<compile_context>
chip_gen: v7x
topology: tpu7x:2x2x1
jax: 0.10.0
libtpu: 0.0.40
codegen_flags: <defaults>
</compile_context>

<pallas_src>
import functools

import jax
import jax.numpy as jnp
from jax.experimental import pallas as pl
from jax.experimental.pallas import tpu as pltpu


C_MID = 32    # hidden width of conv1 / conv2 (matches the PyTorch module)
KTAPS = 9     # 3x3 taps
COL0 = 8      # sublane-aligned column where the image interior starts in xpad
LPAD = 128    # TPU lane width
SPAD = 8      # TPU sublane width


# ----------------------------------------------------------------------------
# Kernel: one batch image per grid step
# ----------------------------------------------------------------------------
def primalnet_kernel(x_ref, pflat_ref,
                     w1_ref, b1_ref, al1_ref,
                     w2_ref, b2_ref, al2_ref,
                     w3t_ref, b3_ref,
                     out_ref,
                     xpad_ref, stack_ref):
    """
    x_ref    : (1, H, W, 32)       concat(primal, div_T, adj_h1), NHWC, channels
                                   zero-padded to 32 by the wrapper
    pflat_ref: (1, n_primal, H*W)  primal in flattened-NCHW layout (residual)
    w1_ref   : (288, 32)           fused-tap conv1 weight (in-ch zero-padded)
    w2_ref   : (288, 32)           fused-tap conv2 weight
    w3t_ref  : (n_primal, 288)     fused-tap conv3 weight, transposed
    b*_ref / al*_ref : biases / PReLU alphas
    out_ref  : (1, n_primal, H*W)  lane-dense output (flattened NCHW)
    xpad_ref : (H+2, W+16, 32)     padded activations, interior at cols [8, 8+W)
    stack_ref: (H*W, 288)          im2col tap stack (matmul dtype)
    """
    _, H, W, _ = x_ref.shape
    f32 = jnp.float32

    # ---- zero only the halo (sublane-aligned slabs); the interior is fully
    #      overwritten every layer, so it is never zeroed ---------------------
    xpad_ref[:, 0:COL0, :] = jnp.zeros((H + 2, COL0, C_MID), f32)
    xpad_ref[:, COL0 + W:COL0 + W + 8, :] = jnp.zeros((H + 2, 8, C_MID), f32)
    xpad_ref[0:1, COL0:COL0 + W, :] = jnp.zeros((1, W, C_MID), f32)
    xpad_ref[H + 1:H + 2, COL0:COL0 + W, :] = jnp.zeros((1, W, C_MID), f32)

    # Layer-1 input: one aligned 32-channel interior store; channels >= cin1
    # are already zero (wrapper pads), so layer 1 never sees stale data.
    xpad_ref[1:H + 1, COL0:COL0 + W, :] = x_ref[0]

    def tap(ky, kx):
        # tap (ky, kx) reads input pixel (h + ky - 1, w + kx - 1):
        # image row r lives at xpad row r+1, image col c at xpad col c+COL0.
        p = xpad_ref[ky:ky + H, COL0 - 1 + kx:COL0 - 1 + kx + W, :]
        return p.reshape(H * W, C_MID)

    def fill_stack():
        # im2col with 128-lane-wide stores: 4 taps are packed into one
        # (H*W, 128) slab before storing -> 2 dense stores + 1 masked tail
        # per layer instead of 9 masked 32-lane column writes.
        dt = stack_ref.dtype
        g0 = jnp.concatenate([tap(0, 0), tap(0, 1), tap(0, 2), tap(1, 0)], -1)
        stack_ref[:, 0 * C_MID:4 * C_MID] = g0.astype(dt)
        g1 = jnp.concatenate([tap(1, 1), tap(1, 2), tap(2, 0), tap(2, 1)], -1)
        stack_ref[:, 4 * C_MID:8 * C_MID] = g1.astype(dt)
        stack_ref[:, 8 * C_MID:9 * C_MID] = tap(2, 2).astype(dt)

    def conv_prelu(w_ref, b_ref, al_ref):
        # ONE fused K=288 MXU matmul per layer, f32 accumulation.
        y = jnp.dot(stack_ref[...], w_ref[...], preferred_element_type=f32)
        y = y + b_ref[...]
        y = jnp.where(y > 0, y, al_ref[...] * y)               # PReLU
        # Sublane-aligned interior writeback for the next layer.
        xpad_ref[1:H + 1, COL0:COL0 + W, :] = y.reshape(H, W, C_MID)

    # layers 1 & 2: conv3x3 + PReLU
    fill_stack()
    conv_prelu(w1_ref, b1_ref, al1_ref)
    fill_stack()
    conv_prelu(w2_ref, b2_ref, al2_ref)

    # layer 3 in the transposed orientation -> (n_primal, H*W): lane-dense
    # output store, residual added in-kernel.
    fill_stack()
    y3 = jax.lax.dot_general(
        w3t_ref[...], stack_ref[...],
        dimension_numbers=(((1,), (1,)), ((), ())),
        preferred_element_type=f32)                            # (n_primal, H*W)
    out_ref[0] = pflat_ref[0] + y3 + b3_ref[...]


# ----------------------------------------------------------------------------
# VMEM sizing helpers
# ----------------------------------------------------------------------------
def _round_up(n, m):
    return -(-n // m) * m


def _vmem_limit_bytes(need_bytes):
    try:
        cap = int(pltpu.get_tpu_info().vmem_capacity_bytes)
    except Exception:                      # older jax / no device info
        cap = 128 * 1024 * 1024
    budget = int(cap * 0.85)
    if need_bytes > budget:
        raise ValueError(
            f"per-image working set ~{need_bytes / 2**20:.1f} MiB exceeds the "
            f"VMEM budget ~{budget / 2**20:.1f} MiB on this TPU generation; "
            "an H-row-tiled grid (3-row halo) is required for this image size")
    return max(32 * 1024 * 1024, min(need_bytes + (4 << 20), budget))


# ----------------------------------------------------------------------------
# Wrapper (NCHW in / NCHW out, matching the PyTorch module)
# ----------------------------------------------------------------------------
@functools.partial(jax.jit, static_argnames=("matmul_dtype",))
def primalnet_forward(primal, div_T, adj_h1, params, matmul_dtype=jnp.bfloat16):
    B, n_primal, H, W = primal.shape
    cin1 = n_primal + 2
    if cin1 > C_MID:
        raise ValueError("n_primal + 2 must be <= 32")
    if W % 8 != 0:
        raise ValueError("W must be a multiple of 8")  # TODO(synk): general W

    # Wrapper glue: channel concat, NHWC transpose, zero-pad channels to 32 so
    # the HBM->VMEM DMA moves contiguous 128-byte rows and the kernel does a
    # single aligned interior store.  No output transpose (kernel writes
    # flattened NCHW; the final reshape is free).
    x = jnp.transpose(jnp.concatenate([primal, div_T, adj_h1], axis=1),
                      (0, 2, 3, 1))                                # (B,H,W,cin1)
    x32 = jnp.pad(x, ((0, 0), (0, 0), (0, 0), (0, C_MID - cin1)))  # (B,H,W,32)
    p_flat = primal.reshape(B, n_primal, H * W)                    # free reshape

    # Fused-tap weights: (3,3,Cin,Cout) -> (288, Cout); layer-1 input channels
    # zero-padded to 32 so all three layers share one K=288 tap stack.
    w1p = jnp.zeros((3, 3, C_MID, C_MID), jnp.float32)
    w1p = w1p.at[:, :, :cin1, :].set(params["w1"])
    wf1 = w1p.reshape(KTAPS * C_MID, C_MID).astype(matmul_dtype)
    wf2 = params["w2"].reshape(KTAPS * C_MID, C_MID).astype(matmul_dtype)
    wf3t = jnp.transpose(
        params["w3"].reshape(KTAPS * C_MID, n_primal)).astype(matmul_dtype)

    b1 = params["b1"].reshape(1, C_MID).astype(jnp.float32)
    al1 = params["alpha1"].reshape(1, C_MID).astype(jnp.float32)
    b2 = params["b2"].reshape(1, C_MID).astype(jnp.float32)
    al2 = params["alpha2"].reshape(1, C_MID).astype(jnp.float32)
    b3 = params["b3"].reshape(n_primal, 1).astype(jnp.float32)

    # Lane-padded per-image VMEM working set -> per-generation vmem limit.
    mm_isz = jnp.dtype(matmul_dtype).itemsize
    xpad_b = (H + 2) * (W + 16) * _round_up(C_MID, LPAD) * 4
    stack_b = _round_up(H * W, SPAD) * _round_up(KTAPS * C_MID, LPAD) * mm_isz
    xin_b = 2 * H * W * _round_up(C_MID, LPAD) * 4                  # dbl-buffered
    io_b = 2 * 2 * _round_up(n_primal, SPAD) * _round_up(H * W, LPAD) * 4
    vmem_limit = _vmem_limit_bytes(xpad_b + stack_b + xin_b + io_b)

    out_flat = pl.pallas_call(
        primalnet_kernel,
        out_shape=jax.ShapeDtypeStruct((B, n_primal, H * W), jnp.float32),
        grid=(B,),
        in_specs=[
            pl.BlockSpec((1, H, W, C_MID), lambda b: (b, 0, 0, 0)),
            pl.BlockSpec((1, n_primal, H * W), lambda b: (b, 0, 0)),
            pl.BlockSpec((KTAPS * C_MID, C_MID), lambda b: (0, 0)),
            pl.BlockSpec((1, C_MID), lambda b: (0, 0)),
            pl.BlockSpec((1, C_MID), lambda b: (0, 0)),
            pl.BlockSpec((KTAPS * C_MID, C_MID), lambda b: (0, 0)),
            pl.BlockSpec((1, C_MID), lambda b: (0, 0)),
            pl.BlockSpec((1, C_MID), lambda b: (0, 0)),
            pl.BlockSpec((n_primal, KTAPS * C_MID), lambda b: (0, 0)),
            pl.BlockSpec((n_primal, 1), lambda b: (0, 0)),
        ],
        out_specs=pl.BlockSpec((1, n_primal, H * W), lambda b: (b, 0, 0)),
        scratch_shapes=[
            pltpu.VMEM((H + 2, W + 16, C_MID), jnp.float32),
            pltpu.VMEM((H * W, KTAPS * C_MID), matmul_dtype),
        ],
        compiler_params=pltpu.CompilerParams(
            dimension_semantics=("parallel",),     # images across TCs (v7x)
            vmem_limit_bytes=vmem_limit),
    )(x32, p_flat, wf1, b1, al1, wf2, b2, al2, wf3t, b3)

    return out_flat.reshape(B, n_primal, H, W)                    # free reshape


# ----------------------------------------------------------------------------
# Parameter init (Xavier-uniform weights, zero biases, PReLU alpha = 0.0;
# same shapes / semantics as the PyTorch module).
# ----------------------------------------------------------------------------
def init_params(key, n_primal):
    def xavier(key, cin, cout, k=3):
        fan_in, fan_out = cin * k * k, cout * k * k
        bound = (6.0 / (fan_in + fan_out)) ** 0.5
        # stored in HWIO layout: (kh, kw, Cin, Cout)
        return jax.random.uniform(key, (k, k, cin, cout), jnp.float32,
                                  minval=-bound, maxval=bound)

    k1, k2, k3 = jax.random.split(key, 3)
    cin = n_primal + 2
    return {
        "w1": xavier(k1, cin, C_MID),
        "b1": jnp.zeros((C_MID,), jnp.float32),
        "alpha1": jnp.zeros((C_MID,), jnp.float32),    # PReLU init=0.0
        "w2": xavier(k2, C_MID, C_MID),
        "b2": jnp.zeros((C_MID,), jnp.float32),
        "alpha2": jnp.zeros((C_MID,), jnp.float32),
        "w3": xavier(k3, C_MID, n_primal),
        "b3": jnp.zeros((n_primal,), jnp.float32),
    }


# ----------------------------------------------------------------------------
# Pure-JAX reference (f32) for the correctness check
# ----------------------------------------------------------------------------
def primalnet_reference(primal, div_T, adj_h1, params):
    x = jnp.concatenate([primal, div_T, adj_h1], axis=1)
    x = jnp.transpose(x, (0, 2, 3, 1))                 # NHWC
    dn = ("NHWC", "HWIO", "NHWC")

    def conv(x, w, b):
        return jax.lax.conv_general_dilated(
            x, w, window_strides=(1, 1), padding="SAME",
            dimension_numbers=dn,
            precision=jax.lax.Precision.HIGHEST) + b

    def prelu(x, a):
        return jnp.where(x > 0, x, a * x)

    y = prelu(conv(x, params["w1"], params["b1"]), params["alpha1"])
    y = prelu(conv(y, params["w2"], params["b2"]), params["alpha2"])
    y = conv(y, params["w3"], params["b3"])
    out = jnp.transpose(primal, (0, 2, 3, 1)) + y
    return jnp.transpose(out, (0, 3, 1, 2))


# ----------------------------------------------------------------------------
if __name__ == "__main__":
    key = jax.random.PRNGKey(0)
    n_primal, B, H, W = 4, 2, 16, 16

    k_p, k_d, k_a, k_w, k_b = jax.random.split(key, 5)
    primal = jax.random.normal(k_p, (B, n_primal, H, W), jnp.float32)
    div_T = jax.random.normal(k_d, (B, 1, H, W), jnp.float32)
    adj_h1 = jax.random.normal(k_a, (B, 1, H, W), jnp.float32)

    params = init_params(k_w, n_primal)
    # Randomize biases / PReLU alphas for the test so broadcast / orientation
    # bugs cannot hide behind all-zero parameters (forward math is unchanged).
    kb1, kb2, kb3, ka1, ka2 = jax.random.split(k_b, 5)
    params["b1"] = 0.1 * jax.random.normal(kb1, (C_MID,), jnp.float32)
    params["b2"] = 0.1 * jax.random.normal(kb2, (C_MID,), jnp.float32)
    params["b3"] = 0.1 * jax.random.normal(kb3, (n_primal,), jnp.float32)
    params["alpha1"] = jax.random.uniform(ka1, (C_MID,), jnp.float32, -0.2, 0.5)
    params["alpha2"] = jax.random.uniform(ka2, (C_MID,), jnp.float32, -0.2, 0.5)

    ref = jax.block_until_ready(
        primalnet_reference(primal, div_T, adj_h1, params))

    # Exact-ish path (f32 MXU operands) -> tight check.
    out_f32 = jax.block_until_ready(
        primalnet_forward(primal, div_T, adj_h1, params,
                          matmul_dtype=jnp.float32))
    assert out_f32.shape == (B, n_primal, H, W)
    err_f32 = float(jnp.max(jnp.abs(out_f32 - ref)))
    assert jnp.allclose(out_f32, ref, atol=5e-3, rtol=5e-3), \
        f"f32 path max abs err {err_f32}"

    # Fast path (bf16 MXU operands, f32 accumulation) -> default.
    out_bf16 = jax.block_until_ready(
        primalnet_forward(primal, div_T, adj_h1, params,
                          matmul_dtype=jnp.bfloat16))
    assert out_bf16.shape == (B, n_primal, H, W)
    err_bf16 = float(jnp.max(jnp.abs(out_bf16 - ref)))
    assert jnp.allclose(out_bf16, ref, atol=5e-2, rtol=5e-2), \
        f"bf16 path max abs err {err_bf16}"

    print("KERNEL_OK")
</pallas_src>

<mosaic_0001>
module attributes {stable_mosaic.version = 11 : i64} {
  func.func @primalnet_kernel(%arg0: i32, %arg1: memref<1x16x16x32xf32, #tpu.memory_space<vmem>>, %arg2: memref<1x4x256xf32, #tpu.memory_space<vmem>>, %arg3: memref<288x32xf32, #tpu.memory_space<vmem>>, %arg4: memref<1x32xf32, #tpu.memory_space<vmem>>, %arg5: memref<1x32xf32, #tpu.memory_space<vmem>>, %arg6: memref<288x32xf32, #tpu.memory_space<vmem>>, %arg7: memref<1x32xf32, #tpu.memory_space<vmem>>, %arg8: memref<1x32xf32, #tpu.memory_space<vmem>>, %arg9: memref<4x288xf32, #tpu.memory_space<vmem>>, %arg10: memref<4x1xf32, #tpu.memory_space<vmem>>, %arg11: memref<1x4x256xf32, #tpu.memory_space<vmem>>, %arg12: memref<18x32x32xf32, #tpu.memory_space<vmem>>, %arg13: memref<256x288xf32, #tpu.memory_space<vmem>>) attributes {dimension_semantics = [#tpu.dimension_semantics<parallel>], iteration_bounds = array<i64: 2>, scalar_prefetch = 0 : i64, scratch_operands = 2 : i64, tpu.core_type = #tpu.core_type<tc>, window_params = [{transform_indices = @transform_0, window_bounds = array<i64: 1, 16, 16, 32>}, {transform_indices = @transform_1, window_bounds = array<i64: 1, 4, 256>}, {pipeline_mode = #tpu.pipeline_mode<synchronous>, transform_indices = @transform_2, window_bounds = array<i64: 288, 32>}, {pipeline_mode = #tpu.pipeline_mode<synchronous>, transform_indices = @transform_3, window_bounds = array<i64: 1, 32>}, {pipeline_mode = #tpu.pipeline_mode<synchronous>, transform_indices = @transform_4, window_bounds = array<i64: 1, 32>}, {pipeline_mode = #tpu.pipeline_mode<synchronous>, transform_indices = @transform_5, window_bounds = array<i64: 288, 32>}, {pipeline_mode = #tpu.pipeline_mode<synchronous>, transform_indices = @transform_6, window_bounds = array<i64: 1, 32>}, {pipeline_mode = #tpu.pipeline_mode<synchronous>, transform_indices = @transform_7, window_bounds = array<i64: 1, 32>}, {pipeline_mode = #tpu.pipeline_mode<synchronous>, transform_indices = @transform_8, window_bounds = array<i64: 4, 288>}, {pipeline_mode = #tpu.pipeline_mode<synchronous>, transform_indices = @transform_9, window_bounds = array<i64: 4, 1>}, {transform_indices = @transform_10, window_bounds = array<i64: 1, 4, 256>}]} {
    %cst = arith.constant 0.000000e+00 : f32
    %0 = vector.broadcast %cst : f32 to vector<18x8x32xf32>
    %c0 = arith.constant 0 : index
    %c0_0 = arith.constant 0 : index
    %c0_1 = arith.constant 0 : index
    %1 = vector.load %arg12[%c0, %c0_0, %c0_1] : memref<18x32x32xf32, #tpu.memory_space<vmem>>, vector<18x8x32xf32>
    tpu.vector_store %arg12[%c0, %c0_0, %c0_1], %0 {strides = array<i32>} : memref<18x32x32xf32, #tpu.memory_space<vmem>>, vector<18x8x32xf32>,
    %cst_2 = arith.constant 0.000000e+00 : f32
    %2 = vector.broadcast %cst_2 : f32 to vector<18x8x32xf32>
    %c0_3 = arith.constant 0 : index
    %c24 = arith.constant 24 : index
    %c0_4 = arith.constant 0 : index
    %3 = vector.load %arg12[%c0_3, %c24, %c0_4] : memref<18x32x32xf32, #tpu.memory_space<vmem>>, vector<18x8x32xf32>
    tpu.vector_store %arg12[%c0_3, %c24, %c0_4], %2 {strides = array<i32>} : memref<18x32x32xf32, #tpu.memory_space<vmem>>, vector<18x8x32xf32>,
    %cst_5 = arith.constant 0.000000e+00 : f32
    %4 = vector.broadcast %cst_5 : f32 to vector<1x16x32xf32>
    %c0_6 = arith.constant 0 : index
    %c8 = arith.constant 8 : index
    %c0_7 = arith.constant 0 : index
    %5 = vector.load %arg12[%c0_6, %c8, %c0_7] : memref<18x32x32xf32, #tpu.memory_space<vmem>>, vector<1x16x32xf32>
    tpu.vector_store %arg12[%c0_6, %c8, %c0_7], %4 {strides = array<i32>} : memref<18x32x32xf32, #tpu.memory_space<vmem>>, vector<1x16x32xf32>,
    %cst_8 = arith.constant 0.000000e+00 : f32
    %6 = vector.broadcast %cst_8 : f32 to vector<1x16x32xf32>
    %c17 = arith.constant 17 : index
    %c8_9 = arith.constant 8 : index
    %c0_10 = arith.constant 0 : index
    %7 = vector.load %arg12[%c17, %c8_9, %c0_10] : memref<18x32x32xf32, #tpu.memory_space<vmem>>, vector<1x16x32xf32>
    tpu.vector_store %arg12[%c17, %c8_9, %c0_10], %6 {strides = array<i32>} : memref<18x32x32xf32, #tpu.memory_space<vmem>>, vector<1x16x32xf32>,
    %c0_11 = arith.constant 0 : index
    %c0_12 = arith.constant 0 : index
    %c0_13 = arith.constant 0 : index
    %c0_14 = arith.constant 0 : index
    %8 = vector.load %arg1[%c0_11, %c0_12, %c0_13, %c0_14] : memref<1x16x16x32xf32, #tpu.memory_space<vmem>>, vector<1x16x16x32xf32>
    %9 = vector.shape_cast %8 : vector<1x16x16x32xf32> to vector<16x16x32xf32>
    %c1 = arith.constant 1 : index
    %c8_15 = arith.constant 8 : index
    %c0_16 = arith.constant 0 : index
    %10 = vector.load %arg12[%c1, %c8_15, %c0_16] : memref<18x32x32xf32, #tpu.memory_space<vmem>>, vector<16x16x32xf32>
    tpu.vector_store %arg12[%c1, %c8_15, %c0_16], %9 {strides = array<i32>} : memref<18x32x32xf32, #tpu.memory_space<vmem>>, vector<16x16x32xf32>,
    %c0_17 = arith.constant 0 : index
    %c7 = arith.constant 7 : index
    %c0_18 = arith.constant 0 : index
    %11 = vector.load %arg12[%c0_17, %c7, %c0_18] : memref<18x32x32xf32, #tpu.memory_space<vmem>>, vector<16x16x32xf32>
    %12 = vector.shape_cast %11 : vector<16x16x32xf32> to vector<256x32xf32>
    %c0_19 = arith.constant 0 : index
    %c8_20 = arith.constant 8 : index
    %c0_21 = arith.constant 0 : index
    %13 = vector.load %arg12[%c0_19, %c8_20, %c0_21] : memref<18x32x32xf32, #tpu.memory_space<vmem>>, vector<16x16x32xf32>
    %14 = vector.shape_cast %13 : vector<16x16x32xf32> to vector<256x32xf32>
    %c0_22 = arith.constant 0 : index
    %c9 = arith.constant 9 : index
    %c0_23 = arith.constant 0 : index
    %15 = vector.load %arg12[%c0_22, %c9, %c0_23] : memref<18x32x32xf32, #tpu.memory_space<vmem>>, vector<16x16x32xf32>
    %16 = vector.shape_cast %15 : vector<16x16x32xf32> to vector<256x32xf32>
    %c1_24 = arith.constant 1 : index
    %c7_25 = arith.constant 7 : index
    %c0_26 = arith.constant 0 : index
    %17 = vector.load %arg12[%c1_24, %c7_25, %c0_26] : memref<18x32x32xf32, #tpu.memory_space<vmem>>, vector<16x16x32xf32>
    %18 = vector.shape_cast %17 : vector<16x16x32xf32> to vector<256x32xf32>
    %19 = tpu.concatenate %12, %14, %16, %18 in 1 : vector<256x32xf32>, vector<256x32xf32>, vector<256x32xf32>, vector<256x32xf32> -> vector<256x128xf32>
    %c0_27 = arith.constant 0 : index
    %c0_28 = arith.constant 0 : index
    %20 = vector.load %arg13[%c0_27, %c0_28] : memref<256x288xf32, #tpu.memory_space<vmem>>, vector<256x128xf32>
    tpu.vector_store %arg13[%c0_27, %c0_28], %19 {strides = array<i32>} : memref<256x288xf32, #tpu.memory_space<vmem>>, vector<256x128xf32>,
    %c1_29 = arith.constant 1 : index
    %c8_30 = arith.constant 8 : index
    %c0_31 = arith.constant 0 : index
    %21 = vector.load %arg12[%c1_29, %c8_30, %c0_31] : memref<18x32x32xf32, #tpu.memory_space<vmem>>, vector<16x16x32xf32>
    %22 = vector.shape_cast %21 : vector<16x16x32xf32> to vector<256x32xf32>
    %c1_32 = arith.constant 1 : index
    %c9_33 = arith.constant 9 : index
    %c0_34 = arith.constant 0 : index
    %23 = vector.load %arg12[%c1_32, %c9_33, %c0_34] : memref<18x32x32xf32, #tpu.memory_space<vmem>>, vector<16x16x32xf32>
    %24 = vector.shape_cast %23 : vector<16x16x32xf32> to vector<256x32xf32>
    %c2 = arith.constant 2 : index
    %c7_35 = arith.constant 7 : index
    %c0_36 = arith.constant 0 : index
    %25 = vector.load %arg12[%c2, %c7_35, %c0_36] : memref<18x32x32xf32, #tpu.memory_space<vmem>>, vector<16x16x32xf32>
    %26 = vector.shape_cast %25 : vector<16x16x32xf32> to vector<256x32xf32>
    %c2_37 = arith.constant 2 : index
    %c8_38 = arith.constant 8 : index
    %c0_39 = arith.constant 0 : index
    %27 = vector.load %arg12[%c2_37, %c8_38, %c0_39] : memref<18x32x32xf32, #tpu.memory_space<vmem>>, vector<16x16x32xf32>
    %28 = vector.shape_cast %27 : vector<16x16x32xf32> to vector<256x32xf32>
    %29 = tpu.concatenate %22, %24, %26, %28 in 1 : vector<256x32xf32>, vector<256x32xf32>, vector<256x32xf32>, vector<256x32xf32> -> vector<256x128xf32>
    %c0_40 = arith.constant 0 : index
    %c128 = arith.constant 128 : index
    %30 = vector.load %arg13[%c0_40, %c128] : memref<256x288xf32, #tpu.memory_space<vmem>>, vector<256x128xf32>
    tpu.vector_store %arg13[%c0_40, %c128], %29 {strides = array<i32>} : memref<256x288xf32, #tpu.memory_space<vmem>>, vector<256x128xf32>,
    %c2_41 = arith.constant 2 : index
    %c9_42 = arith.constant 9 : index
    %c0_43 = arith.constant 0 : index
    %31 = vector.load %arg12[%c2_41, %c9_42, %c0_43] : memref<18x32x32xf32, #tpu.memory_space<vmem>>, vector<16x16x32xf32>
    %32 = vector.shape_cast %31 : vector<16x16x32xf32> to vector<256x32xf32>
    %c0_44 = arith.constant 0 : index
    %c256 = arith.constant 256 : index
    %33 = vector.load %arg13[%c0_44, %c256] : memref<256x288xf32, #tpu.memory_space<vmem>>, vector<256x32xf32>
    tpu.vector_store %arg13[%c0_44, %c256], %32 {strides = array<i32>} : memref<256x288xf32, #tpu.memory_space<vmem>>, vector<256x32xf32>,
    %c0_45 = arith.constant 0 : index
    %c0_46 = arith.constant 0 : index
    %34 = vector.load %arg13[%c0_45, %c0_46] : memref<256x288xf32, #tpu.memory_space<vmem>>, vector<256x288xf32>
    %c0_47 = arith.constant 0 : index
    %c0_48 = arith.constant 0 : index
    %35 = vector.load %arg3[%c0_47, %c0_48] : memref<288x32xf32, #tpu.memory_space<vmem>>, vector<288x32xf32>
    %cst_49 = arith.constant dense<0.000000e+00> : vector<256x32xf32>
    %36 = tpu.matmul %34, %35, %cst_49 {dimension_numbers = #tpu.dot_dimension_numbers<[1], [0], [0], [1], [0, 0, 1, 1], [], []>} : vector<256x288xf32>, vector<288x32xf32>, vector<256x32xf32> -> vector<256x32xf32>
    %c0_50 = arith.constant 0 : index
    %c0_51 = arith.constant 0 : index
    %37 = vector.load %arg4[%c0_50, %c0_51] : memref<1x32xf32, #tpu.memory_space<vmem>>, vector<1x32xf32>
    %38 = vector.broadcast %37 : vector<1x32xf32> to vector<256x32xf32>
    %39 = arith.addf %36, %38 : vector<256x32xf32>
    %cst_52 = arith.constant 0.000000e+00 : f32
    %40 = vector.broadcast %cst_52 : f32 to vector<256x32xf32>
    %41 = arith.cmpf ogt, %39, %40 : vector<256x32xf32>
    %c0_53 = arith.constant 0 : index
    %c0_54 = arith.constant 0 : index
    %42 = vector.load %arg5[%c0_53, %c0_54] : memref<1x32xf32, #tpu.memory_space<vmem>>, vector<1x32xf32>
    %43 = vector.broadcast %42 : vector<1x32xf32> to vector<256x32xf32>
    %44 = arith.mulf %43, %39 : vector<256x32xf32>
    %45 = arith.select %41, %39, %44 : vector<256x32xi1>, vector<256x32xf32>
    %46 = vector.shape_cast %45 : vector<256x32xf32> to vector<16x16x32xf32>
    %c1_55 = arith.constant 1 : index
    %c8_56 = arith.constant 8 : index
    %c0_57 = arith.constant 0 : index
    %47 = vector.load %arg12[%c1_55, %c8_56, %c0_57] : memref<18x32x32xf32, #tpu.memory_space<vmem>>, vector<16x16x32xf32>
    tpu.vector_store %arg12[%c1_55, %c8_56, %c0_57], %46 {strides = array<i32>} : memref<18x32x32xf32, #tpu.memory_space<vmem>>, vector<16x16x32xf32>,
    %c0_58 = arith.constant 0 : index
    %c7_59 = arith.constant 7 : index
    %c0_60 = arith.constant 0 : index
    %48 = vector.load %arg12[%c0_58, %c7_59, %c0_60] : memref<18x32x32xf32, #tpu.memory_space<vmem>>, vector<16x16x32xf32>
    %49 = vector.shape_cast %48 : vector<16x16x32xf32> to vector<256x32xf32>
    %c0_61 = arith.constant 0 : index
    %c8_62 = arith.constant 8 : index
    %c0_63 = arith.constant 0 : index
    %50 = vector.load %arg12[%c0_61, %c8_62, %c0_63] : memref<18x32x32xf32, #tpu.memory_space<vmem>>, vector<16x16x32xf32>
    %51 = vector.shape_cast %50 : vector<16x16x32xf32> to vector<256x32xf32>
    %c0_64 = arith.constant 0 : index
    %c9_65 = arith.constant 9 : index
    %c0_66 = arith.constant 0 : index
    %52 = vector.load %arg12[%c0_64, %c9_65, %c0_66] : memref<18x32x32xf32, #tpu.memory_space<vmem>>, vector<16x16x32xf32>
    %53 = vector.shape_cast %52 : vector<16x16x32xf32> to vector<256x32xf32>
    %c1_67 = arith.constant 1 : index
    %c7_68 = arith.constant 7 : index
    %c0_69 = arith.constant 0 : index
    %54 = vector.load %arg12[%c1_67, %c7_68, %c0_69] : memref<18x32x32xf32, #tpu.memory_space<vmem>>, vector<16x16x32xf32>
    %55 = vector.shape_cast %54 : vector<16x16x32xf32> to vector<256x32xf32>
    %56 = tpu.concatenate %49, %51, %53, %55 in 1 : vector<256x32xf32>, vector<256x32xf32>, vector<256x32xf32>, vector<256x32xf32> -> vector<256x128xf32>
    %c0_70 = arith.constant 0 : index
    %c0_71 = arith.constant 0 : index
    %57 = vector.load %arg13[%c0_70, %c0_71] : memref<256x288xf32, #tpu.memory_space<vmem>>, vector<256x128xf32>
    tpu.vector_store %arg13[%c0_70, %c0_71], %56 {strides = array<i32>} : memref<256x288xf32, #tpu.memory_space<vmem>>, vector<256x128xf32>,
    %c1_72 = arith.constant 1 : index
    %c8_73 = arith.constant 8 : index
    %c0_74 = arith.constant 0 : index
    %58 = vector.load %arg12[%c1_72, %c8_73, %c0_74] : memref<18x32x32xf32, #tpu.memory_space<vmem>>, vector<16x16x32xf32>
    %59 = vector.shape_cast %58 : vector<16x16x32xf32> to vector<256x32xf32>
    %c1_75 = arith.constant 1 : index
    %c9_76 = arith.constant 9 : index
    %c0_77 = arith.constant 0 : index
    %60 = vector.load %arg12[%c1_75, %c9_76, %c0_77] : memref<18x32x32xf32, #tpu.memory_space<vmem>>, vector<16x16x32xf32>
    %61 = vector.shape_cast %60 : vector<16x16x32xf32> to vector<256x32xf32>
    %c2_78 = arith.constant 2 : index
    %c7_79 = arith.constant 7 : index
    %c0_80 = arith.constant 0 : index
    %62 = vector.load %arg12[%c2_78, %c7_79, %c0_80] : memref<18x32x32xf32, #tpu.memory_space<vmem>>, vector<16x16x32xf32>
    %63 = vector.shape_cast %62 : vector<16x16x32xf32> to vector<256x32xf32>
    %c2_81 = arith.constant 2 : index
    %c8_82 = arith.constant 8 : index
    %c0_83 = arith.constant 0 : index
    %64 = vector.load %arg12[%c2_81, %c8_82, %c0_83] : memref<18x32x32xf32, #tpu.memory_space<vmem>>, vector<16x16x32xf32>
    %65 = vector.shape_cast %64 : vector<16x16x32xf32> to vector<256x32xf32>
    %66 = tpu.concatenate %59, %61, %63, %65 in 1 : vector<256x32xf32>, vector<256x32xf32>, vector<256x32xf32>, vector<256x32xf32> -> vector<256x128xf32>
    %c0_84 = arith.constant 0 : index
    %c128_85 = arith.constant 128 : index
    %67 = vector.load %arg13[%c0_84, %c128_85] : memref<256x288xf32, #tpu.memory_space<vmem>>, vector<256x128xf32>
    tpu.vector_store %arg13[%c0_84, %c128_85], %66 {strides = array<i32>} : memref<256x288xf32, #tpu.memory_space<vmem>>, vector<256x128xf32>,
    %c2_86 = arith.constant 2 : index
    %c9_87 = arith.constant 9 : index
    %c0_88 = arith.constant 0 : index
    %68 = vector.load %arg12[%c2_86, %c9_87, %c0_88] : memref<18x32x32xf32, #tpu.memory_space<vmem>>, vector<16x16x32xf32>
    %69 = vector.shape_cast %68 : vector<16x16x32xf32> to vector<256x32xf32>
    %c0_89 = arith.constant 0 : index
    %c256_90 = arith.constant 256 : index
    %70 = vector.load %arg13[%c0_89, %c256_90] : memref<256x288xf32, #tpu.memory_space<vmem>>, vector<256x32xf32>
    tpu.vector_store %arg13[%c0_89, %c256_90], %69 {strides = array<i32>} : memref<256x288xf32, #tpu.memory_space<vmem>>, vector<256x32xf32>,
    %c0_91 = arith.constant 0 : index
    %c0_92 = arith.constant 0 : index
    %71 = vector.load %arg13[%c0_91, %c0_92] : memref<256x288xf32, #tpu.memory_space<vmem>>, vector<256x288xf32>
    %c0_93 = arith.constant 0 : index
    %c0_94 = arith.constant 0 : index
    %72 = vector.load %arg6[%c0_93, %c0_94] : memref<288x32xf32, #tpu.memory_space<vmem>>, vector<288x32xf32>
    %cst_95 = arith.constant dense<0.000000e+00> : vector<256x32xf32>
    %73 = tpu.matmul %71, %72, %cst_95 {dimension_numbers = #tpu.dot_dimension_numbers<[1], [0], [0], [1], [0, 0, 1, 1], [], []>} : vector<256x288xf32>, vector<288x32xf32>, vector<256x32xf32> -> vector<256x32xf32>
    %c0_96 = arith.constant 0 : index
    %c0_97 = arith.constant 0 : index
    %74 = vector.load %arg7[%c0_96, %c0_97] : memref<1x32xf32, #tpu.memory_space<vmem>>, vector<1x32xf32>
    %75 = vector.broadcast %74 : vector<1x32xf32> to vector<256x32xf32>
    %76 = arith.addf %73, %75 : vector<256x32xf32>
    %cst_98 = arith.constant 0.000000e+00 : f32
    %77 = vector.broadcast %cst_98 : f32 to vector<256x32xf32>
    %78 = arith.cmpf ogt, %76, %77 : vector<256x32xf32>
    %c0_99 = arith.constant 0 : index
    %c0_100 = arith.constant 0 : index
    %79 = vector.load %arg8[%c0_99, %c0_100] : memref<1x32xf32, #tpu.memory_space<vmem>>, vector<1x32xf32>
    %80 = vector.broadcast %79 : vector<1x32xf32> to vector<256x32xf32>
    %81 = arith.mulf %80, %76 : vector<256x32xf32>
    %82 = arith.select %78, %76, %81 : vector<256x32xi1>, vector<256x32xf32>
    %83 = vector.shape_cast %82 : vector<256x32xf32> to vector<16x16x32xf32>
    %c1_101 = arith.constant 1 : index
    %c8_102 = arith.constant 8 : index
    %c0_103 = arith.constant 0 : index
    %84 = vector.load %arg12[%c1_101, %c8_102, %c0_103] : memref<18x32x32xf32, #tpu.memory_space<vmem>>, vector<16x16x32xf32>
    tpu.vector_store %arg12[%c1_101, %c8_102, %c0_103], %83 {strides = array<i32>} : memref<18x32x32xf32, #tpu.memory_space<vmem>>, vector<16x16x32xf32>,
    %c0_104 = arith.constant 0 : index
    %c7_105 = arith.constant 7 : index
    %c0_106 = arith.constant 0 : index
    %85 = vector.load %arg12[%c0_104, %c7_105, %c0_106] : memref<18x32x32xf32, #tpu.memory_space<vmem>>, vector<16x16x32xf32>
    %86 = vector.shape_cast %85 : vector<16x16x32xf32> to vector<256x32xf32>
    %c0_107 = arith.constant 0 : index
    %c8_108 = arith.constant 8 : index
    %c0_109 = arith.constant 0 : index
    %87 = vector.load %arg12[%c0_107, %c8_108, %c0_109] : memref<18x32x32xf32, #tpu.memory_space<vmem>>, vector<16x16x32xf32>
    %88 = vector.shape_cast %87 : vector<16x16x32xf32> to vector<256x32xf32>
    %c0_110 = arith.constant 0 : index
    %c9_111 = arith.constant 9 : index
    %c0_112 = arith.constant 0 : index
    %89 = vector.load %arg12[%c0_110, %c9_111, %c0_112] : memref<18x32x32xf32, #tpu.memory_space<vmem>>, vector<16x16x32xf32>
    %90 = vector.shape_cast %89 : vector<16x16x32xf32> to vector<256x32xf32>
    %c1_113 = arith.constant 1 : index
    %c7_114 = arith.constant 7 : index
    %c0_115 = arith.constant 0 : index
    %91 = vector.load %arg12[%c1_113, %c7_114, %c0_115] : memref<18x32x32xf32, #tpu.memory_space<vmem>>, vector<16x16x32xf32>
    %92 = vector.shape_cast %91 : vector<16x16x32xf32> to vector<256x32xf32>
    %93 = tpu.concatenate %86, %88, %90, %92 in 1 : vector<256x32xf32>, vector<256x32xf32>, vector<256x32xf32>, vector<256x32xf32> -> vector<256x128xf32>
    %c0_116 = arith.constant 0 : index
    %c0_117 = arith.constant 0 : index
    %94 = vector.load %arg13[%c0_116, %c0_117] : memref<256x288xf32, #tpu.memory_space<vmem>>, vector<256x128xf32>
    tpu.vector_store %arg13[%c0_116, %c0_117], %93 {strides = array<i32>} : memref<256x288xf32, #tpu.memory_space<vmem>>, vector<256x128xf32>,
    %c1_118 = arith.constant 1 : index
    %c8_119 = arith.constant 8 : index
    %c0_120 = arith.constant 0 : index
    %95 = vector.load %arg12[%c1_118, %c8_119, %c0_120] : memref<18x32x32xf32, #tpu.memory_space<vmem>>, vector<16x16x32xf32>
    %96 = vector.shape_cast %95 : vector<16x16x32xf32> to vector<256x32xf32>
    %c1_121 = arith.constant 1 : index
    %c9_122 = arith.constant 9 : index
    %c0_123 = arith.constant 0 : index
    %97 = vector.load %arg12[%c1_121, %c9_122, %c0_123] : memref<18x32x32xf32, #tpu.memory_space<vmem>>, vector<16x16x32xf32>
    %98 = vector.shape_cast %97 : vector<16x16x32xf32> to vector<256x32xf32>
    %c2_124 = arith.constant 2 : index
    %c7_125 = arith.constant 7 : index
    %c0_126 = arith.constant 0 : index
    %99 = vector.load %arg12[%c2_124, %c7_125, %c0_126] : memref<18x32x32xf32, #tpu.memory_space<vmem>>, vector<16x16x32xf32>
    %100 = vector.shape_cast %99 : vector<16x16x32xf32> to vector<256x32xf32>
    %c2_127 = arith.constant 2 : index
    %c8_128 = arith.constant 8 : index
    %c0_129 = arith.constant 0 : index
    %101 = vector.load %arg12[%c2_127, %c8_128, %c0_129] : memref<18x32x32xf32, #tpu.memory_space<vmem>>, vector<16x16x32xf32>
    %102 = vector.shape_cast %101 : vector<16x16x32xf32> to vector<256x32xf32>
    %103 = tpu.concatenate %96, %98, %100, %102 in 1 : vector<256x32xf32>, vector<256x32xf32>, vector<256x32xf32>, vector<256x32xf32> -> vector<256x128xf32>
    %c0_130 = arith.constant 0 : index
    %c128_131 = arith.constant 128 : index
    %104 = vector.load %arg13[%c0_130, %c128_131] : memref<256x288xf32, #tpu.memory_space<vmem>>, vector<256x128xf32>
    tpu.vector_store %arg13[%c0_130, %c128_131], %103 {strides = array<i32>} : memref<256x288xf32, #tpu.memory_space<vmem>>, vector<256x128xf32>,
    %c2_132 = arith.constant 2 : index
    %c9_133 = arith.constant 9 : index
    %c0_134 = arith.constant 0 : index
    %105 = vector.load %arg12[%c2_132, %c9_133, %c0_134] : memref<18x32x32xf32, #tpu.memory_space<vmem>>, vector<16x16x32xf32>
    %106 = vector.shape_cast %105 : vector<16x16x32xf32> to vector<256x32xf32>
    %c0_135 = arith.constant 0 : index
    %c256_136 = arith.constant 256 : index
    %107 = vector.load %arg13[%c0_135, %c256_136] : memref<256x288xf32, #tpu.memory_space<vmem>>, vector<256x32xf32>
    tpu.vector_store %arg13[%c0_135, %c256_136], %106 {strides = array<i32>} : memref<256x288xf32, #tpu.memory_space<vmem>>, vector<256x32xf32>,
    %c0_137 = arith.constant 0 : index
    %c0_138 = arith.constant 0 : index
    %108 = vector.load %arg9[%c0_137, %c0_138] : memref<4x288xf32, #tpu.memory_space<vmem>>, vector<4x288xf32>
    %c0_139 = arith.constant 0 : index
    %c0_140 = arith.constant 0 : index
    %109 = vector.load %arg13[%c0_139, %c0_140] : memref<256x288xf32, #tpu.memory_space<vmem>>, vector<256x288xf32>
    %cst_141 = arith.constant dense<0.000000e+00> : vector<4x256xf32>
    %110 = tpu.matmul %108, %109, %cst_141 {dimension_numbers = #tpu.dot_dimension_numbers<[1], [1], [0], [0], [0, 0, 1, 0], [], []>} : vector<4x288xf32>, vector<256x288xf32>, vector<4x256xf32> -> vector<4x256xf32>
    %c0_142 = arith.constant 0 : index
    %c0_143 = arith.constant 0 : index
    %c0_144 = arith.constant 0 : index
    %111 = vector.load %arg2[%c0_142, %c0_143, %c0_144] : memref<1x4x256xf32, #tpu.memory_space<vmem>>, vector<1x4x256xf32>
    %112 = vector.shape_cast %111 : vector<1x4x256xf32> to vector<4x256xf32>
    %113 = arith.addf %112, %110 : vector<4x256xf32>
    %c0_145 = arith.constant 0 : index
    %c0_146 = arith.constant 0 : index
    %114 = vector.load %arg10[%c0_145, %c0_146] : memref<4x1xf32, #tpu.memory_space<vmem>>, vector<4x1xf32>
    %115 = vector.broadcast %114 : vector<4x1xf32> to vector<4x256xf32>
    %116 = arith.addf %113, %115 : vector<4x256xf32>
    %c0_147 = arith.constant 0 : index
    %c0_148 = arith.constant 0 : index
    %c0_149 = arith.constant 0 : index
    %117 = vector.load %arg11[%c0_147, %c0_148, %c0_149] : memref<1x4x256xf32, #tpu.memory_space<vmem>>, vector<1x4x256xf32>
    %118 = vector.shape_cast %117 : vector<1x4x256xf32> to vector<4x256xf32>
    %119 = vector.shape_cast %116 : vector<4x256xf32> to vector<1x4x256xf32>
    tpu.vector_store %arg11[%c0_147, %c0_148, %c0_149], %119 {strides = array<i32>} : memref<1x4x256xf32, #tpu.memory_space<vmem>>, vector<1x4x256xf32>,
    return
  }
  func.func @transform_0(%arg0: i32) -> (i32, i32, i32, i32) {
    %c0_i32 = arith.constant 0 : i32
    %c0_i32_0 = arith.constant 0 : i32
    %c0_i32_1 = arith.constant 0 : i32
    %c0_i32_2 = arith.constant 0 : i32
    return %arg0, %c0_i32, %c0_i32_0, %c0_i32_1 : i32, i32, i32, i32
  }
  func.func @transform_1(%arg0: i32) -> (i32, i32, i32) {
    %c0_i32 = arith.constant 0 : i32
    %c0_i32_0 = arith.constant 0 : i32
    %c0_i32_1 = arith.constant 0 : i32
    return %arg0, %c0_i32, %c0_i32_0 : i32, i32, i32
  }
  func.func @transform_2(%arg0: i32) -> (i32, i32) {
    %c0_i32 = arith.constant 0 : i32
    %c0_i32_0 = arith.constant 0 : i32
    %c0_i32_1 = arith.constant 0 : i32
    return %c0_i32, %c0_i32_0 : i32, i32
  }
  func.func @transform_3(%arg0: i32) -> (i32, i32) {
    %c0_i32 = arith.constant 0 : i32
    %c0_i32_0 = arith.constant 0 : i32
    %c0_i32_1 = arith.constant 0 : i32
    return %c0_i32, %c0_i32_0 : i32, i32
  }
  func.func @transform_4(%arg0: i32) -> (i32, i32) {
    %c0_i32 = arith.constant 0 : i32
    %c0_i32_0 = arith.constant 0 : i32
    %c0_i32_1 = arith.constant 0 : i32
    return %c0_i32, %c0_i32_0 : i32, i32
  }
  func.func @transform_5(%arg0: i32) -> (i32, i32) {
    %c0_i32 = arith.constant 0 : i32
    %c0_i32_0 = arith.constant 0 : i32
    %c0_i32_1 = arith.constant 0 : i32
    return %c0_i32, %c0_i32_0 : i32, i32
  }
  func.func @transform_6(%arg0: i32) -> (i32, i32) {
    %c0_i32 = arith.constant 0 : i32
    %c0_i32_0 = arith.constant 0 : i32
    %c0_i32_1 = arith.constant 0 : i32
    return %c0_i32, %c0_i32_0 : i32, i32
  }
  func.func @transform_7(%arg0: i32) -> (i32, i32) {
    %c0_i32 = arith.constant 0 : i32
    %c0_i32_0 = arith.constant 0 : i32
    %c0_i32_1 = arith.constant 0 : i32
    return %c0_i32, %c0_i32_0 : i32, i32
  }
  func.func @transform_8(%arg0: i32) -> (i32, i32) {
    %c0_i32 = arith.constant 0 : i32
    %c0_i32_0 = arith.constant 0 : i32
    %c0_i32_1 = arith.constant 0 : i32
    return %c0_i32, %c0_i32_0 : i32, i32
  }
  func.func @transform_9(%arg0: i32) -> (i32, i32) {
    %c0_i32 = arith.constant 0 : i32
    %c0_i32_0 = arith.constant 0 : i32
    %c0_i32_1 = arith.constant 0 : i32
    return %c0_i32, %c0_i32_0 : i32, i32
  }
  func.func @transform_10(%arg0: i32) -> (i32, i32, i32) {
    %c0_i32 = arith.constant 0 : i32
    %c0_i32_0 = arith.constant 0 : i32
    %c0_i32_1 = arith.constant 0 : i32
    return %arg0, %c0_i32, %c0_i32_0 : i32, i32, i32
  }
}

</mosaic_0001>

<bundles_post_ra>
// kernel: primalnet_forward.1
= control target key start
LH: loop header
LB: loop body
LE: loop exit
PB: predicated region body
PF: predicated region fallthrough
CT: control target
= control target key end

     0   :  { %s7247_s13 = smov 0   ;;  %s10907_s0 = inlined_call_operand.vmem [shape: f32[2,16,16,32], index: 0, kind: input, shape index: {}]   ;;  %s10908_s1 = inlined_call_operand.vmem [shape: f32[2,4,256], index: 1, kind: input, shape index: {}]   ;;  %s10909_s2 = inlined_call_operand.vmem [shape: f32[288,32], index: 2, kind: input, shape index: {}]   ;;  %s10910_s3 = inlined_call_operand.vmem [shape: f32[1,32], index: 3, kind: input, shape index: {}]   ;;  %s10911_s4 = inlined_call_operand.vmem [shape: f32[1,32], index: 4, kind: input, shape index: {}]   ;;  %s10912_s5 = inlined_call_operand.vmem [shape: f32[288,32], index: 5, kind: input, shape index: {}]   ;;  %s10913_s6 = inlined_call_operand.vmem [shape: f32[1,32], index: 6, kind: input, shape index: {}]   ;;  %s10914_s7 = inlined_call_operand.vmem [shape: f32[1,32], index: 7, kind: input, shape index: {}]   ;;  %s10915_s8 = inlined_call_operand.vmem [shape: f32[4,288], index: 8, kind: input, shape index: {}]   ;;  %s10916_s9 = inlined_call_operand.vmem [shape: f32[4,1], index: 9, kind: input, shape index: {}]   ;;  %s10917_s10 = inlined_call_operand.vmem [shape: f32[2,4,256], index: 10, kind: output, shape index: {}]  }
   0x1 LB: > { %s6592_s14 = sadd.s32 4294967295, %s7183_s13   ;;  %p6596_p0 = scmp.ge.s32.totalorder %s7183_s13, 1  ;;  %s7183_s13 = sphi %s7247_s13, %s20_s13  }
   0x2   : > { %p322_p1 = scmp.lt.s32.totalorder %s7183_s13, 3 }
   0x4   : > { %p323_p2 = pnand %p6596_p0, %p322_p1 }
   0x6   : > { %326 = sbr.rel (%p323_p2) target bundleno = 1747 (0x6d3), region = 60 }
   0xd   : > { %vm380_vm0 = vcmask 261120   ;;  %p7257_p3 = scmp.lt.s32.totalorder %s6592_s14, 1  ;;  %v7185_v0 = vmov 0.0   ;;  %s7186_s20 = smov 32   ;;  %v1930_v62 = vld [vmem:[%s10909_s2] sm:$0xff]  ;;  %v1931_v63 = vld [vmem:[%s10909_s2 + $0x8] sm:$0xff] }
   0xe   : > { %417 = vst.msk [vmem:[#allocation2 + $0x8] sm:$0xff] %vm380_vm0, %v7185_v0  ;;  %381 = vst.msk [vmem:[#allocation2] sm:$0xff] %vm380_vm0, %v7185_v0  ;;  %s7188_s29 = smov 64   ;;  %vm1064_vm1 = vcmask 785408   ;;  %vm1031_vm2 = vcmask 523264  }
   0xf   : > { %382 = vst.msk [vmem:[#allocation2 + $0x20] sm:$0xff] %vm380_vm0, %v7185_v0  ;;  %383 = vst.msk [vmem:[#allocation2 + $0x40] sm:$0xff] %vm380_vm0, %v7185_v0  ;;  %s11035_s14 = smov (!%p7257_p3, %s6592_s14), 1 }
  0x10   : > { %384 = vst.msk [vmem:[#allocation2 + $0x60] sm:$0xff] %vm380_vm0, %v7185_v0  ;;  %385 = vst.msk [vmem:[#allocation2 + $0x80] sm:$0xff] %vm380_vm0, %v7185_v0  ;;  %s6706_s16 = sshll.u32 %s11035_s14, 8 }
  0x11   : > { %386 = vst.msk [vmem:[#allocation2 + $0xa0] sm:$0xff] %vm380_vm0, %v7185_v0  ;;  %387 = vst.msk [vmem:[#allocation2 + $0xc0] sm:$0xff] %vm380_vm0, %v7185_v0  ;;  %s7311_s19 = scalar_lea.vmem %s10907_s0, %s6706_s16  ;;  %s7189_s16 = smov 96  }
  0x12   : > { %388 = vst.msk [vmem:[#allocation2 + $0xe0] sm:$0xff] %vm380_vm0, %v7185_v0  ;;  %389 = vst.msk [vmem:[#allocation2 + $0x100] sm:$0xff] %vm380_vm0, %v7185_v0  ;;  %v422_v1 = vld [vmem:[%s7311_s19] sm:$0xff]  ;;  %v424_v2 = vld [vmem:[%s7311_s19 + $0x10] sm:$0xff] }
  0x13   : > { %390 = vst.msk [vmem:[#allocation2 + $0x120] sm:$0xff] %vm380_vm0, %v7185_v0  ;;  %391 = vst.msk [vmem:[#allocation2 + $0x140] sm:$0xff] %vm380_vm0, %v7185_v0  ;;  %v423_v3 = vld [vmem:[%s7311_s19 + $0x8] sm:$0xff]  ;;  %v426_v4 = vld [vmem:[%s7311_s19 + $0x20] sm:$0xff] }
  0x14   : > { %392 = vst.msk [vmem:[#allocation2 + $0x160] sm:$0xff] %vm380_vm0, %v7185_v0  ;;  %393 = vst.msk [vmem:[#allocation2 + $0x180] sm:$0xff] %vm380_vm0, %v7185_v0  ;;  %v425_v5 = vld [vmem:[%s7311_s19 + $0x18] sm:$0xff]  ;;  %v428_v6 = vld [vmem:[%s7311_s19 + $0x30] sm:$0xff] }
  0x15   : > { %394 = vst.msk [vmem:[#allocation2 + $0x1a0] sm:$0xff] %vm380_vm0, %v7185_v0  ;;  %395 = vst.msk [vmem:[#allocation2 + $0x1c0] sm:$0xff] %vm380_vm0, %v7185_v0  ;;  %v519_v7 = vld [vmem:[#allocation2 + $0x8] sm:$0xff]  ;;  %v430_v10 = vld [vmem:[%s7311_s19 + $0x40] sm:$0xff] }
  0x16   : > { %396 = vst.msk [vmem:[#allocation2 + $0x1e0] sm:$0xff] %vm380_vm0, %v7185_v0  ;;  %397 = vst.msk [vmem:[#allocation2 + $0x200] sm:$0xff] %vm380_vm0, %v7185_v0  ;;  %v427_v9 = vld [vmem:[%s7311_s19 + $0x28] sm:$0xff]  ;;  %647 = vrot.lane.b32.xlu0 %v519_v7, %s7186_s20  ;;  %v429_v11 = vld [vmem:[%s7311_s19 + $0x38] sm:$0xff] }
  0x17   : > { %398 = vst.msk [vmem:[#allocation2 + $0x220] sm:$0xff] %vm380_vm0, %v7185_v0  ;;  %399 = vst.msk [vmem:[#allocation2 + $0x18] sm:$0xff] %vm380_vm0, %v7185_v0  ;;  %v432_v12 = vld [vmem:[%s7311_s19 + $0x50] sm:$0xff]  ;;  %v431_v13 = vld [vmem:[%s7311_s19 + $0x48] sm:$0xff] }
  0x18   : > { %400 = vst.msk [vmem:[#allocation2 + $0x38] sm:$0xff] %vm380_vm0, %v7185_v0  ;;  %401 = vst.msk [vmem:[#allocation2 + $0x58] sm:$0xff] %vm380_vm0, %v7185_v0  ;;  %v434_v14 = vld [vmem:[%s7311_s19 + $0x60] sm:$0xff]  ;;  %v433_v15 = vld [vmem:[%s7311_s19 + $0x58] sm:$0xff] }
  0x19   : > { %402 = vst.msk [vmem:[#allocation2 + $0x78] sm:$0xff] %vm380_vm0, %v7185_v0  ;;  %403 = vst.msk [vmem:[#allocation2 + $0x98] sm:$0xff] %vm380_vm0, %v7185_v0  ;;  %v436_v16 = vld [vmem:[%s7311_s19 + $0x70] sm:$0xff]  ;;  %v435_v17 = vld [vmem:[%s7311_s19 + $0x68] sm:$0xff] }
  0x1a   : > { %404 = vst.msk [vmem:[#allocation2 + $0xb8] sm:$0xff] %vm380_vm0, %v7185_v0  ;;  %405 = vst.msk [vmem:[#allocation2 + $0xd8] sm:$0xff] %vm380_vm0, %v7185_v0  ;;  %v438_v18 = vld [vmem:[%s7311_s19 + $0x80] sm:$0xff]  ;;  %v437_v19 = vld [vmem:[%s7311_s19 + $0x78] sm:$0xff] }
  0x1b   : > { %406 = vst.msk [vmem:[#allocation2 + $0xf8] sm:$0xff] %vm380_vm0, %v7185_v0  ;;  %407 = vst.msk [vmem:[#allocation2 + $0x118] sm:$0xff] %vm380_vm0, %v7185_v0  ;;  %v440_v20 = vld [vmem:[%s7311_s19 + $0x90] sm:$0xff]  ;;  %v439_v21 = vld [vmem:[%s7311_s19 + $0x88] sm:$0xff] }
  0x1c   : > { %408 = vst.msk [vmem:[#allocation2 + $0x138] sm:$0xff] %vm380_vm0, %v7185_v0  ;;  %409 = vst.msk [vmem:[#allocation2 + $0x158] sm:$0xff] %vm380_vm0, %v7185_v0  ;;  %v442_v22 = vld [vmem:[%s7311_s19 + $0xa0] sm:$0xff]  ;;  %v441_v23 = vld [vmem:[%s7311_s19 + $0x98] sm:$0xff] }
  0x1d   : > { %410 = vst.msk [vmem:[#allocation2 + $0x178] sm:$0xff] %vm380_vm0, %v7185_v0  ;;  %411 = vst.msk [vmem:[#allocation2 + $0x198] sm:$0xff] %vm380_vm0, %v7185_v0  ;;  %v444_v24 = vld [vmem:[%s7311_s19 + $0xb0] sm:$0xff]  ;;  %v443_v28 = vld [vmem:[%s7311_s19 + $0xa8] sm:$0xff] }
  0x1e   : > { %412 = vst.msk [vmem:[#allocation2 + $0x1b8] sm:$0xff] %vm380_vm0, %v7185_v0  ;;  %413 = vst.msk [vmem:[#allocation2 + $0x1d8] sm:$0xff] %vm380_vm0, %v7185_v0  ;;  %v446_v29 = vld [vmem:[%s7311_s19 + $0xc0] sm:$0xff]  ;;  %v445_v33 = vld [vmem:[%s7311_s19 + $0xb8] sm:$0xff] }
  0x1f   : > { %414 = vst.msk [vmem:[#allocation2 + $0x1f8] sm:$0xff] %vm380_vm0, %v7185_v0  ;;  %415 = vst.msk [vmem:[#allocation2 + $0x218] sm:$0xff] %vm380_vm0, %v7185_v0  ;;  %v448_v34 = vld [vmem:[%s7311_s19 + $0xd0] sm:$0xff]  ;;  %v447_v35 = vld [vmem:[%s7311_s19 + $0xc8] sm:$0xff] }
  0x20   : > { %416 = vst.msk [vmem:[#allocation2 + $0x238] sm:$0xff] %vm380_vm0, %v7185_v0  ;;  %418 = vst.msk [vmem:[#allocation2 + $0x10] sm:$0xff] %vm380_vm0, %v7185_v0  ;;  %v450_v36 = vld [vmem:[%s7311_s19 + $0xe0] sm:$0xff]  ;;  %v449_v37 = vld [vmem:[%s7311_s19 + $0xd8] sm:$0xff] }
  0x21   : > { %420 = vst.msk [vmem:[#allocation2 + $0x228] sm:$0xff] %vm380_vm0, %v7185_v0  ;;  %421 = vst.msk [vmem:[#allocation2 + $0x230] sm:$0xff] %vm380_vm0, %v7185_v0  ;;  %v451_v39 = vld [vmem:[%s7311_s19 + $0xe8] sm:$0xff] }
  0x22   : > { %455 = vst.msk [vmem:[#allocation2 + $0x28] sm:$0xff] %vm380_vm0, %v422_v1  ;;  %457 = vst.msk [vmem:[#allocation2 + $0x48] sm:$0xff] %vm380_vm0, %v424_v2  ;;  %v6928_v1 = vpack.c.bf16 %v1931_v63, %v1930_v62  ;;  %v10918_v2 = vmov 0.0|0.0   ;;  %v1949_v62 = vld [vmem:[%s10909_s2 + $0x98] sm:$0xff] }
  0x23   : > { %456 = vst.msk [vmem:[#allocation2 + $0x30] sm:$0xff] %vm380_vm0, %v423_v3  ;;  %459 = vst.msk [vmem:[#allocation2 + $0x68] sm:$0xff] %vm380_vm0, %v426_v4  ;;  %6927 = vmatprep.subr.bf16.mxu0 %v10918_v2  ;;  %v1932_v4 = vld [vmem:[%s10909_s2 + $0x10] sm:$0xff] }
  0x24   : > { %458 = vst.msk [vmem:[#allocation2 + $0x50] sm:$0xff] %vm380_vm0, %v425_v5  ;;  %461 = vst.msk [vmem:[#allocation2 + $0x88] sm:$0xff] %vm380_vm0, %v428_v6  ;;  %6929 = vmatpush1.bf16.msra.mxu0 %v6928_v1  ;;  %v1933_v5 = vld [vmem:[%s10909_s2 + $0x18] sm:$0xff] }
  0x25   : > { %460 = vst.msk [vmem:[#allocation2 + $0x70] sm:$0xff] %vm380_vm0, %v427_v9  ;;  %463 = vst.msk [vmem:[#allocation2 + $0xa8] sm:$0xff] %vm380_vm0, %v430_v10  ;;  %6930 = vmatprep.subr.bf16.mxu0 %v10918_v2  ;;  %v6931_v7 = vpack.c.bf16 %v1933_v5, %v1932_v4  ;;  %v1934_v9 = vld [vmem:[%s10909_s2 + $0x20] sm:$0xff]  ;;  %v1935_v10 = vld [vmem:[%s10909_s2 + $0x28] sm:$0xff] }
  0x26   : > { %462 = vst.msk [vmem:[#allocation2 + $0x90] sm:$0xff] %vm380_vm0, %v429_v11  ;;  %465 = vst.msk [vmem:[#allocation2 + $0xc8] sm:$0xff] %vm380_vm0, %v432_v12  ;;  %v6934_v12 = vpack.c.bf16 %v1935_v10, %v1934_v9  ;;  %v1951_v4 = vld [vmem:[%s10909_s2 + $0xa8] sm:$0xff]  ;;  %v1953_v9 = vld [vmem:[%s10909_s2 + $0xb8] sm:$0xff] }
  0x27   : > { %v520_v8 = vld [vmem:[#allocation2 + $0x10] sm:$0xff]  ;;  %464 = vst.msk [vmem:[#allocation2 + $0xb0] sm:$0xff] %vm380_vm0, %v431_v13  ;;  %467 = vst.msk [vmem:[#allocation2 + $0xe8] sm:$0xff] %vm380_vm0, %v434_v14 }
  0x28   : > { %466 = vst.msk [vmem:[#allocation2 + $0xd0] sm:$0xff] %vm380_vm0, %v433_v15  ;;  %469 = vst.msk [vmem:[#allocation2 + $0x108] sm:$0xff] %vm380_vm0, %v436_v16  ;;  %649 = vrot.lane.b32.xlu0 %v520_v8, %s7186_s20  ;;  %v551_v6 = vld [vmem:[#allocation2 + $0x9] sm:$0xff]  ;;  %6932 = vmatpush1.bf16.msra.mxu0 %v6931_v7  ;;  %v552_v13 = vld [vmem:[#allocation2 + $0x11] sm:$0xff] }
  0x29   : > { %468 = vst.msk [vmem:[#allocation2 + $0xf0] sm:$0xff] %vm380_vm0, %v435_v17  ;;  %471 = vst.msk [vmem:[#allocation2 + $0x128] sm:$0xff] %vm380_vm0, %v438_v18  ;;  %v7356_v25 = vld [vmem:[#allocation2 + $0x28] sm:$0xff]  ;;  %6933 = vmatprep.subr.bf16.mxu0 %v10918_v2  ;;  %v1936_v14 = vld [vmem:[%s10909_s2 + $0x30] sm:$0xff] }
  0x2a   : > { %470 = vst.msk [vmem:[#allocation2 + $0x110] sm:$0xff] %vm380_vm0, %v437_v19  ;;  %473 = vst.msk [vmem:[#allocation2 + $0x148] sm:$0xff] %vm380_vm0, %v440_v20  ;;  %v7358_v26 = vld [vmem:[#allocation2 + $0x48] sm:$0xff]  ;;  %651 = vrot.lane.b32.xlu1 %v7356_v25, %s7186_s20  ;;  %v522_v27 = vld [vmem:[#allocation2 + $0x30] sm:$0xff] }
  0x2b   : > { %472 = vst.msk [vmem:[#allocation2 + $0x130] sm:$0xff] %vm380_vm0, %v439_v21  ;;  %475 = vst.msk [vmem:[#allocation2 + $0x168] sm:$0xff] %vm380_vm0, %v442_v22  ;;  %v7371_v30 = vld [vmem:[#allocation2 + $0x68] sm:$0xff]  ;;  %v7374_v31 = vld [vmem:[#allocation2 + $0x50] sm:$0xff] }
  0x2c   : > { %474 = vst.msk [vmem:[#allocation2 + $0x150] sm:$0xff] %vm380_vm0, %v441_v23  ;;  %477 = vst.msk [vmem:[#allocation2 + $0x188] sm:$0xff] %vm380_vm0, %v444_v24  ;;  %655 = vrot.lane.b32.xlu0 %v7358_v26, %s7186_s20  ;;  %v7378_v32 = vld [vmem:[#allocation2 + $0x88] sm:$0xff]  ;;  %v7390_v38 = vld [vmem:[#allocation2 + $0x70] sm:$0xff]  ;;  %6935 = vmatpush1.bf16.msra.mxu0 %v6934_v12 }
  0x2d   : > { %476 = vst.msk [vmem:[#allocation2 + $0x170] sm:$0xff] %vm380_vm0, %v443_v28  ;;  %479 = vst.msk [vmem:[#allocation2 + $0x1a8] sm:$0xff] %vm380_vm0, %v446_v29  ;;  %v7398_v40 = vld [vmem:[#allocation2 + $0x49] sm:$0xff]  ;;  %v7402_v42 = vld [vmem:[#allocation2 + $0x51] sm:$0xff]  ;;  %6936 = vmatprep.subr.bf16.mxu0 %v10918_v2 }
  0x2e   : > { %653 = vrot.lane.b32.xlu1 %v522_v27, %s7186_s20  ;;  %478 = vst.msk [vmem:[#allocation2 + $0x190] sm:$0xff] %vm380_vm0, %v445_v33  ;;  %481 = vst.msk [vmem:[#allocation2 + $0x1c8] sm:$0xff] %vm380_vm0, %v448_v34  ;;  %v7400_v41 = vld [vmem:[#allocation2 + $0xa8] sm:$0xff]  ;;  %v7410_v43 = vld [vmem:[#allocation2 + $0x90] sm:$0xff] }
  0x2f   : > { %480 = vst.msk [vmem:[#allocation2 + $0x1b0] sm:$0xff] %vm380_vm0, %v447_v35  ;;  %483 = vst.msk [vmem:[#allocation2 + $0x1e8] sm:$0xff] %vm380_vm0, %v450_v36  ;;  %v7414_v44 = vld [vmem:[#allocation2 + $0xc8] sm:$0xff]  ;;  %v7418_v45 = vld [vmem:[#allocation2 + $0xb0] sm:$0xff] }
  0x30   : > { %659 = vrot.lane.b32.xlu0 %v7371_v30, %s7186_s20  ;;  %482 = vst.msk [vmem:[#allocation2 + $0x1d0] sm:$0xff] %vm380_vm0, %v449_v37  ;;  %484 = vst.msk [vmem:[#allocation2 + $0x1f0] sm:$0xff] %vm380_vm0, %v451_v39  ;;  %v7422_v46 = vld [vmem:[#allocation2 + $0xe8] sm:$0xff]  ;;  %v7426_v47 = vld [vmem:[#allocation2 + $0xd0] sm:$0xff] }
  0x31   : > { %1802 = vst.msk [vmem:[#allocation3 + $0x10] sm:$0xff] %vm380_vm0, %v7398_v40  ;;  %1803 = vst.msk [vmem:[#allocation3 + $0x28] sm:$0xff] %vm380_vm0, %v7402_v42  ;;  %v7430_v48 = vld [vmem:[#allocation2 + $0x108] sm:$0xff]  ;;  %v7434_v49 = vld [vmem:[#allocation2 + $0xf0] sm:$0xff] }
  0x32   : > { %657 = vrot.lane.b32.xlu1 %v7374_v31, %s7186_s20  ;;  %v7438_v50 = vld [vmem:[#allocation2 + $0x128] sm:$0xff]  ;;  %v7442_v51 = vld [vmem:[#allocation2 + $0x110] sm:$0xff]  ;;  %v1937_v15 = vld [vmem:[%s10909_s2 + $0x38] sm:$0xff] }
  0x33   : > { %v539_v52 = vld [vmem:[#allocation2 + $0x148] sm:$0xff]  ;;  %v7448_v53 = vld [vmem:[#allocation2 + $0x130] sm:$0xff]  ;;  %v6937_v16 = vpack.c.bf16 %v1937_v15, %v1936_v14  ;;  %v1938_v18 = vld [vmem:[%s10909_s2 + $0x40] sm:$0xff] }
  0x34   : > { %663 = vrot.lane.b32.xlu0 %v7378_v32, %s7186_s20  ;;  %v541_v54 = vld [vmem:[#allocation2 + $0x168] sm:$0xff]  ;;  %v540_v55 = vld [vmem:[#allocation2 + $0x150] sm:$0xff]  ;;  %v1941_v23 = vld [vmem:[%s10909_s2 + $0x58] sm:$0xff] }
  0x35   : > { %v543_v56 = vld [vmem:[#allocation2 + $0x188] sm:$0xff]  ;;  %v542_v57 = vld [vmem:[#allocation2 + $0x170] sm:$0xff]  ;;  %6938 = vmatpush1.bf16.msra.mxu0 %v6937_v16  ;;  %v1942_v29 = vld [vmem:[%s10909_s2 + $0x60] sm:$0xff] }
  0x36   : > { %661 = vrot.lane.b32.xlu1 %v7390_v38, %s7186_s20  ;;  %v545_v58 = vld [vmem:[#allocation2 + $0x1a8] sm:$0xff]  ;;  %v544_v59 = vld [vmem:[#allocation2 + $0x190] sm:$0xff]  ;;  %6939 = vmatprep.subr.bf16.mxu0 %v10918_v2  ;;  %v1945_v39 = vld [vmem:[%s10909_s2 + $0x78] sm:$0xff] }
  0x37   : > { %v547_v60 = vld [vmem:[#allocation2 + $0x1c8] sm:$0xff]  ;;  %v546_v61 = vld [vmem:[#allocation2 + $0x1b0] sm:$0xff]  ;;  %v1954_v14 = vld [vmem:[%s10909_s2 + $0xc0] sm:$0xff] }
  0x38   : > { %667 = vrot.lane.b32.xlu0 %v7400_v41, %s7186_s20  ;;  %v549_v0 = vld [vmem:[#allocation2 + $0x1e8] sm:$0xff]  ;;  %v548_v3 = vld [vmem:[#allocation2 + $0x1d0] sm:$0xff] }
  0x39   : > { %v550_v8 = vld [vmem:[#allocation2 + $0x1f0] sm:$0xff]  ;;  %v1939_v19 = vld [vmem:[%s10909_s2 + $0x48] sm:$0xff] }
  0x3a   : > { %665 = vrot.lane.b32.xlu1 %v7410_v43, %s7186_s20  ;;  %v7485_v11 = vld [vmem:[#allocation2 + $0x29] sm:$0xff]  ;;  %v7498_v17 = vld [vmem:[#allocation2 + $0x31] sm:$0xff]  ;;  %v6940_v21 = vpack.c.bf16 %v1939_v19, %v1938_v18 }
  0x3b   : > { %v7509_v20 = vld [vmem:[#allocation2 + $0x69] sm:$0xff]  ;;  %v7526_v28 = vld [vmem:[#allocation2 + $0x71] sm:$0xff] }
  0x3c   : > { %671 = vrot.lane.b32.xlu0 %v7414_v44, %s7186_s20  ;;  %6941 = vmatpush1.bf16.msra.mxu0 %v6940_v21  ;;  %v1940_v22 = vld [vmem:[%s10909_s2 + $0x50] sm:$0xff]  ;;  %v1943_v33 = vld [vmem:[%s10909_s2 + $0x68] sm:$0xff] }
  0x3d   : > { %6942 = vmatprep.subr.bf16.mxu0 %v10918_v2  ;;  %v7522_v24 = vld [vmem:[#allocation2 + $0x89] sm:$0xff]  ;;  %v6943_v27 = vpack.c.bf16 %v1941_v23, %v1940_v22  ;;  %v6946_v35 = vpack.c.bf16 %v1943_v33, %v1942_v29  ;;  %v7541_v36 = vld [vmem:[#allocation2 + $0x91] sm:$0xff]  ;;  %v1958_v33 = vld [vmem:[%s10909_s2 + $0xe0] sm:$0xff] }
  0x3e   : > { %669 = vrot.lane.b32.xlu1 %v7418_v45, %s7186_s20  ;;  %v7537_v34 = vld [vmem:[#allocation2 + $0xa9] sm:$0xff]  ;;  %v7586_v1 = vld [vmem:[#allocation2 + $0xf1] sm:$0xff] }
  0x3f   : > { %v1944_v37 = vld [vmem:[%s10909_s2 + $0x70] sm:$0xff]  ;;  %v1955_v15 = vld [vmem:[%s10909_s2 + $0xc8] sm:$0xff]  ;;  %v1957_v22 = vld [vmem:[%s10909_s2 + $0xd8] sm:$0xff] }
  0x40   : > { %675 = vrot.lane.b32.xlu0 %v7422_v46, %s7186_s20  ;;  %6944 = vmatpush1.bf16.msra.mxu0 %v6943_v27  ;;  %v7582_v63 = vld [vmem:[#allocation2 + $0x109] sm:$0xff]  ;;  %v7601_v7 = vld [vmem:[#allocation2 + $0x111] sm:$0xff]  ;;  %v6964_v18 = vpack.c.bf16 %v1955_v15, %v1954_v14 }
  0x41   : > { %6945 = vmatprep.subr.bf16.mxu0 %v10918_v2  ;;  %v7597_v5 = vld [vmem:[#allocation2 + $0x129] sm:$0xff]  ;;  %v7629_v19 = vld [vmem:[#allocation2 + $0x151] sm:$0xff] }
  0x42   : > { %673 = vrot.lane.b32.xlu1 %v7426_v47, %s7186_s20  ;;  %v7612_v10 = vld [vmem:[#allocation2 + $0x149] sm:$0xff]  ;;  %v574_v29 = vld [vmem:[#allocation2 + $0x171] sm:$0xff] }
  0x43   : > { %v573_v16 = vld [vmem:[#allocation2 + $0x169] sm:$0xff]  ;;  %v578_v14 = vld [vmem:[#allocation2 + $0x1b1] sm:$0xff] }
  0x44   : > { %679 = vrot.lane.b32.xlu0 %v7430_v48, %s7186_s20  ;;  %6947 = vmatpush1.bf16.msra.mxu0 %v6946_v35  ;;  %v1956_v21 = vld [vmem:[%s10909_s2 + $0xd0] sm:$0xff]  ;;  %v1959_v35 = vld [vmem:[%s10909_s2 + $0xe8] sm:$0xff] }
  0x45   : > { %6948 = vmatprep.subr.bf16.mxu0 %v10918_v2  ;;  %v575_v23 = vld [vmem:[#allocation2 + $0x189] sm:$0xff]  ;;  %v6967_v27 = vpack.c.bf16 %v1957_v22, %v1956_v21  ;;  %v580_v22 = vld [vmem:[#allocation2 + $0x1d1] sm:$0xff] }
  0x46   : > { %677 = vrot.lane.b32.xlu1 %v7434_v49, %s7186_s20  ;;  %v1839_v21 = vld [vmem:[#allocation3 + $0x28] sm:$0xff] }
  0x48   : > { %683 = vrot.lane.b32.xlu0 %v7438_v50, %s7186_s20 }
  0x4a   : > { %681 = vrot.lane.b32.xlu1 %v7442_v51, %s7186_s20 }
  0x4c   : > { %687 = vrot.lane.b32.xlu0 %v539_v52, %s7186_s20  ;;  %v7552_v52 = vld [vmem:[#allocation2 + $0xc9] sm:$0xff] }
  0x4e   : > { %685 = vrot.lane.b32.xlu1 %v7448_v53, %s7186_s20 }
  0x50   : > { %691 = vrot.lane.b32.xlu0 %v541_v54, %s7186_s20  ;;  %v6949_v54 = vpack.c.bf16 %v1945_v39, %v1944_v37  ;;  %v1962_v37 = vld [vmem:[%s10909_s2 + $0x100] sm:$0xff]  ;;  %v577_v39 = vld [vmem:[#allocation2 + $0x1a9] sm:$0xff] }
  0x52   : > { %689 = vrot.lane.b32.xlu1 %v540_v55, %s7186_s20  ;;  %v7556_v55 = vld [vmem:[#allocation2 + $0xb1] sm:$0xff]  ;;  %6950 = vmatpush1.bf16.msra.mxu0 %v6949_v54  ;;  %v6970_v54 = vpack.c.bf16 %v1959_v35, %v1958_v33  ;;  %v7695_v33 = vld [vmem:[#allocation2 + $0x47] sm:$0xff] }
  0x53   : > { %6951 = vmatprep.subr.bf16.mxu0 %v10918_v2  ;;  %v1772_v35 = vld [vmem:[#allocation2 + $0x69] sm:$0xff] }
  0x54   : > { %695 = vrot.lane.b32.xlu0 %v543_v56, %s7186_s20  ;;  %v1946_v56 = vld [vmem:[%s10909_s2 + $0x80] sm:$0xff]  ;;  %1804 = vst.msk [vmem:[#allocation3 + $0x40] sm:$0xff] %vm380_vm0, %v1772_v35 }
  0x56   : > { %693 = vrot.lane.b32.xlu1 %v542_v57, %s7186_s20  ;;  %v1947_v57 = vld [vmem:[%s10909_s2 + $0x88] sm:$0xff] }
  0x58   : > { %699 = vrot.lane.b32.xlu0 %v545_v58, %s7186_s20  ;;  %v7567_v58 = vld [vmem:[#allocation2 + $0xe9] sm:$0xff] }
  0x5a   : > { %697 = vrot.lane.b32.xlu1 %v544_v59, %s7186_s20  ;;  %v6952_v59 = vpack.c.bf16 %v1947_v57, %v1946_v56  ;;  %v1963_v56 = vld [vmem:[%s10909_s2 + $0x108] sm:$0xff] }
  0x5c   : > { %703 = vrot.lane.b32.xlu0 %v547_v60, %s7186_s20  ;;  %v7571_v60 = vld [vmem:[#allocation2 + $0xd1] sm:$0xff]  ;;  %6953 = vmatpush1.bf16.msra.mxu0 %v6952_v59  ;;  %v6975_v59 = vpack.c.bf16 %v1963_v56, %v1962_v37 }
  0x5d   : > { %6954 = vmatprep.subr.bf16.mxu0 %v10918_v2 }
  0x5e   : > { %701 = vrot.lane.b32.xlu1 %v546_v61, %s7186_s20  ;;  %v1948_v61 = vld [vmem:[%s10909_s2 + $0x90] sm:$0xff]  ;;  %6976 = vmatprep.subr.bf16.mxu1 %v6975_v59 }
  0x5f   : > { %6978 = vmatpush3.bf16.msra.mxu1 %v6975_v59  ;;  %v7717_v59 = vld [vmem:[#allocation2 + $0x4f] sm:$0xff] }
  0x60   : > { %707 = vrot.lane.b32.xlu0 %v549_v0, %s7186_s20  ;;  %v6955_v0 = vpack.c.bf16 %v1949_v62, %v1948_v61  ;;  %v576_v61 = vld [vmem:[#allocation2 + $0x191] sm:$0xff] }
  0x61   : > { %v1960_v62 = vld [vmem:[%s10909_s2 + $0xf0] sm:$0xff] }
  0x62   : > { %705 = vrot.lane.b32.xlu1 %v548_v3, %s7186_s20  ;;  %6956 = vmatpush1.bf16.msra.mxu0 %v6955_v0  ;;  %v1950_v3 = vld [vmem:[%s10909_s2 + $0xa0] sm:$0xff]  ;;  %v1961_v0 = vld [vmem:[%s10909_s2 + $0xf8] sm:$0xff] }
  0x63   : > { %6957 = vmatprep.subr.bf16.mxu0 %v10918_v2 }
  0x64   : > { %775 = vrot.lane.b32.xlu0 %v551_v6, %s7188_s29  ;;  %v6958_v6 = vpack.c.bf16 %v1951_v4, %v1950_v3  ;;  %v1964_v3 = vld [vmem:[%s10909_s2 + $0x110] sm:$0xff] }
  0x65   : > { %v579_v4 = vld [vmem:[#allocation2 + $0x1c9] sm:$0xff] }
  0x66   : > { %709 = vrot.lane.b32.xlu1 %v550_v8, %s7186_s20  ;;  %6959 = vmatpush1.bf16.msra.mxu0 %v6958_v6  ;;  %v1952_v8 = vld [vmem:[%s10909_s2 + $0xb0] sm:$0xff]  ;;  %v6973_v6 = vpack.c.bf16 %v1961_v0, %v1960_v62 }
  0x67   : > { %6960 = vmatprep.subr.bf16.mxu0 %v10918_v2  ;;  %v6961_v12 = vpack.c.bf16 %v1953_v9, %v1952_v8  ;;  %v1965_v8 = vld [vmem:[%s10909_s2 + $0x118] sm:$0xff] }
  0x68   : > { %779 = vrot.lane.b32.xlu0 %v7485_v11, %s7188_s29 }
  0x6a   : > { %777 = vrot.lane.b32.xlu1 %v552_v13, %s7188_s29  ;;  %v7616_v13 = vld [vmem:[#allocation2 + $0x131] sm:$0xff]  ;;  %6962 = vmatpush1.bf16.msra.mxu0 %v6961_v12  ;;  %v6979_v12 = vpack.c.bf16 %v1965_v8, %v1964_v3  ;;  %v1774_v8 = vld [vmem:[#allocation2 + $0x89] sm:$0xff] }
  0x6b   : > { %6963 = vmatprep.subr.bf16.mxu0 %v10918_v2  ;;  %1806 = vst.msk [vmem:[#allocation3 + $0x70] sm:$0xff] %vm380_vm0, %v1774_v8  ;;  %v7783_v8 = vld [vmem:[#allocation2 + $0x87] sm:$0xff] }
  0x6c   : > { %783 = vrot.lane.b32.xlu0 %v7398_v40, %s7188_s29  ;;  %6980 = vmatprep.subr.bf16.mxu1 %v6979_v12 }
  0x6d   : > { %6982 = vmatpush3.bf16.msra.mxu1 %v6979_v12 }
  0x6e   : > { %781 = vrot.lane.b32.xlu1 %v7498_v17, %s7188_s29  ;;  %6965 = vmatpush1.bf16.msra.mxu0 %v6964_v18 }
  0x6f   : > { %6966 = vmatprep.subr.bf16.mxu0 %v10918_v2  ;;  %6983 = vmatprep.subr.bf16.mxu1 %v10918_v2 }
  0x70   : > { %787 = vrot.lane.b32.xlu0 %v7509_v20, %s7188_s29 }
  0x72   : > { %785 = vrot.lane.b32.xlu1 %v7402_v42, %s7188_s29  ;;  %6968 = vmatpush1.bf16.msra.mxu0 %v6967_v27 }
  0x73   : > { %6969 = vmatprep.subr.bf16.mxu0 %v10918_v2 }
  0x74   : > { %791 = vrot.lane.b32.xlu0 %v7522_v24, %s7188_s29 }
  0x76   : > { %789 = vrot.lane.b32.xlu1 %v7526_v28, %s7188_s29  ;;  %6971 = vmatpush1.bf16.msra.mxu0 %v6970_v54 }
  0x77   : > { %6972 = vmatprep.subr.bf16.mxu0 %v10918_v2 }
  0x78   : > { %795 = vrot.lane.b32.xlu0 %v7537_v34, %s7188_s29 }
  0x7a   : > { %793 = vrot.lane.b32.xlu1 %v7541_v36, %s7188_s29  ;;  %6974 = vmatpush1.bf16.msra.mxu0 %v6973_v6  ;;  %v7739_v6 = vld [vmem:[#allocation2 + $0x67] sm:$0xff] }
  0x7c   : > { %799 = vrot.lane.b32.xlu0 %v7552_v52, %s7188_s29 }
  0x7e   : > { %797 = vrot.lane.b32.xlu1 %v7556_v55, %s7188_s29 }
  0x80   : > { %803 = vrot.lane.b32.xlu0 %v7567_v58, %s7188_s29 }
  0x82   : > { %801 = vrot.lane.b32.xlu1 %v7571_v60, %s7188_s29 }
  0x84   : > { %807 = vrot.lane.b32.xlu0 %v7582_v63, %s7188_s29 }
  0x86   : > { %805 = vrot.lane.b32.xlu1 %v7586_v1, %s7188_s29 }
  0x88   : > { %811 = vrot.lane.b32.xlu0 %v7597_v5, %s7188_s29  ;;  %v7655_v57 = vpop.permute.xlu0 %647 }
  0x8a   : > { %809 = vrot.lane.b32.xlu1 %v7601_v7, %s7188_s29 }
  0x8c   : > { %815 = vrot.lane.b32.xlu0 %v7612_v10, %s7188_s29 }
  0x8e   : > { %813 = vrot.lane.b32.xlu1 %v7616_v13, %s7188_s29 }
  0x90   : > { %819 = vrot.lane.b32.xlu0 %v573_v16, %s7188_s29  ;;  %v1836_v16 = vld [vmem:[#allocation3 + $0x10] sm:$0xff] }
  0x91   : > { %6823 = vmatprep.mubr.msk.f32.mxu1 %vm380_vm0, %v1836_v16 }
  0x92   : > { %817 = vrot.lane.b32.xlu1 %v7629_v19, %s7188_s29  ;;  %6824 = vmatmul.mubr.msk.f32.vlgmr.msra.gmra.mrb[0].mxu1 %vm380_vm0, %v1839_v21  ;;  %v7759_v21 = vld [vmem:[#allocation2 + $0x6f] sm:$0xff] }
  0x94   : > { %823 = vrot.lane.b32.xlu0 %v575_v23, %s7188_s29 }
  0x96   : > { %821 = vrot.lane.b32.xlu1 %v574_v29, %s7188_s29 }
  0x98   : > { %827 = vrot.lane.b32.xlu0 %v577_v39, %s7188_s29 }
  0x9a   : > { %v7672_v9 = vpop.permute.xlu0 %649  ;;  %825 = vrot.lane.b32.xlu1 %v576_v61, %s7188_s29  ;;  %v1842_v61 = vld [vmem:[#allocation3 + $0x40] sm:$0xff] }
  0x9b   : > { %6826 = vmatprep.mubr.msk.f32.mxu1 %vm380_vm0, %v1842_v61 }
  0x9c   : > { %831 = vrot.lane.b32.xlu0 %v579_v4, %s7188_s29  ;;  %v7676_v15 = vpop.permute.xlu1 %651 }
  0x9e   : > { %v7678_v18 = vpop.permute.xlu0 %655  ;;  %829 = vrot.lane.b32.xlu1 %v578_v14, %s7188_s29 }
  0xa0   : > { %1290 = vrot.lane.b32.xlu0 %v7485_v11, %s7186_s20  ;;  %v7685_v23 = vpop.permute.xlu1 %653  ;;  %v1773_v11 = vld [vmem:[#allocation2 + $0x71] sm:$0xff] }
  0xa1   : > { %1805 = vst.msk [vmem:[#allocation3 + $0x58] sm:$0xff] %vm380_vm0, %v1773_v11 }
  0xa2   : > { %v7688_v27 = vpop.permute.xlu0 %659  ;;  %833 = vrot.lane.b32.xlu1 %v580_v22, %s7188_s29  ;;  %v1848_v22 = vld [vmem:[#allocation3 + $0x70] sm:$0xff] }
  0xa4   : > { %1546 = vrot.lane.b32.xlu0 %v7358_v26, %s7189_s16  ;;  %v7693_v29 = vpop.permute.xlu1 %657  ;;  %v7707_v26 = vld [vmem:[#allocation2 + $0x27] sm:$0xff] }
  0xa6   : > { %v7697_v37 = vpop.permute.xlu0 %663  ;;  %1418 = vrot.lane.b32.xlu1 %v7695_v33, %s7188_s29 }
  0xa8   : > { %1292 = vrot.lane.b32.xlu0 %v7498_v17, %s7186_s20  ;;  %v7705_v39 = vpop.permute.xlu1 %661  ;;  %v1845_v17 = vld [vmem:[#allocation3 + $0x58] sm:$0xff] }
  0xa9   : > { %6827 = vmatmul.mubr.msk.f32.gmra.mrb[2].mxu1 %vm380_vm0, %v1845_v17 }
  0xaa   : > { %v7709_v54 = vpop.permute.xlu0 %667  ;;  %903 = vrot.lane.b32.xlu1 %v7707_v26, %s7189_s16  ;;  %6829 = vmatprep.mubr.msk.f32.mxu1 %vm380_vm0, %v1848_v22 }
  0xac   : > { %1548 = vrot.lane.b32.xlu0 %v7374_v31, %s7189_s16  ;;  %v7715_v56 = vpop.permute.xlu1 %665  ;;  %v7729_v31 = vld [vmem:[#allocation2 + $0x2f] sm:$0xff] }
  0xae   : > { %v7719_v62 = vpop.permute.xlu0 %671  ;;  %1420 = vrot.lane.b32.xlu1 %v7717_v59, %s7188_s29 }
  0xaf   : > { %10927 = vst [vmem:[#allocation4_spill] sm:$0xff] %v7719_v62 }
  0xb0   : > { %1294 = vrot.lane.b32.xlu0 %v7398_v40, %s7186_s20  ;;  %v7727_v0 = vpop.permute.xlu1 %669  ;;  %v1775_v40 = vld [vmem:[#allocation2 + $0x91] sm:$0xff] }
  0xb1   : > { %10928 = vst [vmem:[#allocation5_spill] sm:$0xff] %v7727_v0  ;;  %1807 = vst.msk [vmem:[#allocation3 + $0x88] sm:$0xff] %vm380_vm0, %v1775_v40  ;;  %v1776_v40 = vld [vmem:[#allocation2 + $0xa9] sm:$0xff] }
  0xb2   : > { %v7731_v3 = vpop.permute.xlu0 %675  ;;  %905 = vrot.lane.b32.xlu1 %v7729_v31, %s7189_s16  ;;  %1808 = vst.msk [vmem:[#allocation3 + $0xa0] sm:$0xff] %vm380_vm0, %v1776_v40 }
  0xb3   : > { %10929 = vst [vmem:[#allocation6_spill] sm:$0xff] %v7731_v3 }
  0xb4   : > { %1550 = vrot.lane.b32.xlu0 %v7371_v30, %s7189_s16  ;;  %v7737_v4 = vpop.permute.xlu1 %673 }
  0xb5   : > { %10930 = vst [vmem:[#allocation7_spill] sm:$0xff] %v7737_v4 }
  0xb6   : > { %v7741_v12 = vpop.permute.xlu0 %679  ;;  %1422 = vrot.lane.b32.xlu1 %v7739_v6, %s7188_s29 }
  0xb7   : > { %10931 = vst [vmem:[#allocation8_spill] sm:$0xff] %v7741_v12 }
  0xb8   : > { %1296 = vrot.lane.b32.xlu0 %v7402_v42, %s7186_s20  ;;  %v7749_v14 = vpop.permute.xlu1 %677  ;;  %v7765_v42 = vld [vmem:[#allocation2 + $0x169] sm:$0xff] }
  0xb9   : > { %10932 = vst [vmem:[#allocation9_spill] sm:$0xff] %v7749_v14  ;;  %v1851_v11 = vld [vmem:[#allocation3 + $0x88] sm:$0xff]  ;;  %1820 = vst.msk [vmem:[#allocation3 + $0x1c0] sm:$0xff] %vm380_vm0, %v7765_v42 }
  0xba   : > { %v7751_v30 = vpop.permute.xlu0 %683  ;;  %907 = vrot.lane.b32.xlu1 %v7695_v33, %s7189_s16  ;;  %6830 = vmatmul.mubr.msk.f32.gmra.mrb[4].mxu1 %vm380_vm0, %v1851_v11  ;;  %v1777_v11 = vld [vmem:[#allocation2 + $0xb1] sm:$0xff] }
  0xbb   : > { %10933 = vst [vmem:[#allocation10_spill] sm:$0xff] %v7751_v30  ;;  %1809 = vst.msk [vmem:[#allocation3 + $0xb8] sm:$0xff] %vm380_vm0, %v1777_v11  ;;  %v1854_v11 = vld [vmem:[#allocation3 + $0xa0] sm:$0xff]  ;;  %v7903_v14 = vld [vmem:[#allocation2 + $0xcf] sm:$0xff] }
  0xbc   : > { %1552 = vrot.lane.b32.xlu0 %v7390_v38, %s7189_s16  ;;  %v7757_v16 = vpop.permute.xlu1 %681  ;;  %6832 = vmatprep.mubr.msk.f32.mxu1 %vm380_vm0, %v1854_v11 }
  0xbd   : > { %10934 = vst [vmem:[#allocation11_spill] sm:$0xff] %v7757_v16  ;;  %v1781_v16 = vld [vmem:[#allocation2 + $0xf1] sm:$0xff] }
  0xbe   : > { %v7761_v35 = vpop.permute.xlu0 %687  ;;  %1424 = vrot.lane.b32.xlu1 %v7759_v21, %s7188_s29  ;;  %1813 = vst.msk [vmem:[#allocation3 + $0x118] sm:$0xff] %vm380_vm0, %v1781_v16 }
  0xbf   : > { %10935 = vst [vmem:[#allocation12_spill] sm:$0xff] %v7761_v35 }
  0xc0   : > { %1298 = vrot.lane.b32.xlu0 %v7509_v20, %s7186_s20  ;;  %v7773_v38 = vpop.permute.xlu1 %685  ;;  %v7789_v20 = vld [vmem:[#allocation2 + $0x171] sm:$0xff] }
  0xc1   : > { %10936 = vst [vmem:[#allocation13_spill] sm:$0xff] %v7773_v38  ;;  %1821 = vst.msk [vmem:[#allocation3 + $0x1d8] sm:$0xff] %vm380_vm0, %v7789_v20  ;;  %v7879_v38 = vld [vmem:[#allocation2 + $0xc7] sm:$0xff] }
  0xc2   : > { %v7775_v61 = vpop.permute.xlu0 %691  ;;  %909 = vrot.lane.b32.xlu1 %v7717_v59, %s7189_s16 }
  0xc3   : > { %10937 = vst [vmem:[#allocation14_spill] sm:$0xff] %v7775_v61 }
  0xc4   : > { %1554 = vrot.lane.b32.xlu0 %v7378_v32, %s7189_s16  ;;  %v7781_v17 = vpop.permute.xlu1 %689 }
  0xc5   : > { %10938 = vst [vmem:[#allocation15_spill] sm:$0xff] %v7781_v17  ;;  %v1869_v4 = vld [vmem:[#allocation3 + $0x118] sm:$0xff] }
  0xc6   : > { %v7785_v22 = vpop.permute.xlu0 %695  ;;  %1426 = vrot.lane.b32.xlu1 %v7783_v8, %s7188_s29 }
  0xc7   : > { %10939 = vst [vmem:[#allocation16_spill] sm:$0xff] %v7785_v22  ;;  %v7807_v22 = vld [vmem:[#allocation2 + $0x8f] sm:$0xff] }
  0xc8   : > { %1300 = vrot.lane.b32.xlu0 %v7526_v28, %s7186_s20  ;;  %v7797_v32 = vpop.permute.xlu1 %693  ;;  %v7813_v28 = vld [vmem:[#allocation2 + $0x189] sm:$0xff] }
  0xc9   : > { %10940 = vst [vmem:[#allocation17_spill] sm:$0xff] %v7797_v32  ;;  %1822 = vst.msk [vmem:[#allocation3 + $0x1f0] sm:$0xff] %vm380_vm0, %v7813_v28 }
  0xca   : > { %v7799_v2 = vpop.permute.xlu0 %699  ;;  %911 = vrot.lane.b32.xlu1 %v7739_v6, %s7189_s16 }
  0xcb   : > { %10941 = vst [vmem:[#allocation18_spill] sm:$0xff] %v7799_v2  ;;  %v1857_v2 = vld [vmem:[#allocation3 + $0xb8] sm:$0xff] }
  0xcc   : > { %1556 = vrot.lane.b32.xlu0 %v7410_v43, %s7189_s16  ;;  %v7805_v40 = vpop.permute.xlu1 %697  ;;  %6833 = vmatmul.mubr.msk.f32.gmra.mrb[6].mxu1 %vm380_vm0, %v1857_v2  ;;  %v1778_v2 = vld [vmem:[#allocation2 + $0xc9] sm:$0xff] }
  0xcd   : > { %10942 = vst [vmem:[#allocation19_spill] sm:$0xff] %v7805_v40  ;;  %1810 = vst.msk [vmem:[#allocation3 + $0xd0] sm:$0xff] %vm380_vm0, %v1778_v2 }
  0xce   : > { %v7809_v61 = vpop.permute.xlu0 %703  ;;  %1428 = vrot.lane.b32.xlu1 %v7807_v22, %s7188_s29 }
  0xcf   : > { %10943 = vst [vmem:[#allocation20_spill] sm:$0xff] %v7809_v61  ;;  %v7831_v61 = vld [vmem:[#allocation2 + $0xa7] sm:$0xff] }
  0xd0   : > { %1302 = vrot.lane.b32.xlu0 %v7522_v24, %s7186_s20  ;;  %v7821_v43 = vpop.permute.xlu1 %701  ;;  %v7837_v24 = vld [vmem:[#allocation2 + $0x191] sm:$0xff] }
  0xd1   : > { %10944 = vst [vmem:[#allocation21_spill] sm:$0xff] %v7821_v43  ;;  %1823 = vst.msk [vmem:[#allocation3 + $0x208] sm:$0xff] %vm380_vm0, %v7837_v24  ;;  %v7855_v43 = vld [vmem:[#allocation2 + $0xaf] sm:$0xff] }
  0xd2   : > { %v7823_v40 = vpop.permute.xlu0 %707  ;;  %913 = vrot.lane.b32.xlu1 %v7759_v21, %s7189_s16 }
  0xd3   : > { %10945 = vst [vmem:[#allocation22_spill] sm:$0xff] %v7823_v40  ;;  %v1779_v40 = vld [vmem:[#allocation2 + $0xd1] sm:$0xff] }
  0xd4   : > { %1558 = vrot.lane.b32.xlu0 %v7400_v41, %s7189_s16  ;;  %v7829_v11 = vpop.permute.xlu1 %705  ;;  %1811 = vst.msk [vmem:[#allocation3 + $0xe8] sm:$0xff] %vm380_vm0, %v1779_v40  ;;  %v1860_v40 = vld [vmem:[#allocation3 + $0xd0] sm:$0xff] }
  0xd5   : > { %10946 = vst [vmem:[#allocation23_spill] sm:$0xff] %v7829_v11  ;;  %6835 = vmatprep.mubr.msk.f32.mxu1 %vm380_vm0, %v1860_v40 }
  0xd6   : > { %v7833_v32 = vpop.permute.xlu0 %775  ;;  %1430 = vrot.lane.b32.xlu1 %v7831_v61, %s7188_s29 }
  0xd8   : > { %1304 = vrot.lane.b32.xlu0 %v7541_v36, %s7186_s20  ;;  %v7845_v41 = vpop.permute.xlu1 %709  ;;  %v7861_v36 = vld [vmem:[#allocation2 + $0x1a9] sm:$0xff] }
  0xd9   : > { %10947 = vst [vmem:[#allocation24_spill] sm:$0xff] %v7845_v41  ;;  %1824 = vst.msk [vmem:[#allocation3 + $0x220] sm:$0xff] %vm380_vm0, %v7861_v36 }
  0xda   : > { %v7847_v11 = vpop.permute.xlu0 %779  ;;  %915 = vrot.lane.b32.xlu1 %v7783_v8, %s7189_s16 }
  0xdb   : > { %v1863_v41 = vld [vmem:[#allocation3 + $0xe8] sm:$0xff] }
  0xdc   : > { %1560 = vrot.lane.b32.xlu0 %v7418_v45, %s7189_s16  ;;  %v7853_v2 = vpop.permute.xlu1 %777  ;;  %6836 = vmatmul.mubr.msk.f32.gmra.mrb[8].mxu1 %vm380_vm0, %v1863_v41  ;;  %v1780_v41 = vld [vmem:[#allocation2 + $0xe9] sm:$0xff] }
  0xdd   : > { %1812 = vst.msk [vmem:[#allocation3 + $0x100] sm:$0xff] %vm380_vm0, %v1780_v41 }
  0xde   : > { %v7857_v17 = vpop.permute.xlu0 %783  ;;  %1432 = vrot.lane.b32.xlu1 %v7855_v43, %s7188_s29 }
  0xe0   : > { %1306 = vrot.lane.b32.xlu0 %v7537_v34, %s7186_s20  ;;  %v7869_v45 = vpop.permute.xlu1 %781  ;;  %v7885_v34 = vld [vmem:[#allocation2 + $0x1b1] sm:$0xff] }
  0xe1   : > { %1825 = vst.msk [vmem:[#allocation3 + $0x238] sm:$0xff] %vm380_vm0, %v7885_v34 }
  0xe2   : > { %v7871_v35 = vpop.permute.xlu0 %787  ;;  %917 = vrot.lane.b32.xlu1 %v7807_v22, %s7189_s16 }
  0xe4   : > { %1562 = vrot.lane.b32.xlu0 %v7414_v44, %s7189_s16  ;;  %v7877_v40 = vpop.permute.xlu1 %785  ;;  %v1866_v16 = vld [vmem:[#allocation3 + $0x100] sm:$0xff] }
  0xe5   : > { %6838 = vmatprep.mubr.msk.f32.mxu1 %vm380_vm0, %v1866_v16 }
  0xe6   : > { %v7881_v30 = vpop.permute.xlu0 %791  ;;  %1434 = vrot.lane.b32.xlu1 %v7879_v38, %s7188_s29  ;;  %6839 = vmatmul.mubr.msk.f32.gmra.mrb[10].mxu1 %vm380_vm0, %v1869_v4  ;;  %v7927_v4 = vld [vmem:[#allocation2 + $0xe7] sm:$0xff] }
  0xe8   : > { %1308 = vrot.lane.b32.xlu0 %v7556_v55, %s7186_s20  ;;  %v7893_v44 = vpop.permute.xlu1 %789  ;;  %v7909_v55 = vld [vmem:[#allocation2 + $0x1c9] sm:$0xff] }
  0xe9   : > { %1826 = vst.msk [vmem:[#allocation3 + $0x250] sm:$0xff] %vm380_vm0, %v7909_v55 }
  0xea   : > { %v7895_v12 = vpop.permute.xlu0 %795  ;;  %919 = vrot.lane.b32.xlu1 %v7831_v61, %s7189_s16 }
  0xec   : > { %1564 = vrot.lane.b32.xlu0 %v7426_v47, %s7189_s16  ;;  %v7901_v41 = vpop.permute.xlu1 %793 }
  0xee   : > { %v7905_v3 = vpop.permute.xlu0 %799  ;;  %1436 = vrot.lane.b32.xlu1 %v7903_v14, %s7188_s29 }
  0xef   : > { %10948 = vst [vmem:[#allocation25_spill] sm:$0xff] %v7905_v3  ;;  %v1782_v3 = vld [vmem:[#allocation2 + $0x109] sm:$0xff] }
  0xf0   : > { %1310 = vrot.lane.b32.xlu0 %v7552_v52, %s7186_s20  ;;  %v7917_v47 = vpop.permute.xlu1 %797  ;;  %v7933_v52 = vld [vmem:[#allocation2 + $0x1d1] sm:$0xff]  ;;  %1814 = vst.msk [vmem:[#allocation3 + $0x130] sm:$0xff] %vm380_vm0, %v1782_v3 }
  0xf1   : > { %10952 = vst [vmem:[#allocation29_spill] sm:$0xff] %v7933_v52  ;;  %1827 = vst.msk [vmem:[#allocation3 + $0x268] sm:$0xff] %vm380_vm0, %v7933_v52 }
  0xf2   : > { %v7919_v62 = vpop.permute.xlu0 %803  ;;  %921 = vrot.lane.b32.xlu1 %v7855_v43, %s7189_s16 }
  0xf3   : > { %10949 = vst [vmem:[#allocation26_spill] sm:$0xff] %v7919_v62  ;;  %v1783_v62 = vld [vmem:[#allocation2 + $0x111] sm:$0xff] }
  0xf4   : > { %1566 = vrot.lane.b32.xlu0 %v7422_v46, %s7189_s16  ;;  %v7925_v16 = vpop.permute.xlu1 %801  ;;  %1815 = vst.msk [vmem:[#allocation3 + $0x148] sm:$0xff] %vm380_vm0, %v1783_v62  ;;  %v7953_v62 = vld [vmem:[#allocation2 + $0xef] sm:$0xff] }
  0xf5   : > { %10950 = vst [vmem:[#allocation27_spill] sm:$0xff] %v7925_v16  ;;  %10956 = vst [vmem:[#allocation33_spill] sm:$0xff] %v7953_v62 }
  0xf6   : > { %v7929_v0 = vpop.permute.xlu0 %807  ;;  %1438 = vrot.lane.b32.xlu1 %v7927_v4, %s7188_s29 }
  0xf7   : > { %10951 = vst [vmem:[#allocation28_spill] sm:$0xff] %v7929_v0  ;;  %v452_v0 = vld [vmem:[%s7311_s19 + $0xf0] sm:$0xff] }
  0xf8   : > { %1312 = vrot.lane.b32.xlu0 %v7571_v60, %s7186_s20  ;;  %v7941_v46 = vpop.permute.xlu1 %805  ;;  %485 = vst.msk [vmem:[#allocation2 + $0x208] sm:$0xff] %vm380_vm0, %v452_v0  ;;  %v1872_v52 = vld [vmem:[#allocation3 + $0x130] sm:$0xff] }
  0xf9   : > { %10953 = vst [vmem:[#allocation30_spill] sm:$0xff] %v7941_v46  ;;  %6841 = vmatprep.mubr.msk.f32.mxu1 %vm380_vm0, %v1872_v52 }
  0xfa   : > { %v7943_v16 = vpop.permute.xlu0 %811  ;;  %923 = vrot.lane.b32.xlu1 %v7879_v38, %s7189_s16 }
  0xfb   : > { %10954 = vst [vmem:[#allocation31_spill] sm:$0xff] %v7943_v16  ;;  %v7959_v16 = vld [vmem:[#allocation2 + $0x1e9] sm:$0xff] }
  0xfc   : > { %1568 = vrot.lane.b32.xlu0 %v7434_v49, %s7189_s16  ;;  %v7950_v3 = vpop.permute.xlu1 %809  ;;  %10958 = vst [vmem:[#allocation35_spill] sm:$0xff] %v7959_v16  ;;  %v1875_v46 = vld [vmem:[#allocation3 + $0x148] sm:$0xff]  ;;  %1828 = vst.msk [vmem:[#allocation3 + $0x280] sm:$0xff] %vm380_vm0, %v7959_v16 }
  0xfd   : > { %10955 = vst [vmem:[#allocation32_spill] sm:$0xff] %v7950_v3  ;;  %6842 = vmatmul.mubr.msk.f32.gmra.mrb[12].mxu1 %vm380_vm0, %v1875_v46  ;;  %v7979_v46 = vld [vmem:[#allocation2 + $0x107] sm:$0xff] }
  0xfe   : > { %v7955_v60 = vpop.permute.xlu0 %815  ;;  %1440 = vrot.lane.b32.xlu1 %v7953_v62, %s7188_s29  ;;  %10962 = vst [vmem:[#allocation39_spill] sm:$0xff] %v7979_v46  ;;  %v1784_v3 = vld [vmem:[#allocation2 + $0x129] sm:$0xff] }
  0xff   : > { %10957 = vst [vmem:[#allocation34_spill] sm:$0xff] %v7955_v60  ;;  %v453_v60 = vld [vmem:[%s7311_s19 + $0xf8] sm:$0xff]  ;;  %1816 = vst.msk [vmem:[#allocation3 + $0x160] sm:$0xff] %vm380_vm0, %v1784_v3 }
 0x100   : > { %1314 = vrot.lane.b32.xlu0 %v7567_v58, %s7186_s20  ;;  %v7967_v49 = vpop.permute.xlu1 %813  ;;  %486 = vst.msk [vmem:[#allocation2 + $0x210] sm:$0xff] %vm380_vm0, %v453_v60  ;;  %v7985_v58 = vld [vmem:[#allocation2 + $0x1f1] sm:$0xff] }
 0x101   : > { %10959 = vst [vmem:[#allocation36_spill] sm:$0xff] %v7967_v49  ;;  %1829 = vst.msk [vmem:[#allocation3 + $0x298] sm:$0xff] %vm380_vm0, %v7985_v58 }
 0x102   : > { %v7969_v0 = vpop.permute.xlu0 %819  ;;  %925 = vrot.lane.b32.xlu1 %v7903_v14, %s7189_s16 }
 0x103   : > { %10960 = vst [vmem:[#allocation37_spill] sm:$0xff] %v7969_v0  ;;  %v1785_v0 = vld [vmem:[#allocation2 + $0x131] sm:$0xff] }
 0x104   : > { %1570 = vrot.lane.b32.xlu0 %v7430_v48, %s7189_s16  ;;  %v7976_v52 = vpop.permute.xlu1 %817  ;;  %1817 = vst.msk [vmem:[#allocation3 + $0x178] sm:$0xff] %vm380_vm0, %v1785_v0 }
 0x105   : > { %10961 = vst [vmem:[#allocation38_spill] sm:$0xff] %v7976_v52 }
 0x106   : > { %v7981_v16 = vpop.permute.xlu0 %823  ;;  %1442 = vrot.lane.b32.xlu1 %v7979_v46, %s7188_s29  ;;  %v1878_v0 = vld [vmem:[#allocation3 + $0x160] sm:$0xff] }
 0x107   : > { %10963 = vst [vmem:[#allocation40_spill] sm:$0xff] %v7981_v16  ;;  %v8003_v16 = vld [vmem:[#allocation2 + $0x10f] sm:$0xff]  ;;  %6844 = vmatprep.mubr.msk.f32.mxu1 %vm380_vm0, %v1878_v0  ;;  %v8025_v0 = vld [vmem:[#allocation2 + $0x127] sm:$0xff] }
 0x108   : > { %1316 = vrot.lane.b32.xlu0 %v7586_v1, %s7186_s20  ;;  %v7993_v48 = vpop.permute.xlu1 %821  ;;  %v8009_v1 = vld [vmem:[#allocation2 + $0x209] sm:$0xff] }
 0x109   : > { %10964 = vst [vmem:[#allocation41_spill] sm:$0xff] %v7993_v48  ;;  %10968 = vst [vmem:[#allocation45_spill] sm:$0xff] %v8009_v1 }
 0x10a   : > { %v7995_v60 = vpop.permute.xlu0 %827  ;;  %927 = vrot.lane.b32.xlu1 %v7927_v4, %s7189_s16  ;;  %1830 = vst.msk [vmem:[#allocation3 + $0x2b0] sm:$0xff] %vm380_vm0, %v8009_v1  ;;  %v8045_v1 = vld [vmem:[#allocation2 + $0x12f] sm:$0xff] }
 0x10b   : > { %10965 = vst [vmem:[#allocation42_spill] sm:$0xff] %v7995_v60  ;;  %v1881_v60 = vld [vmem:[#allocation3 + $0x178] sm:$0xff] }
 0x10c   : > { %1572 = vrot.lane.b32.xlu0 %v7442_v51, %s7189_s16  ;;  %v8001_v3 = vpop.permute.xlu1 %825  ;;  %6845 = vmatmul.mubr.msk.f32.gmra.mrb[14].mxu1 %vm380_vm0, %v1881_v60  ;;  %v1786_v60 = vld [vmem:[#allocation2 + $0x149] sm:$0xff] }
 0x10d   : > { %10966 = vst [vmem:[#allocation43_spill] sm:$0xff] %v8001_v3  ;;  %1818 = vst.msk [vmem:[#allocation3 + $0x190] sm:$0xff] %vm380_vm0, %v1786_v60 }
 0x10e   : > { %v8005_v52 = vpop.permute.xlu0 %831  ;;  %1444 = vrot.lane.b32.xlu1 %v8003_v16, %s7188_s29 }
 0x10f   : > { %10967 = vst [vmem:[#allocation44_spill] sm:$0xff] %v8005_v52 }
 0x110   : > { %1318 = vrot.lane.b32.xlu0 %v7582_v63, %s7186_s20  ;;  %v8017_v51 = vpop.permute.xlu1 %829  ;;  %v1787_v63 = vld [vmem:[#allocation2 + $0x151] sm:$0xff] }
 0x111   : > { %10969 = vst [vmem:[#allocation46_spill] sm:$0xff] %v8017_v51  ;;  %1819 = vst.msk [vmem:[#allocation3 + $0x1a8] sm:$0xff] %vm380_vm0, %v1787_v63  ;;  %v487_v51 = vld [vmem:[#allocation2 + $0x7] sm:$0xff] }
 0x112   : > { %v1291_v3 = vpop.permute.xlu0 %1290  ;;  %929 = vrot.lane.b32.xlu1 %v7953_v62, %s7189_s16  ;;  %v999_v60 = vsel %vm380_vm0, %v487_v51, %v7655_v57  ;;  %v1130_v62 = vld [vmem:[#allocation2 + $0x30] sm:$0xff]  ;;  %v8060_v51 = vld [vmem:[#allocation2 + $0x148] sm:$0xff] }
 0x113   : > { %v1642_v48 = vsel %vm380_vm0, %v7356_v25, %v1291_v3  ;;  %v1032_v63 = vsel %vm1031_vm2, %v999_v60, %v7833_v32 }
 0x114   : > { %1574 = vrot.lane.b32.xlu0 %v7438_v50, %s7189_s16  ;;  %v8023_v52 = vpop.permute.xlu1 %833 }
 0x115   : > { %10970 = vst [vmem:[#allocation47_spill] sm:$0xff] %v8023_v52 }
 0x116   : > { %v1547_v49 = vpop.permute.xlu0 %1546  ;;  %1446 = vrot.lane.b32.xlu1 %v8025_v0, %s7188_s29 }
 0x118   : > { %1320 = vrot.lane.b32.xlu0 %v7601_v7, %s7186_s20  ;;  %v1419_v50 = vpop.permute.xlu1 %1418  ;;  %v1887_v57 = vld [vmem:[#allocation3 + $0x1a8] sm:$0xff] }
 0x119   : > { %v1674_v52 = vsel %vm1031_vm2, %v1642_v48, %v1419_v50  ;;  %v1884_v48 = vld [vmem:[#allocation3 + $0x190] sm:$0xff] }
 0x11a   : > { %v1706_v25 = vsel %vm1064_vm1, %v1674_v52, %v1547_v49  ;;  %v1293_v3 = vpop.permute.xlu0 %1292  ;;  %931 = vrot.lane.b32.xlu1 %v7979_v46, %s7189_s16  ;;  %v8048_v52 = vld [vmem:[#allocation2 + $0x211] sm:$0xff]  ;;  %6847 = vmatprep.mubr.msk.f32.mxu1 %vm380_vm0, %v1884_v48 }
 0x11b   : > { %2133 = vmatprep.mubr.f32.mxu0 %v1706_v25  ;;  %v1643_v50 = vsel %vm380_vm0, %v1130_v62, %v1293_v3  ;;  %1831 = vst.msk [vmem:[#allocation3 + $0x2c8] sm:$0xff] %vm380_vm0, %v8048_v52  ;;  %6848 = vmatmul.mubr.msk.f32.gmra.mrb[16].mxu1 %vm380_vm0, %v1887_v57  ;;  %v8080_v57 = vld [vmem:[#allocation2 + $0x150] sm:$0xff] }
 0x11c   : > { %1576 = vrot.lane.b32.xlu0 %v7448_v53, %s7189_s16  ;;  %v904_v7 = vpop.permute.xlu1 %903  ;;  %v488_v53 = vld [vmem:[#allocation2 + $0xf] sm:$0xff] }
 0x11d   : > { %v1065_v49 = vsel %vm1064_vm1, %v1032_v63, %v904_v7  ;;  %v1000_v60 = vsel %vm380_vm0, %v488_v53, %v7672_v9  ;;  %v1131_v63 = vld [vmem:[#allocation2 + $0x48] sm:$0xff] }
 0x11e   : > { %v1549_v46 = vpop.permute.xlu0 %1548  ;;  %1448 = vrot.lane.b32.xlu1 %v8045_v1, %s7188_s29  ;;  %2134 = vmatmul.mubr.f32.vlgmr.msra.gmra.mrb[0].mxu0 %v1065_v49  ;;  %v8071_v49 = vld [vmem:[#allocation2 + $0x147] sm:$0xff] }
 0x120   : > { %1322 = vrot.lane.b32.xlu0 %v7597_v5, %s7186_s20  ;;  %v1421_v32 = vpop.permute.xlu1 %1420  ;;  %v1033_v5 = vsel %vm1031_vm2, %v1000_v60, %v7853_v2  ;;  %v8092_v60 = vld [vmem:[#allocation2 + $0x14f] sm:$0xff] }
 0x121   : > { %v1675_v62 = vsel %vm1031_vm2, %v1643_v50, %v1421_v32 }
 0x122   : > { %v1707_v25 = vsel %vm1064_vm1, %v1675_v62, %v1549_v46  ;;  %v1295_v3 = vpop.permute.xlu0 %1294  ;;  %933 = vrot.lane.b32.xlu1 %v8003_v16, %s7189_s16  ;;  %v1001_v62 = vsel %vm380_vm0, %v7707_v26, %v7676_v15  ;;  %v1893_v15 = vld [vmem:[#allocation3 + $0x1d8] sm:$0xff] }
 0x123   : > { %2138 = vmatprep.mubr.f32.mxu0 %v1707_v25  ;;  %v1644_v48 = vsel %vm380_vm0, %v1131_v63, %v1295_v3  ;;  %v1132_v25 = vld [vmem:[#allocation2 + $0x50] sm:$0xff] }
 0x124   : > { %1578 = vrot.lane.b32.xlu0 %v8060_v51, %s7189_s16  ;;  %v906_v7 = vpop.permute.xlu1 %905 }
 0x125   : > { %v1066_v46 = vsel %vm1064_vm1, %v1033_v5, %v906_v7  ;;  %v1890_v5 = vld [vmem:[#allocation3 + $0x1c0] sm:$0xff] }
 0x126   : > { %v1551_v50 = vpop.permute.xlu0 %1550  ;;  %1450 = vrot.lane.b32.xlu1 %v8071_v49, %s7188_s29  ;;  %2139 = vmatmul.mubr.f32.gmra.mrb[2].mxu0 %v1066_v46 }
 0x127   : > { %6850 = vmatprep.mubr.msk.f32.mxu1 %vm380_vm0, %v1890_v5 }
 0x128   : > { %1324 = vrot.lane.b32.xlu0 %v7616_v13, %s7186_s20  ;;  %v1423_v9 = vpop.permute.xlu1 %1422  ;;  %v1034_v13 = vsel %vm1031_vm2, %v1001_v62, %v7847_v11  ;;  %6851 = vmatmul.mubr.msk.f32.gmra.mrb[18].mxu1 %vm380_vm0, %v1893_v15  ;;  %v8115_v62 = vld [vmem:[#allocation2 + $0x167] sm:$0xff] }
 0x129   : > { %v1676_v2 = vsel %vm1031_vm2, %v1644_v48, %v1423_v9  ;;  %v8103_v48 = vld [vmem:[#allocation2 + $0x168] sm:$0xff] }
 0x12a   : > { %v1708_v53 = vsel %vm1064_vm1, %v1676_v2, %v1551_v50  ;;  %v1297_v32 = vpop.permute.xlu0 %1296  ;;  %935 = vrot.lane.b32.xlu1 %v8025_v0, %s7189_s16  ;;  %v1002_v2 = vsel %vm380_vm0, %v7729_v31, %v7685_v23 }
 0x12b   : > { %2143 = vmatprep.mubr.f32.mxu0 %v1708_v53  ;;  %v1645_v7 = vsel %vm380_vm0, %v1132_v25, %v1297_v32  ;;  %v1133_v53 = vld [vmem:[#allocation2 + $0x68] sm:$0xff] }
 0x12c   : > { %1580 = vrot.lane.b32.xlu0 %v8080_v57, %s7189_s16  ;;  %v908_v3 = vpop.permute.xlu1 %907 }
 0x12d   : > { %v1067_v63 = vsel %vm1064_vm1, %v1034_v13, %v908_v3 }
 0x12e   : > { %v1553_v46 = vpop.permute.xlu0 %1552  ;;  %1452 = vrot.lane.b32.xlu1 %v8092_v60, %s7188_s29  ;;  %2144 = vmatmul.mubr.f32.gmra.mrb[4].mxu0 %v1067_v63 }
 0x130   : > { %1326 = vrot.lane.b32.xlu0 %v7612_v10, %s7186_s20  ;;  %v1425_v26 = vpop.permute.xlu1 %1424  ;;  %v1035_v10 = vsel %vm1031_vm2, %v1002_v2, %v7869_v45  ;;  %v8124_v45 = vld [vmem:[#allocation2 + $0x170] sm:$0xff] }
 0x131   : > { %v1677_v11 = vsel %vm1031_vm2, %v1645_v7, %v1425_v26  ;;  %v1003_v7 = vsel %vm380_vm0, %v7695_v33, %v7678_v18  ;;  %v8136_v26 = vld [vmem:[#allocation2 + $0x16f] sm:$0xff] }
 0x132   : > { %v1709_v50 = vsel %vm1064_vm1, %v1677_v11, %v1553_v46  ;;  %v1299_v9 = vpop.permute.xlu0 %1298  ;;  %937 = vrot.lane.b32.xlu1 %v8045_v1, %s7189_s16  ;;  %v1134_v46 = vld [vmem:[#allocation2 + $0x70] sm:$0xff]  ;;  %v1899_v18 = vld [vmem:[#allocation3 + $0x208] sm:$0xff] }
 0x133   : > { %2148 = vmatprep.mubr.f32.mxu0 %v1709_v50  ;;  %v1646_v13 = vsel %vm380_vm0, %v1133_v53, %v1299_v9  ;;  %v1896_v50 = vld [vmem:[#allocation3 + $0x1f0] sm:$0xff]  ;;  %v8147_v53 = vld [vmem:[#allocation2 + $0x188] sm:$0xff] }
 0x134   : > { %1582 = vrot.lane.b32.xlu0 %v8103_v48, %s7189_s16  ;;  %v910_v32 = vpop.permute.xlu1 %909  ;;  %6853 = vmatprep.mubr.msk.f32.mxu1 %vm380_vm0, %v1896_v50  ;;  %v8180_v50 = vld [vmem:[#allocation2 + $0x18f] sm:$0xff] }
 0x135   : > { %v1068_v25 = vsel %vm1064_vm1, %v1035_v10, %v910_v32  ;;  %6854 = vmatmul.mubr.msk.f32.gmra.mrb[20].mxu1 %vm380_vm0, %v1899_v18 }
 0x136   : > { %v1555_v3 = vpop.permute.xlu0 %1554  ;;  %1454 = vrot.lane.b32.xlu1 %v8115_v62, %s7188_s29  ;;  %2149 = vmatmul.mubr.f32.gmra.mrb[6].mxu0 %v1068_v25  ;;  %v1004_v25 = vsel %vm380_vm0, %v7717_v59, %v7693_v29 }
 0x138   : > { %1328 = vrot.lane.b32.xlu0 %v7629_v19, %s7186_s20  ;;  %v1427_v23 = vpop.permute.xlu1 %1426  ;;  %v1036_v19 = vsel %vm1031_vm2, %v1003_v7, %v7857_v17 }
 0x139   : > { %v1678_v31 = vsel %vm1031_vm2, %v1646_v13, %v1427_v23  ;;  %v1135_v13 = vld [vmem:[#allocation2 + $0x88] sm:$0xff] }
 0x13a   : > { %v1710_v63 = vsel %vm1064_vm1, %v1678_v31, %v1555_v3  ;;  %v1301_v5 = vpop.permute.xlu0 %1300  ;;  %939 = vrot.lane.b32.xlu1 %v8071_v49, %s7189_s16  ;;  %v8159_v23 = vld [vmem:[#allocation2 + $0x187] sm:$0xff] }
 0x13b   : > { %2153 = vmatprep.mubr.f32.mxu0 %v1710_v63  ;;  %v1647_v9 = vsel %vm380_vm0, %v1134_v46, %v1301_v5 }
 0x13c   : > { %1584 = vrot.lane.b32.xlu0 %v8124_v45, %s7189_s16  ;;  %v912_v15 = vpop.permute.xlu1 %911 }
 0x13d   : > { %v1069_v11 = vsel %vm1064_vm1, %v1036_v19, %v912_v15  ;;  %v1005_v19 = vsel %vm380_vm0, %v7739_v6, %v7688_v27  ;;  %v1136_v15 = vld [vmem:[#allocation2 + $0x90] sm:$0xff]  ;;  %v1905_v27 = vld [vmem:[#allocation3 + $0x238] sm:$0xff] }
 0x13e   : > { %v1557_v2 = vpop.permute.xlu0 %1556  ;;  %1456 = vrot.lane.b32.xlu1 %v8136_v26, %s7188_s29  ;;  %2154 = vmatmul.mubr.f32.gmra.mrb[8].mxu0 %v1069_v11 }
 0x140   : > { %1330 = vrot.lane.b32.xlu0 %v7765_v42, %s7186_s20  ;;  %v1429_v33 = vpop.permute.xlu1 %1428  ;;  %v1037_v42 = vsel %vm1031_vm2, %v1004_v25, %v7877_v40  ;;  %v8168_v40 = vld [vmem:[#allocation2 + $0x190] sm:$0xff]  ;;  %v1006_v25 = vsel %vm380_vm0, %v7759_v21, %v7705_v39 }
 0x141   : > { %v1679_v17 = vsel %vm1031_vm2, %v1647_v9, %v1429_v33 }
 0x142   : > { %v1711_v10 = vsel %vm1064_vm1, %v1679_v17, %v1557_v2  ;;  %v1303_v32 = vpop.permute.xlu0 %1302  ;;  %941 = vrot.lane.b32.xlu1 %v8092_v60, %s7189_s16  ;;  %v1902_v2 = vld [vmem:[#allocation3 + $0x220] sm:$0xff]  ;;  %v8191_v17 = vld [vmem:[#allocation2 + $0x1a8] sm:$0xff] }
 0x143   : > { %2158 = vmatprep.mubr.f32.mxu0 %v1711_v10  ;;  %v1648_v63 = vsel %vm380_vm0, %v1135_v13, %v1303_v32  ;;  %6856 = vmatprep.mubr.msk.f32.mxu1 %vm380_vm0, %v1902_v2  ;;  %v1137_v13 = vld [vmem:[#allocation2 + $0xa8] sm:$0xff] }
 0x144   : > { %1586 = vrot.lane.b32.xlu0 %v8147_v53, %s7189_s16  ;;  %v914_v3 = vpop.permute.xlu1 %913  ;;  %6857 = vmatmul.mubr.msk.f32.gmra.mrb[22].mxu1 %vm380_vm0, %v1905_v27 }
 0x145   : > { %v1070_v31 = vsel %vm1064_vm1, %v1037_v42, %v914_v3  ;;  %v8203_v3 = vld [vmem:[#allocation2 + $0x1a7] sm:$0xff] }
 0x146   : > { %v1559_v5 = vpop.permute.xlu0 %1558  ;;  %1458 = vrot.lane.b32.xlu1 %v8159_v23, %s7188_s29  ;;  %2159 = vmatmul.mubr.f32.gmra.mrb[10].mxu0 %v1070_v31 }
 0x148   : > { %1332 = vrot.lane.b32.xlu0 %v7789_v20, %s7186_s20  ;;  %v1431_v29 = vpop.permute.xlu1 %1430  ;;  %v1038_v20 = vsel %vm1031_vm2, %v1005_v19, %v7871_v35 }
 0x149   : > { %v1680_v59 = vsel %vm1031_vm2, %v1648_v63, %v1431_v29 }
 0x14a   : > { %v1712_v7 = vsel %vm1064_vm1, %v1680_v59, %v1559_v5  ;;  %v1305_v46 = vpop.permute.xlu0 %1304  ;;  %943 = vrot.lane.b32.xlu1 %v8115_v62, %s7189_s16 }
 0x14b   : > { %2163 = vmatprep.mubr.f32.mxu0 %v1712_v7  ;;  %v1649_v18 = vsel %vm380_vm0, %v1136_v15, %v1305_v46  ;;  %v1007_v7 = vsel %vm380_vm0, %v7783_v8, %v7697_v37  ;;  %v1138_v46 = vld [vmem:[#allocation2 + $0xb0] sm:$0xff]  ;;  %v1911_v37 = vld [vmem:[#allocation3 + $0x268] sm:$0xff] }
 0x14c   : > { %1588 = vrot.lane.b32.xlu0 %v8168_v40, %s7189_s16  ;;  %v916_v11 = vpop.permute.xlu1 %915  ;;  %v8224_v15 = vld [vmem:[#allocation2 + $0x1af] sm:$0xff] }
 0x14d   : > { %v1071_v9 = vsel %vm1064_vm1, %v1038_v20, %v916_v11  ;;  %v1908_v11 = vld [vmem:[#allocation3 + $0x250] sm:$0xff] }
 0x14e   : > { %v1561_v33 = vpop.permute.xlu0 %1560  ;;  %1460 = vrot.lane.b32.xlu1 %v8180_v50, %s7188_s29  ;;  %2164 = vmatmul.mubr.f32.gmra.mrb[12].mxu0 %v1071_v9 }
 0x14f   : > { %6859 = vmatprep.mubr.msk.f32.mxu1 %vm380_vm0, %v1908_v11 }
 0x150   : > { %1334 = vrot.lane.b32.xlu0 %v7813_v28, %s7186_s20  ;;  %v1433_v6 = vpop.permute.xlu1 %1432  ;;  %v1039_v28 = vsel %vm1031_vm2, %v1006_v25, %v7893_v44  ;;  %v8212_v44 = vld [vmem:[#allocation2 + $0x1b0] sm:$0xff]  ;;  %6860 = vmatmul.mubr.msk.f32.gmra.mrb[24].mxu1 %vm380_vm0, %v1911_v37 }
 0x151   : > { %v1681_v35 = vsel %vm1031_vm2, %v1649_v18, %v1433_v6  ;;  %v8235_v18 = vld [vmem:[#allocation2 + $0x1c8] sm:$0xff]  ;;  %v1008_v6 = vsel %vm380_vm0, %v7807_v22, %v7715_v56 }
 0x152   : > { %v1713_v10 = vsel %vm1064_vm1, %v1681_v35, %v1561_v33  ;;  %v1307_v32 = vpop.permute.xlu0 %1306  ;;  %945 = vrot.lane.b32.xlu1 %v8136_v26, %s7189_s16  ;;  %v1139_v35 = vld [vmem:[#allocation2 + $0xc8] sm:$0xff] }
 0x153   : > { %2168 = vmatprep.mubr.f32.mxu0 %v1713_v10  ;;  %v1650_v63 = vsel %vm380_vm0, %v1137_v13, %v1307_v32  ;;  %v8247_v32 = vld [vmem:[#allocation2 + $0x1c7] sm:$0xff] }
 0x154   : > { %1590 = vrot.lane.b32.xlu0 %v8191_v17, %s7189_s16  ;;  %v918_v42 = vpop.permute.xlu1 %917  ;;  %v607_v56 = vld [vmem:[#allocation2 + $0x1a7] sm:$0xff] }
 0x155   : > { %v1072_v31 = vsel %vm1064_vm1, %v1039_v28, %v918_v42  ;;  %v8256_v42 = vld [vmem:[#allocation2 + $0x1d0] sm:$0xff] }
 0x156   : > { %v1563_v5 = vpop.permute.xlu0 %1562  ;;  %1462 = vrot.lane.b32.xlu1 %v8203_v3, %s7188_s29  ;;  %2169 = vmatmul.mubr.f32.gmra.mrb[14].mxu0 %v1072_v31 }
 0x158   : > { %1336 = vrot.lane.b32.xlu0 %v7837_v24, %s7186_s20  ;;  %v1435_v39 = vpop.permute.xlu1 %1434  ;;  %v1040_v24 = vsel %vm1031_vm2, %v1007_v7, %v7881_v30  ;;  %v1914_v7 = vld [vmem:[#allocation3 + $0x280] sm:$0xff] }
 0x159   : > { %v1682_v21 = vsel %vm1031_vm2, %v1650_v63, %v1435_v39  ;;  %v1140_v39 = vld [vmem:[#allocation2 + $0xd0] sm:$0xff]  ;;  %6862 = vmatprep.mubr.msk.f32.mxu1 %vm380_vm0, %v1914_v7 }
 0x15a   : > { %v1714_v29 = vsel %vm1064_vm1, %v1682_v21, %v1563_v5  ;;  %v1309_v59 = vpop.permute.xlu0 %1308  ;;  %947 = vrot.lane.b32.xlu1 %v8159_v23, %s7189_s16  ;;  %v1009_v5 = vsel %vm380_vm0, %v7831_v61, %v7709_v54  ;;  %v8263_v21 = vld [vmem:[#allocation2 + $0x1cf] sm:$0xff]  ;;  %v1917_v54 = vld [vmem:[#allocation3 + $0x298] sm:$0xff] }
 0x15b   : > { %2173 = vmatprep.mubr.f32.mxu0 %v1714_v29  ;;  %v1651_v9 = vsel %vm380_vm0, %v1138_v46, %v1309_v59  ;;  %v608_v61 = vld [vmem:[#allocation2 + $0x1af] sm:$0xff]  ;;  %6863 = vmatmul.mubr.msk.f32.gmra.mrb[26].mxu1 %vm380_vm0, %v1917_v54  ;;  %v10975_v54 = vld [vmem:[#allocation35_spill] sm:$0xff] }
 0x15c   : > { %1592 = vrot.lane.b32.xlu0 %v8212_v44, %s7189_s16  ;;  %v920_v19 = vpop.permute.xlu1 %919  ;;  %v1920_v7 = vld [vmem:[#allocation3 + $0x2b0] sm:$0xff] }
 0x15d   : > { %v1073_v20 = vsel %vm1064_vm1, %v1040_v24, %v920_v19  ;;  %6865 = vmatprep.mubr.msk.f32.mxu1 %vm380_vm0, %v1920_v7  ;;  %v10979_v7 = vld [vmem:[#allocation26_spill] sm:$0xff] }
 0x15e   : > { %v1565_v2 = vpop.permute.xlu0 %1564  ;;  %1464 = vrot.lane.b32.xlu1 %v8224_v15, %s7188_s29  ;;  %2174 = vmatmul.mubr.f32.gmra.mrb[16].mxu0 %v1073_v20  ;;  %v8278_v20 = vld [vmem:[#allocation2 + $0x1e8] sm:$0xff] }
 0x160   : > { %1338 = vrot.lane.b32.xlu0 %v7861_v36, %s7186_s20  ;;  %v1437_v30 = vpop.permute.xlu1 %1436  ;;  %v1041_v36 = vsel %vm1031_vm2, %v1008_v6, %v7901_v41 }
 0x161   : > { %v1683_v8 = vsel %vm1031_vm2, %v1651_v9, %v1437_v30  ;;  %v1141_v30 = vld [vmem:[#allocation2 + $0xe8] sm:$0xff] }
 0x162   : > { %v1715_v33 = vsel %vm1064_vm1, %v1683_v8, %v1565_v2  ;;  %v1311_v27 = vpop.permute.xlu0 %1310  ;;  %949 = vrot.lane.b32.xlu1 %v8180_v50, %s7189_s16  ;;  %v10971_v2 = vld [vmem:[#allocation5_spill] sm:$0xff] }
 0x163   : > { %2178 = vmatprep.mubr.f32.mxu0 %v1715_v33  ;;  %v1652_v13 = vsel %vm380_vm0, %v1139_v35, %v1311_v27  ;;  %v1010_v37 = vsel %vm380_vm0, %v7855_v43, %v10971_v2  ;;  %v8285_v8 = vld [vmem:[#allocation2 + $0x1e7] sm:$0xff] }
 0x164   : > { %1594 = vrot.lane.b32.xlu0 %v8235_v18, %s7189_s16  ;;  %v922_v10 = vpop.permute.xlu1 %921  ;;  %v1043_v33 = vsel %vm1031_vm2, %v1010_v37, %v7917_v47  ;;  %v10976_v37 = vld [vmem:[#allocation7_spill] sm:$0xff] }
 0x165   : > { %v1074_v25 = vsel %vm1064_vm1, %v1041_v36, %v922_v10  ;;  %v609_v10 = vld [vmem:[#allocation2 + $0x1c7] sm:$0xff] }
 0x166   : > { %v1567_v28 = vpop.permute.xlu0 %1566  ;;  %1466 = vrot.lane.b32.xlu1 %v8247_v32, %s7188_s29  ;;  %2179 = vmatmul.mubr.f32.gmra.mrb[18].mxu0 %v1074_v25  ;;  %v10972_v25 = vld [vmem:[#allocation29_spill] sm:$0xff] }
 0x168   : > { %1340 = vrot.lane.b32.xlu0 %v7885_v34, %s7186_s20  ;;  %v1439_v22 = vpop.permute.xlu1 %1438  ;;  %v1042_v34 = vsel %vm1031_vm2, %v1009_v5, %v7895_v12  ;;  %v8309_v5 = vld [vmem:[#allocation2 + $0x1ef] sm:$0xff] }
 0x169   : > { %v1684_v41 = vsel %vm1031_vm2, %v1652_v13, %v1439_v22 }
 0x16a   : > { %v1716_v31 = vsel %vm1064_vm1, %v1684_v41, %v1567_v28  ;;  %v1313_v63 = vpop.permute.xlu0 %1312  ;;  %951 = vrot.lane.b32.xlu1 %v607_v56, %s7189_s16  ;;  %v8302_v28 = vld [vmem:[#allocation2 + $0x1f0] sm:$0xff]  ;;  %v10973_v41 = vld [vmem:[#allocation4_spill] sm:$0xff] }
 0x16b   : > { %2183 = vmatprep.mubr.f32.mxu0 %v1716_v31  ;;  %v1653_v46 = vsel %vm380_vm0, %v1140_v39, %v1313_v63  ;;  %v1011_v31 = vsel %vm380_vm0, %v7879_v38, %v10973_v41  ;;  %v1142_v63 = vld [vmem:[#allocation2 + $0xf0] sm:$0xff]  ;;  %v10974_v39 = vld [vmem:[#allocation25_spill] sm:$0xff] }
 0x16c   : > { %1596 = vrot.lane.b32.xlu0 %v8256_v42, %s7189_s16  ;;  %v924_v29 = vpop.permute.xlu1 %923  ;;  %v1923_v38 = vld [vmem:[#allocation3 + $0x2c8] sm:$0xff]  ;;  %v8348_v41 = vld [vmem:[#allocation2 + $0x210] sm:$0xff] }
 0x16d   : > { %v1075_v59 = vsel %vm1064_vm1, %v1042_v34, %v924_v29  ;;  %v1044_v34 = vsel %vm1031_vm2, %v1011_v31, %v10974_v39  ;;  %6866 = vmatmul.mubr.msk.f32.gmra.mrb[28].mxu1 %vm380_vm0, %v1923_v38  ;;  %v10978_v39 = vld [vmem:[#allocation6_spill] sm:$0xff] }
 0x16e   : > { %v1569_v24 = vpop.permute.xlu0 %1568  ;;  %1468 = vrot.lane.b32.xlu1 %v8263_v21, %s7188_s29  ;;  %2184 = vmatmul.mubr.f32.gmra.mrb[20].mxu0 %v1075_v59 }
 0x170   : > { %1342 = vrot.lane.b32.xlu0 %v7909_v55, %s7186_s20  ;;  %v1441_v12 = vpop.permute.xlu1 %1440  ;;  %v8287_v55 = vpop.f32.mrb[0].mxu1 }
 0x171   : > { %v1685_v19 = vsel %vm1031_vm2, %v1653_v46, %v1441_v12  ;;  %v8293_v6 = vpop.f32.mrb[1].mxu1 }
 0x172   : > { %v1717_v11 = vsel %vm1064_vm1, %v1685_v19, %v1569_v24  ;;  %v1315_v9 = vpop.permute.xlu0 %1314  ;;  %953 = vrot.lane.b32.xlu1 %v608_v61, %s7189_s16  ;;  %v8324_v19 = vld [vmem:[#allocation2 + $0x208] sm:$0xff] }
 0x173   : > { %2188 = vmatprep.mubr.f32.mxu0 %v1717_v11  ;;  %v1654_v36 = vsel %vm380_vm0, %v1141_v30, %v1315_v9  ;;  %v1012_v30 = vsel %vm380_vm0, %v7903_v14, %v10976_v37  ;;  %v1800_v14 = vld [vmem:[#allocation2 + $0x229] sm:$0xff] }
 0x174   : > { %1598 = vrot.lane.b32.xlu0 %v8278_v20, %s7189_s16  ;;  %v926_v27 = vpop.permute.xlu1 %925  ;;  %1832 = vst.msk [vmem:[#allocation3 + $0x2e0] sm:$0xff] %vm380_vm0, %v1800_v14 }
 0x175   : > { %v1076_v35 = vsel %vm1064_vm1, %v1043_v33, %v926_v27  ;;  %v1143_v33 = vld [vmem:[#allocation2 + $0x108] sm:$0xff] }
 0x176   : > { %v1571_v43 = vpop.permute.xlu0 %1570  ;;  %1470 = vrot.lane.b32.xlu1 %v8285_v8, %s7188_s29  ;;  %2189 = vmatmul.mubr.f32.gmra.mrb[22].mxu0 %v1076_v35  ;;  %v1222_v27 = vld [vmem:[#allocation2 + $0x207] sm:$0xff] }
 0x178   : > { %1344 = vrot.lane.b32.xlu0 %v10972_v25, %s7186_s20  ;;  %v1443_v47 = vpop.permute.xlu1 %1442 }
 0x179   : > { %v1686_v13 = vsel %vm1031_vm2, %v1654_v36, %v1443_v47  ;;  %v10977_v36 = vld [vmem:[#allocation27_spill] sm:$0xff] }
 0x17a   : > { %v1718_v56 = vsel %vm1064_vm1, %v1686_v13, %v1571_v43  ;;  %v1317_v22 = vpop.permute.xlu0 %1316  ;;  %955 = vrot.lane.b32.xlu1 %v609_v10, %s7189_s16  ;;  %v1045_v43 = vsel %vm1031_vm2, %v1012_v30, %v10977_v36  ;;  %v1801_v13 = vld [vmem:[#allocation2 + $0x231] sm:$0xff] }
 0x17b   : > { %2193 = vmatprep.mubr.f32.mxu0 %v1718_v56  ;;  %v1655_v46 = vsel %vm380_vm0, %v1142_v63, %v1317_v22  ;;  %1833 = vst.msk [vmem:[#allocation3 + $0x2f8] sm:$0xff] %vm380_vm0, %v1801_v13 }
 0x17c   : > { %1600 = vrot.lane.b32.xlu0 %v8302_v28, %s7189_s16  ;;  %v928_v29 = vpop.permute.xlu1 %927  ;;  %v8329_v2 = vpop.f32.mrb[2].mxu1 }
 0x17d   : > { %v1077_v59 = vsel %vm1064_vm1, %v1044_v34, %v928_v29  ;;  %v8334_v35 = vpop.f32.mrb[3].mxu1  ;;  %v1013_v34 = vsel %vm380_vm0, %v7927_v4, %v10978_v39  ;;  %v1144_v29 = vld [vmem:[#allocation2 + $0x110] sm:$0xff]  ;;  %v1926_v4 = vld [vmem:[#allocation3 + $0x2e0] sm:$0xff]  ;;  %v1256_v39 = vld [vmem:[#allocation2 + $0x228] sm:$0xff] }
 0x17e   : > { %v1573_v24 = vpop.permute.xlu0 %1572  ;;  %1472 = vrot.lane.b32.xlu1 %v8309_v5, %s7188_s29  ;;  %2194 = vmatmul.mubr.f32.gmra.mrb[24].mxu0 %v1077_v59  ;;  %v8356_v59 = vld [vmem:[#allocation2 + $0x20f] sm:$0xff]  ;;  %3996 = vst.msk [vmem:[#allocation3 + $0x2e0] sm:$0xff] %vm380_vm0, %v1800_v14 }
 0x17f   : > { %6868 = vmatprep.mubr.msk.f32.mxu1 %vm380_vm0, %v1926_v4  ;;  %v10985_v4 = vld [vmem:[#allocation39_spill] sm:$0xff] }
 0x180   : > { %1346 = vrot.lane.b32.xlu0 %v10975_v54, %s7186_s20  ;;  %v1445_v61 = vpop.permute.xlu1 %1444 }
 0x181   : > { %v1687_v12 = vsel %vm1031_vm2, %v1655_v46, %v1445_v61  ;;  %v1046_v46 = vsel %vm1031_vm2, %v1013_v34, %v10979_v7  ;;  %v4126_v34 = vld [vmem:[%s10912_s5 + $0x100] sm:$0xff] }
 0x182   : > { %v1719_v11 = vsel %vm1064_vm1, %v1687_v12, %v1573_v24  ;;  %v1319_v9 = vpop.permute.xlu0 %1318  ;;  %957 = vrot.lane.b32.xlu1 %v8263_v21, %s7189_s16  ;;  %v1929_v12 = vld [vmem:[#allocation3 + $0x2f8] sm:$0xff] }
 0x183   : > { %2198 = vmatprep.mubr.f32.mxu0 %v1719_v11  ;;  %v1656_v25 = vsel %vm380_vm0, %v1143_v33, %v1319_v9  ;;  %v10980_v11 = vld [vmem:[#allocation45_spill] sm:$0xff]  ;;  %6869 = vmatmul.mubr.msk.f32.gmra.mrb[30].mxu1 %vm380_vm0, %v1929_v12  ;;  %3997 = vst.msk [vmem:[#allocation3 + $0x2f8] sm:$0xff] %vm380_vm0, %v1801_v13  ;;  %v10983_v13 = vld [vmem:[#allocation30_spill] sm:$0xff] }
 0x184   : > { %1602 = vrot.lane.b32.xlu0 %v8324_v19, %s7189_s16  ;;  %v930_v10 = vpop.permute.xlu1 %929 }
 0x185   : > { %v1078_v21 = vsel %vm1064_vm1, %v1045_v43, %v930_v10  ;;  %v10981_v43 = vld [vmem:[#allocation9_spill] sm:$0xff] }
 0x186   : > { %v1575_v47 = vpop.permute.xlu0 %1574  ;;  %1474 = vrot.lane.b32.xlu1 %v1222_v27, %s7188_s29  ;;  %2199 = vmatmul.mubr.f32.gmra.mrb[26].mxu0 %v1078_v21  ;;  %v10982_v10 = vld [vmem:[#allocation33_spill] sm:$0xff] }
 0x187   : > { %v1014_v21 = vsel %vm380_vm0, %v10982_v10, %v10981_v43 }
 0x188   : > { %1348 = vrot.lane.b32.xlu0 %v7985_v58, %s7186_s20  ;;  %v1447_v56 = vpop.permute.xlu1 %1446 }
 0x189   : > { %v1688_v22 = vsel %vm1031_vm2, %v1656_v25, %v1447_v56  ;;  %v1145_v25 = vld [vmem:[#allocation2 + $0x128] sm:$0xff]  ;;  %v1047_v56 = vsel %vm1031_vm2, %v1014_v21, %v10983_v13  ;;  %v1257_v21 = vld [vmem:[#allocation2 + $0x230] sm:$0xff] }
 0x18a   : > { %v1720_v31 = vsel %vm1064_vm1, %v1688_v22, %v1575_v47  ;;  %v1321_v63 = vpop.permute.xlu0 %1320  ;;  %959 = vrot.lane.b32.xlu1 %v8285_v8, %s7189_s16  ;;  %v1224_v47 = vld [vmem:[#allocation2 + $0x227] sm:$0xff] }
 0x18b   : > { %2203 = vmatprep.mubr.f32.mxu0 %v1720_v31  ;;  %v1657_v61 = vsel %vm380_vm0, %v1144_v29, %v1321_v63  ;;  %v4127_v29 = vld [vmem:[%s10912_s5 + $0x108] sm:$0xff] }
 0x18c   : > { %1604 = vrot.lane.b32.xlu0 %v8348_v41, %s7189_s16  ;;  %v932_v24 = vpop.permute.xlu1 %931  ;;  %v7031_v7 = vpack.c.bf16 %v4127_v29, %v4126_v34  ;;  %v10988_v29 = vld [vmem:[#allocation32_spill] sm:$0xff] }
 0x18d   : > { %v1079_v38 = vsel %vm1064_vm1, %v1046_v46, %v932_v24  ;;  %v8376_v36 = vpop.f32.mrb[4].mxu1  ;;  %v1225_v24 = vld [vmem:[#allocation2 + $0x22f] sm:$0xff] }
 0x18e   : > { %v1577_v8 = vpop.permute.xlu0 %1576  ;;  %1476 = vrot.lane.b32.xlu1 %v8356_v59, %s7188_s29  ;;  %2204 = vmatmul.mubr.f32.gmra.mrb[28].mxu0 %v1079_v38  ;;  %v8381_v14 = vpop.f32.mrb[5].mxu1 }
 0x18f   : > { %7032 = vmatprep.subr.bf16.mxu0 %v7031_v7 }
 0x190   : > { %1350 = vrot.lane.b32.xlu0 %v10980_v11, %s7186_s20  ;;  %v1449_v9 = vpop.permute.xlu1 %1448  ;;  %v1146_v11 = vld [vmem:[#allocation2 + $0x130] sm:$0xff]  ;;  %7034 = vmatpush3.bf16.msra.mxu0 %v7031_v7 }
 0x191   : > { %v1689_v37 = vsel %vm1031_vm2, %v1657_v61, %v1449_v9  ;;  %v4129_v9 = vld [vmem:[%s10912_s5 + $0x118] sm:$0xff] }
 0x192   : > { %v1721_v30 = vsel %vm1064_vm1, %v1689_v37, %v1577_v8  ;;  %v1323_v33 = vpop.permute.xlu0 %1322  ;;  %961 = vrot.lane.b32.xlu1 %v8309_v5, %s7189_s16  ;;  %v10984_v8 = vld [vmem:[#allocation8_spill] sm:$0xff] }
 0x193   : > { %2208 = vmatprep.mubr.f32.mxu0 %v1721_v30  ;;  %v1658_v31 = vsel %vm380_vm0, %v1145_v25, %v1323_v33  ;;  %v1015_v12 = vsel %vm380_vm0, %v10985_v4, %v10984_v8  ;;  %v10986_v37 = vld [vmem:[#allocation28_spill] sm:$0xff] }
 0x194   : > { %835 = vrot.lane.b32.xlu0 %v10975_v54, %s7188_s29  ;;  %v934_v22 = vpop.permute.xlu1 %933  ;;  %v1048_v30 = vsel %vm1031_vm2, %v1015_v12, %v10986_v37  ;;  %v10989_v12 = vld [vmem:[#allocation10_spill] sm:$0xff] }
 0x195   : > { %v1080_v5 = vsel %vm1064_vm1, %v1047_v56, %v934_v22  ;;  %v2686_v22 = vld [vmem:[#allocation2 + $0x8] sm:$0xff] }
 0x196   : > { %v1579_v63 = vpop.permute.xlu0 %1578  ;;  %1478 = vrot.lane.b32.xlu1 %v1224_v47, %s7188_s29  ;;  %2209 = vmatmul.mubr.f32.gmra.mrb[30].mxu0 %v1080_v5 }
 0x198   : > { %963 = vrot.lane.b32.xlu0 %v1222_v27, %s7189_s16  ;;  %v1451_v54 = vpop.permute.xlu1 %1450  ;;  %v4128_v27 = vld [vmem:[%s10912_s5 + $0x110] sm:$0xff] }
 0x199   : > { %v1690_v46 = vsel %vm1031_vm2, %v1658_v31, %v1451_v54  ;;  %v7035_v43 = vpack.c.bf16 %v4129_v9, %v4128_v27 }
 0x19a   : > { %v1722_v38 = vsel %vm1064_vm1, %v1690_v46, %v1579_v63  ;;  %v1325_v61 = vpop.permute.xlu0 %1324  ;;  %1606 = vrot.lane.b32.xlu1 %v1256_v39, %s7189_s16  ;;  %v10987_v39 = vld [vmem:[#allocation11_spill] sm:$0xff] }
 0x19b   : > { %2213 = vmatprep.mubr.f32.mxu0 %v1722_v38  ;;  %v1659_v25 = vsel %vm380_vm0, %v1146_v11, %v1325_v61  ;;  %7036 = vmatprep.subr.bf16.mxu0 %v7035_v43  ;;  %v1017_v11 = vsel %vm380_vm0, %v8025_v0, %v10989_v12  ;;  %v10991_v0 = vld [vmem:[#allocation13_spill] sm:$0xff] }
 0x19c   : > { %v936_v33 = vpop.permute.xlu1 %935  ;;  %1480 = vrot.lane.b32.xlu0 %v1225_v24, %s7188_s29  ;;  %7038 = vmatpush3.bf16.msra.mxu0 %v7035_v43 }
 0x19d   : > { %v1081_v10 = vsel %vm1064_vm1, %v1048_v30, %v936_v33 }
 0x19e   : > { %v1581_v47 = vpop.permute.xlu0 %1580  ;;  %1352 = vrot.lane.b32.xlu1 %v8048_v52, %s7186_s20  ;;  %2214 = vmatmul.mubr.f32.gmra.mrb[32].mxu0 %v1081_v10  ;;  %v1016_v52 = vsel %vm380_vm0, %v8003_v16, %v10987_v39  ;;  %v2687_v16 = vld [vmem:[#allocation2 + $0x10] sm:$0xff] }
 0x19f   : > { %v8421_v63 = vpop.f32.mrb[6].mxu1  ;;  %v1049_v54 = vsel %vm1031_vm2, %v1016_v52, %v10988_v29 }
 0x1a0   : > { %v1453_v13 = vpop.permute.xlu1 %1452  ;;  %1608 = vrot.lane.b32.xlu0 %v1257_v21, %s7189_s16  ;;  %v8426_v34 = vpop.f32.mrb[7].mxu1 }
 0x1a1   : > { %v1691_v56 = vsel %vm1031_vm2, %v1659_v25, %v1453_v13 }
 0x1a2   : > { %v1723_v5 = vsel %vm1064_vm1, %v1691_v56, %v1581_v47  ;;  %v1327_v31 = vpop.permute.xlu0 %1326  ;;  %837 = vrot.lane.b32.xlu1 %v7985_v58, %s7188_s29  ;;  %v1018_v47 = vsel %vm380_vm0, %v8045_v1, %v10991_v0  ;;  %v10992_v56 = vld [vmem:[#allocation36_spill] sm:$0xff] }
 0x1a3   : > { %2218 = vmatprep.mubr.f32.mxu0 %v1723_v5  ;;  %v1660_v58 = vsel %vm380_vm0, %v8060_v51, %v1327_v31  ;;  %v10990_v51 = vld [vmem:[#allocation31_spill] sm:$0xff] }
 0x1a4   : > { %v938_v7 = vpop.permute.xlu1 %937  ;;  %2814 = vrot.lane.b32.xlu0 %v2686_v22, %s7186_s20  ;;  %v1050_v27 = vsel %vm1031_vm2, %v1017_v11, %v10990_v51 }
 0x1a5   : > { %v1082_v46 = vsel %vm1064_vm1, %v1049_v54, %v938_v7  ;;  %v10993_v7 = vld [vmem:[#allocation12_spill] sm:$0xff] }
 0x1a6   : > { %v1583_v24 = vpop.permute.xlu0 %1582  ;;  %965 = vrot.lane.b32.xlu1 %v8356_v59, %s7189_s16  ;;  %2219 = vmatmul.mubr.f32.gmra.mrb[34].mxu0 %v1082_v46  ;;  %v1019_v46 = vsel %vm380_vm0, %v8071_v49, %v10993_v7  ;;  %v10995_v49 = vld [vmem:[#allocation15_spill] sm:$0xff] }
 0x1a8   : > { %v1455_v38 = vpop.permute.xlu1 %1454 }
 0x1a9   : > { %v1692_v61 = vsel %vm1031_vm2, %v1660_v58, %v1455_v38  ;;  %v10994_v58 = vld [vmem:[#allocation34_spill] sm:$0xff] }
 0x1aa   : > { %v1724_v8 = vsel %vm1064_vm1, %v1692_v61, %v1583_v24  ;;  %v1329_v4 = vpop.permute.xlu0 %1328  ;;  %2816 = vrot.lane.b32.xlu1 %v2687_v16, %s7186_s20  ;;  %v1052_v24 = vsel %vm1031_vm2, %v1019_v46, %v10994_v58 }
 0x1ab   : > { %2223 = vmatprep.mubr.f32.mxu0 %v1724_v8  ;;  %v1661_v37 = vsel %vm380_vm0, %v8080_v57, %v1329_v4  ;;  %v1051_v57 = vsel %vm1031_vm2, %v1018_v47, %v10992_v56  ;;  %v10997_v47 = vld [vmem:[#allocation14_spill] sm:$0xff] }
 0x1ac   : > { %v940_v9 = vpop.permute.xlu1 %939  ;;  %v1021_v56 = vsel %vm380_vm0, %v8115_v62, %v10997_v47  ;;  %v10999_v62 = vld [vmem:[#allocation17_spill] sm:$0xff] }
 0x1ad   : > { %v1083_v59 = vsel %vm1064_vm1, %v1050_v27, %v940_v9  ;;  %v1020_v27 = vsel %vm380_vm0, %v8092_v60, %v10995_v49  ;;  %v1022_v46 = vsel %vm380_vm0, %v8136_v26, %v10999_v62 }
 0x1ae   : > { %v1585_v30 = vpop.permute.xlu0 %1584  ;;  %2224 = vmatmul.mubr.f32.gmra.mrb[36].mxu0 %v1083_v59  ;;  %v10996_v59 = vld [vmem:[#allocation38_spill] sm:$0xff] }
 0x1af   : > { %v8449_v25 = vpop.f32.mrb[8].mxu1 }
 0x1b0   : > { %v1457_v33 = vpop.permute.xlu1 %1456  ;;  %v8454_v13 = vpop.f32.mrb[9].mxu1 }
 0x1b1   : > { %v1693_v43 = vsel %vm1031_vm2, %v1661_v37, %v1457_v33 }
 0x1b2   : > { %v1725_v10 = vsel %vm1064_vm1, %v1693_v43, %v1585_v30  ;;  %v1331_v21 = vpop.permute.xlu0 %1330 }
 0x1b3   : > { %2228 = vmatprep.mubr.f32.mxu0 %v1725_v10  ;;  %v1662_v31 = vsel %vm380_vm0, %v8103_v48, %v1331_v21 }
 0x1b4   : > { %v942_v22 = vpop.permute.xlu1 %941 }
 0x1b5   : > { %v1084_v5 = vsel %vm1064_vm1, %v1051_v57, %v942_v22  ;;  %v10998_v57 = vld [vmem:[#allocation37_spill] sm:$0xff] }
 0x1b6   : > { %v1587_v39 = vpop.permute.xlu0 %1586  ;;  %2229 = vmatmul.mubr.f32.gmra.mrb[38].mxu0 %v1084_v5  ;;  %v1054_v22 = vsel %vm1031_vm2, %v1021_v56, %v10998_v57  ;;  %v11004_v56 = vld [vmem:[#allocation43_spill] sm:$0xff] }
 0x1b8   : > { %v1459_v52 = vpop.permute.xlu1 %1458 }
 0x1b9   : > { %v1694_v29 = vsel %vm1031_vm2, %v1662_v31, %v1459_v52  ;;  %v8473_v51 = vpop.f32.mrb[10].mxu1 }
 0x1ba   : > { %v1726_v54 = vsel %vm1064_vm1, %v1694_v29, %v1587_v39  ;;  %v1333_v1 = vpop.permute.xlu0 %1332  ;;  %v8478_v9 = vpop.f32.mrb[11].mxu1 }
 0x1bb   : > { %2233 = vmatprep.mubr.f32.mxu0 %v1726_v54  ;;  %v1663_v48 = vsel %vm380_vm0, %v8124_v45, %v1333_v1  ;;  %v1053_v45 = vsel %vm1031_vm2, %v1020_v27, %v10996_v59  ;;  %v11002_v27 = vld [vmem:[#allocation40_spill] sm:$0xff] }
 0x1bc   : > { %v944_v16 = vpop.permute.xlu1 %943 }
 0x1bd   : > { %v1085_v38 = vsel %vm1064_vm1, %v1052_v24, %v944_v16  ;;  %v11000_v24 = vld [vmem:[#allocation41_spill] sm:$0xff] }
 0x1be   : > { %v1589_v61 = vpop.permute.xlu0 %1588  ;;  %2234 = vmatmul.mubr.f32.gmra.mrb[40].mxu0 %v1085_v38 }
 0x1c0   : > { %v1461_v8 = vpop.permute.xlu1 %1460 }
 0x1c1   : > { %v1695_v4 = vsel %vm1031_vm2, %v1663_v48, %v1461_v8 }
 0x1c2   : > { %v1727_v12 = vsel %vm1064_vm1, %v1695_v4, %v1589_v61  ;;  %v1335_v11 = vpop.permute.xlu0 %1334 }
 0x1c3   : > { %2238 = vmatprep.mubr.f32.mxu0 %v1727_v12  ;;  %v1664_v33 = vsel %vm380_vm0, %v8147_v53, %v1335_v11  ;;  %v11001_v11 = vld [vmem:[#allocation16_spill] sm:$0xff] }
 0x1c4   : > { %v946_v37 = vpop.permute.xlu1 %945  ;;  %v1023_v49 = vsel %vm380_vm0, %v8159_v23, %v11001_v11  ;;  %v11003_v23 = vld [vmem:[#allocation19_spill] sm:$0xff]  ;;  %v8557_v11 = vld [vmem:[%s10911_s4] ss:$0 sm:$0xff] }
 0x1c5   : > { %v1086_v30 = vsel %vm1064_vm1, %v1053_v45, %v946_v37  ;;  %v1056_v59 = vsel %vm1031_vm2, %v1023_v49, %v11002_v27  ;;  %v11008_v27 = vld [vmem:[#allocation46_spill] sm:$0xff] }
 0x1c6   : > { %v1591_v43 = vpop.permute.xlu0 %1590  ;;  %2239 = vmatmul.mubr.f32.gmra.mrb[42].mxu0 %v1086_v30 }
 0x1c8   : > { %v1463_v10 = vpop.permute.xlu1 %1462 }
 0x1c9   : > { %v1696_v21 = vsel %vm1031_vm2, %v1664_v33, %v1463_v10 }
 0x1ca   : > { %v1728_v0 = vsel %vm1064_vm1, %v1696_v21, %v1591_v43  ;;  %v1337_v60 = vpop.permute.xlu0 %1336 }
 0x1cb   : > { %2243 = vmatprep.mubr.f32.mxu0 %v1728_v0  ;;  %v1665_v53 = vsel %vm380_vm0, %v8168_v40, %v1337_v60  ;;  %v1055_v40 = vsel %vm1031_vm2, %v1022_v46, %v11000_v24  ;;  %v1024_v60 = vsel %vm380_vm0, %v8180_v50, %v11003_v23 }
 0x1cc   : > { %v948_v5 = vpop.permute.xlu1 %947 }
 0x1cd   : > { %v1087_v31 = vsel %vm1064_vm1, %v1054_v22, %v948_v5 }
 0x1ce   : > { %v1593_v39 = vpop.permute.xlu0 %1592  ;;  %2244 = vmatmul.mubr.f32.gmra.mrb[44].mxu0 %v1087_v31 }
 0x1d0   : > { %v1465_v52 = vpop.permute.xlu1 %1464  ;;  %v8497_v7 = vpop.f32.mrb[12].mxu1 }
 0x1d1   : > { %v1697_v29 = vsel %vm1031_vm2, %v1665_v53, %v1465_v52  ;;  %v8502_v58 = vpop.f32.mrb[13].mxu1 }
 0x1d2   : > { %v1729_v54 = vsel %vm1064_vm1, %v1697_v29, %v1593_v39  ;;  %v1339_v1 = vpop.permute.xlu0 %1338  ;;  %v11005_v29 = vld [vmem:[#allocation18_spill] sm:$0xff] }
 0x1d3   : > { %2248 = vmatprep.mubr.f32.mxu0 %v1729_v54  ;;  %v1666_v48 = vsel %vm380_vm0, %v8191_v17, %v1339_v1  ;;  %v1025_v54 = vsel %vm380_vm0, %v8203_v3, %v11005_v29  ;;  %v11006_v1 = vld [vmem:[#allocation42_spill] sm:$0xff] }
 0x1d4   : > { %v950_v16 = vpop.permute.xlu1 %949  ;;  %v1058_v62 = vsel %vm1031_vm2, %v1025_v54, %v11006_v1  ;;  %v516_v1 = vld [vmem:[#allocation2 + $0x1cf] sm:$0xff] }
 0x1d5   : > { %v1088_v38 = vsel %vm1064_vm1, %v1055_v40, %v950_v16  ;;  %v8546_v16 = vld [vmem:[%s10910_s3] ss:$0 sm:$0xff] }
 0x1d6   : > { %v1595_v61 = vpop.permute.xlu0 %1594  ;;  %2249 = vmatmul.mubr.f32.gmra.mrb[46].mxu0 %v1088_v38 }
 0x1d8   : > { %v1467_v8 = vpop.permute.xlu1 %1466 }
 0x1d9   : > { %v1698_v4 = vsel %vm1031_vm2, %v1666_v48, %v1467_v8 }
 0x1da   : > { %v1730_v12 = vsel %vm1064_vm1, %v1698_v4, %v1595_v61  ;;  %v1341_v26 = vpop.permute.xlu0 %1340 }
 0x1db   : > { %2253 = vmatprep.mubr.f32.mxu0 %v1730_v12  ;;  %v1667_v17 = vsel %vm380_vm0, %v8212_v44, %v1341_v26  ;;  %v1057_v44 = vsel %vm1031_vm2, %v1024_v60, %v11004_v56  ;;  %v11007_v26 = vld [vmem:[#allocation21_spill] sm:$0xff] }
 0x1dc   : > { %v952_v45 = vpop.permute.xlu1 %951 }
 0x1dd   : > { %v1089_v37 = vsel %vm1064_vm1, %v1056_v59, %v952_v45 }
 0x1de   : > { %v1597_v30 = vpop.permute.xlu0 %1596  ;;  %2254 = vmatmul.mubr.f32.gmra.mrb[48].mxu0 %v1089_v37 }
 0x1df   : > { %v8521_v0 = vpop.f32.mrb[14].mxu1 }
 0x1e0   : > { %v1469_v33 = vpop.permute.xlu1 %1468  ;;  %v8526_v47 = vpop.f32.mrb[15].mxu1 }
 0x1e1   : > { %v1699_v43 = vsel %vm1031_vm2, %v1667_v17, %v1469_v33 }
 0x1e2   : > { %v1731_v10 = vsel %vm1064_vm1, %v1699_v43, %v1597_v30  ;;  %v1343_v21 = vpop.permute.xlu0 %1342 }
 0x1e3   : > { %2258 = vmatprep.mubr.f32.mxu0 %v1731_v10  ;;  %v1668_v5 = vsel %vm380_vm0, %v8235_v18, %v1343_v21 }
 0x1e4   : > { %v954_v57 = vpop.permute.xlu1 %953 }
 0x1e5   : > { %v1090_v22 = vsel %vm1064_vm1, %v1057_v44, %v954_v57 }
 0x1e6   : > { %v1599_v31 = vpop.permute.xlu0 %1598  ;;  %2259 = vmatmul.mubr.f32.gmra.mrb[50].mxu0 %v1090_v22  ;;  %v11009_v22 = vld [vmem:[#allocation20_spill] sm:$0xff] }
 0x1e8   : > { %v1471_v53 = vpop.permute.xlu1 %1470 }
 0x1e9   : > { %v1700_v39 = vsel %vm1031_vm2, %v1668_v5, %v1471_v53  ;;  %v11010_v5 = vld [vmem:[#allocation44_spill] sm:$0xff] }
 0x1ea   : > { %v1732_v52 = vsel %vm1064_vm1, %v1700_v39, %v1599_v31  ;;  %v1345_v50 = vpop.permute.xlu0 %1344 }
 0x1eb   : > { %2263 = vmatprep.mubr.f32.mxu0 %v1732_v52  ;;  %v1669_v18 = vsel %vm380_vm0, %v8256_v42, %v1345_v50  ;;  %v1026_v42 = vsel %vm380_vm0, %v8224_v15, %v11007_v26 }
 0x1ec   : > { %v956_v46 = vpop.permute.xlu1 %955  ;;  %v1059_v59 = vsel %vm1031_vm2, %v1026_v42, %v11008_v27 }
 0x1ed   : > { %v1091_v24 = vsel %vm1064_vm1, %v1058_v62, %v956_v46 }
 0x1ee   : > { %v1601_v40 = vpop.permute.xlu0 %1600  ;;  %2264 = vmatmul.mubr.f32.gmra.mrb[52].mxu0 %v1091_v24  ;;  %v8559_v49 = vpop.f32.mrb[16].mxu1 }
 0x1ef   : > { %v8564_v17 = vpop.f32.mrb[17].mxu1 }
 0x1f0   : > { %v1473_v38 = vpop.permute.xlu1 %1472 }
 0x1f1   : > { %v1701_v3 = vsel %vm1031_vm2, %v1669_v18, %v1473_v38  ;;  %v2135_v48 = vpop.f32.mrb[0].mxu0 }
 0x1f2   : > { %v1733_v61 = vsel %vm1064_vm1, %v1701_v3, %v1601_v40  ;;  %v1347_v8 = vpop.permute.xlu0 %1346  ;;  %v2136_v4 = vadd.f32 %v8546_v16, %v2135_v48  ;;  %v2137_v12 = vpop.f32.mrb[1].mxu0  ;;  %v11011_v3 = vld [vmem:[#allocation23_spill] sm:$0xff] }
 0x1f3   : > { %2268 = vmatprep.mubr.f32.mxu0 %v1733_v61  ;;  %v1670_v15 = vsel %vm380_vm0, %v8278_v20, %v1347_v8  ;;  %v1027_v20 = vsel %vm380_vm0, %v8247_v32, %v11009_v22  ;;  %v1028_v48 = vsel %vm380_vm0, %v516_v1, %v11011_v3  ;;  %v11012_v8 = vld [vmem:[#allocation47_spill] sm:$0xff] }
 0x1f4   : > { %v958_v45 = vpop.permute.xlu1 %957  ;;  %v2361_v37 = vadd.f32 %v8293_v6, %v2136_v4  ;;  %v1060_v31 = vsel %vm1031_vm2, %v1027_v20, %v11010_v5  ;;  %v1061_v4 = vsel %vm1031_vm2, %v1028_v48, %v11012_v8 }
 0x1f5   : > { %v1092_v30 = vsel %vm1064_vm1, %v1059_v59, %v958_v45 }
 0x1f6   : > { %v1603_v33 = vpop.permute.xlu0 %1602  ;;  %vm2519_vm3 = vcmp.gt.f32.partialorder %v2361_v37, 0.0  ;;  %v2558_v43 = vmul.f32 %v8557_v11, %v2361_v37  ;;  %2269 = vmatmul.mubr.f32.gmra.mrb[54].mxu0 %v1092_v30 }
 0x1f8   : > { %v1475_v10 = vpop.permute.xlu1 %1474  ;;  %v2590_v21 = vsel %vm2519_vm3, %v2361_v37, %v2558_v43  ;;  %v517_v43 = vld [vmem:[#allocation2 + $0x1e7] sm:$0xff] }
 0x1f9   : > { %v1702_v23 = vsel %vm1031_vm2, %v1670_v15, %v1475_v10  ;;  %2622 = vst.msk [vmem:[#allocation2 + $0x28] sm:$0xff] %vm380_vm0, %v2590_v21  ;;  %v2140_v60 = vpop.f32.mrb[2].mxu0 }
 0x1fa   : > { %v1734_v6 = vsel %vm1064_vm1, %v1702_v23, %v1603_v33  ;;  %v1349_v56 = vpop.permute.xlu0 %1348  ;;  %v2141_v44 = vadd.f32 %v8546_v16, %v2140_v60  ;;  %v2142_v57 = vpop.f32.mrb[3].mxu0 }
 0x1fb   : > { %2273 = vmatprep.mubr.f32.mxu0 %v1734_v6  ;;  %v1671_v50 = vsel %vm380_vm0, %v8302_v28, %v1349_v56  ;;  %v8591_v61 = vpop.f32.mrb[18].mxu1  ;;  %v11013_v6 = vld [vmem:[#allocation22_spill] sm:$0xff] }
 0x1fc   : > { %v960_v53 = vpop.permute.xlu1 %959  ;;  %v2366_v39 = vadd.f32 %v8287_v55, %v2141_v44  ;;  %v8596_v42 = vpop.f32.mrb[19].mxu1  ;;  %v1029_v56 = vsel %vm380_vm0, %v517_v43, %v11013_v6 }
 0x1fd   : > { %v1093_v52 = vsel %vm1064_vm1, %v1060_v31, %v960_v53 }
 0x1fe   : > { %v1605_v29 = vpop.permute.xlu0 %1604  ;;  %vm2520_vm4 = vcmp.gt.f32.partialorder %v2366_v39, 0.0  ;;  %v2559_v54 = vmul.f32 %v8557_v11, %v2366_v39  ;;  %2274 = vmatmul.mubr.f32.gmra.mrb[56].mxu0 %v1093_v52 }
 0x200   : > { %v1477_v62 = vpop.permute.xlu1 %1476  ;;  %v2591_v32 = vsel %vm2520_vm4, %v2366_v39, %v2559_v54  ;;  %v2688_v46 = vld [vmem:[#allocation2 + $0x28] sm:$0xff] }
 0x201   : > { %v1703_v24 = vsel %vm1031_vm2, %v1671_v50, %v1477_v62  ;;  %2623 = vst.msk [vmem:[#allocation2 + $0x30] sm:$0xff] %vm380_vm0, %v2591_v32  ;;  %2818 = vrot.lane.b32.xlu0 %v2688_v46, %s7186_s20  ;;  %v2145_v55 = vpop.f32.mrb[4].mxu0 }
 0x202   : > { %v1735_v18 = vsel %vm1064_vm1, %v1703_v24, %v1605_v29  ;;  %v1351_v40 = vpop.permute.xlu0 %1350  ;;  %v2146_v28 = vadd.f32 %v8546_v16, %v2145_v55  ;;  %v2147_v38 = vpop.f32.mrb[5].mxu0  ;;  %v518_v24 = vld [vmem:[#allocation2 + $0x1ef] sm:$0xff] }
 0x203   : > { %2278 = vmatprep.mubr.f32.mxu0 %v1735_v18  ;;  %v1672_v37 = vsel %vm380_vm0, %v8324_v19, %v1351_v40 }
 0x204   : > { %v962_v12 = vpop.permute.xlu1 %961  ;;  %v2371_v26 = vadd.f32 %v8334_v35, %v2146_v28  ;;  %v11014_v28 = vld [vmem:[#allocation24_spill] sm:$0xff] }
 0x205   : > { %v1094_v27 = vsel %vm1064_vm1, %v1061_v4, %v962_v12  ;;  %v1030_v38 = vsel %vm380_vm0, %v518_v24, %v11014_v28  ;;  %v4099_v28 = vld [vmem:[%s10912_s5 + $0x28] sm:$0xff] }
 0x206   : > { %v836_v59 = vpop.permute.xlu0 %835  ;;  %vm2521_vm5 = vcmp.gt.f32.partialorder %v2371_v26, 0.0  ;;  %v2560_v45 = vmul.f32 %v8557_v11, %v2371_v26  ;;  %2279 = vmatmul.mubr.f32.gmra.mrb[58].mxu0 %v1094_v27 }
 0x207   : > { %v1062_v57 = vsel %vm1031_vm2, %v1029_v56, %v836_v59 }
 0x208   : > { %v1479_v30 = vpop.permute.xlu1 %1478  ;;  %v2592_v15 = vsel %vm2521_vm5, %v2371_v26, %v2560_v45  ;;  %v2689_v33 = vld [vmem:[#allocation2 + $0x30] sm:$0xff]  ;;  %v8623_v46 = vpop.f32.mrb[20].mxu1 }
 0x209   : > { %2624 = vst.msk [vmem:[#allocation2 + $0x48] sm:$0xff] %vm380_vm0, %v2592_v15  ;;  %2820 = vrot.lane.b32.xlu1 %v2689_v33, %s7186_s20  ;;  %v2150_v35 = vpop.f32.mrb[6].mxu0  ;;  %v1704_v10 = vsel %vm1031_vm2, %v1672_v37, %v1479_v30  ;;  %v8626_v18 = vpop.f32.mrb[21].mxu1 }
 0x20a   : > { %v964_v21 = vpop.permute.xlu0 %963  ;;  %v2151_v23 = vadd.f32 %v8546_v16, %v2150_v35  ;;  %v2152_v60 = vpop.f32.mrb[7].mxu0 }
 0x20b   : > { %v1095_v20 = vsel %vm1064_vm1, %v1062_v57, %v964_v21 }
 0x20c   : > { %v1607_v44 = vpop.permute.xlu1 %1606  ;;  %v2376_v19 = vadd.f32 %v8329_v2, %v2151_v23 }
 0x20d   : > { %v1736_v22 = vsel %vm1064_vm1, %v1704_v10, %v1607_v44 }
 0x20e   : > { %vm2522_vm6 = vcmp.gt.f32.partialorder %v2376_v19, 0.0  ;;  %v2561_v5 = vmul.f32 %v8557_v11, %v2376_v19  ;;  %v1481_v31 = vpop.permute.xlu0 %1480  ;;  %2283 = vmatprep.mubr.f32.mxu0 %v1736_v22 }
 0x20f   : > { %2284 = vmatmul.mubr.f32.gmra.mrb[60].mxu0 %v1095_v20 }
 0x210   : > { %v1353_v53 = vpop.permute.xlu1 %1352  ;;  %v2593_v39 = vsel %vm2522_vm6, %v2376_v19, %v2561_v5  ;;  %v8613_v52 = vld [vmem:[#allocation2 + $0x48] sm:$0xff] }
 0x211   : > { %v1673_v50 = vsel %vm380_vm0, %v8348_v41, %v1353_v53  ;;  %2625 = vst.msk [vmem:[#allocation2 + $0x50] sm:$0xff] %vm380_vm0, %v2593_v39  ;;  %v2155_v2 = vpop.f32.mrb[8].mxu0  ;;  %2822 = vrot.lane.b32.xlu0 %v8613_v52, %s7186_s20  ;;  %v4095_v5 = vld [vmem:[%s10912_s5 + $0x8] sm:$0xff] }
 0x212   : > { %v1705_v29 = vsel %vm1031_vm2, %v1673_v50, %v1481_v31  ;;  %v1609_v54 = vpop.permute.xlu0 %1608  ;;  %v2156_v1 = vadd.f32 %v8546_v16, %v2155_v2  ;;  %v2157_v62 = vpop.f32.mrb[9].mxu0  ;;  %v4096_v2 = vld [vmem:[%s10912_s5 + $0x10] sm:$0xff] }
 0x213   : > { %v1737_v32 = vsel %vm1064_vm1, %v1705_v29, %v1609_v54  ;;  %v4097_v29 = vld [vmem:[%s10912_s5 + $0x18] sm:$0xff]  ;;  %v11015_v54 = vmov 0.0|0.0  }
 0x214   : > { %v838_v55 = vpop.permute.xlu1 %837  ;;  %v2381_v41 = vadd.f32 %v8381_v14, %v2156_v1  ;;  %2288 = vmatprep.mubr.f32.mxu0 %v1737_v32  ;;  %v6987_v1 = vpack.c.bf16 %v4097_v29, %v4096_v2 }
 0x215   : > { %v1063_v3 = vsel %vm1031_vm2, %v1030_v38, %v838_v55 }
 0x216   : > { %vm2523_vm7 = vcmp.gt.f32.partialorder %v2381_v41, 0.0  ;;  %v2562_v40 = vmul.f32 %v8557_v11, %v2381_v41 }
 0x218   : > { %v966_v48 = vpop.permute.xlu1 %965  ;;  %v2594_v8 = vsel %vm2523_vm7, %v2381_v41, %v2562_v40  ;;  %v8632_v4 = vld [vmem:[#allocation2 + $0x50] sm:$0xff]  ;;  %v4098_v40 = vld [vmem:[%s10912_s5 + $0x20] sm:$0xff] }
 0x219   : > { %v8634_v12 = vld [vmem:[#allocation2 + $0x49] sm:$0xff]  ;;  %v8636_v26 = vld [vmem:[#allocation2 + $0x51] sm:$0xff]  ;;  %v1096_v14 = vsel %vm1064_vm1, %v1063_v3, %v966_v48  ;;  %2626 = vst.msk [vmem:[#allocation2 + $0x68] sm:$0xff] %vm380_vm0, %v2594_v8  ;;  %v2160_v27 = vpop.f32.mrb[10].mxu0  ;;  %2824 = vrot.lane.b32.xlu1 %v8632_v4, %s7186_s20  ;;  %v6990_v48 = vpack.c.bf16 %v4099_v28, %v4098_v40 }
 0x21a   : > { %3966 = vst.msk [vmem:[#allocation3 + $0x10] sm:$0xff] %vm380_vm0, %v8634_v12  ;;  %3967 = vst.msk [vmem:[#allocation3 + $0x28] sm:$0xff] %vm380_vm0, %v8636_v26  ;;  %v2161_v59 = vadd.f32 %v8546_v16, %v2160_v27  ;;  %v2162_v45 = vpop.f32.mrb[11].mxu0  ;;  %2289 = vmatmul.mubr.f32.gmra.mrb[62].mxu0 %v1096_v14 }
 0x21b   : > { %v4101_v45 = vld [vmem:[%s10912_s5 + $0x38] sm:$0xff] }
 0x21c   : > { %v2386_v37 = vadd.f32 %v8376_v36, %v2161_v59  ;;  %v8657_v36 = vpop.f32.mrb[22].mxu1  ;;  %v4100_v59 = vld [vmem:[%s10912_s5 + $0x30] sm:$0xff] }
 0x21d   : > { %v8660_v6 = vpop.f32.mrb[23].mxu1 }
 0x21e   : > { %vm2524_vm8 = vcmp.gt.f32.partialorder %v2386_v37, 0.0  ;;  %v2563_v30 = vmul.f32 %v8557_v11, %v2386_v37 }
 0x220   : > { %v2595_v15 = vsel %vm2524_vm8, %v2386_v37, %v2563_v30  ;;  %v8649_v43 = vld [vmem:[#allocation2 + $0x68] sm:$0xff]  ;;  %v6993_v37 = vpack.c.bf16 %v4101_v45, %v4100_v59 }
 0x221   : > { %v4000_v33 = vld [vmem:[#allocation3 + $0x10] sm:$0xff]  ;;  %v4003_v35 = vld [vmem:[#allocation3 + $0x28] sm:$0xff]  ;;  %2627 = vst.msk [vmem:[#allocation2 + $0x70] sm:$0xff] %vm380_vm0, %v2595_v15  ;;  %v2165_v10 = vpop.f32.mrb[12].mxu0  ;;  %2826 = vrot.lane.b32.xlu0 %v8649_v43, %s7186_s20 }
 0x222   : > { %6879 = vmatprep.mubr.msk.f32.mxu0 %vm380_vm0, %v4000_v33  ;;  %v2166_v21 = vadd.f32 %v8546_v16, %v2165_v10  ;;  %v2167_v23 = vpop.f32.mrb[13].mxu0 }
 0x223   : > { %6880 = vmatmul.mubr.msk.f32.vlgmr.msra.gmra.mrb[64].mxu0 %vm380_vm0, %v4003_v35  ;;  %v8707_v8 = vpop.f32.mrb[24].mxu1  ;;  %v4103_v23 = vld [vmem:[%s10912_s5 + $0x48] sm:$0xff] }
 0x224   : > { %v2391_v60 = vadd.f32 %v8426_v34, %v2166_v21  ;;  %v4094_v34 = vld [vmem:[%s10912_s5] sm:$0xff]  ;;  %v8710_v27 = vpop.f32.mrb[25].mxu1 }
 0x225   : > { %v6984_v39 = vpack.c.bf16 %v4095_v5, %v4094_v34  ;;  %v4102_v21 = vld [vmem:[%s10912_s5 + $0x40] sm:$0xff]  ;;  %v4104_v34 = vld [vmem:[%s10912_s5 + $0x50] sm:$0xff]  ;;  %v4105_v5 = vld [vmem:[%s10912_s5 + $0x58] sm:$0xff] }
 0x226   : > { %vm2525_vm9 = vcmp.gt.f32.partialorder %v2391_v60, 0.0  ;;  %v2564_v56 = vmul.f32 %v8557_v11, %v2391_v60 }
 0x227   : > { %6985 = vmatpush1.bf16.msra.mxu1 %v6984_v39 }
 0x228   : > { %v2596_v44 = vsel %vm2525_vm9, %v2391_v60, %v2564_v56  ;;  %v8663_v19 = vld [vmem:[#allocation2 + $0x70] sm:$0xff]  ;;  %6986 = vmatprep.subr.bf16.mxu1 %v11015_v54 }
 0x229   : > { %v8665_v57 = vld [vmem:[#allocation2 + $0x69] sm:$0xff]  ;;  %v8667_v22 = vld [vmem:[#allocation2 + $0x71] sm:$0xff]  ;;  %2628 = vst.msk [vmem:[#allocation2 + $0x88] sm:$0xff] %vm380_vm0, %v2596_v44  ;;  %v2170_v20 = vpop.f32.mrb[14].mxu0  ;;  %2828 = vrot.lane.b32.xlu1 %v8663_v19, %s7186_s20  ;;  %v6996_v44 = vpack.c.bf16 %v4103_v23, %v4102_v21 }
 0x22a   : > { %3968 = vst.msk [vmem:[#allocation3 + $0x40] sm:$0xff] %vm380_vm0, %v8665_v57  ;;  %3969 = vst.msk [vmem:[#allocation3 + $0x58] sm:$0xff] %vm380_vm0, %v8667_v22  ;;  %v2171_v31 = vadd.f32 %v8546_v16, %v2170_v20  ;;  %v2172_v53 = vpop.f32.mrb[15].mxu0 }
 0x22b   : > { %6988 = vmatpush1.bf16.msra.mxu1 %v6987_v1  ;;  %v4106_v1 = vld [vmem:[%s10912_s5 + $0x60] sm:$0xff] }
 0x22c   : > { %v2396_v50 = vadd.f32 %v8421_v63, %v2171_v31  ;;  %6989 = vmatprep.subr.bf16.mxu1 %v11015_v54  ;;  %v6999_v31 = vpack.c.bf16 %v4105_v5, %v4104_v34  ;;  %v4113_v34 = vld [vmem:[%s10912_s5 + $0x98] sm:$0xff] }
 0x22e   : > { %vm2526_vm10 = vcmp.gt.f32.partialorder %v2396_v50, 0.0  ;;  %v2565_v62 = vmul.f32 %v8557_v11, %v2396_v50 }
 0x22f   : > { %6991 = vmatpush1.bf16.msra.mxu1 %v6990_v48 }
 0x230   : > { %v2597_v32 = vsel %vm2526_vm10, %v2396_v50, %v2565_v62  ;;  %v8692_v55 = vld [vmem:[#allocation2 + $0x88] sm:$0xff]  ;;  %6992 = vmatprep.subr.bf16.mxu1 %v11015_v54 }
 0x231   : > { %v4006_v24 = vld [vmem:[#allocation3 + $0x40] sm:$0xff]  ;;  %v4009_v63 = vld [vmem:[#allocation3 + $0x58] sm:$0xff]  ;;  %2629 = vst.msk [vmem:[#allocation2 + $0x90] sm:$0xff] %vm380_vm0, %v2597_v32  ;;  %v2175_v41 = vpop.f32.mrb[16].mxu0  ;;  %2830 = vrot.lane.b32.xlu0 %v8692_v55, %s7186_s20  ;;  %v4107_v62 = vld [vmem:[%s10912_s5 + $0x68] sm:$0xff] }
 0x232   : > { %6882 = vmatprep.mubr.msk.f32.mxu0 %vm380_vm0, %v4006_v24  ;;  %v2176_v38 = vadd.f32 %v8546_v16, %v2175_v41  ;;  %v2177_v3 = vpop.f32.mrb[17].mxu0  ;;  %v8765_v41 = vpop.f32.mrb[26].mxu1 }
 0x233   : > { %6883 = vmatmul.mubr.msk.f32.gmra.mrb[66].mxu0 %vm380_vm0, %v4009_v63  ;;  %6994 = vmatpush1.bf16.msra.mxu1 %v6993_v37  ;;  %v7002_v63 = vpack.c.bf16 %v4107_v62, %v4106_v1  ;;  %v8768_v28 = vpop.f32.mrb[27].mxu1  ;;  %v4109_v3 = vld [vmem:[%s10912_s5 + $0x78] sm:$0xff]  ;;  %v4115_v1 = vld [vmem:[%s10912_s5 + $0xa8] sm:$0xff] }
 0x234   : > { %v2401_v14 = vadd.f32 %v8454_v13, %v2176_v38  ;;  %6995 = vmatprep.subr.bf16.mxu1 %v11015_v54  ;;  %v4108_v38 = vld [vmem:[%s10912_s5 + $0x70] sm:$0xff] }
 0x235   : > { %v7005_v48 = vpack.c.bf16 %v4109_v3, %v4108_v38  ;;  %v8830_v38 = vld [vmem:[#allocation2 + $0x29] sm:$0xff] }
 0x236   : > { %vm2527_vm11 = vcmp.gt.f32.partialorder %v2401_v14, 0.0  ;;  %v2566_v30 = vmul.f32 %v8557_v11, %v2401_v14 }
 0x237   : > { %6997 = vmatpush1.bf16.msra.mxu1 %v6996_v44  ;;  %v8800_v44 = vld [vmem:[#allocation2 + $0x47] sm:$0xff] }
 0x238   : > { %v2598_v15 = vsel %vm2527_vm11, %v2401_v14, %v2566_v30  ;;  %v8720_v33 = vld [vmem:[#allocation2 + $0x90] sm:$0xff]  ;;  %6998 = vmatprep.subr.bf16.mxu1 %v11015_v54 }
 0x239   : > { %v8722_v13 = vld [vmem:[#allocation2 + $0x89] sm:$0xff]  ;;  %v8724_v35 = vld [vmem:[#allocation2 + $0x91] sm:$0xff]  ;;  %2630 = vst.msk [vmem:[#allocation2 + $0xa8] sm:$0xff] %vm380_vm0, %v2598_v15  ;;  %v2180_v10 = vpop.f32.mrb[18].mxu0  ;;  %2832 = vrot.lane.b32.xlu1 %v8720_v33, %s7186_s20  ;;  %v4110_v15 = vld [vmem:[%s10912_s5 + $0x80] sm:$0xff] }
 0x23a   : > { %3970 = vst.msk [vmem:[#allocation3 + $0x70] sm:$0xff] %vm380_vm0, %v8722_v13  ;;  %3971 = vst.msk [vmem:[#allocation3 + $0x88] sm:$0xff] %vm380_vm0, %v8724_v35  ;;  %v2181_v60 = vadd.f32 %v8546_v16, %v2180_v10  ;;  %v2182_v56 = vpop.f32.mrb[19].mxu0  ;;  %v4111_v10 = vld [vmem:[%s10912_s5 + $0x88] sm:$0xff] }
 0x23b   : > { %7000 = vmatpush1.bf16.msra.mxu1 %v6999_v31 }
 0x23c   : > { %v2406_v20 = vadd.f32 %v8449_v25, %v2181_v60  ;;  %7001 = vmatprep.subr.bf16.mxu1 %v11015_v54  ;;  %v7008_v60 = vpack.c.bf16 %v4111_v10, %v4110_v15 }
 0x23e   : > { %vm2528_vm12 = vcmp.gt.f32.partialorder %v2406_v20, 0.0  ;;  %v2567_v53 = vmul.f32 %v8557_v11, %v2406_v20 }
 0x23f   : > { %7003 = vmatpush1.bf16.msra.mxu1 %v7002_v63 }
 0x240   : > { %v2599_v39 = vsel %vm2528_vm12, %v2406_v20, %v2567_v53  ;;  %v8750_v2 = vld [vmem:[#allocation2 + $0xa8] sm:$0xff]  ;;  %7004 = vmatprep.subr.bf16.mxu1 %v11015_v54  ;;  %v4112_v20 = vld [vmem:[%s10912_s5 + $0x90] sm:$0xff]  ;;  %v8827_v63 = vpop.f32.mrb[28].mxu1 }
 0x241   : > { %v4012_v50 = vld [vmem:[#allocation3 + $0x70] sm:$0xff]  ;;  %v4015_v25 = vld [vmem:[#allocation3 + $0x88] sm:$0xff]  ;;  %2631 = vst.msk [vmem:[#allocation2 + $0xb0] sm:$0xff] %vm380_vm0, %v2599_v39  ;;  %v2185_v29 = vpop.f32.mrb[20].mxu0  ;;  %2834 = vrot.lane.b32.xlu0 %v8750_v2, %s7186_s20  ;;  %v7011_v5 = vpack.c.bf16 %v4113_v34, %v4112_v20  ;;  %v8832_v3 = vpop.f32.mrb[29].mxu1 }
 0x242   : > { %6885 = vmatprep.mubr.msk.f32.mxu0 %vm380_vm0, %v4012_v50  ;;  %v2186_v32 = vadd.f32 %v8546_v16, %v2185_v29  ;;  %v2187_v24 = vpop.f32.mrb[21].mxu0  ;;  %v4114_v29 = vld [vmem:[%s10912_s5 + $0xa0] sm:$0xff] }
 0x243   : > { %6886 = vmatmul.mubr.msk.f32.gmra.mrb[68].mxu0 %vm380_vm0, %v4015_v25  ;;  %7006 = vmatpush1.bf16.msra.mxu1 %v7005_v48  ;;  %v7014_v24 = vpack.c.bf16 %v4115_v1, %v4114_v29  ;;  %v4116_v48 = vld [vmem:[%s10912_s5 + $0xb0] sm:$0xff] }
 0x244   : > { %v2411_v40 = vadd.f32 %v8478_v9, %v2186_v32  ;;  %7007 = vmatprep.subr.bf16.mxu1 %v11015_v54 }
 0x246   : > { %vm2529_vm13 = vcmp.gt.f32.partialorder %v2411_v40, 0.0  ;;  %v2568_v14 = vmul.f32 %v8557_v11, %v2411_v40 }
 0x247   : > { %7009 = vmatpush1.bf16.msra.mxu1 %v7008_v60  ;;  %v4118_v60 = vld [vmem:[%s10912_s5 + $0xc0] sm:$0xff] }
 0x248   : > { %v2600_v59 = vsel %vm2529_vm13, %v2411_v40, %v2568_v14  ;;  %v8778_v45 = vld [vmem:[#allocation2 + $0xb0] sm:$0xff]  ;;  %7010 = vmatprep.subr.bf16.mxu1 %v11015_v54  ;;  %v4117_v14 = vld [vmem:[%s10912_s5 + $0xb8] sm:$0xff] }
 0x249   : > { %v8780_v9 = vld [vmem:[#allocation2 + $0xa9] sm:$0xff]  ;;  %v8782_v37 = vld [vmem:[#allocation2 + $0xb1] sm:$0xff]  ;;  %2632 = vst.msk [vmem:[#allocation2 + $0xc8] sm:$0xff] %vm380_vm0, %v2600_v59  ;;  %v2190_v30 = vpop.f32.mrb[22].mxu0  ;;  %2836 = vrot.lane.b32.xlu1 %v8778_v45, %s7186_s20  ;;  %v7017_v59 = vpack.c.bf16 %v4117_v14, %v4116_v48 }
 0x24a   : > { %3972 = vst.msk [vmem:[#allocation3 + $0xa0] sm:$0xff] %vm380_vm0, %v8780_v9  ;;  %3973 = vst.msk [vmem:[#allocation3 + $0xb8] sm:$0xff] %vm380_vm0, %v8782_v37  ;;  %v2191_v21 = vadd.f32 %v8546_v16, %v2190_v30  ;;  %v2192_v23 = vpop.f32.mrb[23].mxu0  ;;  %v2718_v14 = vld [vmem:[#allocation2 + $0x9] sm:$0xff] }
 0x24b   : > { %7012 = vmatpush1.bf16.msra.mxu1 %v7011_v5 }
 0x24c   : > { %v2416_v56 = vadd.f32 %v8473_v51, %v2191_v21  ;;  %7013 = vmatprep.subr.bf16.mxu1 %v11015_v54 }
 0x24d   : > { %3582 = vrot.lane.b32.xlu1 %v8800_v44, %s7188_s29 }
 0x24e   : > { %vm2530_vm14 = vcmp.gt.f32.partialorder %v2416_v56, 0.0  ;;  %v2569_v51 = vmul.f32 %v8557_v11, %v2416_v56 }
 0x24f   : > { %7015 = vmatpush1.bf16.msra.mxu1 %v7014_v24  ;;  %v4123_v24 = vld [vmem:[%s10912_s5 + $0xe8] sm:$0xff] }
 0x250   : > { %v2601_v31 = vsel %vm2530_vm14, %v2416_v56, %v2569_v51  ;;  %v8812_v39 = vld [vmem:[#allocation2 + $0xc8] sm:$0xff]  ;;  %7016 = vmatprep.subr.bf16.mxu1 %v11015_v54 }
 0x251   : > { %v4018_v53 = vld [vmem:[#allocation3 + $0xa0] sm:$0xff]  ;;  %v4021_v50 = vld [vmem:[#allocation3 + $0xb8] sm:$0xff]  ;;  %2633 = vst.msk [vmem:[#allocation2 + $0xd0] sm:$0xff] %vm380_vm0, %v2601_v31  ;;  %v2195_v25 = vpop.f32.mrb[24].mxu0  ;;  %2838 = vrot.lane.b32.xlu0 %v8812_v39, %s7186_s20  ;;  %v4119_v56 = vld [vmem:[%s10912_s5 + $0xc8] sm:$0xff] }
 0x252   : > { %6888 = vmatprep.mubr.msk.f32.mxu0 %vm380_vm0, %v4018_v53  ;;  %v2196_v62 = vadd.f32 %v8546_v16, %v2195_v25  ;;  %v2197_v32 = vpop.f32.mrb[25].mxu0  ;;  %v7020_v5 = vpack.c.bf16 %v4119_v56, %v4118_v60  ;;  %v4120_v31 = vld [vmem:[%s10912_s5 + $0xd0] sm:$0xff]  ;;  %v4121_v53 = vld [vmem:[%s10912_s5 + $0xd8] sm:$0xff] }
 0x253   : > { %6889 = vmatmul.mubr.msk.f32.gmra.mrb[70].mxu0 %vm380_vm0, %v4021_v50  ;;  %7018 = vmatpush1.bf16.msra.mxu1 %v7017_v59  ;;  %v7023_v25 = vpack.c.bf16 %v4121_v53, %v4120_v31  ;;  %v4122_v32 = vld [vmem:[%s10912_s5 + $0xe0] sm:$0xff]  ;;  %v4124_v60 = vld [vmem:[%s10912_s5 + $0xf0] sm:$0xff]  ;;  %v4125_v56 = vld [vmem:[%s10912_s5 + $0xf8] sm:$0xff] }
 0x254   : > { %v2421_v40 = vadd.f32 %v8502_v58, %v2196_v62  ;;  %7019 = vmatprep.subr.bf16.mxu1 %v11015_v54 }
 0x255   : > { %3454 = vrot.lane.b32.xlu0 %v8830_v38, %s7186_s20 }
 0x256   : > { %vm2531_vm15 = vcmp.gt.f32.partialorder %v2421_v40, 0.0  ;;  %v2570_v58 = vmul.f32 %v8557_v11, %v2421_v40  ;;  %v8891_v59 = vpop.f32.mrb[30].mxu1 }
 0x257   : > { %7021 = vmatpush1.bf16.msra.mxu1 %v7020_v5 }
 0x258   : > { %v2602_v30 = vsel %vm2531_vm15, %v2421_v40, %v2570_v58  ;;  %v8844_v15 = vld [vmem:[#allocation2 + $0xd0] sm:$0xff]  ;;  %7022 = vmatprep.subr.bf16.mxu1 %v11015_v54  ;;  %v7026_v58 = vpack.c.bf16 %v4123_v24, %v4122_v32 }
 0x259   : > { %v8846_v10 = vld [vmem:[#allocation2 + $0xc9] sm:$0xff]  ;;  %v8848_v21 = vld [vmem:[#allocation2 + $0xd1] sm:$0xff]  ;;  %2634 = vst.msk [vmem:[#allocation2 + $0xe8] sm:$0xff] %vm380_vm0, %v2602_v30  ;;  %v2200_v23 = vpop.f32.mrb[26].mxu0  ;;  %2840 = vrot.lane.b32.xlu1 %v8844_v15, %s7186_s20 }
 0x25a   : > { %3974 = vst.msk [vmem:[#allocation3 + $0xd0] sm:$0xff] %vm380_vm0, %v8846_v10  ;;  %3975 = vst.msk [vmem:[#allocation3 + $0xe8] sm:$0xff] %vm380_vm0, %v8848_v21  ;;  %v2201_v20 = vadd.f32 %v8546_v16, %v2200_v23  ;;  %v2202_v34 = vpop.f32.mrb[27].mxu0  ;;  %v8894_v23 = vpop.f32.mrb[31].mxu1 }
 0x25b   : > { %7024 = vmatpush1.bf16.msra.mxu1 %v7023_v25  ;;  %v7029_v34 = vpack.c.bf16 %v4125_v56, %v4124_v60 }
 0x25c   : > { %v2426_v51 = vadd.f32 %v8497_v7, %v2201_v20  ;;  %7025 = vmatprep.subr.bf16.mxu1 %v11015_v54 }
 0x25d   : > { %3710 = vrot.lane.b32.xlu1 %v8613_v52, %s7189_s16 }
 0x25e   : > { %vm2532_vm3 = vcmp.gt.f32.partialorder %v2426_v51, 0.0  ;;  %v2571_v50 = vmul.f32 %v8557_v11, %v2426_v51 }
 0x25f   : > { %7027 = vmatpush1.bf16.msra.mxu1 %v7026_v58  ;;  %v8931_v58 = vld [vmem:[#allocation2 + $0x27] sm:$0xff] }
 0x260   : > { %v2603_v29 = vsel %vm2532_vm3, %v2426_v51, %v2571_v50  ;;  %v8876_v1 = vld [vmem:[#allocation2 + $0xe8] sm:$0xff]  ;;  %7028 = vmatprep.subr.bf16.mxu1 %v11015_v54 }
 0x261   : > { %v4024_v7 = vld [vmem:[#allocation3 + $0xd0] sm:$0xff]  ;;  %v4027_v62 = vld [vmem:[#allocation3 + $0xe8] sm:$0xff]  ;;  %2635 = vst.msk [vmem:[#allocation2 + $0xf0] sm:$0xff] %vm380_vm0, %v2603_v29  ;;  %v2205_v52 = vpop.f32.mrb[28].mxu0  ;;  %2842 = vrot.lane.b32.xlu0 %v8876_v1, %s7186_s20 }
 0x262   : > { %6891 = vmatprep.mubr.msk.f32.mxu0 %vm380_vm0, %v4024_v7  ;;  %v2206_v40 = vadd.f32 %v8546_v16, %v2205_v52  ;;  %v2207_v48 = vpop.f32.mrb[29].mxu0  ;;  %v8917_v29 = vld [vmem:[#allocation2 + $0x31] sm:$0xff] }
 0x263   : > { %6892 = vmatmul.mubr.msk.f32.gmra.mrb[72].mxu0 %vm380_vm0, %v4027_v62  ;;  %7030 = vmatpush1.bf16.msra.mxu1 %v7029_v34 }
 0x264   : > { %v2431_v30 = vadd.f32 %v8526_v47, %v2206_v40 }
 0x265   : > { %2942 = vrot.lane.b32.xlu0 %v2718_v14, %s7188_s29 }
 0x266   : > { %vm2533_vm4 = vcmp.gt.f32.partialorder %v2431_v30, 0.0  ;;  %v2572_v20 = vmul.f32 %v8557_v11, %v2431_v30 }
 0x268   : > { %v2604_v47 = vsel %vm2533_vm4, %v2431_v30, %v2572_v20  ;;  %v8905_v5 = vld [vmem:[#allocation2 + $0xf0] sm:$0xff] }
 0x269   : > { %v8907_v51 = vld [vmem:[#allocation2 + $0xe9] sm:$0xff]  ;;  %v3945_v31 = vld [vmem:[#allocation2 + $0xf1] sm:$0xff]  ;;  %2636 = vst.msk [vmem:[#allocation2 + $0x108] sm:$0xff] %vm380_vm0, %v2604_v47  ;;  %v2210_v54 = vpop.f32.mrb[30].mxu0  ;;  %2844 = vrot.lane.b32.xlu1 %v8905_v5, %s7186_s20 }
 0x26a   : > { %3976 = vst.msk [vmem:[#allocation3 + $0x100] sm:$0xff] %vm380_vm0, %v8907_v51  ;;  %3977 = vst.msk [vmem:[#allocation3 + $0x118] sm:$0xff] %vm380_vm0, %v3945_v31  ;;  %v2211_v53 = vadd.f32 %v8546_v16, %v2210_v54  ;;  %v2212_v50 = vpop.f32.mrb[31].mxu0  ;;  %v2719_v54 = vld [vmem:[#allocation2 + $0x11] sm:$0xff] }
 0x26c   : > { %v2436_v25 = vadd.f32 %v8521_v0, %v2211_v53 }
 0x26d   : > { %3456 = vrot.lane.b32.xlu1 %v8917_v29, %s7186_s20 }
 0x26e   : > { %vm2534_vm5 = vcmp.gt.f32.partialorder %v2436_v25, 0.0  ;;  %v2573_v7 = vmul.f32 %v8557_v11, %v2436_v25 }
 0x270   : > { %v2605_v62 = vsel %vm2534_vm5, %v2436_v25, %v2573_v7  ;;  %v8922_v32 = vld [vmem:[#allocation2 + $0x108] sm:$0xff] }
 0x271   : > { %v4030_v52 = vld [vmem:[#allocation3 + $0x100] sm:$0xff]  ;;  %v4033_v24 = vld [vmem:[#allocation3 + $0x118] sm:$0xff]  ;;  %2637 = vst.msk [vmem:[#allocation2 + $0x110] sm:$0xff] %vm380_vm0, %v2605_v62  ;;  %v2215_v40 = vpop.f32.mrb[32].mxu0  ;;  %2846 = vrot.lane.b32.xlu0 %v8922_v32, %s7186_s20 }
 0x272   : > { %6894 = vmatprep.mubr.msk.f32.mxu0 %vm380_vm0, %v4030_v52  ;;  %v2216_v0 = vadd.f32 %v8546_v16, %v2215_v40  ;;  %v2217_v48 = vpop.f32.mrb[33].mxu0 }
 0x273   : > { %6895 = vmatmul.mubr.msk.f32.gmra.mrb[74].mxu0 %vm380_vm0, %v4033_v24  ;;  %v8956_v48 = vld [vmem:[#allocation2 + $0x4f] sm:$0xff] }
 0x274   : > { %v2441_v14 = vadd.f32 %v8564_v17, %v2216_v0 }
 0x275   : > { %3070 = vrot.lane.b32.xlu0 %v8931_v58, %s7189_s16 }
 0x276   : > { %vm2535_vm6 = vcmp.gt.f32.partialorder %v2441_v14, 0.0  ;;  %v2574_v30 = vmul.f32 %v8557_v11, %v2441_v14 }
 0x278   : > { %v2606_v60 = vsel %vm2535_vm6, %v2441_v14, %v2574_v30  ;;  %v8936_v56 = vld [vmem:[#allocation2 + $0x110] sm:$0xff] }
 0x279   : > { %v8938_v20 = vld [vmem:[#allocation2 + $0x109] sm:$0xff]  ;;  %v3947_v34 = vld [vmem:[#allocation2 + $0x111] sm:$0xff]  ;;  %2638 = vst.msk [vmem:[#allocation2 + $0x128] sm:$0xff] %vm380_vm0, %v2606_v60  ;;  %v2220_v47 = vpop.f32.mrb[34].mxu0  ;;  %2848 = vrot.lane.b32.xlu1 %v8936_v56, %s7186_s20 }
 0x27a   : > { %3978 = vst.msk [vmem:[#allocation3 + $0x130] sm:$0xff] %vm380_vm0, %v8938_v20  ;;  %3979 = vst.msk [vmem:[#allocation3 + $0x148] sm:$0xff] %vm380_vm0, %v3947_v34  ;;  %v2221_v17 = vadd.f32 %v8546_v16, %v2220_v47  ;;  %v2222_v31 = vpop.f32.mrb[35].mxu0 }
 0x27c   : > { %v2446_v53 = vadd.f32 %v8559_v49, %v2221_v17 }
 0x27d   : > { %2944 = vrot.lane.b32.xlu1 %v2719_v54, %s7188_s29  ;;  %v8966_v54 = vld [vmem:[#allocation2 + $0x2f] sm:$0xff] }
 0x27e   : > { %vm2536_vm7 = vcmp.gt.f32.partialorder %v2446_v53, 0.0  ;;  %v2575_v50 = vmul.f32 %v8557_v11, %v2446_v53 }
 0x280   : > { %v2607_v25 = vsel %vm2536_vm7, %v2446_v53, %v2575_v50  ;;  %v2704_v62 = vld [vmem:[#allocation2 + $0x128] sm:$0xff] }
 0x281   : > { %v4036_v7 = vld [vmem:[#allocation3 + $0x130] sm:$0xff]  ;;  %v4039_v52 = vld [vmem:[#allocation3 + $0x148] sm:$0xff]  ;;  %2639 = vst.msk [vmem:[#allocation2 + $0x130] sm:$0xff] %vm380_vm0, %v2607_v25  ;;  %v2225_v24 = vpop.f32.mrb[36].mxu0  ;;  %2850 = vrot.lane.b32.xlu0 %v2704_v62, %s7186_s20 }
 0x282   : > { %6897 = vmatprep.mubr.msk.f32.mxu0 %vm380_vm0, %v4036_v7  ;;  %v2226_v40 = vadd.f32 %v8546_v16, %v2225_v24  ;;  %v2227_v0 = vpop.f32.mrb[37].mxu0 }
 0x283   : > { %6898 = vmatmul.mubr.msk.f32.gmra.mrb[76].mxu0 %vm380_vm0, %v4039_v52 }
 0x284   : > { %v2451_v49 = vadd.f32 %v8596_v42, %v2226_v40 }
 0x285   : > { %3584 = vrot.lane.b32.xlu0 %v8956_v48, %s7188_s29 }
 0x286   : > { %vm2537_vm8 = vcmp.gt.f32.partialorder %v2451_v49, 0.0  ;;  %v2576_v14 = vmul.f32 %v8557_v11, %v2451_v49 }
 0x288   : > { %v2608_v30 = vsel %vm2537_vm8, %v2451_v49, %v2576_v14  ;;  %v2705_v60 = vld [vmem:[#allocation2 + $0x130] sm:$0xff] }
 0x289   : > { %v3948_v34 = vld [vmem:[#allocation2 + $0x129] sm:$0xff]  ;;  %v3949_v47 = vld [vmem:[#allocation2 + $0x131] sm:$0xff]  ;;  %2640 = vst.msk [vmem:[#allocation2 + $0x148] sm:$0xff] %vm380_vm0, %v2608_v30  ;;  %v2230_v17 = vpop.f32.mrb[38].mxu0  ;;  %2852 = vrot.lane.b32.xlu1 %v2705_v60, %s7186_s20 }
 0x28a   : > { %3980 = vst.msk [vmem:[#allocation3 + $0x160] sm:$0xff] %vm380_vm0, %v3948_v34  ;;  %3981 = vst.msk [vmem:[#allocation3 + $0x178] sm:$0xff] %vm380_vm0, %v3949_v47  ;;  %v2231_v42 = vadd.f32 %v8546_v16, %v2230_v17  ;;  %v2232_v31 = vpop.f32.mrb[39].mxu0  ;;  %v8988_v17 = vld [vmem:[#allocation2 + $0x67] sm:$0xff] }
 0x28c   : > { %v2456_v53 = vadd.f32 %v8591_v61, %v2231_v42 }
 0x28d   : > { %3072 = vrot.lane.b32.xlu1 %v8966_v54, %s7189_s16 }
 0x28e   : > { %vm2538_vm9 = vcmp.gt.f32.partialorder %v2456_v53, 0.0  ;;  %v2577_v50 = vmul.f32 %v8557_v11, %v2456_v53 }
 0x290   : > { %v2609_v25 = vsel %vm2538_vm9, %v2456_v53, %v2577_v50  ;;  %v2706_v62 = vld [vmem:[#allocation2 + $0x148] sm:$0xff] }
 0x291   : > { %v4042_v7 = vld [vmem:[#allocation3 + $0x160] sm:$0xff]  ;;  %v4045_v52 = vld [vmem:[#allocation3 + $0x178] sm:$0xff]  ;;  %2641 = vst.msk [vmem:[#allocation2 + $0x150] sm:$0xff] %vm380_vm0, %v2609_v25  ;;  %v2235_v24 = vpop.f32.mrb[40].mxu0  ;;  %2854 = vrot.lane.b32.xlu0 %v2706_v62, %s7186_s20 }
 0x292   : > { %6900 = vmatprep.mubr.msk.f32.mxu0 %vm380_vm0, %v4042_v7  ;;  %v2236_v40 = vadd.f32 %v8546_v16, %v2235_v24  ;;  %v2237_v61 = vpop.f32.mrb[41].mxu0 }
 0x293   : > { %6901 = vmatmul.mubr.msk.f32.gmra.mrb[78].mxu0 %vm380_vm0, %v4045_v52  ;;  %v9005_v52 = vld [vmem:[#allocation2 + $0x6f] sm:$0xff] }
 0x294   : > { %v2461_v0 = vadd.f32 %v8626_v18, %v2236_v40 }
 0x295   : > { %3712 = vrot.lane.b32.xlu0 %v8632_v4, %s7189_s16 }
 0x296   : > { %vm2539_vm10 = vcmp.gt.f32.partialorder %v2461_v0, 0.0  ;;  %v2578_v49 = vmul.f32 %v8557_v11, %v2461_v0 }
 0x298   : > { %v2610_v14 = vsel %vm2539_vm10, %v2461_v0, %v2578_v49  ;;  %v2707_v30 = vld [vmem:[#allocation2 + $0x150] sm:$0xff] }
 0x299   : > { %v3950_v60 = vld [vmem:[#allocation2 + $0x149] sm:$0xff]  ;;  %v3951_v34 = vld [vmem:[#allocation2 + $0x151] sm:$0xff]  ;;  %2642 = vst.msk [vmem:[#allocation2 + $0x168] sm:$0xff] %vm380_vm0, %v2610_v14  ;;  %v2240_v47 = vpop.f32.mrb[42].mxu0  ;;  %2856 = vrot.lane.b32.xlu1 %v2707_v30, %s7186_s20  ;;  %3458 = vrot.lane.b32.xlu0 %v8634_v12, %s7186_s20  ;;  %v9022_v14 = vpop.permute.xlu1 %2816 }
 0x29a   : > { %3982 = vst.msk [vmem:[#allocation3 + $0x190] sm:$0xff] %vm380_vm0, %v3950_v60  ;;  %3983 = vst.msk [vmem:[#allocation3 + $0x1a8] sm:$0xff] %vm380_vm0, %v3951_v34  ;;  %v2241_v18 = vadd.f32 %v8546_v16, %v2240_v47  ;;  %v2242_v4 = vpop.f32.mrb[43].mxu0  ;;  %v9032_v34 = vld [vmem:[#allocation2 + $0x87] sm:$0xff] }
 0x29c   : > { %v2466_v42 = vadd.f32 %v8623_v46, %v2241_v18 }
 0x29d   : > { %3586 = vrot.lane.b32.xlu1 %v8988_v17, %s7188_s29  ;;  %2946 = vrot.lane.b32.xlu0 %v8830_v38, %s7188_s29  ;;  %v9034_v4 = vpop.permute.xlu1 %2820 }
 0x29e   : > { %vm2540_vm11 = vcmp.gt.f32.partialorder %v2466_v42, 0.0  ;;  %v2579_v31 = vmul.f32 %v8557_v11, %v2466_v42 }
 0x2a0   : > { %v2611_v53 = vsel %vm2540_vm11, %v2466_v42, %v2579_v31 }
 0x2a1   : > { %v4048_v50 = vld [vmem:[#allocation3 + $0x190] sm:$0xff]  ;;  %v4051_v25 = vld [vmem:[#allocation3 + $0x1a8] sm:$0xff]  ;;  %2643 = vst.msk [vmem:[#allocation2 + $0x170] sm:$0xff] %vm380_vm0, %v2611_v53  ;;  %v2245_v7 = vpop.f32.mrb[44].mxu0  ;;  %3714 = vrot.lane.b32.xlu1 %v8649_v43, %s7189_s16  ;;  %3074 = vrot.lane.b32.xlu0 %v8800_v44, %s7189_s16  ;;  %v9012_v44 = vpop.permute.xlu0 %2814 }
 0x2a2   : > { %6903 = vmatprep.mubr.msk.f32.mxu0 %vm380_vm0, %v4048_v50  ;;  %v2246_v46 = vadd.f32 %v8546_v16, %v2245_v7  ;;  %v2247_v38 = vpop.f32.mrb[45].mxu0 }
 0x2a3   : > { %6904 = vmatmul.mubr.msk.f32.gmra.mrb[80].mxu0 %vm380_vm0, %v4051_v25  ;;  %v9047_v25 = vpop.permute.xlu1 %2824 }
 0x2a4   : > { %v2471_v62 = vadd.f32 %v8660_v6, %v2246_v46 }
 0x2a5   : > { %3460 = vrot.lane.b32.xlu1 %v8636_v26, %s7186_s20  ;;  %3588 = vrot.lane.b32.xlu0 %v9005_v52, %s7188_s29  ;;  %v9030_v60 = vpop.permute.xlu0 %2818 }
 0x2a6   : > { %vm2541_vm12 = vcmp.gt.f32.partialorder %v2471_v62, 0.0  ;;  %v2580_v24 = vmul.f32 %v8557_v11, %v2471_v62 }
 0x2a8   : > { %v2612_v43 = vsel %vm2541_vm12, %v2471_v62, %v2580_v24  ;;  %v3952_v40 = vld [vmem:[#allocation2 + $0x169] sm:$0xff]  ;;  %v3953_v61 = vld [vmem:[#allocation2 + $0x171] sm:$0xff]  ;;  %v9056_v62 = vpop.permute.xlu1 %2828 }
 0x2a9   : > { %2644 = vst.msk [vmem:[#allocation2 + $0x188] sm:$0xff] %vm380_vm0, %v2612_v43  ;;  %v2250_v0 = vpop.f32.mrb[46].mxu0  ;;  %2948 = vrot.lane.b32.xlu1 %v8917_v29, %s7188_s29  ;;  %3984 = vst.msk [vmem:[#allocation3 + $0x1c0] sm:$0xff] %vm380_vm0, %v3952_v40  ;;  %3716 = vrot.lane.b32.xlu0 %v8663_v19, %s7189_s16  ;;  %v9044_v53 = vpop.permute.xlu0 %2822  ;;  %v9058_v24 = vld [vmem:[#allocation2 + $0x8f] sm:$0xff] }
 0x2aa   : > { %3985 = vst.msk [vmem:[#allocation3 + $0x1d8] sm:$0xff] %vm380_vm0, %v3953_v61  ;;  %v2251_v6 = vadd.f32 %v8546_v16, %v2250_v0  ;;  %v2252_v49 = vpop.f32.mrb[47].mxu0 }
 0x2ac   : > { %v2476_v30 = vadd.f32 %v8657_v36, %v2251_v6  ;;  %v9076_v0 = vpop.permute.xlu1 %2832  ;;  %v9083_v6 = vld [vmem:[%s10911_s4] ss:$0 sm:$0xff] }
 0x2ad   : > { %3076 = vrot.lane.b32.xlu1 %v8956_v48, %s7189_s16  ;;  %3462 = vrot.lane.b32.xlu0 %v8665_v57, %s7186_s20 }
 0x2ae   : > { %vm2542_vm13 = vcmp.gt.f32.partialorder %v2476_v30, 0.0  ;;  %v2581_v29 = vmul.f32 %v8557_v11, %v2476_v30 }
 0x2b0   : > { %v2613_v47 = vsel %vm2542_vm13, %v2476_v30, %v2581_v29  ;;  %v4054_v19 = vld [vmem:[#allocation3 + $0x1c0] sm:$0xff] }
 0x2b1   : > { %v4057_v18 = vld [vmem:[#allocation3 + $0x1d8] sm:$0xff]  ;;  %2645 = vst.msk [vmem:[#allocation2 + $0x190] sm:$0xff] %vm380_vm0, %v2613_v47  ;;  %v2255_v36 = vpop.f32.mrb[48].mxu0  ;;  %6906 = vmatprep.mubr.msk.f32.mxu0 %vm380_vm0, %v4054_v19  ;;  %3590 = vrot.lane.b32.xlu1 %v9032_v34, %s7188_s29 }
 0x2b2   : > { %v2256_v42 = vadd.f32 %v8546_v16, %v2255_v36  ;;  %2950 = vrot.lane.b32.xlu0 %v8634_v12, %s7188_s29  ;;  %v2257_v31 = vpop.f32.mrb[49].mxu0  ;;  %6907 = vmatmul.mubr.msk.f32.gmra.mrb[82].mxu0 %vm380_vm0, %v4057_v18  ;;  %v9054_v16 = vpop.permute.xlu0 %2826 }
 0x2b4   : > { %v2481_v50 = vadd.f32 %v8710_v27, %v2256_v42  ;;  %v9102_v42 = vld [vmem:[#allocation2 + $0xa7] sm:$0xff] }
 0x2b5   : > { %3718 = vrot.lane.b32.xlu1 %v8692_v55, %s7189_s16 }
 0x2b6   : > { %vm2543_vm14 = vcmp.gt.f32.partialorder %v2481_v50, 0.0  ;;  %v2582_v7 = vmul.f32 %v8557_v11, %v2481_v50  ;;  %3078 = vrot.lane.b32.xlu0 %v8988_v17, %s7189_s16  ;;  %v9068_v11 = vld [vmem:[%s10910_s3] ss:$0 sm:$0xff]  ;;  %v9073_v40 = vpop.permute.xlu0 %2830 }
 0x2b8   : > { %v2614_v12 = vsel %vm2543_vm14, %v2481_v50, %v2582_v7  ;;  %v3954_v46 = vld [vmem:[#allocation2 + $0x189] sm:$0xff]  ;;  %v3955_v38 = vld [vmem:[#allocation2 + $0x191] sm:$0xff] }
 0x2b9   : > { %2646 = vst.msk [vmem:[#allocation2 + $0x1a8] sm:$0xff] %vm380_vm0, %v2614_v12  ;;  %v2260_v27 = vpop.f32.mrb[50].mxu0  ;;  %3464 = vrot.lane.b32.xlu1 %v8667_v22, %s7186_s20  ;;  %3986 = vst.msk [vmem:[#allocation3 + $0x1f0] sm:$0xff] %vm380_vm0, %v3954_v46 }
 0x2ba   : > { %3987 = vst.msk [vmem:[#allocation3 + $0x208] sm:$0xff] %vm380_vm0, %v3955_v38  ;;  %v2261_v55 = vadd.f32 %v9068_v11, %v2260_v27  ;;  %3592 = vrot.lane.b32.xlu0 %v9058_v24, %s7188_s29  ;;  %v2262_v43 = vpop.f32.mrb[51].mxu0  ;;  %v9088_v30 = vpop.permute.xlu0 %2834 }
 0x2bb   : > { %v9091_v19 = vpop.permute.xlu1 %2836  ;;  %v3294_v43 = vld [vmem:[#allocation2 + $0x28] sm:$0xff] }
 0x2bc   : > { %v2486_v61 = vadd.f32 %v8707_v8, %v2261_v55 }
 0x2bd   : > { %2952 = vrot.lane.b32.xlu1 %v8636_v26, %s7188_s29 }
 0x2be   : > { %vm2544_vm15 = vcmp.gt.f32.partialorder %v2486_v61, 0.0  ;;  %v2583_v49 = vmul.f32 %v9083_v6, %v2486_v61  ;;  %3720 = vrot.lane.b32.xlu0 %v8720_v33, %s7189_s16 }
 0x2bf   : > { %v3583_v7 = vpop.permute.xlu1 %3582 }
 0x2c0   : > { %v2615_v29 = vsel %vm2544_vm15, %v2486_v61, %v2583_v49  ;;  %v4060_v8 = vld [vmem:[#allocation3 + $0x1f0] sm:$0xff] }
 0x2c1   : > { %v4063_v47 = vld [vmem:[#allocation3 + $0x208] sm:$0xff]  ;;  %2647 = vst.msk [vmem:[#allocation2 + $0x1b0] sm:$0xff] %vm380_vm0, %v2615_v29  ;;  %v2265_v26 = vpop.f32.mrb[52].mxu0  ;;  %6909 = vmatprep.mubr.msk.f32.mxu0 %vm380_vm0, %v4060_v8  ;;  %3080 = vrot.lane.b32.xlu1 %v9005_v52, %s7189_s16 }
 0x2c2   : > { %v2266_v18 = vadd.f32 %v9068_v11, %v2265_v26  ;;  %3466 = vrot.lane.b32.xlu0 %v8722_v13, %s7186_s20  ;;  %v2267_v33 = vpop.f32.mrb[53].mxu0  ;;  %6910 = vmatmul.mubr.msk.f32.gmra.mrb[84].mxu0 %vm380_vm0, %v4063_v47  ;;  %v9122_v8 = vld [vmem:[#allocation2 + $0xaf] sm:$0xff] }
 0x2c3   : > { %v9100_v36 = vpop.permute.xlu0 %2838 }
 0x2c4   : > { %v2491_v31 = vadd.f32 %v8768_v28, %v2266_v18 }
 0x2c5   : > { %3594 = vrot.lane.b32.xlu1 %v9102_v42, %s7188_s29 }
 0x2c6   : > { %vm2545_vm3 = vcmp.gt.f32.partialorder %v2491_v31, 0.0  ;;  %v2584_v50 = vmul.f32 %v9083_v6, %v2491_v31  ;;  %2954 = vrot.lane.b32.xlu0 %v8665_v57, %s7188_s29 }
 0x2c7   : > { %v3455_v27 = vpop.permute.xlu0 %3454 }
 0x2c8   : > { %v2616_v12 = vsel %vm2545_vm3, %v2491_v31, %v2584_v50  ;;  %v3956_v46 = vld [vmem:[#allocation2 + $0x1a9] sm:$0xff]  ;;  %v3957_v38 = vld [vmem:[#allocation2 + $0x1b1] sm:$0xff]  ;;  %v3806_v49 = vsel %vm380_vm0, %v3294_v43, %v3455_v27 }
 0x2c9   : > { %2648 = vst.msk [vmem:[#allocation2 + $0x1c8] sm:$0xff] %vm380_vm0, %v2616_v12  ;;  %v2270_v55 = vpop.f32.mrb[54].mxu0  ;;  %3722 = vrot.lane.b32.xlu1 %v8750_v2, %s7189_s16  ;;  %3988 = vst.msk [vmem:[#allocation3 + $0x220] sm:$0xff] %vm380_vm0, %v3956_v46  ;;  %v3838_v26 = vsel %vm1031_vm2, %v3806_v49, %v3583_v7 }
 0x2ca   : > { %3989 = vst.msk [vmem:[#allocation3 + $0x238] sm:$0xff] %vm380_vm0, %v3957_v38  ;;  %v2271_v28 = vadd.f32 %v9068_v11, %v2270_v55  ;;  %3082 = vrot.lane.b32.xlu0 %v9032_v34, %s7189_s16  ;;  %v2272_v57 = vpop.f32.mrb[55].mxu0 }
 0x2cb   : > { %v9118_v61 = vpop.permute.xlu1 %2840 }
 0x2cc   : > { %v2496_v29 = vadd.f32 %v8765_v41, %v2271_v28 }
 0x2cd   : > { %3468 = vrot.lane.b32.xlu1 %v8724_v35, %s7186_s20 }
 0x2ce   : > { %vm2546_vm4 = vcmp.gt.f32.partialorder %v2496_v29, 0.0  ;;  %v2585_v2 = vmul.f32 %v9083_v6, %v2496_v29  ;;  %3596 = vrot.lane.b32.xlu0 %v9122_v8, %s7188_s29 }
 0x2cf   : > { %v3711_v47 = vpop.permute.xlu1 %3710 }
 0x2d0   : > { %v2617_v18 = vsel %vm2546_vm4, %v2496_v29, %v2585_v2  ;;  %v3870_v33 = vsel %vm1064_vm1, %v3838_v26, %v3711_v47  ;;  %v4066_v31 = vld [vmem:[#allocation3 + $0x220] sm:$0xff]  ;;  %v9163_v26 = vld [vmem:[#allocation2 + $0xcf] sm:$0xff] }
 0x2d1   : > { %v4069_v50 = vld [vmem:[#allocation3 + $0x238] sm:$0xff]  ;;  %2649 = vst.msk [vmem:[#allocation2 + $0x1d0] sm:$0xff] %vm380_vm0, %v2617_v18  ;;  %v2275_v41 = vpop.f32.mrb[56].mxu0  ;;  %6912 = vmatprep.mubr.msk.f32.mxu0 %vm380_vm0, %v4066_v31  ;;  %2956 = vrot.lane.b32.xlu1 %v8667_v22, %s7188_s29  ;;  %v9145_v22 = vld [vmem:[#allocation2 + $0xc7] sm:$0xff] }
 0x2d2   : > { %v2276_v35 = vadd.f32 %v9068_v11, %v2275_v41  ;;  %3724 = vrot.lane.b32.xlu0 %v8778_v45, %s7189_s16  ;;  %v2277_v12 = vpop.f32.mrb[57].mxu0  ;;  %6913 = vmatmul.mubr.msk.f32.gmra.mrb[86].mxu0 %vm380_vm0, %v4069_v50  ;;  %v2727_v31 = vld [vmem:[#allocation2 + $0x91] sm:$0xff] }
 0x2d3   : > { %4297 = vmatprep.mubr.f32.mxu1 %v3870_v33  ;;  %v9148_v55 = vpop.permute.xlu0 %2842 }
 0x2d4   : > { %v2501_v7 = vadd.f32 %v8832_v3, %v2276_v35 }
 0x2d5   : > { %3084 = vrot.lane.b32.xlu1 %v9058_v24, %s7189_s16 }
 0x2d6   : > { %vm2547_vm5 = vcmp.gt.f32.partialorder %v2501_v7, 0.0  ;;  %v2586_v46 = vmul.f32 %v9083_v6, %v2501_v7  ;;  %3470 = vrot.lane.b32.xlu0 %v8780_v9, %s7186_s20 }
 0x2d7   : > { %v2943_v49 = vpop.permute.xlu0 %2942 }
 0x2d8   : > { %v2618_v38 = vsel %vm2547_vm5, %v2501_v7, %v2586_v46  ;;  %v3958_v27 = vld [vmem:[#allocation2 + $0x1c9] sm:$0xff]  ;;  %v3959_v45 = vld [vmem:[#allocation2 + $0x1d1] sm:$0xff] }
 0x2d9   : > { %2650 = vst.msk [vmem:[#allocation2 + $0x1e8] sm:$0xff] %vm380_vm0, %v2618_v38  ;;  %v2280_v28 = vpop.f32.mrb[58].mxu0  ;;  %3598 = vrot.lane.b32.xlu1 %v9145_v22, %s7188_s29  ;;  %3990 = vst.msk [vmem:[#allocation3 + $0x250] sm:$0xff] %vm380_vm0, %v3958_v27 }
 0x2da   : > { %3991 = vst.msk [vmem:[#allocation3 + $0x268] sm:$0xff] %vm380_vm0, %v3959_v45  ;;  %v2281_v3 = vadd.f32 %v9068_v11, %v2280_v28  ;;  %2958 = vrot.lane.b32.xlu0 %v8722_v13, %s7188_s29  ;;  %v2282_v9 = vpop.f32.mrb[59].mxu0  ;;  %v2728_v45 = vld [vmem:[#allocation2 + $0xa9] sm:$0xff] }
 0x2dc   : > { %v2506_v57 = vadd.f32 %v8827_v63, %v2281_v3 }
 0x2dd   : > { %3726 = vrot.lane.b32.xlu1 %v8812_v39, %s7189_s16  ;;  %v2654_v39 = vld [vmem:[#allocation2 + $0x7] sm:$0xff] }
 0x2de   : > { %vm2548_vm6 = vcmp.gt.f32.partialorder %v2506_v57, 0.0  ;;  %v2587_v43 = vmul.f32 %v9083_v6, %v2506_v57  ;;  %3086 = vrot.lane.b32.xlu0 %v9102_v42, %s7189_s16 }
 0x2e0   : > { %v2619_v29 = vsel %vm2548_vm6, %v2506_v57, %v2587_v43  ;;  %v4072_v2 = vld [vmem:[#allocation3 + $0x250] sm:$0xff] }
 0x2e1   : > { %v4075_v47 = vld [vmem:[#allocation3 + $0x268] sm:$0xff]  ;;  %2651 = vst.msk [vmem:[#allocation2 + $0x1f0] sm:$0xff] %vm380_vm0, %v2619_v29  ;;  %6915 = vmatprep.mubr.msk.f32.mxu0 %vm380_vm0, %v4072_v2  ;;  %3472 = vrot.lane.b32.xlu1 %v8782_v37, %s7186_s20  ;;  %v3166_v37 = vsel %vm380_vm0, %v2654_v39, %v9012_v44  ;;  %v2729_v2 = vld [vmem:[#allocation2 + $0xb1] sm:$0xff] }
 0x2e2   : > { %3600 = vrot.lane.b32.xlu0 %v9163_v26, %s7188_s29  ;;  %v2285_v13 = vpop.f32.mrb[60].mxu0  ;;  %6916 = vmatmul.mubr.msk.f32.gmra.mrb[88].mxu0 %vm380_vm0, %v4075_v47  ;;  %v3198_v41 = vsel %vm1031_vm2, %v3166_v37, %v2943_v49  ;;  %v9207_v29 = vld [vmem:[#allocation2 + $0xef] sm:$0xff] }
 0x2e3   : > { %v2286_v63 = vadd.f32 %v9068_v11, %v2285_v13  ;;  %v2287_v18 = vpop.f32.mrb[61].mxu0  ;;  %v9173_v33 = vpop.permute.xlu0 %2846  ;;  %v2655_v37 = vld [vmem:[#allocation2 + $0xf] sm:$0xff] }
 0x2e4   : > { %v9231_v18 = vld [vmem:[#allocation2 + $0x107] sm:$0xff] }
 0x2e5   : > { %v2511_v50 = vadd.f32 %v8894_v23, %v2286_v63  ;;  %2960 = vrot.lane.b32.xlu1 %v2727_v31, %s7188_s29  ;;  %v9193_v23 = vpop.permute.xlu1 %2844 }
 0x2e6   : > { %3728 = vrot.lane.b32.xlu0 %v8844_v15, %s7189_s16  ;;  %v9191_v15 = vld [vmem:[#allocation2 + $0xe7] sm:$0xff] }
 0x2e7   : > { %vm2549_vm7 = vcmp.gt.f32.partialorder %v2511_v50, 0.0  ;;  %v2588_v35 = vmul.f32 %v9083_v6, %v2511_v50  ;;  %v3071_v12 = vpop.permute.xlu0 %3070 }
 0x2e8   : > { %v3230_v7 = vsel %vm1064_vm1, %v3198_v41, %v3071_v12  ;;  %v3960_v46 = vld [vmem:[#allocation2 + $0x1e9] sm:$0xff]  ;;  %v3961_v38 = vld [vmem:[#allocation2 + $0x1f1] sm:$0xff] }
 0x2e9   : > { %v2620_v27 = vsel %vm2549_vm7, %v2511_v50, %v2588_v35  ;;  %3088 = vrot.lane.b32.xlu1 %v9122_v8, %s7189_s16  ;;  %3992 = vst.msk [vmem:[#allocation3 + $0x280] sm:$0xff] %vm380_vm0, %v3960_v46  ;;  %4298 = vmatmul.mubr.f32.vlgmr.msra.gmra.mrb[32].mxu1 %v3230_v7  ;;  %3993 = vst.msk [vmem:[#allocation3 + $0x298] sm:$0xff] %vm380_vm0, %v3961_v38  ;;  %v3295_v12 = vld [vmem:[#allocation2 + $0x30] sm:$0xff] }
 0x2ea   : > { %2652 = vst.msk [vmem:[#allocation2 + $0x208] sm:$0xff] %vm380_vm0, %v2620_v27  ;;  %3474 = vrot.lane.b32.xlu0 %v8846_v10, %s7186_s20  ;;  %v3457_v10 = vpop.permute.xlu1 %3456  ;;  %v3167_v27 = vsel %vm380_vm0, %v2655_v37, %v9022_v14 }
 0x2ed   : > { %v2290_v44 = vpop.f32.mrb[62].mxu0  ;;  %3602 = vrot.lane.b32.xlu1 %v9191_v15, %s7188_s29 }
 0x2ee   : > { %v2291_v28 = vadd.f32 %v9068_v11, %v2290_v44  ;;  %2962 = vrot.lane.b32.xlu0 %v2728_v45, %s7188_s29  ;;  %v2292_v3 = vpop.f32.mrb[63].mxu0 }
 0x2ef   : > { %v3339_v3 = vld [vmem:[#allocation2 + $0xf1] sm:$0xff] }
 0x2f0   : > { %v2516_v9 = vadd.f32 %v8891_v59, %v2291_v28  ;;  %v4078_v57 = vld [vmem:[#allocation3 + $0x280] sm:$0xff]  ;;  %v4081_v43 = vld [vmem:[#allocation3 + $0x298] sm:$0xff] }
 0x2f1   : > { %6918 = vmatprep.mubr.msk.f32.mxu0 %vm380_vm0, %v4078_v57  ;;  %3730 = vrot.lane.b32.xlu1 %v8876_v1, %s7189_s16  ;;  %v9214_v1 = vpop.permute.xlu1 %2848 }
 0x2f2   : > { %vm2550_vm8 = vcmp.gt.f32.partialorder %v2516_v9, 0.0  ;;  %v2589_v49 = vmul.f32 %v9083_v6, %v2516_v9  ;;  %3090 = vrot.lane.b32.xlu0 %v9145_v22, %s7189_s16  ;;  %6919 = vmatmul.mubr.msk.f32.gmra.mrb[90].mxu0 %vm380_vm0, %v4081_v43 }
 0x2f3   : > { %v9220_v47 = vpop.permute.xlu0 %2850 }
 0x2f4   : > { %v2621_v11 = vsel %vm2550_vm8, %v2516_v9, %v2589_v49  ;;  %v9256_v9 = vld [vmem:[#allocation2 + $0x10f] sm:$0xff] }
 0x2f5   : > { %2653 = vst.msk [vmem:[#allocation2 + $0x210] sm:$0xff] %vm380_vm0, %v2621_v11  ;;  %3476 = vrot.lane.b32.xlu1 %v8848_v21, %s7186_s20  ;;  %v2945_v13 = vpop.permute.xlu1 %2944 }
 0x2f6   : > { %v9210_v59 = vpop.f32.mrb[64].mxu0  ;;  %3604 = vrot.lane.b32.xlu0 %v9207_v29, %s7188_s29  ;;  %v3199_v28 = vsel %vm1031_vm2, %v3167_v27, %v2945_v13  ;;  %v9288_v27 = vld [vmem:[#allocation2 + $0x128] sm:$0xff] }
 0x2f7   : > { %v9218_v6 = vpop.f32.mrb[65].mxu0  ;;  %v3585_v21 = vpop.permute.xlu0 %3584 }
 0x2f9   : > { %2964 = vrot.lane.b32.xlu1 %v2729_v2, %s7188_s29  ;;  %v3296_v2 = vld [vmem:[#allocation2 + $0x48] sm:$0xff] }
 0x2fa   : > { %3732 = vrot.lane.b32.xlu0 %v8905_v5, %s7189_s16  ;;  %v2730_v5 = vld [vmem:[#allocation2 + $0xc9] sm:$0xff] }
 0x2fb   : > { %v9233_v31 = vpop.permute.xlu1 %2852 }
 0x2fc   : > { %v3962_v39 = vld [vmem:[#allocation2 + $0x209] sm:$0xff]  ;;  %v3963_v63 = vld [vmem:[#allocation2 + $0x211] sm:$0xff] }
 0x2fd   : > { %3092 = vrot.lane.b32.xlu1 %v9163_v26, %s7189_s16  ;;  %3994 = vst.msk [vmem:[#allocation3 + $0x2b0] sm:$0xff] %vm380_vm0, %v3962_v39  ;;  %3995 = vst.msk [vmem:[#allocation3 + $0x2c8] sm:$0xff] %vm380_vm0, %v3963_v63  ;;  %v3168_v39 = vsel %vm380_vm0, %v8931_v58, %v9030_v60 }
 0x2fe   : > { %3478 = vrot.lane.b32.xlu0 %v8907_v51, %s7186_s20  ;;  %v3807_v51 = vsel %vm380_vm0, %v3295_v12, %v3457_v10  ;;  %v2731_v10 = vld [vmem:[#allocation2 + $0xd1] sm:$0xff] }
 0x2ff   : > { %v3073_v46 = vpop.permute.xlu1 %3072  ;;  %v3839_v44 = vsel %vm1031_vm2, %v3807_v51, %v3585_v21  ;;  %v3297_v51 = vld [vmem:[#allocation2 + $0x50] sm:$0xff] }
 0x300   : > { %v3231_v57 = vsel %vm1064_vm1, %v3199_v28, %v3073_v46 }
 0x301   : > { %3606 = vrot.lane.b32.xlu1 %v9231_v18, %s7188_s29 }
 0x302   : > { %2966 = vrot.lane.b32.xlu0 %v2730_v5, %s7188_s29  ;;  %v9276_v5 = vld [vmem:[#allocation2 + $0x127] sm:$0xff] }
 0x303   : > { %v9238_v50 = vpop.permute.xlu0 %2854 }
 0x304   : > { %v4084_v41 = vld [vmem:[#allocation3 + $0x2b0] sm:$0xff]  ;;  %v4087_v35 = vld [vmem:[#allocation3 + $0x2c8] sm:$0xff] }
 0x305   : > { %6921 = vmatprep.mubr.msk.f32.mxu0 %vm380_vm0, %v4084_v41  ;;  %3734 = vrot.lane.b32.xlu1 %v8922_v32, %s7189_s16 }
 0x306   : > { %v9240_v7 = vpop.f32.mrb[66].mxu0  ;;  %3094 = vrot.lane.b32.xlu0 %v9191_v15, %s7189_s16  ;;  %6922 = vmatmul.mubr.msk.f32.gmra.mrb[92].mxu0 %vm380_vm0, %v4087_v35 }
 0x307   : > { %v9248_v38 = vpop.f32.mrb[67].mxu0  ;;  %v3713_v45 = vpop.permute.xlu0 %3712 }
 0x308   : > { %v3871_v32 = vsel %vm1064_vm1, %v3839_v44, %v3713_v45 }
 0x309   : > { %3480 = vrot.lane.b32.xlu1 %v3339_v3, %s7186_s20  ;;  %4302 = vmatprep.mubr.f32.mxu1 %v3871_v32 }
 0x30a   : > { %3608 = vrot.lane.b32.xlu0 %v9256_v9, %s7188_s29  ;;  %4303 = vmatmul.mubr.f32.gmra.mrb[34].mxu1 %v3231_v57  ;;  %v3341_v57 = vld [vmem:[#allocation2 + $0x111] sm:$0xff] }
 0x30b   : > { %v9262_v14 = vpop.permute.xlu1 %2856  ;;  %v3459_v43 = vpop.permute.xlu0 %3458 }
 0x30c   : > { %v3808_v13 = vsel %vm380_vm0, %v3296_v2, %v3459_v43  ;;  %v9296_v43 = vld [vmem:[#allocation2 + $0x12f] sm:$0xff] }
 0x30d   : > { %2968 = vrot.lane.b32.xlu1 %v2731_v10, %s7188_s29 }
 0x30e   : > { %3736 = vrot.lane.b32.xlu0 %v8936_v56, %s7189_s16 }
 0x30f   : > { %v3587_v49 = vpop.permute.xlu1 %3586  ;;  %v2947_v11 = vpop.permute.xlu0 %2946 }
 0x310   : > { %v3840_v63 = vsel %vm1031_vm2, %v3808_v13, %v3587_v49  ;;  %v3200_v56 = vsel %vm1031_vm2, %v3168_v39, %v2947_v11  ;;  %v3169_v49 = vsel %vm380_vm0, %v8966_v54, %v9034_v4  ;;  %v3298_v4 = vld [vmem:[#allocation2 + $0x68] sm:$0xff] }
 0x311   : > { %3096 = vrot.lane.b32.xlu1 %v9207_v29, %s7189_s16 }
 0x312   : > { %3482 = vrot.lane.b32.xlu0 %v8938_v20, %s7186_s20  ;;  %v2732_v20 = vld [vmem:[#allocation2 + $0xe9] sm:$0xff] }
 0x313   : > { %v3715_v21 = vpop.permute.xlu1 %3714  ;;  %v3075_v41 = vpop.permute.xlu0 %3074 }
 0x314   : > { %v3872_v37 = vsel %vm1064_vm1, %v3840_v63, %v3715_v21  ;;  %v3232_v35 = vsel %vm1064_vm1, %v3200_v56, %v3075_v41  ;;  %v9308_v63 = vld [vmem:[#allocation2 + $0x130] sm:$0xff] }
 0x315   : > { %3610 = vrot.lane.b32.xlu1 %v9276_v5, %s7188_s29  ;;  %4307 = vmatprep.mubr.f32.mxu1 %v3872_v37  ;;  %v3342_v37 = vld [vmem:[#allocation2 + $0x129] sm:$0xff] }
 0x316   : > { %v9281_v12 = vpop.f32.mrb[68].mxu0  ;;  %2970 = vrot.lane.b32.xlu0 %v2732_v20, %s7188_s29  ;;  %4308 = vmatmul.mubr.f32.gmra.mrb[36].mxu1 %v3232_v35  ;;  %v7172_v35 = vld [vmem:[#allocation2 + $0x47] sm:$0xff] }
 0x317   : > { %v9286_v58 = vpop.f32.mrb[69].mxu0  ;;  %v3461_v60 = vpop.permute.xlu1 %3460  ;;  %v3170_v20 = vsel %vm380_vm0, %v7172_v35, %v9044_v53 }
 0x318   : > { %v3589_v46 = vpop.permute.xlu0 %3588  ;;  %v3809_v44 = vsel %vm380_vm0, %v3297_v51, %v3461_v60 }
 0x319   : > { %3738 = vrot.lane.b32.xlu1 %v9288_v27, %s7189_s16  ;;  %v3841_v28 = vsel %vm1031_vm2, %v3809_v44, %v3589_v46  ;;  %v9323_v46 = vld [vmem:[#allocation2 + $0x147] sm:$0xff] }
 0x31a   : > { %3098 = vrot.lane.b32.xlu0 %v9231_v18, %s7189_s16 }
 0x31b   : > { %v2949_v45 = vpop.permute.xlu1 %2948 }
 0x31c   : > { %v3717_v32 = vpop.permute.xlu0 %3716  ;;  %v3201_v11 = vsel %vm1031_vm2, %v3169_v49, %v2949_v45  ;;  %v3299_v49 = vld [vmem:[#allocation2 + $0x70] sm:$0xff] }
 0x31d   : > { %v3873_v10 = vsel %vm1064_vm1, %v3841_v28, %v3717_v32  ;;  %3484 = vrot.lane.b32.xlu1 %v3341_v57, %s7186_s20 }
 0x31e   : > { %3612 = vrot.lane.b32.xlu0 %v9296_v43, %s7188_s29  ;;  %4312 = vmatprep.mubr.f32.mxu1 %v3873_v10  ;;  %v2734_v10 = vld [vmem:[#allocation2 + $0x109] sm:$0xff] }
 0x31f   : > { %v3077_v2 = vpop.permute.xlu1 %3076 }
 0x320   : > { %v3233_v13 = vsel %vm1064_vm1, %v3201_v11, %v3077_v2  ;;  %v3463_v39 = vpop.permute.xlu0 %3462  ;;  %v9331_v2 = vld [vmem:[#allocation2 + $0x148] sm:$0xff] }
 0x321   : > { %2972 = vrot.lane.b32.xlu1 %v3339_v3, %s7188_s29  ;;  %4313 = vmatmul.mubr.f32.gmra.mrb[38].mxu1 %v3233_v13  ;;  %v3810_v41 = vsel %vm380_vm0, %v3298_v4, %v3463_v39  ;;  %v3343_v4 = vld [vmem:[#allocation2 + $0x131] sm:$0xff] }
 0x322   : > { %3740 = vrot.lane.b32.xlu0 %v9308_v63, %s7189_s16 }
 0x323   : > { %v3591_v21 = vpop.permute.xlu1 %3590 }
 0x324   : > { %v2951_v54 = vpop.permute.xlu0 %2950  ;;  %v3842_v60 = vsel %vm1031_vm2, %v3810_v41, %v3591_v21  ;;  %v9339_v41 = vld [vmem:[#allocation2 + $0x14f] sm:$0xff] }
 0x325   : > { %3100 = vrot.lane.b32.xlu1 %v9256_v9, %s7189_s16  ;;  %v3202_v44 = vsel %vm1031_vm2, %v3170_v20, %v2951_v54  ;;  %v3171_v20 = vsel %vm380_vm0, %v8956_v48, %v9047_v25 }
 0x326   : > { %v9312_v56 = vpop.f32.mrb[70].mxu0  ;;  %3486 = vrot.lane.b32.xlu0 %v3342_v37, %s7186_s20 }
 0x327   : > { %v9318_v3 = vpop.f32.mrb[71].mxu0  ;;  %v3719_v51 = vpop.permute.xlu1 %3718 }
 0x328   : > { %v3874_v45 = vsel %vm1064_vm1, %v3842_v60, %v3719_v51  ;;  %v3079_v28 = vpop.permute.xlu0 %3078 }
 0x329   : > { %v3234_v32 = vsel %vm1064_vm1, %v3202_v44, %v3079_v28  ;;  %3614 = vrot.lane.b32.xlu1 %v9323_v46, %s7188_s29  ;;  %4317 = vmatprep.mubr.f32.mxu1 %v3874_v45 }
 0x32a   : > { %2974 = vrot.lane.b32.xlu0 %v2734_v10, %s7188_s29  ;;  %4318 = vmatmul.mubr.f32.gmra.mrb[40].mxu1 %v3234_v32  ;;  %v9353_v32 = vld [vmem:[#allocation2 + $0x150] sm:$0xff] }
 0x32b   : > { %v3465_v53 = vpop.permute.xlu1 %3464 }
 0x32c   : > { %v3593_v11 = vpop.permute.xlu0 %3592  ;;  %v3811_v13 = vsel %vm380_vm0, %v3299_v49, %v3465_v53  ;;  %v3300_v53 = vld [vmem:[#allocation2 + $0x88] sm:$0xff] }
 0x32d   : > { %3742 = vrot.lane.b32.xlu1 %v9331_v2, %s7189_s16  ;;  %v3843_v21 = vsel %vm1031_vm2, %v3811_v13, %v3593_v11  ;;  %v3344_v49 = vld [vmem:[#allocation2 + $0x149] sm:$0xff] }
 0x32e   : > { %3102 = vrot.lane.b32.xlu0 %v9276_v5, %s7189_s16 }
 0x32f   : > { %v2953_v39 = vpop.permute.xlu1 %2952 }
 0x330   : > { %v3721_v54 = vpop.permute.xlu0 %3720  ;;  %v3203_v60 = vsel %vm1031_vm2, %v3171_v20, %v2953_v39  ;;  %v9369_v20 = vld [vmem:[#allocation2 + $0x167] sm:$0xff] }
 0x331   : > { %v3875_v35 = vsel %vm1064_vm1, %v3843_v21, %v3721_v54  ;;  %3488 = vrot.lane.b32.xlu1 %v3343_v4, %s7186_s20 }
 0x332   : > { %3616 = vrot.lane.b32.xlu0 %v9339_v41, %s7188_s29  ;;  %4322 = vmatprep.mubr.f32.mxu1 %v3875_v35 }
 0x333   : > { %v3081_v51 = vpop.permute.xlu1 %3080 }
 0x334   : > { %v3235_v44 = vsel %vm1064_vm1, %v3203_v60, %v3081_v51  ;;  %v3467_v45 = vpop.permute.xlu0 %3466 }
 0x335   : > { %2976 = vrot.lane.b32.xlu1 %v3341_v57, %s7188_s29  ;;  %4323 = vmatmul.mubr.f32.gmra.mrb[42].mxu1 %v3235_v44  ;;  %v3812_v11 = vsel %vm380_vm0, %v3300_v53, %v3467_v45  ;;  %v3172_v57 = vsel %vm380_vm0, %v8988_v17, %v9054_v16  ;;  %v3301_v16 = vld [vmem:[#allocation2 + $0x90] sm:$0xff]  ;;  %v9375_v44 = vld [vmem:[#allocation2 + $0x168] sm:$0xff] }
 0x336   : > { %v9350_v28 = vpop.f32.mrb[72].mxu0  ;;  %3744 = vrot.lane.b32.xlu0 %v9353_v32, %s7189_s16 }
 0x337   : > { %v9357_v48 = vpop.f32.mrb[73].mxu0  ;;  %v3595_v25 = vpop.permute.xlu1 %3594 }
 0x338   : > { %v2955_v10 = vpop.permute.xlu0 %2954  ;;  %v3844_v13 = vsel %vm1031_vm2, %v3812_v11, %v3595_v25  ;;  %v3345_v11 = vld [vmem:[#allocation2 + $0x151] sm:$0xff] }
 0x339   : > { %3104 = vrot.lane.b32.xlu1 %v9296_v43, %s7189_s16  ;;  %v3204_v21 = vsel %vm1031_vm2, %v3172_v57, %v2955_v10 }
 0x33a   : > { %3490 = vrot.lane.b32.xlu0 %v3344_v49, %s7186_s20 }
 0x33b   : > { %v3723_v39 = vpop.permute.xlu1 %3722 }
 0x33c   : > { %v3876_v54 = vsel %vm1064_vm1, %v3844_v13, %v3723_v39  ;;  %v3083_v35 = vpop.permute.xlu0 %3082  ;;  %v9387_v13 = vld [vmem:[#allocation2 + $0x16f] sm:$0xff]  ;;  %v3173_v39 = vsel %vm380_vm0, %v9005_v52, %v9056_v62 }
 0x33d   : > { %v3236_v60 = vsel %vm1064_vm1, %v3204_v21, %v3083_v35  ;;  %3618 = vrot.lane.b32.xlu1 %v9369_v20, %s7188_s29  ;;  %4327 = vmatprep.mubr.f32.mxu1 %v3876_v54 }
 0x33e   : > { %2978 = vrot.lane.b32.xlu0 %v3342_v37, %s7188_s29  ;;  %4328 = vmatmul.mubr.f32.gmra.mrb[44].mxu1 %v3236_v60 }
 0x33f   : > { %v3469_v17 = vpop.permute.xlu1 %3468 }
 0x340   : > { %v3597_v51 = vpop.permute.xlu0 %3596  ;;  %v3813_v45 = vsel %vm380_vm0, %v3301_v16, %v3469_v17  ;;  %v9399_v16 = vld [vmem:[#allocation2 + $0x170] sm:$0xff] }
 0x341   : > { %3746 = vrot.lane.b32.xlu1 %v9375_v44, %s7189_s16  ;;  %v3845_v10 = vsel %vm1031_vm2, %v3813_v45, %v3597_v51  ;;  %v3302_v51 = vld [vmem:[#allocation2 + $0xa8] sm:$0xff] }
 0x342   : > { %3106 = vrot.lane.b32.xlu0 %v9323_v46, %s7189_s16  ;;  %v9405_v45 = vld [vmem:[#allocation2 + $0x169] sm:$0xff] }
 0x343   : > { %v2957_v25 = vpop.permute.xlu1 %2956 }
 0x344   : > { %v3725_v53 = vpop.permute.xlu0 %3724  ;;  %v3205_v54 = vsel %vm1031_vm2, %v3173_v39, %v2957_v25 }
 0x345   : > { %v3877_v37 = vsel %vm1064_vm1, %v3845_v10, %v3725_v53  ;;  %3492 = vrot.lane.b32.xlu1 %v3345_v11, %s7186_s20 }
 0x346   : > { %v9384_v57 = vpop.f32.mrb[74].mxu0  ;;  %3620 = vrot.lane.b32.xlu0 %v9387_v13, %s7188_s29  ;;  %4332 = vmatprep.mubr.f32.mxu1 %v3877_v37 }
 0x347   : > { %v9394_v21 = vpop.f32.mrb[75].mxu0  ;;  %v3085_v35 = vpop.permute.xlu1 %3084 }
 0x348   : > { %v3237_v60 = vsel %vm1064_vm1, %v3205_v54, %v3085_v35  ;;  %v3471_v17 = vpop.permute.xlu0 %3470  ;;  %v9416_v35 = vld [vmem:[#allocation2 + $0x187] sm:$0xff] }
 0x349   : > { %2980 = vrot.lane.b32.xlu1 %v3343_v4, %s7188_s29  ;;  %4333 = vmatmul.mubr.f32.gmra.mrb[46].mxu1 %v3237_v60  ;;  %v3814_v25 = vsel %vm380_vm0, %v3302_v51, %v3471_v17  ;;  %v3174_v4 = vsel %vm380_vm0, %v9032_v34, %v9073_v40  ;;  %v3303_v40 = vld [vmem:[#allocation2 + $0xb0] sm:$0xff] }
 0x34a   : > { %3748 = vrot.lane.b32.xlu0 %v9399_v16, %s7189_s16 }
 0x34b   : > { %v3599_v52 = vpop.permute.xlu1 %3598 }
 0x34c   : > { %v2959_v62 = vpop.permute.xlu0 %2958  ;;  %v3846_v10 = vsel %vm1031_vm2, %v3814_v25, %v3599_v52  ;;  %v9422_v52 = vld [vmem:[#allocation2 + $0x188] sm:$0xff] }
 0x34d   : > { %3108 = vrot.lane.b32.xlu1 %v9339_v41, %s7189_s16  ;;  %v3206_v37 = vsel %vm1031_vm2, %v3174_v4, %v2959_v62 }
 0x34e   : > { %3494 = vrot.lane.b32.xlu0 %v9405_v45, %s7186_s20 }
 0x34f   : > { %v3727_v53 = vpop.permute.xlu1 %3726 }
 0x350   : > { %v3878_v39 = vsel %vm1064_vm1, %v3846_v10, %v3727_v53  ;;  %v3087_v54 = vpop.permute.xlu0 %3086  ;;  %v9434_v53 = vld [vmem:[#allocation2 + $0x171] sm:$0xff] }
 0x351   : > { %v3238_v60 = vsel %vm1064_vm1, %v3206_v37, %v3087_v54  ;;  %3622 = vrot.lane.b32.xlu1 %v9416_v35, %s7188_s29  ;;  %4337 = vmatprep.mubr.f32.mxu1 %v3878_v39  ;;  %v9439_v39 = vld [vmem:[#allocation2 + $0x18f] sm:$0xff]  ;;  %v3175_v54 = vsel %vm380_vm0, %v9058_v24, %v9076_v0 }
 0x352   : > { %2982 = vrot.lane.b32.xlu0 %v3344_v49, %s7188_s29  ;;  %4338 = vmatmul.mubr.f32.gmra.mrb[48].mxu1 %v3238_v60  ;;  %v3304_v0 = vld [vmem:[#allocation2 + $0xc8] sm:$0xff] }
 0x353   : > { %v3473_v34 = vpop.permute.xlu1 %3472 }
 0x354   : > { %v3601_v17 = vpop.permute.xlu0 %3600  ;;  %v3815_v62 = vsel %vm380_vm0, %v3303_v40, %v3473_v34 }
 0x355   : > { %3750 = vrot.lane.b32.xlu1 %v9422_v52, %s7189_s16  ;;  %v3847_v49 = vsel %vm1031_vm2, %v3815_v62, %v3601_v17  ;;  %v9449_v62 = vld [vmem:[#allocation2 + $0x190] sm:$0xff] }
 0x356   : > { %v9425_v51 = vpop.f32.mrb[76].mxu0  ;;  %3110 = vrot.lane.b32.xlu0 %v9369_v20, %s7189_s16 }
 0x357   : > { %11016 = vst [vmem:[#allocation5_spill] sm:$0xff] %v9425_v51  ;;  %v9431_v25 = vpop.f32.mrb[77].mxu0  ;;  %v2961_v4 = vpop.permute.xlu1 %2960 }
 0x358   : > { %11017 = vst [vmem:[#allocation29_spill] sm:$0xff] %v9431_v25  ;;  %v3729_v10 = vpop.permute.xlu0 %3728  ;;  %v3207_v60 = vsel %vm1031_vm2, %v3175_v54, %v2961_v4 }
 0x359   : > { %v3879_v37 = vsel %vm1064_vm1, %v3847_v49, %v3729_v10  ;;  %3496 = vrot.lane.b32.xlu1 %v9434_v53, %s7186_s20  ;;  %v9455_v10 = vld [vmem:[#allocation2 + $0x189] sm:$0xff] }
 0x35a   : > { %3624 = vrot.lane.b32.xlu0 %v9439_v39, %s7188_s29  ;;  %4342 = vmatprep.mubr.f32.mxu1 %v3879_v37 }
 0x35b   : > { %v3089_v34 = vpop.permute.xlu1 %3088 }
 0x35c   : > { %v3239_v40 = vsel %vm1064_vm1, %v3207_v60, %v3089_v34  ;;  %v3475_v17 = vpop.permute.xlu0 %3474 }
 0x35d   : > { %2984 = vrot.lane.b32.xlu1 %v3345_v11, %s7188_s29  ;;  %4343 = vmatmul.mubr.f32.gmra.mrb[50].mxu1 %v3239_v40  ;;  %v3816_v4 = vsel %vm380_vm0, %v3304_v0, %v3475_v17  ;;  %v3176_v11 = vsel %vm380_vm0, %v9102_v42, %v9088_v30  ;;  %v9471_v17 = vld [vmem:[#allocation2 + $0x1a7] sm:$0xff] }
 0x35e   : > { %3752 = vrot.lane.b32.xlu0 %v9449_v62, %s7189_s16 }
 0x35f   : > { %v3603_v49 = vpop.permute.xlu1 %3602 }
 0x360   : > { %v2963_v24 = vpop.permute.xlu0 %2962  ;;  %v3848_v37 = vsel %vm1031_vm2, %v3816_v4, %v3603_v49  ;;  %v3305_v49 = vld [vmem:[#allocation2 + $0xd0] sm:$0xff]  ;;  %v9480_v4 = vld [vmem:[#allocation2 + $0x1a8] sm:$0xff] }
 0x361   : > { %3112 = vrot.lane.b32.xlu1 %v9387_v13, %s7189_s16  ;;  %v3208_v60 = vsel %vm1031_vm2, %v3176_v11, %v2963_v24 }
 0x362   : > { %3498 = vrot.lane.b32.xlu0 %v9455_v10, %s7186_s20 }
 0x363   : > { %v3731_v54 = vpop.permute.xlu1 %3730 }
 0x364   : > { %v3880_v34 = vsel %vm1064_vm1, %v3848_v37, %v3731_v54  ;;  %v3091_v40 = vpop.permute.xlu0 %3090 }
 0x365   : > { %v3240_v51 = vsel %vm1064_vm1, %v3208_v60, %v3091_v40  ;;  %2858 = vrot.lane.b32.xlu1 %v9375_v44, %s7186_s20  ;;  %4347 = vmatprep.mubr.f32.mxu1 %v3880_v34 }
 0x366   : > { %v9467_v25 = vpop.f32.mrb[78].mxu0  ;;  %3626 = vrot.lane.b32.xlu0 %v9471_v17, %s7188_s29  ;;  %4348 = vmatmul.mubr.f32.gmra.mrb[52].mxu1 %v3240_v51  ;;  %v9488_v51 = vld [vmem:[#allocation2 + $0x191] sm:$0xff] }
 0x367   : > { %11018 = vst [vmem:[#allocation4_spill] sm:$0xff] %v9467_v25  ;;  %v9475_v30 = vpop.f32.mrb[79].mxu0  ;;  %v3477_v42 = vpop.permute.xlu1 %3476 }
 0x368   : > { %v3605_v24 = vpop.permute.xlu0 %3604  ;;  %v3817_v0 = vsel %vm380_vm0, %v3305_v49, %v3477_v42 }
 0x369   : > { %2986 = vrot.lane.b32.xlu1 %v9405_v45, %s7188_s29  ;;  %v3849_v37 = vsel %vm1031_vm2, %v3817_v0, %v3605_v24  ;;  %v3177_v45 = vsel %vm380_vm0, %v9122_v8, %v9091_v19  ;;  %v9499_v24 = vld [vmem:[#allocation2 + $0x1af] sm:$0xff] }
 0x36a   : > { %3754 = vrot.lane.b32.xlu0 %v9480_v4, %s7189_s16  ;;  %v3306_v0 = vld [vmem:[#allocation2 + $0xe8] sm:$0xff] }
 0x36b   : > { %v2965_v11 = vpop.permute.xlu1 %2964 }
 0x36c   : > { %v3733_v54 = vpop.permute.xlu0 %3732  ;;  %v3209_v34 = vsel %vm1031_vm2, %v3177_v45, %v2965_v11  ;;  %v9507_v11 = vld [vmem:[#allocation2 + $0x1b0] sm:$0xff]  ;;  %v3178_v45 = vsel %vm380_vm0, %v9145_v22, %v9100_v36 }
 0x36d   : > { %v3881_v60 = vsel %vm1064_vm1, %v3849_v37, %v3733_v54  ;;  %3114 = vrot.lane.b32.xlu1 %v9416_v35, %s7189_s16  ;;  %v3307_v22 = vld [vmem:[#allocation2 + $0xf0] sm:$0xff] }
 0x36e   : > { %3500 = vrot.lane.b32.xlu0 %v9488_v51, %s7186_s20  ;;  %4352 = vmatprep.mubr.f32.mxu1 %v3881_v60 }
 0x36f   : > { %v3093_v40 = vpop.permute.xlu1 %3092 }
 0x370   : > { %v3241_v42 = vsel %vm1064_vm1, %v3209_v34, %v3093_v40  ;;  %v3479_v49 = vpop.permute.xlu0 %3478 }
 0x371   : > { %2860 = vrot.lane.b32.xlu1 %v9399_v16, %s7186_s20  ;;  %4353 = vmatmul.mubr.f32.gmra.mrb[54].mxu1 %v3241_v42  ;;  %v3818_v54 = vsel %vm380_vm0, %v3306_v0, %v3479_v49  ;;  %v9523_v49 = vld [vmem:[#allocation2 + $0x1a9] sm:$0xff] }
 0x372   : > { %3628 = vrot.lane.b32.xlu0 %v9499_v24, %s7188_s29  ;;  %v9530_v0 = vld [vmem:[#allocation2 + $0x1c7] sm:$0xff] }
 0x373   : > { %v3607_v19 = vpop.permute.xlu1 %3606 }
 0x374   : > { %v2967_v8 = vpop.permute.xlu0 %2966  ;;  %v3850_v34 = vsel %vm1031_vm2, %v3818_v54, %v3607_v19 }
 0x375   : > { %2988 = vrot.lane.b32.xlu1 %v9434_v53, %s7188_s29  ;;  %v3210_v42 = vsel %vm1031_vm2, %v3178_v45, %v2967_v8 }
 0x376   : > { %v9503_v37 = vpop.f32.mrb[80].mxu0  ;;  %3756 = vrot.lane.b32.xlu0 %v9507_v11, %s7189_s16 }
 0x377   : > { %11019 = vst [vmem:[#allocation25_spill] sm:$0xff] %v9503_v37  ;;  %v9512_v60 = vpop.f32.mrb[81].mxu0  ;;  %v3735_v40 = vpop.permute.xlu1 %3734 }
 0x378   : > { %v3882_v53 = vsel %vm1064_vm1, %v3850_v34, %v3735_v40  ;;  %v3095_v37 = vpop.permute.xlu0 %3094  ;;  %v3179_v40 = vsel %vm380_vm0, %v9163_v26, %v9118_v61 }
 0x379   : > { %v3242_v25 = vsel %vm1064_vm1, %v3210_v42, %v3095_v37  ;;  %3116 = vrot.lane.b32.xlu1 %v9439_v39, %s7189_s16  ;;  %4357 = vmatprep.mubr.f32.mxu1 %v3882_v53 }
 0x37a   : > { %3502 = vrot.lane.b32.xlu0 %v9523_v49, %s7186_s20  ;;  %4358 = vmatmul.mubr.f32.gmra.mrb[56].mxu1 %v3242_v25  ;;  %v9538_v25 = vld [vmem:[#allocation2 + $0x1c8] sm:$0xff] }
 0x37b   : > { %v3481_v36 = vpop.permute.xlu1 %3480 }
 0x37c   : > { %v3609_v19 = vpop.permute.xlu0 %3608  ;;  %v3819_v8 = vsel %vm380_vm0, %v3307_v22, %v3481_v36 }
 0x37d   : > { %2862 = vrot.lane.b32.xlu1 %v9422_v52, %s7186_s20  ;;  %v3851_v54 = vsel %vm1031_vm2, %v3819_v8, %v3609_v19 }
 0x37e   : > { %3630 = vrot.lane.b32.xlu0 %v9530_v0, %s7188_s29 }
 0x37f   : > { %v2969_v37 = vpop.permute.xlu1 %2968 }
 0x380   : > { %v3737_v45 = vpop.permute.xlu0 %3736  ;;  %v3211_v42 = vsel %vm1031_vm2, %v3179_v40, %v2969_v37  ;;  %v3308_v37 = vld [vmem:[#allocation2 + $0x108] sm:$0xff] }
 0x381   : > { %v3883_v34 = vsel %vm1064_vm1, %v3851_v54, %v3737_v45  ;;  %2990 = vrot.lane.b32.xlu1 %v9455_v10, %s7188_s29  ;;  %v9551_v10 = vld [vmem:[#allocation2 + $0x1b1] sm:$0xff] }
 0x382   : > { %3758 = vrot.lane.b32.xlu0 %v9538_v25, %s7189_s16  ;;  %4362 = vmatprep.mubr.f32.mxu1 %v3883_v34  ;;  %v9559_v54 = vld [vmem:[#allocation2 + $0x1cf] sm:$0xff]  ;;  %v3180_v34 = vsel %vm380_vm0, %v9191_v15, %v9148_v55 }
 0x383   : > { %v3097_v53 = vpop.permute.xlu1 %3096  ;;  %v3309_v15 = vld [vmem:[#allocation2 + $0x110] sm:$0xff] }
 0x384   : > { %v3243_v36 = vsel %vm1064_vm1, %v3211_v42, %v3097_v53  ;;  %v3483_v22 = vpop.permute.xlu0 %3482 }
 0x385   : > { %v9547_v19 = vpop.f32.mrb[82].mxu0  ;;  %3118 = vrot.lane.b32.xlu1 %v9471_v17, %s7189_s16  ;;  %4363 = vmatmul.mubr.f32.gmra.mrb[58].mxu1 %v3243_v36  ;;  %v3820_v45 = vsel %vm380_vm0, %v3308_v37, %v3483_v22  ;;  %v9573_v22 = vld [vmem:[#allocation2 + $0x1d0] sm:$0xff] }
 0x386   : > { %11020 = vst [vmem:[#allocation35_spill] sm:$0xff] %v9547_v19  ;;  %3504 = vrot.lane.b32.xlu0 %v9551_v10, %s7186_s20  ;;  %v9555_v61 = vpop.f32.mrb[83].mxu0  ;;  %v9580_v37 = vld [vmem:[#allocation2 + $0x1c9] sm:$0xff] }
 0x387   : > { %11021 = vst [vmem:[#allocation7_spill] sm:$0xff] %v9555_v61  ;;  %v3611_v26 = vpop.permute.xlu1 %3610 }
 0x388   : > { %v2971_v8 = vpop.permute.xlu0 %2970  ;;  %v3852_v40 = vsel %vm1031_vm2, %v3820_v45, %v3611_v26 }
 0x389   : > { %2864 = vrot.lane.b32.xlu1 %v9449_v62, %s7186_s20  ;;  %v3212_v53 = vsel %vm1031_vm2, %v3180_v34, %v2971_v8 }
 0x38a   : > { %3632 = vrot.lane.b32.xlu0 %v9559_v54, %s7188_s29 }
 0x38b   : > { %v3739_v42 = vpop.permute.xlu1 %3738 }
 0x38c   : > { %v3884_v36 = vsel %vm1064_vm1, %v3852_v40, %v3739_v42  ;;  %v3099_v19 = vpop.permute.xlu0 %3098  ;;  %v9590_v40 = vld [vmem:[#allocation2 + $0x1e7] sm:$0xff]  ;;  %v3181_v42 = vsel %vm380_vm0, %v9207_v29, %v9193_v23 }
 0x38d   : > { %v3244_v61 = vsel %vm1064_vm1, %v3212_v53, %v3099_v19  ;;  %2992 = vrot.lane.b32.xlu1 %v9488_v51, %s7188_s29  ;;  %4367 = vmatprep.mubr.f32.mxu1 %v3884_v36 }
 0x38e   : > { %3760 = vrot.lane.b32.xlu0 %v9573_v22, %s7189_s16  ;;  %4368 = vmatmul.mubr.f32.gmra.mrb[60].mxu1 %v3244_v61 }
 0x38f   : > { %v3485_v55 = vpop.permute.xlu1 %3484 }
 0x390   : > { %v3613_v26 = vpop.permute.xlu0 %3612  ;;  %v3821_v8 = vsel %vm380_vm0, %v3309_v15, %v3485_v55 }
 0x391   : > { %3120 = vrot.lane.b32.xlu1 %v9499_v24, %s7189_s16  ;;  %v3853_v19 = vsel %vm1031_vm2, %v3821_v8, %v3613_v26  ;;  %v9603_v8 = vld [vmem:[#allocation2 + $0x1e8] sm:$0xff] }
 0x392   : > { %3506 = vrot.lane.b32.xlu0 %v9580_v37, %s7186_s20 }
 0x393   : > { %v2973_v51 = vpop.permute.xlu1 %2972 }
 0x394   : > { %v3741_v45 = vpop.permute.xlu0 %3740  ;;  %v3213_v36 = vsel %vm1031_vm2, %v3181_v42, %v2973_v51 }
 0x395   : > { %v3885_v34 = vsel %vm1064_vm1, %v3853_v19, %v3741_v45  ;;  %v9586_v61 = vpop.f32.mrb[84].mxu0  ;;  %2866 = vrot.lane.b32.xlu1 %v9480_v4, %s7186_s20  ;;  %v9609_v19 = vld [vmem:[#allocation2 + $0x1d1] sm:$0xff] }
 0x396   : > { %3634 = vrot.lane.b32.xlu0 %v9590_v40, %s7188_s29  ;;  %v9597_v53 = vpop.f32.mrb[85].mxu0  ;;  %4372 = vmatprep.mubr.f32.mxu1 %v3885_v34 }
 0x397   : > { %v3101_v55 = vpop.permute.xlu1 %3100 }
 0x398   : > { %v3245_v15 = vsel %vm1064_vm1, %v3213_v36, %v3101_v55  ;;  %v3487_v26 = vpop.permute.xlu0 %3486 }
 0x399   : > { %2994 = vrot.lane.b32.xlu1 %v9523_v49, %s7188_s29  ;;  %4373 = vmatmul.mubr.f32.gmra.mrb[62].mxu1 %v3245_v15  ;;  %v3822_v51 = vsel %vm380_vm0, %v9288_v27, %v3487_v26  ;;  %v3182_v49 = vsel %vm380_vm0, %v9231_v18, %v9173_v33  ;;  %v9624_v27 = vld [vmem:[#allocation2 + $0x1ef] sm:$0xff] }
 0x39a   : > { %3762 = vrot.lane.b32.xlu0 %v9603_v8, %s7189_s16 }
 0x39b   : > { %v3615_v23 = vpop.permute.xlu1 %3614 }
 0x39c   : > { %v2975_v29 = vpop.permute.xlu0 %2974  ;;  %v3854_v45 = vsel %vm1031_vm2, %v3822_v51, %v3615_v23 }
 0x39d   : > { %3122 = vrot.lane.b32.xlu1 %v9530_v0, %s7189_s16  ;;  %v3214_v42 = vsel %vm1031_vm2, %v3182_v49, %v2975_v29  ;;  %v9634_v29 = vld [vmem:[#allocation2 + $0x1f0] sm:$0xff] }
 0x39e   : > { %3508 = vrot.lane.b32.xlu0 %v9609_v19, %s7186_s20 }
 0x39f   : > { %v3743_v34 = vpop.permute.xlu1 %3742 }
 0x3a0   : > { %v3886_v36 = vsel %vm1064_vm1, %v3854_v45, %v3743_v34  ;;  %v3103_v55 = vpop.permute.xlu0 %3102 }
 0x3a1   : > { %v3246_v15 = vsel %vm1064_vm1, %v3214_v42, %v3103_v55  ;;  %2868 = vrot.lane.b32.xlu1 %v9507_v11, %s7186_s20  ;;  %4377 = vmatprep.mubr.f32.mxu1 %v3886_v36 }
 0x3a2   : > { %3636 = vrot.lane.b32.xlu0 %v9624_v27, %s7188_s29  ;;  %4378 = vmatmul.mubr.f32.gmra.mrb[64].mxu1 %v3246_v15 }
 0x3a3   : > { %v3489_v33 = vpop.permute.xlu1 %3488 }
 0x3a4   : > { %v3617_v18 = vpop.permute.xlu0 %3616  ;;  %v3823_v26 = vsel %vm380_vm0, %v9308_v63, %v3489_v33  ;;  %v9644_v63 = vld [vmem:[#allocation2 + $0x1e9] sm:$0xff] }
 0x3a5   : > { %v9630_v23 = vpop.f32.mrb[86].mxu0  ;;  %2996 = vrot.lane.b32.xlu1 %v9551_v10, %s7188_s29  ;;  %v3855_v45 = vsel %vm1031_vm2, %v3823_v26, %v3617_v18  ;;  %v3183_v10 = vsel %vm380_vm0, %v9256_v9, %v9214_v1  ;;  %v9655_v18 = vld [vmem:[#allocation2 + $0x207] sm:$0xff] }
 0x3a6   : > { %3764 = vrot.lane.b32.xlu0 %v9634_v29, %s7189_s16  ;;  %v9638_v51 = vpop.f32.mrb[87].mxu0  ;;  %v9661_v26 = vld [vmem:[#allocation2 + $0x208] sm:$0xff] }
 0x3a7   : > { %v2977_v49 = vpop.permute.xlu1 %2976 }
 0x3a8   : > { %v3745_v34 = vpop.permute.xlu0 %3744  ;;  %v3215_v36 = vsel %vm1031_vm2, %v3183_v10, %v2977_v49 }
 0x3a9   : > { %v3887_v42 = vsel %vm1064_vm1, %v3855_v45, %v3745_v34  ;;  %3124 = vrot.lane.b32.xlu1 %v9559_v54, %s7189_s16  ;;  %v3184_v45 = vsel %vm380_vm0, %v9276_v5, %v9220_v47 }
 0x3aa   : > { %3510 = vrot.lane.b32.xlu0 %v9644_v63, %s7186_s20  ;;  %4382 = vmatprep.mubr.f32.mxu1 %v3887_v42 }
 0x3ab   : > { %v3105_v55 = vpop.permute.xlu1 %3104 }
 0x3ac   : > { %v3247_v15 = vsel %vm1064_vm1, %v3215_v36, %v3105_v55  ;;  %v3491_v33 = vpop.permute.xlu0 %3490 }
 0x3ad   : > { %2870 = vrot.lane.b32.xlu1 %v9538_v25, %s7186_s20  ;;  %4383 = vmatmul.mubr.f32.gmra.mrb[66].mxu1 %v3247_v15  ;;  %v3824_v49 = vsel %vm380_vm0, %v9331_v2, %v3491_v33  ;;  %v9678_v2 = vld [vmem:[#allocation2 + $0x1f1] sm:$0xff] }
 0x3ae   : > { %3638 = vrot.lane.b32.xlu0 %v9655_v18, %s7188_s29 }
 0x3af   : > { %v3619_v1 = vpop.permute.xlu1 %3618 }
 0x3b0   : > { %v2979_v9 = vpop.permute.xlu0 %2978  ;;  %v3856_v34 = vsel %vm1031_vm2, %v3824_v49, %v3619_v1  ;;  %v9695_v49 = vld [vmem:[%s10913_s6] ss:$0 sm:$0xff] }
 0x3b1   : > { %2998 = vrot.lane.b32.xlu1 %v9580_v37, %s7188_s29  ;;  %v3216_v10 = vsel %vm1031_vm2, %v3184_v45, %v2979_v9  ;;  %v9688_v9 = vld [vmem:[#allocation2 + $0x20f] sm:$0xff] }
 0x3b2   : > { %3766 = vrot.lane.b32.xlu0 %v9661_v26, %s7189_s16 }
 0x3b3   : > { %v3747_v42 = vpop.permute.xlu1 %3746 }
 0x3b4   : > { %v3888_v36 = vsel %vm1064_vm1, %v3856_v34, %v3747_v42  ;;  %v3107_v37 = vpop.permute.xlu0 %3106 }
 0x3b5   : > { %v3248_v55 = vsel %vm1064_vm1, %v3216_v10, %v3107_v37  ;;  %v9674_v15 = vpop.f32.mrb[88].mxu0  ;;  %3126 = vrot.lane.b32.xlu1 %v9590_v40, %s7189_s16  ;;  %4387 = vmatprep.mubr.f32.mxu1 %v3888_v36  ;;  %v9701_v36 = vld [vmem:[#allocation2 + $0x210] sm:$0xff] }
 0x3b6   : > { %11022 = vst [vmem:[#allocation27_spill] sm:$0xff] %v9674_v15  ;;  %3512 = vrot.lane.b32.xlu0 %v9678_v2, %s7186_s20  ;;  %v9682_v47 = vpop.f32.mrb[89].mxu0  ;;  %4388 = vmatmul.mubr.f32.gmra.mrb[68].mxu1 %v3248_v55 }
 0x3b7   : > { %v3493_v5 = vpop.permute.xlu1 %3492 }
 0x3b8   : > { %v3621_v33 = vpop.permute.xlu0 %3620  ;;  %v3825_v1 = vsel %vm380_vm0, %v9353_v32, %v3493_v5  ;;  %v3185_v5 = vsel %vm380_vm0, %v9296_v43, %v9233_v31  ;;  %v3356_v31 = vld [vmem:[#allocation2 + $0x209] sm:$0xff] }
 0x3b9   : > { %2872 = vrot.lane.b32.xlu1 %v9573_v22, %s7186_s20  ;;  %v3857_v34 = vsel %vm1031_vm2, %v3825_v1, %v3621_v33  ;;  %v9712_v33 = vld [vmem:[%s10914_s7] ss:$0 sm:$0xff] }
 0x3ba   : > { %3640 = vrot.lane.b32.xlu0 %v9688_v9, %s7188_s29 }
 0x3bb   : > { %v2981_v45 = vpop.permute.xlu1 %2980 }
 0x3bc   : > { %v3749_v42 = vpop.permute.xlu0 %3748  ;;  %v4299_v10 = vpop.f32.mrb[32].mxu1 }
 0x3bd   : > { %v3889_v32 = vsel %vm1064_vm1, %v3857_v34, %v3749_v42  ;;  %3000 = vrot.lane.b32.xlu1 %v9609_v19, %s7188_s29  ;;  %v4300_v37 = vadd.f32 %v9695_v49, %v4299_v10  ;;  %v4301_v55 = vpop.f32.mrb[33].mxu1  ;;  %v3217_v19 = vsel %vm1031_vm2, %v3185_v5, %v2981_v45  ;;  %v3388_v45 = vld [vmem:[#allocation2 + $0x227] sm:$0xff] }
 0x3be   : > { %3768 = vrot.lane.b32.xlu0 %v9701_v36, %s7189_s16  ;;  %4392 = vmatprep.mubr.f32.mxu1 %v3889_v32  ;;  %v4090_v55 = vld [vmem:[#allocation3 + $0x2e0] sm:$0xff] }
 0x3bf   : > { %v3109_v1 = vpop.permute.xlu1 %3108  ;;  %v4525_v34 = vadd.f32 %v9218_v6, %v4300_v37  ;;  %6924 = vmatprep.mubr.msk.f32.mxu0 %vm380_vm0, %v4090_v55  ;;  %v4093_v6 = vld [vmem:[#allocation3 + $0x2f8] sm:$0xff] }
 0x3c0   : > { %v3249_v42 = vsel %vm1064_vm1, %v3217_v19, %v3109_v1  ;;  %v3495_v10 = vpop.permute.xlu0 %3494  ;;  %6925 = vmatmul.mubr.msk.f32.gmra.mrb[94].mxu0 %vm380_vm0, %v4093_v6 }
 0x3c1   : > { %3128 = vrot.lane.b32.xlu1 %v9624_v27, %s7189_s16  ;;  %vm4683_vm9 = vcmp.gt.f32.partialorder %v4525_v34, 0.0  ;;  %v4722_v43 = vmul.f32 %v9712_v33, %v4525_v34  ;;  %4393 = vmatmul.mubr.f32.gmra.mrb[70].mxu1 %v3249_v42  ;;  %v3826_v19 = vsel %vm380_vm0, %v9375_v44, %v3495_v10  ;;  %v6128_v44 = vld [vmem:[#allocation2 + $0x229] sm:$0xff]  ;;  %v6129_v10 = vld [vmem:[#allocation2 + $0x231] sm:$0xff] }
 0x3c2   : > { %3514 = vrot.lane.b32.xlu0 %v3356_v31, %s7186_s20  ;;  %v3420_v31 = vld [vmem:[#allocation2 + $0x228] sm:$0xff]  ;;  %6160 = vst.msk [vmem:[#allocation3 + $0x2e0] sm:$0xff] %vm380_vm0, %v6128_v44  ;;  %6161 = vst.msk [vmem:[#allocation3 + $0x2f8] sm:$0xff] %vm380_vm0, %v6129_v10 }
 0x3c3   : > { %v3623_v32 = vpop.permute.xlu1 %3622  ;;  %v4754_v15 = vsel %vm4683_vm9, %v4525_v34, %v4722_v43  ;;  %v3186_v34 = vsel %vm380_vm0, %v9323_v46, %v9238_v50 }
 0x3c4   : > { %v2983_v37 = vpop.permute.xlu0 %2982  ;;  %4786 = vst.msk [vmem:[#allocation2 + $0x28] sm:$0xff] %vm380_vm0, %v4754_v15  ;;  %v3858_v15 = vsel %vm1031_vm2, %v3826_v19, %v3623_v32 }
 0x3c5   : > { %v9724_v5 = vpop.f32.mrb[90].mxu0  ;;  %2874 = vrot.lane.b32.xlu1 %v9603_v8, %s7186_s20  ;;  %v3218_v43 = vsel %vm1031_vm2, %v3186_v34, %v2983_v37  ;;  %v3389_v37 = vld [vmem:[#allocation2 + $0x22f] sm:$0xff] }
 0x3c6   : > { %11023 = vst [vmem:[#allocation6_spill] sm:$0xff] %v9724_v5  ;;  %3642 = vrot.lane.b32.xlu0 %v3388_v45, %s7188_s29  ;;  %v9731_v1 = vpop.f32.mrb[91].mxu0  ;;  %v3357_v45 = vld [vmem:[#allocation2 + $0x211] sm:$0xff] }
 0x3c7   : > { %v3751_v42 = vpop.permute.xlu1 %3750 }
 0x3c8   : > { %v3890_v55 = vsel %vm1064_vm1, %v3858_v15, %v3751_v42  ;;  %v3111_v6 = vpop.permute.xlu0 %3110  ;;  %v3421_v42 = vld [vmem:[#allocation2 + $0x230] sm:$0xff] }
 0x3c9   : > { %v3250_v5 = vsel %vm1064_vm1, %v3218_v43, %v3111_v6  ;;  %3002 = vrot.lane.b32.xlu1 %v9644_v63, %s7188_s29  ;;  %4397 = vmatprep.mubr.f32.mxu1 %v3890_v55 }
 0x3ca   : > { %3770 = vrot.lane.b32.xlu0 %v3420_v31, %s7189_s16  ;;  %4398 = vmatmul.mubr.f32.gmra.mrb[72].mxu1 %v3250_v5 }
 0x3cb   : > { %v3497_v50 = vpop.permute.xlu1 %3496 }
 0x3cc   : > { %v3625_v46 = vpop.permute.xlu0 %3624  ;;  %v3827_v32 = vsel %vm380_vm0, %v9399_v16, %v3497_v50  ;;  %v3187_v16 = vsel %vm380_vm0, %v9339_v41, %v9262_v14 }
 0x3cd   : > { %3130 = vrot.lane.b32.xlu1 %v9655_v18, %s7189_s16  ;;  %v3859_v19 = vsel %vm1031_vm2, %v3827_v32, %v3625_v46 }
 0x3ce   : > { %3516 = vrot.lane.b32.xlu0 %v3357_v45, %s7186_s20 }
 0x3cf   : > { %v2985_v63 = vpop.permute.xlu1 %2984 }
 0x3d0   : > { %v3753_v5 = vpop.permute.xlu0 %3752  ;;  %v3219_v18 = vsel %vm1031_vm2, %v3187_v16, %v2985_v63 }
 0x3d1   : > { %v3891_v34 = vsel %vm1064_vm1, %v3859_v19, %v3753_v5  ;;  %2876 = vrot.lane.b32.xlu1 %v9634_v29, %s7186_s20 }
 0x3d2   : > { %3644 = vrot.lane.b32.xlu0 %v3389_v37, %s7188_s29  ;;  %4402 = vmatprep.mubr.f32.mxu1 %v3891_v34 }
 0x3d3   : > { %v3113_v15 = vpop.permute.xlu1 %3112 }
 0x3d4   : > { %v3251_v31 = vsel %vm1064_vm1, %v3219_v18, %v3113_v15  ;;  %v3499_v43 = vpop.permute.xlu0 %3498 }
 0x3d5   : > { %3004 = vrot.lane.b32.xlu1 %v9678_v2, %s7188_s29  ;;  %4403 = vmatmul.mubr.f32.gmra.mrb[74].mxu1 %v3251_v31  ;;  %v3828_v41 = vsel %vm380_vm0, %v9422_v52, %v3499_v43 }
 0x3d6   : > { %3772 = vrot.lane.b32.xlu0 %v3421_v42, %s7189_s16 }
 0x3d7   : > { %v2859_v55 = vpop.permute.xlu1 %2858 }
 0x3d8   : > { %v3627_v6 = vpop.permute.xlu0 %3626  ;;  %v3188_v45 = vsel %vm380_vm0, %v9369_v20, %v2859_v55 }
 0x3d9   : > { %v9763_v44 = vpop.f32.mrb[92].mxu0  ;;  %3132 = vrot.lane.b32.xlu1 %v9688_v9, %s7189_s16  ;;  %v3860_v50 = vsel %vm1031_vm2, %v3828_v41, %v3627_v6 }
 0x3da   : > { %v9767_v14 = vpop.f32.mrb[93].mxu0 }
 0x3db   : > { %v2987_v10 = vpop.permute.xlu1 %2986 }
 0x3dc   : > { %v3755_v46 = vpop.permute.xlu0 %3754  ;;  %v3220_v9 = vsel %vm1031_vm2, %v3188_v45, %v2987_v10 }
 0x3dd   : > { %v3892_v2 = vsel %vm1064_vm1, %v3860_v50, %v3755_v46  ;;  %v4304_v32 = vpop.f32.mrb[34].mxu1 }
 0x3de   : > { %v4305_v63 = vadd.f32 %v9695_v49, %v4304_v32  ;;  %4407 = vmatprep.mubr.f32.mxu1 %v3892_v2  ;;  %v4306_v37 = vpop.f32.mrb[35].mxu1 }
 0x3df   : > { %v3115_v19 = vpop.permute.xlu1 %3114 }
 0x3e0   : > { %v3252_v5 = vsel %vm1064_vm1, %v3220_v9, %v3115_v19  ;;  %v3501_v52 = vpop.permute.xlu0 %3500  ;;  %v4530_v34 = vadd.f32 %v9210_v59, %v4305_v63  ;;  %v4850_v9 = vld [vmem:[#allocation2 + $0x8] sm:$0xff]  ;;  %v4851_v19 = vld [vmem:[#allocation2 + $0x10] sm:$0xff] }
 0x3e1   : > { %4408 = vmatmul.mubr.f32.gmra.mrb[76].mxu1 %v3252_v5  ;;  %v3829_v20 = vsel %vm380_vm0, %v9449_v62, %v3501_v52 }
 0x3e2   : > { %vm4684_vm10 = vcmp.gt.f32.partialorder %v4530_v34, 0.0  ;;  %v4723_v16 = vmul.f32 %v9712_v33, %v4530_v34 }
 0x3e3   : > { %v2861_v18 = vpop.permute.xlu1 %2860 }
 0x3e4   : > { %v3629_v15 = vpop.permute.xlu0 %3628  ;;  %v4755_v42 = vsel %vm4684_vm10, %v4530_v34, %v4723_v16  ;;  %v3189_v59 = vsel %vm380_vm0, %v9387_v13, %v2861_v18 }
 0x3e5   : > { %4787 = vst.msk [vmem:[#allocation2 + $0x30] sm:$0xff] %vm380_vm0, %v4755_v42  ;;  %v3861_v43 = vsel %vm1031_vm2, %v3829_v20, %v3629_v15 }
 0x3e7   : > { %v2989_v31 = vpop.permute.xlu1 %2988 }
 0x3e8   : > { %v3757_v55 = vpop.permute.xlu0 %3756  ;;  %v3221_v46 = vsel %vm1031_vm2, %v3189_v59, %v2989_v31 }
 0x3e9   : > { %v3893_v6 = vsel %vm1064_vm1, %v3861_v43, %v3757_v55  ;;  %v4309_v41 = vpop.f32.mrb[36].mxu1 }
 0x3ea   : > { %v4310_v10 = vadd.f32 %v9695_v49, %v4309_v41  ;;  %4412 = vmatprep.mubr.f32.mxu1 %v3893_v6  ;;  %v4311_v50 = vpop.f32.mrb[37].mxu1 }
 0x3eb   : > { %v3117_v2 = vpop.permute.xlu1 %3116 }
 0x3ec   : > { %v3253_v32 = vsel %vm1064_vm1, %v3221_v46, %v3117_v2  ;;  %v3503_v62 = vpop.permute.xlu0 %3502  ;;  %v4535_v45 = vadd.f32 %v9248_v38, %v4310_v10  ;;  %v9791_v63 = vld [vmem:[#allocation2 + $0x31] sm:$0xff]  ;;  %v9793_v37 = vld [vmem:[#allocation2 + $0x29] sm:$0xff] }
 0x3ed   : > { %5620 = vrot.lane.b32.xlu1 %v9791_v63, %s7186_s20  ;;  %5618 = vrot.lane.b32.xlu0 %v9793_v37, %s7186_s20  ;;  %v3830_v38 = vsel %vm380_vm0, %v9480_v4, %v3503_v62  ;;  %v4882_v2 = vld [vmem:[#allocation2 + $0x9] sm:$0xff] }
 0x3ee   : > { %vm4685_vm11 = vcmp.gt.f32.partialorder %v4535_v45, 0.0  ;;  %v4724_v13 = vmul.f32 %v9712_v33, %v4535_v45  ;;  %4413 = vmatmul.mubr.f32.gmra.mrb[78].mxu1 %v3253_v32 }
 0x3ef   : > { %v2863_v5 = vpop.permute.xlu1 %2862 }
 0x3f0   : > { %v3631_v52 = vpop.permute.xlu0 %3630  ;;  %v4756_v34 = vsel %vm4685_vm11, %v4535_v45, %v4724_v13  ;;  %v3190_v55 = vsel %vm380_vm0, %v9416_v35, %v2863_v5 }
 0x3f1   : > { %4788 = vst.msk [vmem:[#allocation2 + $0x48] sm:$0xff] %vm380_vm0, %v4756_v34  ;;  %4978 = vrot.lane.b32.xlu0 %v4850_v9, %s7186_s20  ;;  %4980 = vrot.lane.b32.xlu1 %v4851_v19, %s7186_s20  ;;  %v3862_v18 = vsel %vm1031_vm2, %v3830_v38, %v3631_v52 }
 0x3f3   : > { %v2991_v16 = vpop.permute.xlu1 %2990 }
 0x3f4   : > { %v3759_v15 = vpop.permute.xlu0 %3758  ;;  %v4314_v42 = vpop.f32.mrb[38].mxu1  ;;  %v3222_v6 = vsel %vm1031_vm2, %v3190_v55, %v2991_v16  ;;  %v9839_v55 = vld [vmem:[#allocation2 + $0x27] sm:$0xff] }
 0x3f5   : > { %v3894_v20 = vsel %vm1064_vm1, %v3862_v18, %v3759_v15  ;;  %v4315_v31 = vadd.f32 %v9695_v49, %v4314_v42  ;;  %v4316_v43 = vpop.f32.mrb[39].mxu1 }
 0x3f6   : > { %4417 = vmatprep.mubr.f32.mxu1 %v3894_v20 }
 0x3f7   : > { %v3119_v41 = vpop.permute.xlu1 %3118  ;;  %v4540_v59 = vadd.f32 %v9240_v7, %v4315_v31 }
 0x3f8   : > { %v3254_v4 = vsel %vm1064_vm1, %v3222_v6, %v3119_v41  ;;  %v3505_v10 = vpop.permute.xlu0 %3504  ;;  %v9813_v50 = vld [vmem:[#allocation2 + $0x47] sm:$0xff]  ;;  %v4883_v41 = vld [vmem:[#allocation2 + $0x11] sm:$0xff] }
 0x3f9   : > { %vm4686_vm12 = vcmp.gt.f32.partialorder %v4540_v59, 0.0  ;;  %v4725_v46 = vmul.f32 %v9712_v33, %v4540_v59  ;;  %5746 = vrot.lane.b32.xlu0 %v9813_v50, %s7188_s29  ;;  %4418 = vmatmul.mubr.f32.gmra.mrb[80].mxu1 %v3254_v4  ;;  %v3831_v9 = vsel %vm380_vm0, %v9507_v11, %v3505_v10  ;;  %v9825_v38 = vld [vmem:[#allocation2 + $0x48] sm:$0xff] }
 0x3fb   : > { %v2865_v35 = vpop.permute.xlu1 %2864  ;;  %v4757_v32 = vsel %vm4686_vm12, %v4540_v59, %v4725_v46 }
 0x3fc   : > { %v3633_v62 = vpop.permute.xlu0 %3632  ;;  %4789 = vst.msk [vmem:[#allocation2 + $0x50] sm:$0xff] %vm380_vm0, %v4757_v32  ;;  %v3191_v18 = vsel %vm380_vm0, %v9439_v39, %v2865_v35 }
 0x3fd   : > { %5106 = vrot.lane.b32.xlu0 %v4882_v2, %s7188_s29  ;;  %v4319_v7 = vpop.f32.mrb[40].mxu1  ;;  %v3863_v5 = vsel %vm1031_vm2, %v3831_v9, %v3633_v62 }
 0x3fe   : > { %v4320_v45 = vadd.f32 %v9695_v49, %v4319_v7  ;;  %v4321_v13 = vpop.f32.mrb[41].mxu1 }
 0x3ff   : > { %v2993_v19 = vpop.permute.xlu1 %2992 }
 0x400   : > { %v3761_v52 = vpop.permute.xlu0 %3760  ;;  %v4545_v34 = vadd.f32 %v9286_v58, %v4320_v45  ;;  %v3223_v11 = vsel %vm1031_vm2, %v3191_v18, %v2993_v19  ;;  %v9863_v19 = vld [vmem:[#allocation2 + $0x28] sm:$0xff] }
 0x401   : > { %v3895_v16 = vsel %vm1064_vm1, %v3863_v5, %v3761_v52  ;;  %5874 = vrot.lane.b32.xlu0 %v9825_v38, %s7189_s16  ;;  %v9872_v18 = vld [vmem:[#allocation2 + $0x2f] sm:$0xff] }
 0x402   : > { %vm4687_vm13 = vcmp.gt.f32.partialorder %v4545_v34, 0.0  ;;  %v4726_v15 = vmul.f32 %v9712_v33, %v4545_v34  ;;  %4422 = vmatprep.mubr.f32.mxu1 %v3895_v16 }
 0x403   : > { %v3121_v42 = vpop.permute.xlu1 %3120  ;;  %v9834_v20 = vld [vmem:[#allocation2 + $0x4f] sm:$0xff] }
 0x404   : > { %v3255_v58 = vsel %vm1064_vm1, %v3223_v11, %v3121_v42  ;;  %v3507_v31 = vpop.permute.xlu0 %3506  ;;  %v4758_v43 = vsel %vm4687_vm13, %v4545_v34, %v4726_v15  ;;  %5748 = vrot.lane.b32.xlu1 %v9834_v20, %s7188_s29  ;;  %v9841_v6 = vld [vmem:[#allocation2 + $0x51] sm:$0xff]  ;;  %v6098_v39 = vld [vmem:[#allocation2 + $0x49] sm:$0xff] }
 0x405   : > { %4790 = vst.msk [vmem:[#allocation2 + $0x68] sm:$0xff] %vm380_vm0, %v4758_v43  ;;  %5234 = vrot.lane.b32.xlu0 %v9839_v55, %s7189_s16  ;;  %4423 = vmatmul.mubr.f32.gmra.mrb[82].mxu1 %v3255_v58  ;;  %6130 = vst.msk [vmem:[#allocation3 + $0x10] sm:$0xff] %vm380_vm0, %v6098_v39  ;;  %v9850_v46 = vld [vmem:[#allocation2 + $0x49] sm:$0xff]  ;;  %v3832_v32 = vsel %vm380_vm0, %v9538_v25, %v3507_v31 }
 0x406   : > { %6131 = vst.msk [vmem:[#allocation3 + $0x28] sm:$0xff] %vm380_vm0, %v9841_v6  ;;  %v9858_v45 = vld [vmem:[#allocation2 + $0x50] sm:$0xff] }
 0x407   : > { %v2867_v59 = vpop.permute.xlu1 %2866 }
 0x408   : > { %v3635_v4 = vpop.permute.xlu0 %3634  ;;  %5108 = vrot.lane.b32.xlu1 %v4883_v41, %s7188_s29  ;;  %v4324_v10 = vpop.f32.mrb[42].mxu1 }
 0x409   : > { %v4325_v2 = vadd.f32 %v9695_v49, %v4324_v10  ;;  %5622 = vrot.lane.b32.xlu0 %v9850_v46, %s7186_s20  ;;  %v4326_v35 = vpop.f32.mrb[43].mxu1  ;;  %v3864_v13 = vsel %vm1031_vm2, %v3832_v32, %v3635_v4 }
 0x40b   : > { %v2995_v62 = vpop.permute.xlu1 %2994  ;;  %v4550_v7 = vadd.f32 %v9281_v12, %v4325_v2  ;;  %v3192_v12 = vsel %vm380_vm0, %v9471_v17, %v2867_v59  ;;  %v9891_v2 = vld [vmem:[#allocation2 + $0x30] sm:$0xff] }
 0x40c   : > { %v3763_v9 = vpop.permute.xlu0 %3762  ;;  %5876 = vrot.lane.b32.xlu1 %v9858_v45, %s7189_s16  ;;  %v3224_v25 = vsel %vm1031_vm2, %v3192_v12, %v2995_v62  ;;  %v9878_v42 = vld [vmem:[#allocation2 + $0x67] sm:$0xff] }
 0x40d   : > { %v3896_v5 = vsel %vm1064_vm1, %v3864_v13, %v3763_v9  ;;  %vm4688_vm14 = vcmp.gt.f32.partialorder %v4550_v7, 0.0  ;;  %v4727_v52 = vmul.f32 %v9712_v33, %v4550_v7  ;;  %4982 = vrot.lane.b32.xlu0 %v9863_v19, %s7186_s20 }
 0x40e   : > { %4427 = vmatprep.mubr.f32.mxu1 %v3896_v5 }
 0x40f   : > { %v3123_v34 = vpop.permute.xlu1 %3122  ;;  %v4759_v16 = vsel %vm4688_vm14, %v4550_v7, %v4727_v52 }
 0x410   : > { %v3256_v15 = vsel %vm1064_vm1, %v3224_v25, %v3123_v34  ;;  %v3509_v11 = vpop.permute.xlu0 %3508  ;;  %4791 = vst.msk [vmem:[#allocation2 + $0x70] sm:$0xff] %vm380_vm0, %v4759_v16  ;;  %5236 = vrot.lane.b32.xlu1 %v9872_v18, %s7189_s16 }
 0x411   : > { %v4329_v58 = vpop.f32.mrb[44].mxu1  ;;  %4428 = vmatmul.mubr.f32.gmra.mrb[84].mxu1 %v3256_v15  ;;  %5750 = vrot.lane.b32.xlu0 %v9878_v42, %s7188_s29  ;;  %v3833_v4 = vsel %vm380_vm0, %v9573_v22, %v3509_v11 }
 0x412   : > { %v4330_v17 = vadd.f32 %v9695_v49, %v4329_v58  ;;  %v4331_v31 = vpop.f32.mrb[45].mxu1 }
 0x413   : > { %v2869_v43 = vpop.permute.xlu1 %2868 }
 0x414   : > { %v3637_v39 = vpop.permute.xlu0 %3636  ;;  %v4555_v41 = vadd.f32 %v9318_v3, %v4330_v17  ;;  %5624 = vrot.lane.b32.xlu1 %v9841_v6, %s7186_s20  ;;  %v9896_v3 = vld [vmem:[#allocation2 + $0x68] sm:$0xff]  ;;  %v3193_v22 = vsel %vm380_vm0, %v9499_v24, %v2869_v43 }
 0x415   : > { %5110 = vrot.lane.b32.xlu0 %v9793_v37, %s7188_s29  ;;  %v3865_v35 = vsel %vm1031_vm2, %v3833_v4, %v3637_v39 }
 0x416   : > { %vm4689_vm15 = vcmp.gt.f32.partialorder %v4555_v41, 0.0  ;;  %v4728_v59 = vmul.f32 %v9712_v33, %v4555_v41 }
 0x417   : > { %v2997_v10 = vpop.permute.xlu1 %2996  ;;  %v9898_v7 = vld [vmem:[#allocation2 + $0x71] sm:$0xff]  ;;  %v6100_v37 = vld [vmem:[#allocation2 + $0x69] sm:$0xff] }
 0x418   : > { %v3765_v32 = vpop.permute.xlu0 %3764  ;;  %v4760_v62 = vsel %vm4689_vm15, %v4555_v41, %v4728_v59  ;;  %4984 = vrot.lane.b32.xlu1 %v9891_v2, %s7186_s20  ;;  %6132 = vst.msk [vmem:[#allocation3 + $0x40] sm:$0xff] %vm380_vm0, %v6100_v37  ;;  %6133 = vst.msk [vmem:[#allocation3 + $0x58] sm:$0xff] %vm380_vm0, %v9898_v7  ;;  %v3225_v9 = vsel %vm1031_vm2, %v3193_v22, %v2997_v10  ;;  %v9910_v52 = vld [vmem:[#allocation2 + $0x6f] sm:$0xff] }
 0x419   : > { %v3897_v13 = vsel %vm1064_vm1, %v3865_v35, %v3765_v32  ;;  %4792 = vst.msk [vmem:[#allocation2 + $0x88] sm:$0xff] %vm380_vm0, %v4760_v62  ;;  %5878 = vrot.lane.b32.xlu0 %v9896_v3, %s7189_s16  ;;  %v9921_v17 = vld [vmem:[#allocation2 + $0x69] sm:$0xff] }
 0x41a   : > { %4432 = vmatprep.mubr.f32.mxu1 %v3897_v13  ;;  %v9928_v59 = vld [vmem:[#allocation2 + $0x70] sm:$0xff] }
 0x41b   : > { %v3125_v5 = vpop.permute.xlu1 %3124 }
 0x41c   : > { %v3257_v12 = vsel %vm1064_vm1, %v3225_v9, %v3125_v5  ;;  %v3511_v25 = vpop.permute.xlu0 %3510  ;;  %v4334_v34 = vpop.f32.mrb[46].mxu1  ;;  %5752 = vrot.lane.b32.xlu1 %v9910_v52, %s7188_s29 }
 0x41d   : > { %v4335_v16 = vadd.f32 %v9695_v49, %v4334_v34  ;;  %v4336_v15 = vpop.f32.mrb[47].mxu1  ;;  %4433 = vmatmul.mubr.f32.gmra.mrb[86].mxu1 %v3257_v12  ;;  %5238 = vrot.lane.b32.xlu0 %v9813_v50, %s7189_s16  ;;  %v3834_v43 = vsel %vm380_vm0, %v9603_v8, %v3511_v25 }
 0x41f   : > { %v2871_v24 = vpop.permute.xlu1 %2870  ;;  %v4560_v11 = vadd.f32 %v9312_v56, %v4335_v16 }
 0x420   : > { %v3639_v58 = vpop.permute.xlu0 %3638  ;;  %5112 = vrot.lane.b32.xlu1 %v9791_v63, %s7188_s29  ;;  %v3194_v8 = vsel %vm380_vm0, %v9530_v0, %v2871_v24  ;;  %v9945_v5 = vld [vmem:[#allocation2 + $0x87] sm:$0xff] }
 0x421   : > { %vm4690_vm3 = vcmp.gt.f32.partialorder %v4560_v11, 0.0  ;;  %v4729_v31 = vmul.f32 %v9712_v33, %v4560_v11  ;;  %5626 = vrot.lane.b32.xlu0 %v9921_v17, %s7186_s20  ;;  %v3866_v56 = vsel %vm1031_vm2, %v3834_v43, %v3639_v58  ;;  %v9965_v43 = vld [vmem:[#allocation2 + $0x88] sm:$0xff] }
 0x423   : > { %v2999_v39 = vpop.permute.xlu1 %2998  ;;  %v4761_v41 = vsel %vm4690_vm3, %v4560_v11, %v4729_v31 }
 0x424   : > { %v3767_v4 = vpop.permute.xlu0 %3766  ;;  %4793 = vst.msk [vmem:[#allocation2 + $0x90] sm:$0xff] %vm380_vm0, %v4761_v41  ;;  %5880 = vrot.lane.b32.xlu1 %v9928_v59, %s7189_s16  ;;  %v3226_v62 = vsel %vm1031_vm2, %v3194_v8, %v2999_v39 }
 0x425   : > { %v3898_v63 = vsel %vm1064_vm1, %v3866_v56, %v3767_v4  ;;  %v4339_v10 = vpop.f32.mrb[48].mxu1  ;;  %4986 = vrot.lane.b32.xlu0 %v9825_v38, %s7186_s20 }
 0x426   : > { %v4340_v35 = vadd.f32 %v9695_v49, %v4339_v10  ;;  %4437 = vmatprep.mubr.f32.mxu1 %v3898_v63  ;;  %v4341_v32 = vpop.f32.mrb[49].mxu1 }
 0x427   : > { %v3127_v37 = vpop.permute.xlu1 %3126 }
 0x428   : > { %v3258_v13 = vsel %vm1064_vm1, %v3226_v62, %v3127_v37  ;;  %v3513_v22 = vpop.permute.xlu0 %3512  ;;  %v4565_v9 = vadd.f32 %v9357_v48, %v4340_v35  ;;  %5240 = vrot.lane.b32.xlu1 %v9834_v20, %s7189_s16 }
 0x429   : > { %4438 = vmatmul.mubr.f32.gmra.mrb[88].mxu1 %v3258_v13  ;;  %5754 = vrot.lane.b32.xlu0 %v9945_v5, %s7188_s29  ;;  %v3835_v15 = vsel %vm380_vm0, %v9634_v29, %v3513_v22 }
 0x42a   : > { %vm4691_vm4 = vcmp.gt.f32.partialorder %v4565_v9, 0.0  ;;  %v4730_v0 = vmul.f32 %v9712_v33, %v4565_v9 }
 0x42b   : > { %v2873_v12 = vpop.permute.xlu1 %2872  ;;  %v9952_v16 = vld [vmem:[#allocation2 + $0x91] sm:$0xff]  ;;  %v6102_v48 = vld [vmem:[#allocation2 + $0x89] sm:$0xff] }
 0x42c   : > { %v3641_v25 = vpop.permute.xlu0 %3640  ;;  %v4762_v34 = vsel %vm4691_vm4, %v4565_v9, %v4730_v0  ;;  %5628 = vrot.lane.b32.xlu1 %v9898_v7, %s7186_s20  ;;  %6134 = vst.msk [vmem:[#allocation3 + $0x70] sm:$0xff] %vm380_vm0, %v6102_v48  ;;  %6135 = vst.msk [vmem:[#allocation3 + $0x88] sm:$0xff] %vm380_vm0, %v9952_v16  ;;  %v3195_v29 = vsel %vm380_vm0, %v9559_v54, %v2873_v12  ;;  %v9975_v10 = vld [vmem:[#allocation2 + $0x8f] sm:$0xff] }
 0x42d   : > { %4794 = vst.msk [vmem:[#allocation2 + $0xa8] sm:$0xff] %vm380_vm0, %v4762_v34  ;;  %5114 = vrot.lane.b32.xlu0 %v9850_v46, %s7188_s29  ;;  %v3867_v11 = vsel %vm1031_vm2, %v3835_v15, %v3641_v25  ;;  %v9993_v25 = vld [vmem:[#allocation2 + $0x90] sm:$0xff]  ;;  %vm10289_vm4 = vmpackc.low %vm380_vm0, %vm380_vm0 }
 0x42f   : > { %v3001_v24 = vpop.permute.xlu1 %3000 }
 0x430   : > { %v3769_v58 = vpop.permute.xlu0 %3768  ;;  %v4344_v31 = vpop.f32.mrb[50].mxu1  ;;  %4988 = vrot.lane.b32.xlu1 %v9858_v45, %s7186_s20  ;;  %v3227_v56 = vsel %vm1031_vm2, %v3195_v29, %v3001_v24 }
 0x431   : > { %v3899_v46 = vsel %vm1064_vm1, %v3867_v11, %v3769_v58  ;;  %v4345_v39 = vadd.f32 %v9695_v49, %v4344_v31  ;;  %v4346_v41 = vpop.f32.mrb[51].mxu1  ;;  %5882 = vrot.lane.b32.xlu0 %v9965_v43, %s7189_s16 }
 0x432   : > { %4442 = vmatprep.mubr.f32.mxu1 %v3899_v46 }
 0x433   : > { %v3129_v4 = vpop.permute.xlu1 %3128  ;;  %v4570_v63 = vadd.f32 %v9350_v28, %v4345_v39  ;;  %v9986_v28 = vld [vmem:[#allocation2 + $0x89] sm:$0xff] }
 0x434   : > { %v3259_v8 = vsel %vm1064_vm1, %v3227_v56, %v3129_v4  ;;  %v3515_v35 = vpop.permute.xlu0 %3514  ;;  %5756 = vrot.lane.b32.xlu1 %v9975_v10, %s7188_s29  ;;  %v10009_v39 = vld [vmem:[#allocation2 + $0xa7] sm:$0xff] }
 0x435   : > { %vm4692_vm5 = vcmp.gt.f32.partialorder %v4570_v63, 0.0  ;;  %v4731_v32 = vmul.f32 %v9712_v33, %v4570_v63  ;;  %4443 = vmatmul.mubr.f32.gmra.mrb[90].mxu1 %v3259_v8  ;;  %5242 = vrot.lane.b32.xlu0 %v9878_v42, %s7189_s16  ;;  %v3836_v0 = vsel %vm380_vm0, %v9661_v26, %v3515_v35 }
 0x437   : > { %v2875_v54 = vpop.permute.xlu1 %2874  ;;  %v4763_v62 = vsel %vm4692_vm5, %v4570_v63, %v4731_v32 }
 0x438   : > { %v3643_v37 = vpop.permute.xlu0 %3642  ;;  %4795 = vst.msk [vmem:[#allocation2 + $0xb0] sm:$0xff] %vm380_vm0, %v4763_v62  ;;  %5116 = vrot.lane.b32.xlu1 %v9841_v6, %s7188_s29  ;;  %v3196_v24 = vsel %vm380_vm0, %v9590_v40, %v2875_v54 }
 0x439   : > { %v4349_v13 = vpop.f32.mrb[52].mxu1  ;;  %5630 = vrot.lane.b32.xlu0 %v9986_v28, %s7186_s20  ;;  %v3868_v34 = vsel %vm1031_vm2, %v3836_v0, %v3643_v37 }
 0x43a   : > { %v4350_v22 = vadd.f32 %v9695_v49, %v4349_v13  ;;  %v4351_v9 = vpop.f32.mrb[53].mxu1  ;;  %v10027_v13 = vld [vmem:[#allocation2 + $0xa8] sm:$0xff] }
 0x43b   : > { %v3003_v12 = vpop.permute.xlu1 %3002 }
 0x43c   : > { %v3771_v48 = vpop.permute.xlu0 %3770  ;;  %v4575_v6 = vadd.f32 %v9394_v21, %v4350_v22  ;;  %5884 = vrot.lane.b32.xlu1 %v9993_v25, %s7189_s16  ;;  %v3228_v11 = vsel %vm1031_vm2, %v3196_v24, %v3003_v12 }
 0x43d   : > { %v3900_v15 = vsel %vm1064_vm1, %v3868_v34, %v3771_v48  ;;  %4990 = vrot.lane.b32.xlu0 %v9896_v3, %s7186_s20 }
 0x43e   : > { %vm4693_vm6 = vcmp.gt.f32.partialorder %v4575_v6, 0.0  ;;  %v4732_v26 = vmul.f32 %v9712_v33, %v4575_v6  ;;  %4447 = vmatprep.mubr.f32.mxu1 %v3900_v15  ;;  %v11024_v15 = vld [vmem:[#allocation29_spill] sm:$0xff] }
 0x43f   : > { %v3131_v58 = vpop.permute.xlu1 %3130  ;;  %v6104_v41 = vld [vmem:[#allocation2 + $0xa9] sm:$0xff]  ;;  %v6105_v40 = vld [vmem:[#allocation2 + $0xb1] sm:$0xff] }
 0x440   : > { %v3260_v21 = vsel %vm1064_vm1, %v3228_v11, %v3131_v58  ;;  %v3517_v31 = vpop.permute.xlu0 %3516  ;;  %v4764_v46 = vsel %vm4693_vm6, %v4575_v6, %v4732_v26  ;;  %5244 = vrot.lane.b32.xlu1 %v9910_v52, %s7189_s16  ;;  %6136 = vst.msk [vmem:[#allocation3 + $0xa0] sm:$0xff] %vm380_vm0, %v6104_v41  ;;  %6137 = vst.msk [vmem:[#allocation3 + $0xb8] sm:$0xff] %vm380_vm0, %v6105_v40  ;;  %v10036_v12 = vld [vmem:[#allocation2 + $0xaf] sm:$0xff] }
 0x441   : > { %4796 = vst.msk [vmem:[#allocation2 + $0xc8] sm:$0xff] %vm380_vm0, %v4764_v46  ;;  %4448 = vmatmul.mubr.f32.gmra.mrb[92].mxu1 %v3260_v21  ;;  %5758 = vrot.lane.b32.xlu0 %v10009_v39, %s7188_s29  ;;  %v3837_v35 = vsel %vm380_vm0, %v9701_v36, %v3517_v31  ;;  %v10048_v26 = vld [vmem:[#allocation2 + $0xa9] sm:$0xff] }
 0x442   : > { %v10053_v58 = vld [vmem:[#allocation2 + $0xb0] sm:$0xff] }
 0x443   : > { %v2877_v29 = vpop.permute.xlu1 %2876 }
 0x444   : > { %v3645_v56 = vpop.permute.xlu0 %3644  ;;  %v4354_v4 = vpop.f32.mrb[54].mxu1  ;;  %5632 = vrot.lane.b32.xlu1 %v9952_v16, %s7186_s20  ;;  %v3197_v36 = vsel %vm380_vm0, %v9624_v27, %v2877_v29  ;;  %v11025_v29 = vld [vmem:[#allocation5_spill] sm:$0xff] }
 0x445   : > { %v4355_v63 = vadd.f32 %v9695_v49, %v4354_v4  ;;  %v4356_v8 = vpop.f32.mrb[55].mxu1  ;;  %5118 = vrot.lane.b32.xlu0 %v9921_v17, %s7188_s29  ;;  %v3869_v62 = vsel %vm1031_vm2, %v3837_v35, %v3645_v56  ;;  %v10070_v4 = vld [vmem:[#allocation2 + $0xb1] sm:$0xff] }
 0x447   : > { %v3005_v32 = vpop.permute.xlu1 %3004  ;;  %v4580_v54 = vadd.f32 %v9384_v57, %v4355_v63 }
 0x448   : > { %v3773_v37 = vpop.permute.xlu0 %3772  ;;  %4992 = vrot.lane.b32.xlu1 %v9928_v59, %s7186_s20  ;;  %v3229_v57 = vsel %vm1031_vm2, %v3197_v36, %v3005_v32  ;;  %v10064_v46 = vld [vmem:[#allocation2 + $0xc7] sm:$0xff] }
 0x449   : > { %v3901_v22 = vsel %vm1064_vm1, %v3869_v62, %v3773_v37  ;;  %vm4694_vm7 = vcmp.gt.f32.partialorder %v4580_v54, 0.0  ;;  %v4733_v9 = vmul.f32 %v9712_v33, %v4580_v54  ;;  %5886 = vrot.lane.b32.xlu0 %v10027_v13, %s7189_s16  ;;  %v10080_v8 = vld [vmem:[#allocation2 + $0xc8] sm:$0xff] }
 0x44a   : > { %4452 = vmatprep.mubr.f32.mxu1 %v3901_v22 }
 0x44b   : > { %v3133_v17 = vpop.permute.xlu1 %3132  ;;  %v4765_v0 = vsel %vm4694_vm7, %v4580_v54, %v4733_v9 }
 0x44c   : > { %v3261_v34 = vsel %vm1064_vm1, %v3229_v57, %v3133_v17  ;;  %4797 = vst.msk [vmem:[#allocation2 + $0xd0] sm:$0xff] %vm380_vm0, %v4765_v0  ;;  %5760 = vrot.lane.b32.xlu1 %v10036_v12, %s7188_s29 }
 0x44d   : > { %v4359_v48 = vpop.f32.mrb[56].mxu1  ;;  %4453 = vmatmul.mubr.f32.gmra.mrb[94].mxu1 %v3261_v34  ;;  %5246 = vrot.lane.b32.xlu0 %v9945_v5, %s7189_s16 }
 0x44e   : > { %v4360_v27 = vadd.f32 %v9695_v49, %v4359_v48  ;;  %v4361_v6 = vpop.f32.mrb[57].mxu1 }
 0x44f   : > { %v11026_v6 = vld [vmem:[#allocation4_spill] sm:$0xff] }
 0x450   : > { %v4585_v24 = vadd.f32 %v11024_v15, %v4360_v27  ;;  %5120 = vrot.lane.b32.xlu1 %v9898_v7, %s7188_s29 }
 0x451   : > { %5634 = vrot.lane.b32.xlu0 %v10048_v26, %s7186_s20 }
 0x452   : > { %vm4695_vm8 = vcmp.gt.f32.partialorder %v4585_v24, 0.0  ;;  %v4734_v11 = vmul.f32 %v9712_v33, %v4585_v24 }
 0x453   : > { %v6106_v5 = vld [vmem:[#allocation2 + $0xc9] sm:$0xff]  ;;  %v6107_v7 = vld [vmem:[#allocation2 + $0xd1] sm:$0xff] }
 0x454   : > { %v4766_v21 = vsel %vm4695_vm8, %v4585_v24, %v4734_v11  ;;  %5888 = vrot.lane.b32.xlu1 %v10053_v58, %s7189_s16  ;;  %6138 = vst.msk [vmem:[#allocation3 + $0xd0] sm:$0xff] %vm380_vm0, %v6106_v5  ;;  %6139 = vst.msk [vmem:[#allocation3 + $0xe8] sm:$0xff] %vm380_vm0, %v6107_v7  ;;  %v10085_v37 = vld [vmem:[#allocation2 + $0xcf] sm:$0xff]  ;;  %v4818_v5 = vld [vmem:[#allocation2 + $0x7] sm:$0xff] }
 0x455   : > { %4798 = vst.msk [vmem:[#allocation2 + $0xe8] sm:$0xff] %vm380_vm0, %v4766_v21  ;;  %4994 = vrot.lane.b32.xlu0 %v9965_v43, %s7186_s20  ;;  %v10095_v57 = vld [vmem:[#allocation2 + $0xc9] sm:$0xff] }
 0x456   : > { %v10102_v0 = vld [vmem:[#allocation2 + $0xd0] sm:$0xff] }
 0x458   : > { %v4364_v31 = vpop.f32.mrb[58].mxu1  ;;  %5248 = vrot.lane.b32.xlu1 %v9975_v10, %s7189_s16 }
 0x459   : > { %v4365_v41 = vadd.f32 %v9695_v49, %v4364_v31  ;;  %v4366_v40 = vpop.f32.mrb[59].mxu1  ;;  %5762 = vrot.lane.b32.xlu0 %v10064_v46, %s7188_s29 }
 0x45b   : > { %v4590_v56 = vadd.f32 %v11025_v29, %v4365_v41 }
 0x45c   : > { %5636 = vrot.lane.b32.xlu1 %v10070_v4, %s7186_s20  ;;  %v10112_v11 = vld [vmem:[#allocation2 + $0xe7] sm:$0xff] }
 0x45d   : > { %vm4696_vm9 = vcmp.gt.f32.partialorder %v4590_v56, 0.0  ;;  %v4735_v63 = vmul.f32 %v9712_v33, %v4590_v56  ;;  %5122 = vrot.lane.b32.xlu0 %v9986_v28, %s7188_s29 }
 0x45f   : > { %v4767_v10 = vsel %vm4696_vm9, %v4590_v56, %v4735_v63  ;;  %v5619_v35 = vpop.permute.xlu0 %5618  ;;  %v5621_v34 = vpop.permute.xlu1 %5620  ;;  %v10120_v56 = vld [vmem:[#allocation2 + $0xd1] sm:$0xff] }
 0x460   : > { %4799 = vst.msk [vmem:[#allocation2 + $0xf0] sm:$0xff] %vm380_vm0, %v4767_v10  ;;  %4996 = vrot.lane.b32.xlu1 %v9993_v25, %s7186_s20  ;;  %v5970_v31 = vsel %vm380_vm0, %v9863_v19, %v5619_v35 }
 0x461   : > { %v4369_v32 = vpop.f32.mrb[60].mxu1  ;;  %5890 = vrot.lane.b32.xlu0 %v10080_v8, %s7189_s16 }
 0x462   : > { %v4370_v54 = vadd.f32 %v9695_v49, %v4369_v32  ;;  %v4371_v62 = vpop.f32.mrb[61].mxu1 }
 0x463   : > { %v4979_v22 = vpop.permute.xlu0 %4978  ;;  %v4981_v21 = vpop.permute.xlu1 %4980 }
 0x464   : > { %v4595_v28 = vadd.f32 %v9475_v30, %v4370_v54  ;;  %5764 = vrot.lane.b32.xlu1 %v10085_v37, %s7188_s29 }
 0x465   : > { %5250 = vrot.lane.b32.xlu0 %v10009_v39, %s7189_s16 }
 0x466   : > { %vm4697_vm10 = vcmp.gt.f32.partialorder %v4595_v28, 0.0  ;;  %v4736_v9 = vmul.f32 %v9712_v33, %v4595_v28 }
 0x467   : > { %v6108_v17 = vld [vmem:[#allocation2 + $0xe9] sm:$0xff]  ;;  %v6109_v30 = vld [vmem:[#allocation2 + $0xf1] sm:$0xff] }
 0x468   : > { %v4768_v36 = vsel %vm4697_vm10, %v4595_v28, %v4736_v9  ;;  %5124 = vrot.lane.b32.xlu1 %v9952_v16, %s7188_s29  ;;  %6140 = vst.msk [vmem:[#allocation3 + $0x100] sm:$0xff] %vm380_vm0, %v6108_v17  ;;  %6141 = vst.msk [vmem:[#allocation3 + $0x118] sm:$0xff] %vm380_vm0, %v6109_v30  ;;  %v10135_v9 = vld [vmem:[#allocation2 + $0xe8] sm:$0xff] }
 0x469   : > { %4800 = vst.msk [vmem:[#allocation2 + $0x108] sm:$0xff] %vm380_vm0, %v4768_v36  ;;  %5638 = vrot.lane.b32.xlu0 %v10095_v57, %s7186_s20  ;;  %v10140_v17 = vld [vmem:[#allocation2 + $0xef] sm:$0xff] }
 0x46b   : > { %v5747_v39 = vpop.permute.xlu0 %5746 }
 0x46c   : > { %v4374_v48 = vpop.f32.mrb[62].mxu1  ;;  %5892 = vrot.lane.b32.xlu1 %v10102_v0, %s7189_s16  ;;  %v6002_v41 = vsel %vm1031_vm2, %v5970_v31, %v5747_v39  ;;  %v5971_v39 = vsel %vm380_vm0, %v9891_v2, %v5621_v34  ;;  %v10155_v2 = vld [vmem:[#allocation2 + $0xe9] sm:$0xff] }
 0x46d   : > { %v4375_v16 = vadd.f32 %v9695_v49, %v4374_v48  ;;  %v4376_v27 = vpop.f32.mrb[63].mxu1  ;;  %4998 = vrot.lane.b32.xlu0 %v10027_v13, %s7186_s20 }
 0x46f   : > { %v4600_v15 = vadd.f32 %v11026_v6, %v4375_v16  ;;  %v5107_v24 = vpop.permute.xlu0 %5106 }
 0x470   : > { %5252 = vrot.lane.b32.xlu1 %v10036_v12, %s7189_s16  ;;  %v5330_v12 = vsel %vm380_vm0, %v4818_v5, %v4979_v22  ;;  %v10161_v5 = vld [vmem:[%s10913_s6] ss:$0 sm:$0xff] }
 0x471   : > { %vm4698_vm11 = vcmp.gt.f32.partialorder %v4600_v15, 0.0  ;;  %v4737_v7 = vmul.f32 %v9712_v33, %v4600_v15  ;;  %5766 = vrot.lane.b32.xlu0 %v10112_v11, %s7188_s29  ;;  %v5362_v54 = vsel %vm1031_vm2, %v5330_v12, %v5107_v24 }
 0x473   : > { %v4769_v40 = vsel %vm4698_vm11, %v4600_v15, %v4737_v7  ;;  %v5875_v29 = vpop.permute.xlu0 %5874 }
 0x474   : > { %4801 = vst.msk [vmem:[#allocation2 + $0x110] sm:$0xff] %vm380_vm0, %v4769_v40  ;;  %v6034_v63 = vsel %vm1064_vm1, %v6002_v41, %v5875_v29  ;;  %5640 = vrot.lane.b32.xlu1 %v10120_v56, %s7186_s20 }
 0x475   : > { %v4379_v10 = vpop.f32.mrb[64].mxu1  ;;  %5126 = vrot.lane.b32.xlu0 %v10048_v26, %s7188_s29 }
 0x476   : > { %v4380_v19 = vadd.f32 %v9695_v49, %v4379_v10  ;;  %v5749_v35 = vpop.permute.xlu1 %5748  ;;  %v4381_v32 = vpop.f32.mrb[65].mxu1 }
 0x477   : > { %v5235_v62 = vpop.permute.xlu0 %5234  ;;  %v6003_v16 = vsel %vm1031_vm2, %v5971_v39, %v5749_v35 }
 0x478   : > { %v4605_v28 = vadd.f32 %v9512_v60, %v4380_v19  ;;  %v5394_v22 = vsel %vm1064_vm1, %v5362_v54, %v5235_v62  ;;  %5000 = vrot.lane.b32.xlu1 %v10053_v58, %s7186_s20  ;;  %v10176_v19 = vld [vmem:[%s10914_s7] ss:$0 sm:$0xff] }
 0x479   : > { %5894 = vrot.lane.b32.xlu0 %v10135_v9, %s7189_s16 }
 0x47a   : > { %vm4699_vm12 = vcmp.gt.f32.partialorder %v4605_v28, 0.0  ;;  %v4738_v49 = vmul.f32 %v9712_v33, %v4605_v28  ;;  %v5109_v26 = vpop.permute.xlu1 %5108  ;;  %v4819_v33 = vld [vmem:[#allocation2 + $0xf] sm:$0xff] }
 0x47b   : > { %v5623_v36 = vpop.permute.xlu0 %5622  ;;  %v6110_v60 = vld [vmem:[#allocation2 + $0x109] sm:$0xff]  ;;  %v6111_v48 = vld [vmem:[#allocation2 + $0x111] sm:$0xff] }
 0x47c   : > { %v4770_v30 = vsel %vm4699_vm12, %v4605_v28, %v4738_v49  ;;  %5768 = vrot.lane.b32.xlu1 %v10140_v17, %s7188_s29  ;;  %6142 = vst.msk [vmem:[#allocation3 + $0x130] sm:$0xff] %vm380_vm0, %v6110_v60  ;;  %6143 = vst.msk [vmem:[#allocation3 + $0x148] sm:$0xff] %vm380_vm0, %v6111_v48  ;;  %v10184_v28 = vld [vmem:[#allocation2 + $0x107] sm:$0xff]  ;;  %v5972_v49 = vsel %vm380_vm0, %v9825_v38, %v5623_v36 }
 0x47d   : > { %4802 = vst.msk [vmem:[#allocation2 + $0x128] sm:$0xff] %vm380_vm0, %v4770_v30  ;;  %5254 = vrot.lane.b32.xlu0 %v10064_v46, %s7189_s16  ;;  %v5331_v46 = vsel %vm380_vm0, %v4819_v33, %v4981_v21  ;;  %v10192_v33 = vld [vmem:[#allocation2 + $0xf1] sm:$0xff] }
 0x47e   : > { %v5877_v27 = vpop.permute.xlu1 %5876  ;;  %v5363_v41 = vsel %vm1031_vm2, %v5331_v46, %v5109_v26 }
 0x47f   : > { %v6035_v6 = vsel %vm1064_vm1, %v6003_v16, %v5877_v27  ;;  %v4983_v15 = vpop.permute.xlu0 %4982  ;;  %v11028_v16 = vld [vmem:[#allocation7_spill] sm:$0xff] }
 0x480   : > { %v4384_v24 = vpop.f32.mrb[66].mxu1  ;;  %5128 = vrot.lane.b32.xlu1 %v10070_v4, %s7188_s29  ;;  %v7039_v34 = vpack.c.bf16 %v6035_v6, %v6034_v63  ;;  %v11027_v4 = vld [vmem:[#allocation25_spill] sm:$0xff]  ;;  %v10169_v63 = vld [vmem:[#allocation2 + $0xf0] sm:$0xff]  ;;  %v5332_v38 = vsel %vm380_vm0, %v9839_v55, %v4983_v15 }
 0x481   : > { %v4385_v7 = vadd.f32 %v10161_v5, %v4384_v24  ;;  %v4386_v31 = vpop.f32.mrb[67].mxu1  ;;  %5642 = vrot.lane.b32.xlu0 %v10155_v2, %s7186_s20 }
 0x482   : > { %v5237_v40 = vpop.permute.xlu1 %5236  ;;  %7040 = vmatprep.subr.bf16.mxu1 %v7039_v34  ;;  %v10207_v31 = vld [vmem:[#allocation2 + $0x108] sm:$0xff] }
 0x483   : > { %v4610_v29 = vadd.f32 %v11027_v4, %v4385_v7  ;;  %v5395_v12 = vsel %vm1064_vm1, %v5363_v41, %v5237_v40  ;;  %v5751_v21 = vpop.permute.xlu0 %5750  ;;  %v10214_v40 = vld [vmem:[#allocation2 + $0x10f] sm:$0xff] }
 0x484   : > { %5896 = vrot.lane.b32.xlu1 %v10169_v63, %s7189_s16  ;;  %v7041_v10 = vpack.c.bf16 %v5395_v12, %v5394_v22  ;;  %v6004_v39 = vsel %vm1031_vm2, %v5972_v49, %v5751_v21 }
 0x485   : > { %vm4700_vm13 = vcmp.gt.f32.partialorder %v4610_v29, 0.0  ;;  %v4739_v35 = vmul.f32 %v10176_v19, %v4610_v29  ;;  %5002 = vrot.lane.b32.xlu0 %v10080_v8, %s7186_s20 }
 0x486   : > { %v5625_v32 = vpop.permute.xlu1 %5624  ;;  %7042 = vmatpush1.bf16.xpose.msra.mxu1 %v7041_v10 }
 0x487   : > { %v4771_v54 = vsel %vm4700_vm13, %v4610_v29, %v4739_v35  ;;  %v5111_v62 = vpop.permute.xlu0 %5110  ;;  %v5973_v29 = vsel %vm380_vm0, %v9858_v45, %v5625_v32  ;;  %v10230_v45 = vld [vmem:[#allocation2 + $0x109] sm:$0xff] }
 0x488   : > { %4803 = vst.msk [vmem:[#allocation2 + $0x130] sm:$0xff] %vm380_vm0, %v4771_v54  ;;  %5256 = vrot.lane.b32.xlu1 %v10085_v37, %s7189_s16  ;;  %v5364_v24 = vsel %vm1031_vm2, %v5332_v38, %v5111_v62  ;;  %v11029_v54 = vld [vmem:[#allocation35_spill] sm:$0xff] }
 0x489   : > { %v4389_v22 = vpop.f32.mrb[68].mxu1  ;;  %5770 = vrot.lane.b32.xlu0 %v10184_v28, %s7188_s29 }
 0x48a   : > { %v4390_v26 = vadd.f32 %v10161_v5, %v4389_v22  ;;  %v4985_v30 = vpop.permute.xlu1 %4984  ;;  %v4391_v60 = vpop.f32.mrb[69].mxu1 }
 0x48b   : > { %v5879_v48 = vpop.permute.xlu0 %5878 }
 0x48c   : > { %v4615_v37 = vadd.f32 %v11028_v16, %v4390_v26  ;;  %v6036_v27 = vsel %vm1064_vm1, %v6004_v39, %v5879_v48  ;;  %5644 = vrot.lane.b32.xlu1 %v10192_v33, %s7186_s20 }
 0x48d   : > { %5130 = vrot.lane.b32.xlu0 %v10095_v57, %s7188_s29 }
 0x48e   : > { %vm4701_vm14 = vcmp.gt.f32.partialorder %v4615_v37, 0.0  ;;  %v4740_v36 = vmul.f32 %v10176_v19, %v4615_v37  ;;  %v5753_v6 = vpop.permute.xlu1 %5752 }
 0x48f   : > { %v5239_v34 = vpop.permute.xlu0 %5238  ;;  %v6112_v41 = vld [vmem:[#allocation2 + $0x129] sm:$0xff]  ;;  %v6113_v57 = vld [vmem:[#allocation2 + $0x131] sm:$0xff]  ;;  %v6005_v10 = vsel %vm1031_vm2, %v5973_v29, %v5753_v6 }
 0x490   : > { %v4772_v46 = vsel %vm4701_vm14, %v4615_v37, %v4740_v36  ;;  %v5396_v7 = vsel %vm1064_vm1, %v5364_v24, %v5239_v34  ;;  %5004 = vrot.lane.b32.xlu1 %v10102_v0, %s7186_s20  ;;  %6144 = vst.msk [vmem:[#allocation3 + $0x160] sm:$0xff] %vm380_vm0, %v6112_v41  ;;  %6145 = vst.msk [vmem:[#allocation3 + $0x178] sm:$0xff] %vm380_vm0, %v6113_v57  ;;  %v10252_v41 = vld [vmem:[#allocation2 + $0x127] sm:$0xff] }
 0x491   : > { %4804 = vst.msk [vmem:[#allocation2 + $0x148] sm:$0xff] %vm380_vm0, %v4772_v46  ;;  %5898 = vrot.lane.b32.xlu0 %v10207_v31, %s7189_s16 }
 0x492   : > { %v5113_v55 = vpop.permute.xlu1 %5112 }
 0x493   : > { %v5627_v15 = vpop.permute.xlu0 %5626  ;;  %v10226_v26 = vpop.f32.mrb[94].mxu0 }
 0x494   : > { %v4394_v4 = vpop.f32.mrb[70].mxu1  ;;  %5772 = vrot.lane.b32.xlu1 %v10214_v40, %s7188_s29  ;;  %v10232_v60 = vpop.f32.mrb[95].mxu0 }
 0x495   : > { %v4395_v12 = vadd.f32 %v10161_v5, %v4394_v4  ;;  %v4396_v21 = vpop.f32.mrb[71].mxu1  ;;  %5258 = vrot.lane.b32.xlu0 %v10112_v11, %s7189_s16  ;;  %v5333_v11 = vsel %vm380_vm0, %v9872_v18, %v4985_v30 }
 0x496   : > { %v5881_v35 = vpop.permute.xlu1 %5880  ;;  %v5365_v48 = vsel %vm1031_vm2, %v5333_v11, %v5113_v55 }
 0x497   : > { %v4620_v62 = vadd.f32 %v11029_v54, %v4395_v12  ;;  %v6037_v22 = vsel %vm1064_vm1, %v6005_v10, %v5881_v35  ;;  %v4987_v49 = vpop.permute.xlu0 %4986  ;;  %v10260_v12 = vld [vmem:[#allocation2 + $0x111] sm:$0xff] }
 0x498   : > { %5132 = vrot.lane.b32.xlu1 %v10120_v56, %s7188_s29  ;;  %v7043_v32 = vpack.c.bf16 %v6037_v22, %v6036_v27  ;;  %v10241_v27 = vld [vmem:[#allocation2 + $0x110] sm:$0xff] }
 0x499   : > { %vm4702_vm15 = vcmp.gt.f32.partialorder %v4620_v62, 0.0  ;;  %v4741_v39 = vmul.f32 %v10176_v19, %v4620_v62  ;;  %5646 = vrot.lane.b32.xlu0 %v10230_v45, %s7186_s20 }
 0x49a   : > { %v5241_v16 = vpop.permute.xlu1 %5240  ;;  %7044 = vmatprep.subr.bf16.mxu1 %v7043_v32  ;;  %v10282_v32 = vld [vmem:[#allocation2 + $0x128] sm:$0xff] }
 0x49b   : > { %v4773_v37 = vsel %vm4702_vm15, %v4620_v62, %v4741_v39  ;;  %v5397_v56 = vsel %vm1064_vm1, %v5365_v48, %v5241_v16  ;;  %v5755_v38 = vpop.permute.xlu0 %5754  ;;  %v6169_v48 = vld [vmem:[#allocation3 + $0x28] sm:$0xff] }
 0x49c   : > { %4805 = vst.msk [vmem:[#allocation2 + $0x150] sm:$0xff] %vm380_vm0, %v4773_v37  ;;  %5900 = vrot.lane.b32.xlu1 %v10241_v27, %s7189_s16  ;;  %v7045_v18 = vpack.c.bf16 %v5397_v56, %v5396_v7  ;;  %v5974_v7 = vsel %vm380_vm0, %v9896_v3, %v5627_v15  ;;  %v5334_v3 = vsel %vm380_vm0, %v9813_v50, %v4987_v49  ;;  %v6166_v49 = vld [vmem:[#allocation3 + $0x10] sm:$0xff] }
 0x49d   : > { %v4399_v30 = vpop.f32.mrb[72].mxu1  ;;  %5006 = vrot.lane.b32.xlu0 %v10135_v9, %s7186_s20  ;;  %v6006_v4 = vsel %vm1031_vm2, %v5974_v7, %v5755_v38  ;;  %v10294_v56 = vld [vmem:[#allocation2 + $0x12f] sm:$0xff] }
 0x49e   : > { %v4400_v36 = vadd.f32 %v10161_v5, %v4399_v30  ;;  %v4401_v6 = vpop.f32.mrb[73].mxu1  ;;  %v5629_v24 = vpop.permute.xlu1 %5628  ;;  %7046 = vmatpush1.bf16.xpose.msra.mxu1 %v7045_v18 }
 0x49f   : > { %v5115_v34 = vpop.permute.xlu0 %5114 }
 0x4a0   : > { %v4625_v46 = vadd.f32 %v9597_v53, %v4400_v36  ;;  %5260 = vrot.lane.b32.xlu1 %v10140_v17, %s7189_s16  ;;  %v5366_v35 = vsel %vm1031_vm2, %v5334_v3, %v5115_v34  ;;  %v5975_v36 = vsel %vm380_vm0, %v9928_v59, %v5629_v24  ;;  %v7106_v34 = vpack.c.bf16 %v6169_v48, %v6166_v49  ;;  %v10334_v49 = vld [vmem:[#allocation2 + $0x147] sm:$0xff] }
 0x4a1   : > { %5774 = vrot.lane.b32.xlu0 %v10252_v41, %s7188_s29 }
 0x4a2   : > { %vm4703_vm3 = vcmp.gt.f32.partialorder %v4625_v46, 0.0  ;;  %v4742_v57 = vmul.f32 %v10176_v19, %v4625_v46  ;;  %v4989_v55 = vpop.permute.xlu1 %4988 }
 0x4a3   : > { %v5883_v29 = vpop.permute.xlu0 %5882  ;;  %v10262_v53 = vld [vmem:[#allocation2 + $0x149] sm:$0xff]  ;;  %v10264_v17 = vld [vmem:[#allocation2 + $0x151] sm:$0xff] }
 0x4a4   : > { %v4774_v21 = vsel %vm4703_vm3, %v4625_v46, %v4742_v57  ;;  %v6038_v10 = vsel %vm1064_vm1, %v6006_v4, %v5883_v29  ;;  %5648 = vrot.lane.b32.xlu1 %v10260_v12, %s7186_s20  ;;  %6146 = vst.msk [vmem:[#allocation3 + $0x190] sm:$0xff] %vm380_vm0, %v10262_v53  ;;  %6147 = vst.msk [vmem:[#allocation3 + $0x1a8] sm:$0xff] %vm380_vm0, %v10264_v17  ;;  %v5335_v4 = vsel %vm380_vm0, %v9834_v20, %v4989_v55 }
 0x4a5   : > { %4806 = vst.msk [vmem:[#allocation2 + $0x168] sm:$0xff] %vm380_vm0, %v4774_v21  ;;  %5134 = vrot.lane.b32.xlu0 %v10155_v2, %s7188_s29 }
 0x4a6   : > { %v5757_v15 = vpop.permute.xlu1 %5756 }
 0x4a7   : > { %v5243_v54 = vpop.permute.xlu0 %5242 }
 0x4a8   : > { %v5398_v62 = vsel %vm1064_vm1, %v5366_v35, %v5243_v54  ;;  %v4404_v22 = vpop.f32.mrb[74].mxu1  ;;  %5008 = vrot.lane.b32.xlu1 %v10169_v63, %s7186_s20  ;;  %v10320_v35 = vld [vmem:[#allocation2 + $0x130] sm:$0xff] }
 0x4a9   : > { %v4405_v11 = vadd.f32 %v10161_v5, %v4404_v22  ;;  %v4406_v39 = vpop.f32.mrb[75].mxu1  ;;  %5902 = vrot.lane.b32.xlu0 %v10282_v32, %s7189_s16 }
 0x4aa   : > { %v5117_v2 = vpop.permute.xlu1 %5116 }
 0x4ab   : > { %v4630_v16 = vadd.f32 %v9586_v61, %v4405_v11  ;;  %v5631_v37 = vpop.permute.xlu0 %5630  ;;  %v6214_v38 = vld [vmem:[#allocation3 + $0x190] sm:$0xff]  ;;  %v6217_v18 = vld [vmem:[#allocation3 + $0x1a8] sm:$0xff]  ;;  %v6007_v61 = vsel %vm1031_vm2, %v5975_v36, %v5757_v15  ;;  %v5367_v29 = vsel %vm1031_vm2, %v5335_v4, %v5117_v2  ;;  %v6172_v36 = vld [vmem:[#allocation3 + $0x40] sm:$0xff] }
 0x4ac   : > { %5776 = vrot.lane.b32.xlu1 %v10294_v56, %s7188_s29  ;;  %v7103_v30 = vpack.c.bf16 %v6217_v18, %v6214_v38  ;;  %v10346_v18 = vld [vmem:[#allocation2 + $0x131] sm:$0xff] }
 0x4ad   : > { %vm4704_vm5 = vcmp.gt.f32.partialorder %v4630_v16, 0.0  ;;  %v4743_v6 = vmul.f32 %v10176_v19, %v4630_v16  ;;  %5262 = vrot.lane.b32.xlu0 %v10184_v28, %s7189_s16  ;;  %v10312_v28 = vld [vmem:[#allocation2 + $0x129] sm:$0xff] }
 0x4ae   : > { %7105 = vmatprep.subr.msk.bf16.mxu0 %vm10289_vm4, %v7103_v30  ;;  %v5885_v46 = vpop.permute.xlu1 %5884 }
 0x4af   : > { %v4775_v7 = vsel %vm4704_vm5, %v4630_v16, %v4743_v6  ;;  %v6039_v57 = vsel %vm1064_vm1, %v6007_v61, %v5885_v46  ;;  %7108 = vmatpush3.bf16.xpose.msk.msra.mxu0 %vm10289_vm4, %v7106_v34  ;;  %v4991_v59 = vpop.permute.xlu0 %4990  ;;  %v6175_v6 = vld [vmem:[#allocation3 + $0x58] sm:$0xff] }
 0x4b0   : > { %4807 = vst.msk [vmem:[#allocation2 + $0x170] sm:$0xff] %vm380_vm0, %v4775_v7  ;;  %5136 = vrot.lane.b32.xlu1 %v10192_v33, %s7188_s29  ;;  %v7047_v24 = vpack.c.bf16 %v6039_v57, %v6038_v10 }
 0x4b1   : > { %5650 = vrot.lane.b32.xlu0 %v10312_v28, %s7186_s20 }
 0x4b2   : > { %v5245_v21 = vpop.permute.xlu1 %5244  ;;  %7048 = vmatprep.subr.bf16.mxu1 %v7047_v24  ;;  %v10360_v24 = vld [vmem:[#allocation2 + $0x148] sm:$0xff] }
 0x4b3   : > { %v5399_v3 = vsel %vm1064_vm1, %v5367_v29, %v5245_v21  ;;  %v5759_v15 = vpop.permute.xlu0 %5758 }
 0x4b4   : > { %v4409_v54 = vpop.f32.mrb[76].mxu1  ;;  %5904 = vrot.lane.b32.xlu1 %v10320_v35, %s7189_s16  ;;  %v7049_v33 = vpack.c.bf16 %v5399_v3, %v5398_v62 }
 0x4b5   : > { %v4410_v10 = vadd.f32 %v10161_v5, %v4409_v54  ;;  %v4411_v20 = vpop.f32.mrb[77].mxu1  ;;  %5010 = vrot.lane.b32.xlu0 %v10207_v31, %s7186_s20 }
 0x4b6   : > { %v5633_v55 = vpop.permute.xlu1 %5632  ;;  %7050 = vmatpush1.bf16.xpose.msra.mxu1 %v7049_v33 }
 0x4b7   : > { %v4635_v22 = vadd.f32 %v9638_v51, %v4410_v10  ;;  %v5119_v11 = vpop.permute.xlu0 %5118  ;;  %v10328_v39 = vld [vmem:[#allocation2 + $0x169] sm:$0xff]  ;;  %v10330_v2 = vld [vmem:[#allocation2 + $0x171] sm:$0xff]  ;;  %v5976_v51 = vsel %vm380_vm0, %v9965_v43, %v5631_v37  ;;  %v5336_v43 = vsel %vm380_vm0, %v9878_v42, %v4991_v59  ;;  %v7112_v42 = vpack.c.bf16 %v6175_v6, %v6172_v36 }
 0x4b8   : > { %5264 = vrot.lane.b32.xlu1 %v10214_v40, %s7189_s16  ;;  %6148 = vst.msk [vmem:[#allocation3 + $0x1c0] sm:$0xff] %vm380_vm0, %v10328_v39  ;;  %6149 = vst.msk [vmem:[#allocation3 + $0x1d8] sm:$0xff] %vm380_vm0, %v10330_v2  ;;  %v6008_v40 = vsel %vm1031_vm2, %v5976_v51, %v5759_v15  ;;  %v5368_v34 = vsel %vm1031_vm2, %v5336_v43, %v5119_v11  ;;  %v10369_v15 = vld [vmem:[#allocation2 + $0x14f] sm:$0xff]  ;;  %v5977_v33 = vsel %vm380_vm0, %v9993_v25, %v5633_v55  ;;  %v10400_v6 = vld [vmem:[#allocation2 + $0x167] sm:$0xff] }
 0x4b9   : > { %vm4705_vm6 = vcmp.gt.f32.partialorder %v4635_v22, 0.0  ;;  %v4744_v62 = vmul.f32 %v10176_v19, %v4635_v22  ;;  %5778 = vrot.lane.b32.xlu0 %v10334_v49, %s7188_s29 }
 0x4ba   : > { %v4993_v48 = vpop.permute.xlu1 %4992 }
 0x4bb   : > { %v4776_v16 = vsel %vm4705_vm6, %v4635_v22, %v4744_v62  ;;  %v5887_v38 = vpop.permute.xlu0 %5886  ;;  %v5337_v25 = vsel %vm380_vm0, %v9910_v52, %v4993_v48 }
 0x4bc   : > { %4808 = vst.msk [vmem:[#allocation2 + $0x188] sm:$0xff] %vm380_vm0, %v4776_v16  ;;  %v6040_v30 = vsel %vm1064_vm1, %v6008_v40, %v5887_v38  ;;  %5652 = vrot.lane.b32.xlu1 %v10346_v18, %s7186_s20  ;;  %v10390_v38 = vld [vmem:[#allocation2 + $0x150] sm:$0xff] }
 0x4bd   : > { %5138 = vrot.lane.b32.xlu0 %v10230_v45, %s7188_s29 }
 0x4be   : > { %v5761_v37 = vpop.permute.xlu1 %5760 }
 0x4bf   : > { %v5247_v61 = vpop.permute.xlu0 %5246  ;;  %v6220_v46 = vld [vmem:[#allocation3 + $0x1c0] sm:$0xff]  ;;  %v6223_v7 = vld [vmem:[#allocation3 + $0x1d8] sm:$0xff]  ;;  %v6009_v10 = vsel %vm1031_vm2, %v5977_v33, %v5761_v37 }
 0x4c0   : > { %v5400_v57 = vsel %vm1064_vm1, %v5368_v34, %v5247_v61  ;;  %5012 = vrot.lane.b32.xlu1 %v10241_v27, %s7186_s20  ;;  %v7109_v4 = vpack.c.bf16 %v6223_v7, %v6220_v46 }
 0x4c1   : > { %v4414_v45 = vpop.f32.mrb[78].mxu1  ;;  %5906 = vrot.lane.b32.xlu0 %v10360_v24, %s7189_s16 }
 0x4c2   : > { %v4415_v59 = vadd.f32 %v10161_v5, %v4414_v45  ;;  %v4416_v29 = vpop.f32.mrb[79].mxu1  ;;  %7111 = vmatprep.subr.msk.bf16.mxu0 %vm10289_vm4, %v7109_v4  ;;  %v5121_v21 = vpop.permute.xlu1 %5120 }
 0x4c3   : > { %7114 = vmatpush3.bf16.xpose.msk.msra.mxu0 %vm10289_vm4, %v7112_v42  ;;  %v5635_v3 = vpop.permute.xlu0 %5634  ;;  %v4826_v42 = vld [vmem:[#allocation2 + $0x87] sm:$0xff] }
 0x4c4   : > { %v4640_v54 = vadd.f32 %v9630_v23, %v4415_v59  ;;  %5780 = vrot.lane.b32.xlu1 %v10369_v15, %s7188_s29 }
 0x4c5   : > { %5266 = vrot.lane.b32.xlu0 %v10252_v41, %s7189_s16  ;;  %v5369_v41 = vsel %vm1031_vm2, %v5337_v25, %v5121_v21 }
 0x4c6   : > { %vm4706_vm7 = vcmp.gt.f32.partialorder %v4640_v54, 0.0  ;;  %v4745_v20 = vmul.f32 %v10176_v19, %v4640_v54  ;;  %v5889_v22 = vpop.permute.xlu1 %5888 }
 0x4c7   : > { %v6041_v11 = vsel %vm1064_vm1, %v6009_v10, %v5889_v22  ;;  %v4995_v62 = vpop.permute.xlu0 %4994 }
 0x4c8   : > { %v4777_v51 = vsel %vm4706_vm7, %v4640_v54, %v4745_v20  ;;  %5140 = vrot.lane.b32.xlu1 %v10260_v12, %s7188_s29  ;;  %v7051_v23 = vpack.c.bf16 %v6041_v11, %v6040_v30  ;;  %v5338_v59 = vsel %vm380_vm0, %v4826_v42, %v4995_v62  ;;  %v6181_v54 = vld [vmem:[#allocation3 + $0x88] sm:$0xff]  ;;  %v10456_v42 = vld [vmem:[#allocation2 + $0x170] sm:$0xff] }
 0x4c9   : > { %4809 = vst.msk [vmem:[#allocation2 + $0x190] sm:$0xff] %vm380_vm0, %v4777_v51  ;;  %5654 = vrot.lane.b32.xlu0 %v10262_v53, %s7186_s20  ;;  %v10427_v20 = vld [vmem:[#allocation2 + $0x168] sm:$0xff] }
 0x4ca   : > { %v5249_v55 = vpop.permute.xlu1 %5248  ;;  %7052 = vmatprep.subr.bf16.mxu1 %v7051_v23 }
 0x4cb   : > { %v5401_v40 = vsel %vm1064_vm1, %v5369_v41, %v5249_v55  ;;  %v5763_v16 = vpop.permute.xlu0 %5762  ;;  %v11032_v41 = vld [vmem:[#allocation27_spill] sm:$0xff] }
 0x4cc   : > { %v4419_v43 = vpop.f32.mrb[80].mxu1  ;;  %5908 = vrot.lane.b32.xlu1 %v10390_v38, %s7189_s16  ;;  %v7053_v12 = vpack.c.bf16 %v5401_v40, %v5400_v57 }
 0x4cd   : > { %v4420_v52 = vadd.f32 %v10161_v5, %v4419_v43  ;;  %v4421_v48 = vpop.f32.mrb[81].mxu1  ;;  %5014 = vrot.lane.b32.xlu0 %v10282_v32, %s7186_s20 }
 0x4ce   : > { %v5637_v30 = vpop.permute.xlu1 %5636  ;;  %7054 = vmatpush1.bf16.xpose.msra.mxu1 %v7053_v12 }
 0x4cf   : > { %v4645_v37 = vadd.f32 %v9682_v47, %v4420_v52  ;;  %v5123_v36 = vpop.permute.xlu0 %5122  ;;  %v5978_v47 = vsel %vm380_vm0, %v10027_v13, %v5635_v3  ;;  %v6178_v3 = vld [vmem:[#allocation3 + $0x70] sm:$0xff]  ;;  %v5979_v43 = vsel %vm380_vm0, %v10053_v58, %v5637_v30 }
 0x4d0   : > { %5268 = vrot.lane.b32.xlu1 %v10294_v56, %s7189_s16  ;;  %v10402_v34 = vld [vmem:[#allocation2 + $0x189] sm:$0xff]  ;;  %v10404_v61 = vld [vmem:[#allocation2 + $0x191] sm:$0xff]  ;;  %v6010_v7 = vsel %vm1031_vm2, %v5978_v47, %v5763_v16  ;;  %v5370_v13 = vsel %vm1031_vm2, %v5338_v59, %v5123_v36  ;;  %v7118_v25 = vpack.c.bf16 %v6181_v54, %v6178_v3 }
 0x4d1   : > { %vm4707_vm8 = vcmp.gt.f32.partialorder %v4645_v37, 0.0  ;;  %v4746_v46 = vmul.f32 %v10176_v19, %v4645_v37  ;;  %5782 = vrot.lane.b32.xlu0 %v10400_v6, %s7188_s29  ;;  %6150 = vst.msk [vmem:[#allocation3 + $0x1f0] sm:$0xff] %vm380_vm0, %v10402_v34  ;;  %6151 = vst.msk [vmem:[#allocation3 + $0x208] sm:$0xff] %vm380_vm0, %v10404_v61  ;;  %v10435_v16 = vld [vmem:[#allocation2 + $0x16f] sm:$0xff] }
 0x4d2   : > { %v4997_v56 = vpop.permute.xlu1 %4996  ;;  %v4827_v47 = vld [vmem:[#allocation2 + $0x8f] sm:$0xff] }
 0x4d3   : > { %v4778_v57 = vsel %vm4707_vm8, %v4645_v37, %v4746_v46  ;;  %v5891_v4 = vpop.permute.xlu0 %5890  ;;  %v5339_v30 = vsel %vm380_vm0, %v4827_v47, %v4997_v56 }
 0x4d4   : > { %4810 = vst.msk [vmem:[#allocation2 + $0x1a8] sm:$0xff] %vm380_vm0, %v4778_v57  ;;  %v6042_v45 = vsel %vm1064_vm1, %v6010_v7, %v5891_v4  ;;  %5656 = vrot.lane.b32.xlu1 %v10264_v17, %s7186_s20 }
 0x4d5   : > { %5142 = vrot.lane.b32.xlu0 %v10312_v28, %s7188_s29 }
 0x4d6   : > { %v5765_v29 = vpop.permute.xlu1 %5764 }
 0x4d7   : > { %v5251_v21 = vpop.permute.xlu0 %5250  ;;  %v6011_v52 = vsel %vm1031_vm2, %v5979_v43, %v5765_v29 }
 0x4d8   : > { %v5402_v33 = vsel %vm1064_vm1, %v5370_v13, %v5251_v21  ;;  %v4424_v10 = vpop.f32.mrb[82].mxu1  ;;  %5016 = vrot.lane.b32.xlu1 %v10320_v35, %s7186_s20  ;;  %v6226_v22 = vld [vmem:[#allocation3 + $0x1f0] sm:$0xff]  ;;  %v6229_v11 = vld [vmem:[#allocation3 + $0x208] sm:$0xff] }
 0x4d9   : > { %v4425_v28 = vadd.f32 %v10161_v5, %v4424_v10  ;;  %v4426_v51 = vpop.f32.mrb[83].mxu1  ;;  %5910 = vrot.lane.b32.xlu0 %v10427_v20, %s7189_s16  ;;  %v7115_v62 = vpack.c.bf16 %v6229_v11, %v6226_v22  ;;  %v10470_v10 = vld [vmem:[#allocation2 + $0x187] sm:$0xff] }
 0x4da   : > { %v5125_v23 = vpop.permute.xlu1 %5124 }
 0x4db   : > { %v4650_v55 = vadd.f32 %v11032_v41, %v4425_v28  ;;  %7117 = vmatprep.subr.msk.bf16.mxu0 %vm10289_vm4, %v7115_v62  ;;  %v5639_v40 = vpop.permute.xlu0 %5638  ;;  %v4828_v62 = vld [vmem:[#allocation2 + $0xa7] sm:$0xff]  ;;  %v6187_v41 = vld [vmem:[#allocation3 + $0xb8] sm:$0xff] }
 0x4dc   : > { %7120 = vmatpush3.bf16.xpose.msk.msra.mxu0 %vm10289_vm4, %v7118_v25  ;;  %5784 = vrot.lane.b32.xlu1 %v10435_v16, %s7188_s29 }
 0x4dd   : > { %vm4708_vm9 = vcmp.gt.f32.partialorder %v4650_v55, 0.0  ;;  %v4747_v12 = vmul.f32 %v10176_v19, %v4650_v55  ;;  %5270 = vrot.lane.b32.xlu0 %v10334_v49, %s7189_s16  ;;  %v5371_v49 = vsel %vm1031_vm2, %v5339_v30, %v5125_v23  ;;  %v11033_v30 = vld [vmem:[#allocation6_spill] sm:$0xff] }
 0x4de   : > { %v5893_v48 = vpop.permute.xlu1 %5892 }
 0x4df   : > { %v4779_v37 = vsel %vm4708_vm9, %v4650_v55, %v4747_v12  ;;  %v6043_v36 = vsel %vm1064_vm1, %v6011_v52, %v5893_v48  ;;  %v4999_v46 = vpop.permute.xlu0 %4998 }
 0x4e0   : > { %4811 = vst.msk [vmem:[#allocation2 + $0x1b0] sm:$0xff] %vm380_vm0, %v4779_v37  ;;  %5144 = vrot.lane.b32.xlu1 %v10346_v18, %s7188_s29  ;;  %v7055_v58 = vpack.c.bf16 %v6043_v36, %v6042_v45  ;;  %v5340_v23 = vsel %vm380_vm0, %v4828_v62, %v4999_v46  ;;  %v10493_v37 = vld [vmem:[#allocation2 + $0x188] sm:$0xff] }
 0x4e1   : > { %5658 = vrot.lane.b32.xlu0 %v10328_v39, %s7186_s20 }
 0x4e2   : > { %v5253_v7 = vpop.permute.xlu1 %5252  ;;  %7056 = vmatprep.subr.bf16.mxu1 %v7055_v58 }
 0x4e3   : > { %v5403_v57 = vsel %vm1064_vm1, %v5371_v49, %v5253_v7  ;;  %v5767_v4 = vpop.permute.xlu0 %5766 }
 0x4e4   : > { %v4429_v59 = vpop.f32.mrb[84].mxu1  ;;  %5912 = vrot.lane.b32.xlu1 %v10456_v42, %s7189_s16  ;;  %v7057_v18 = vpack.c.bf16 %v5403_v57, %v5402_v33  ;;  %v10503_v57 = vld [vmem:[#allocation2 + $0x18f] sm:$0xff] }
 0x4e5   : > { %v4430_v45 = vadd.f32 %v10161_v5, %v4429_v59  ;;  %v4431_v56 = vpop.f32.mrb[85].mxu1  ;;  %5018 = vrot.lane.b32.xlu0 %v10360_v24, %s7186_s20 }
 0x4e6   : > { %v5641_v29 = vpop.permute.xlu1 %5640  ;;  %7058 = vmatpush1.bf16.xpose.msra.mxu1 %v7057_v18 }
 0x4e7   : > { %v4655_v13 = vadd.f32 %v9731_v1, %v4430_v45  ;;  %v5127_v21 = vpop.permute.xlu0 %5126  ;;  %v10464_v3 = vld [vmem:[#allocation2 + $0x1a9] sm:$0xff]  ;;  %v10466_v54 = vld [vmem:[#allocation2 + $0x1b1] sm:$0xff]  ;;  %v5980_v1 = vsel %vm380_vm0, %v10080_v8, %v5639_v40  ;;  %v6184_v8 = vld [vmem:[#allocation3 + $0xa0] sm:$0xff] }
 0x4e8   : > { %5272 = vrot.lane.b32.xlu1 %v10369_v15, %s7189_s16  ;;  %6152 = vst.msk [vmem:[#allocation3 + $0x220] sm:$0xff] %vm380_vm0, %v10464_v3  ;;  %6153 = vst.msk [vmem:[#allocation3 + $0x238] sm:$0xff] %vm380_vm0, %v10466_v54  ;;  %v6012_v15 = vsel %vm1031_vm2, %v5980_v1, %v5767_v4  ;;  %v5372_v55 = vsel %vm1031_vm2, %v5340_v23, %v5127_v21  ;;  %v7124_v47 = vpack.c.bf16 %v6187_v41, %v6184_v8 }
 0x4e9   : > { %vm4709_vm10 = vcmp.gt.f32.partialorder %v4655_v13, 0.0  ;;  %v4748_v33 = vmul.f32 %v10176_v19, %v4655_v13  ;;  %5786 = vrot.lane.b32.xlu0 %v10470_v10, %s7188_s29  ;;  %v5981_v4 = vsel %vm380_vm0, %v10102_v0, %v5641_v29 }
 0x4ea   : > { %v5001_v22 = vpop.permute.xlu1 %5000 }
 0x4eb   : > { %v4780_v11 = vsel %vm4709_vm10, %v4655_v13, %v4748_v33  ;;  %v5895_v28 = vpop.permute.xlu0 %5894  ;;  %v4829_v33 = vld [vmem:[#allocation2 + $0xaf] sm:$0xff] }
 0x4ec   : > { %4812 = vst.msk [vmem:[#allocation2 + $0x1c8] sm:$0xff] %vm380_vm0, %v4780_v11  ;;  %v6044_v51 = vsel %vm1064_vm1, %v6012_v15, %v5895_v28  ;;  %5660 = vrot.lane.b32.xlu1 %v10330_v2, %s7186_s20  ;;  %v5341_v29 = vsel %vm380_vm0, %v4829_v33, %v5001_v22  ;;  %v10522_v28 = vld [vmem:[#allocation2 + $0x190] sm:$0xff] }
 0x4ed   : > { %5146 = vrot.lane.b32.xlu0 %v10262_v53, %s7188_s29 }
 0x4ee   : > { %v5769_v25 = vpop.permute.xlu1 %5768 }
 0x4ef   : > { %v5255_v40 = vpop.permute.xlu0 %5254  ;;  %v6232_v43 = vld [vmem:[#allocation3 + $0x220] sm:$0xff]  ;;  %v6235_v12 = vld [vmem:[#allocation3 + $0x238] sm:$0xff]  ;;  %v6013_v18 = vsel %vm1031_vm2, %v5981_v4, %v5769_v25 }
 0x4f0   : > { %v5404_v52 = vsel %vm1064_vm1, %v5372_v55, %v5255_v40  ;;  %v4434_v48 = vpop.f32.mrb[86].mxu1  ;;  %5020 = vrot.lane.b32.xlu1 %v10390_v38, %s7186_s20  ;;  %v7121_v36 = vpack.c.bf16 %v6235_v12, %v6232_v43  ;;  %v10536_v40 = vld [vmem:[#allocation2 + $0x1a7] sm:$0xff] }
 0x4f1   : > { %v4435_v53 = vadd.f32 %v10161_v5, %v4434_v48  ;;  %v4436_v46 = vpop.f32.mrb[87].mxu1  ;;  %5914 = vrot.lane.b32.xlu0 %v10493_v37, %s7189_s16 }
 0x4f2   : > { %7123 = vmatprep.subr.msk.bf16.mxu0 %vm10289_vm4, %v7121_v36  ;;  %v5129_v58 = vpop.permute.xlu1 %5128 }
 0x4f3   : > { %v4660_v49 = vadd.f32 %v11033_v30, %v4435_v53  ;;  %7126 = vmatpush3.bf16.xpose.msk.msra.mxu0 %vm10289_vm4, %v7124_v47  ;;  %v5643_v7 = vpop.permute.xlu0 %5642  ;;  %v4830_v53 = vld [vmem:[#allocation2 + $0xc7] sm:$0xff] }
 0x4f4   : > { %5788 = vrot.lane.b32.xlu1 %v10503_v57, %s7188_s29 }
 0x4f5   : > { %vm4710_vm11 = vcmp.gt.f32.partialorder %v4660_v49, 0.0  ;;  %v4749_v59 = vmul.f32 %v10176_v19, %v4660_v49  ;;  %5274 = vrot.lane.b32.xlu0 %v10400_v6, %s7189_s16  ;;  %v5373_v6 = vsel %vm1031_vm2, %v5341_v29, %v5129_v58  ;;  %v6193_v58 = vld [vmem:[#allocation3 + $0xe8] sm:$0xff] }
 0x4f6   : > { %v5897_v45 = vpop.permute.xlu1 %5896 }
 0x4f7   : > { %v4781_v56 = vsel %vm4710_vm11, %v4660_v49, %v4749_v59  ;;  %v6045_v13 = vsel %vm1064_vm1, %v6013_v18, %v5897_v45  ;;  %v5003_v21 = vpop.permute.xlu0 %5002  ;;  %v10559_v45 = vld [vmem:[#allocation2 + $0x1a8] sm:$0xff] }
 0x4f8   : > { %4813 = vst.msk [vmem:[#allocation2 + $0x1d0] sm:$0xff] %vm380_vm0, %v4781_v56  ;;  %5148 = vrot.lane.b32.xlu1 %v10264_v17, %s7188_s29  ;;  %v7059_v0 = vpack.c.bf16 %v6045_v13, %v6044_v51  ;;  %v5342_v46 = vsel %vm380_vm0, %v4830_v53, %v5003_v21 }
 0x4f9   : > { %5662 = vrot.lane.b32.xlu0 %v10402_v34, %s7186_s20 }
 0x4fa   : > { %v5257_v1 = vpop.permute.xlu1 %5256  ;;  %7060 = vmatprep.subr.bf16.mxu1 %v7059_v0 }
 0x4fb   : > { %v5405_v15 = vsel %vm1064_vm1, %v5373_v6, %v5257_v1  ;;  %v5771_v11 = vpop.permute.xlu0 %5770  ;;  %v10569_v6 = vld [vmem:[#allocation2 + $0x1af] sm:$0xff] }
 0x4fc   : > { %v4439_v62 = vpop.f32.mrb[88].mxu1  ;;  %5916 = vrot.lane.b32.xlu1 %v10522_v28, %s7189_s16  ;;  %v7061_v17 = vpack.c.bf16 %v5405_v15, %v5404_v52 }
 0x4fd   : > { %v4440_v51 = vadd.f32 %v10161_v5, %v4439_v62  ;;  %v4441_v22 = vpop.f32.mrb[89].mxu1  ;;  %5022 = vrot.lane.b32.xlu0 %v10427_v20, %s7186_s20 }
 0x4fe   : > { %v5645_v23 = vpop.permute.xlu1 %5644  ;;  %7062 = vmatpush1.bf16.xpose.msra.mxu1 %v7061_v17  ;;  %v4831_v22 = vld [vmem:[#allocation2 + $0xcf] sm:$0xff] }
 0x4ff   : > { %v4665_v25 = vadd.f32 %v9767_v14, %v4440_v51  ;;  %v5131_v8 = vpop.permute.xlu0 %5130  ;;  %v10530_v41 = vld [vmem:[#allocation2 + $0x1c9] sm:$0xff]  ;;  %v10532_v55 = vld [vmem:[#allocation2 + $0x1d1] sm:$0xff]  ;;  %v5982_v14 = vsel %vm380_vm0, %v10135_v9, %v5643_v7  ;;  %v5983_v1 = vsel %vm380_vm0, %v10169_v63, %v5645_v23 }
 0x500   : > { %5276 = vrot.lane.b32.xlu1 %v10435_v16, %s7189_s16  ;;  %6154 = vst.msk [vmem:[#allocation3 + $0x250] sm:$0xff] %vm380_vm0, %v10530_v41  ;;  %6155 = vst.msk [vmem:[#allocation3 + $0x268] sm:$0xff] %vm380_vm0, %v10532_v55  ;;  %v6014_v16 = vsel %vm1031_vm2, %v5982_v14, %v5771_v11  ;;  %v6190_v9 = vld [vmem:[#allocation3 + $0xd0] sm:$0xff]  ;;  %v5374_v30 = vsel %vm1031_vm2, %v5342_v46, %v5131_v8 }
 0x501   : > { %vm4711_vm12 = vcmp.gt.f32.partialorder %v4665_v25, 0.0  ;;  %v4750_v43 = vmul.f32 %v10176_v19, %v4665_v25  ;;  %5790 = vrot.lane.b32.xlu0 %v10536_v40, %s7188_s29  ;;  %v7130_v21 = vpack.c.bf16 %v6193_v58, %v6190_v9  ;;  %v10588_v14 = vld [vmem:[#allocation2 + $0x1b0] sm:$0xff]  ;;  %v10602_v9 = vld [vmem:[#allocation2 + $0x1c7] sm:$0xff] }
 0x502   : > { %v5005_v12 = vpop.permute.xlu1 %5004 }
 0x503   : > { %v4782_v52 = vsel %vm4711_vm12, %v4665_v25, %v4750_v43  ;;  %v5899_v48 = vpop.permute.xlu0 %5898  ;;  %v5343_v23 = vsel %vm380_vm0, %v4831_v22, %v5005_v12 }
 0x504   : > { %4814 = vst.msk [vmem:[#allocation2 + $0x1e8] sm:$0xff] %vm380_vm0, %v4782_v52  ;;  %v6046_v36 = vsel %vm1064_vm1, %v6014_v16, %v5899_v48  ;;  %5664 = vrot.lane.b32.xlu1 %v10404_v61, %s7186_s20 }
 0x505   : > { %5150 = vrot.lane.b32.xlu0 %v10328_v39, %s7188_s29 }
 0x506   : > { %v5773_v47 = vpop.permute.xlu1 %5772 }
 0x507   : > { %v5259_v49 = vpop.permute.xlu0 %5258  ;;  %v6238_v7 = vld [vmem:[#allocation3 + $0x250] sm:$0xff]  ;;  %v6241_v4 = vld [vmem:[#allocation3 + $0x268] sm:$0xff] }
 0x508   : > { %v5406_v59 = vsel %vm1064_vm1, %v5374_v30, %v5259_v49  ;;  %v4444_v18 = vpop.f32.mrb[90].mxu1  ;;  %5024 = vrot.lane.b32.xlu1 %v10456_v42, %s7186_s20  ;;  %v7127_v56 = vpack.c.bf16 %v6241_v4, %v6238_v7 }
 0x509   : > { %v4445_v39 = vadd.f32 %v10161_v5, %v4444_v18  ;;  %v4446_v13 = vpop.f32.mrb[91].mxu1  ;;  %5918 = vrot.lane.b32.xlu0 %v10559_v45, %s7189_s16 }
 0x50a   : > { %7129 = vmatprep.subr.msk.bf16.mxu0 %vm10289_vm4, %v7127_v56  ;;  %v5133_v33 = vpop.permute.xlu1 %5132  ;;  %v6199_v56 = vld [vmem:[#allocation3 + $0x118] sm:$0xff] }
 0x50b   : > { %v4670_v0 = vadd.f32 %v9763_v44, %v4445_v39  ;;  %7132 = vmatpush3.bf16.xpose.msk.msra.mxu0 %vm10289_vm4, %v7130_v21  ;;  %v5647_v29 = vpop.permute.xlu0 %5646  ;;  %v6015_v44 = vsel %vm1031_vm2, %v5983_v1, %v5773_v47  ;;  %v10625_v1 = vld [vmem:[#allocation2 + $0x1c8] sm:$0xff] }
 0x50c   : > { %5792 = vrot.lane.b32.xlu1 %v10569_v6, %s7188_s29 }
 0x50d   : > { %vm4712_vm13 = vcmp.gt.f32.partialorder %v4670_v0, 0.0  ;;  %v4751_v15 = vmul.f32 %v10176_v19, %v4670_v0  ;;  %5278 = vrot.lane.b32.xlu0 %v10470_v10, %s7189_s16  ;;  %v5375_v10 = vsel %vm1031_vm2, %v5343_v23, %v5133_v33 }
 0x50e   : > { %v5901_v11 = vpop.permute.xlu1 %5900 }
 0x50f   : > { %v4783_v62 = vsel %vm4712_vm13, %v4670_v0, %v4751_v15  ;;  %v6047_v17 = vsel %vm1064_vm1, %v6015_v44, %v5901_v11  ;;  %v5007_v51 = vpop.permute.xlu0 %5006 }
 0x510   : > { %4815 = vst.msk [vmem:[#allocation2 + $0x1f0] sm:$0xff] %vm380_vm0, %v4783_v62  ;;  %5152 = vrot.lane.b32.xlu1 %v10330_v2, %s7188_s29  ;;  %v7063_v63 = vpack.c.bf16 %v6047_v17, %v6046_v36 }
 0x511   : > { %5666 = vrot.lane.b32.xlu0 %v10464_v3, %s7186_s20 }
 0x512   : > { %v5261_v25 = vpop.permute.xlu1 %5260  ;;  %7064 = vmatprep.subr.bf16.mxu1 %v7063_v63  ;;  %v10637_v63 = vld [vmem:[#allocation2 + $0x1cf] sm:$0xff] }
 0x513   : > { %v5407_v8 = vsel %vm1064_vm1, %v5375_v10, %v5261_v25  ;;  %v5775_v43 = vpop.permute.xlu0 %5774  ;;  %v7176_v10 = vld [vmem:[%s10914_s7] ss:$0 sm:$0xff] }
 0x514   : > { %v4449_v16 = vpop.f32.mrb[92].mxu1  ;;  %5920 = vrot.lane.b32.xlu1 %v10588_v14, %s7189_s16  ;;  %v7065_v2 = vpack.c.bf16 %v5407_v8, %v5406_v59  ;;  %v4832_v59 = vld [vmem:[#allocation2 + $0xe7] sm:$0xff] }
 0x515   : > { %v4450_v52 = vadd.f32 %v10161_v5, %v4449_v16  ;;  %v4451_v12 = vpop.f32.mrb[93].mxu1  ;;  %5026 = vrot.lane.b32.xlu0 %v10493_v37, %s7186_s20 }
 0x516   : > { %v5649_v48 = vpop.permute.xlu1 %5648  ;;  %7066 = vmatpush1.bf16.xpose.msra.mxu1 %v7065_v2 }
 0x517   : > { %v4675_v36 = vadd.f32 %v10232_v60, %v4450_v52  ;;  %v5135_v53 = vpop.permute.xlu0 %5134  ;;  %v10596_v46 = vld [vmem:[#allocation2 + $0x1e9] sm:$0xff]  ;;  %v10598_v47 = vld [vmem:[#allocation2 + $0x1f1] sm:$0xff]  ;;  %v5984_v60 = vsel %vm380_vm0, %v10207_v31, %v5647_v29  ;;  %v6196_v31 = vld [vmem:[#allocation3 + $0x100] sm:$0xff]  ;;  %v5985_v23 = vsel %vm380_vm0, %v10241_v27, %v5649_v48 }
 0x518   : > { %5280 = vrot.lane.b32.xlu1 %v10503_v57, %s7189_s16  ;;  %6156 = vst.msk [vmem:[#allocation3 + $0x280] sm:$0xff] %vm380_vm0, %v10596_v46  ;;  %6157 = vst.msk [vmem:[#allocation3 + $0x298] sm:$0xff] %vm380_vm0, %v10598_v47  ;;  %v6016_v30 = vsel %vm1031_vm2, %v5984_v60, %v5775_v43  ;;  %v7136_v62 = vpack.c.bf16 %v6199_v56, %v6196_v31  ;;  %v4833_v52 = vld [vmem:[#allocation2 + $0xef] sm:$0xff] }
 0x519   : > { %vm4713_vm14 = vcmp.gt.f32.partialorder %v4675_v36, 0.0  ;;  %v4752_v5 = vmul.f32 %v10176_v19, %v4675_v36  ;;  %5794 = vrot.lane.b32.xlu0 %v10602_v9, %s7188_s29  ;;  %v5344_v19 = vsel %vm380_vm0, %v4832_v59, %v5007_v51  ;;  %v10658_v60 = vld [vmem:[#allocation2 + $0x1d0] sm:$0xff] }
 0x51a   : > { %v5009_v58 = vpop.permute.xlu1 %5008  ;;  %v5376_v39 = vsel %vm1031_vm2, %v5344_v19, %v5135_v53 }
 0x51b   : > { %v4784_v49 = vsel %vm4713_vm14, %v4675_v36, %v4752_v5  ;;  %v5903_v7 = vpop.permute.xlu0 %5902  ;;  %v5345_v12 = vsel %vm380_vm0, %v4833_v52, %v5009_v58 }
 0x51c   : > { %4816 = vst.msk [vmem:[#allocation2 + $0x208] sm:$0xff] %vm380_vm0, %v4784_v49  ;;  %v6048_v4 = vsel %vm1064_vm1, %v6016_v30, %v5903_v7  ;;  %5668 = vrot.lane.b32.xlu1 %v10466_v54, %s7186_s20 }
 0x51d   : > { %5154 = vrot.lane.b32.xlu0 %v10402_v34, %s7188_s29  ;;  %v7175_v34 = vld [vmem:[%s10913_s6] ss:$0 sm:$0xff] }
 0x51e   : > { %v5777_v18 = vpop.permute.xlu1 %5776 }
 0x51f   : > { %v5263_v13 = vpop.permute.xlu0 %5262  ;;  %v6244_v21 = vld [vmem:[#allocation3 + $0x280] sm:$0xff]  ;;  %v6247_v33 = vld [vmem:[#allocation3 + $0x298] sm:$0xff] }
 0x520   : > { %v5408_v0 = vsel %vm1064_vm1, %v5376_v39, %v5263_v13  ;;  %v4454_v29 = vpop.f32.mrb[94].mxu1  ;;  %5028 = vrot.lane.b32.xlu1 %v10522_v28, %s7186_s20  ;;  %v7133_v15 = vpack.c.bf16 %v6247_v33, %v6244_v21  ;;  %v4834_v39 = vld [vmem:[#allocation2 + $0x107] sm:$0xff]  ;;  %v6259_v21 = vld [vmem:[#allocation3 + $0x2f8] sm:$0xff] }
 0x521   : > { %v4455_v44 = vadd.f32 %v7175_v34, %v4454_v29  ;;  %v4456_v11 = vpop.f32.mrb[95].mxu1  ;;  %5922 = vrot.lane.b32.xlu0 %v10625_v1, %s7189_s16  ;;  %v6256_v13 = vld [vmem:[#allocation3 + $0x2e0] sm:$0xff]  ;;  %v6202_v29 = vld [vmem:[#allocation3 + $0x130] sm:$0xff] }
 0x522   : > { %7135 = vmatprep.subr.msk.bf16.mxu0 %vm10289_vm4, %v7133_v15  ;;  %v5137_v17 = vpop.permute.xlu1 %5136 }
 0x523   : > { %v4680_v51 = vadd.f32 %v10226_v26, %v4455_v44  ;;  %7138 = vmatpush3.bf16.xpose.msk.msra.mxu0 %vm10289_vm4, %v7136_v62  ;;  %v5651_v22 = vpop.permute.xlu0 %5650  ;;  %v6017_v26 = vsel %vm1031_vm2, %v5985_v23, %v5777_v18  ;;  %v5377_v48 = vsel %vm1031_vm2, %v5345_v12, %v5137_v17  ;;  %v10691_v17 = vld [vmem:[#allocation2 + $0x1e8] sm:$0xff] }
 0x524   : > { %5796 = vrot.lane.b32.xlu1 %v10637_v63, %s7188_s29  ;;  %v5986_v59 = vsel %vm380_vm0, %v10282_v32, %v5651_v22  ;;  %v6205_v32 = vld [vmem:[#allocation3 + $0x148] sm:$0xff] }
 0x525   : > { %vm4714_vm15 = vcmp.gt.f32.partialorder %v4680_v51, 0.0  ;;  %v4753_v25 = vmul.f32 %v7176_v10, %v4680_v51  ;;  %5282 = vrot.lane.b32.xlu0 %v10536_v40, %s7189_s16  ;;  %v7142_v22 = vpack.c.bf16 %v6205_v32, %v6202_v29  ;;  %v4835_v12 = vld [vmem:[#allocation2 + $0x10f] sm:$0xff] }
 0x526   : > { %v5905_v8 = vpop.permute.xlu1 %5904 }
 0x527   : > { %v4785_v43 = vsel %vm4714_vm15, %v4680_v51, %v4753_v25  ;;  %v6049_v16 = vsel %vm1064_vm1, %v6017_v26, %v5905_v8  ;;  %v5011_v2 = vpop.permute.xlu0 %5010  ;;  %v7145_v51 = vpack.c.bf16 %v6259_v21, %v6256_v13  ;;  %v10699_v25 = vld [vmem:[#allocation2 + $0x1ef] sm:$0xff]  ;;  %v4836_v21 = vld [vmem:[#allocation2 + $0x127] sm:$0xff] }
 0x528   : > { %4817 = vst.msk [vmem:[#allocation2 + $0x210] sm:$0xff] %vm380_vm0, %v4785_v43  ;;  %5156 = vrot.lane.b32.xlu1 %v10404_v61, %s7188_s29  ;;  %v7067_v27 = vpack.c.bf16 %v6049_v16, %v6048_v4  ;;  %v10670_v4 = vld [vmem:[#allocation2 + $0x1e7] sm:$0xff]  ;;  %v5346_v33 = vsel %vm380_vm0, %v4834_v39, %v5011_v2  ;;  %v6211_v2 = vld [vmem:[#allocation3 + $0x178] sm:$0xff] }
 0x529   : > { %5670 = vrot.lane.b32.xlu0 %v10530_v41, %s7186_s20  ;;  %v6208_v16 = vld [vmem:[#allocation3 + $0x160] sm:$0xff] }
 0x52a   : > { %v5265_v36 = vpop.permute.xlu1 %5264  ;;  %7068 = vmatprep.subr.bf16.mxu1 %v7067_v27 }
 0x52b   : > { %v5409_v53 = vsel %vm1064_vm1, %v5377_v48, %v5265_v36  ;;  %v5779_v5 = vpop.permute.xlu0 %5778 }
 0x52c   : > { %5924 = vrot.lane.b32.xlu1 %v10658_v60, %s7189_s16  ;;  %v7069_v30 = vpack.c.bf16 %v5409_v53, %v5408_v0  ;;  %v6018_v18 = vsel %vm1031_vm2, %v5986_v59, %v5779_v5 }
 0x52d   : > { %5030 = vrot.lane.b32.xlu0 %v10559_v45, %s7186_s20 }
 0x52e   : > { %v5653_v61 = vpop.permute.xlu1 %5652  ;;  %7070 = vmatpush1.bf16.xpose.msra.mxu1 %v7069_v30 }
 0x52f   : > { %v5139_v58 = vpop.permute.xlu0 %5138  ;;  %v10664_v49 = vld [vmem:[#allocation2 + $0x209] sm:$0xff]  ;;  %v10666_v7 = vld [vmem:[#allocation2 + $0x211] sm:$0xff]  ;;  %v5987_v26 = vsel %vm380_vm0, %v10320_v35, %v5653_v61  ;;  %v7148_v35 = vpack.c.bf16 %v6211_v2, %v6208_v16 }
 0x530   : > { %5284 = vrot.lane.b32.xlu1 %v10569_v6, %s7189_s16  ;;  %6158 = vst.msk [vmem:[#allocation3 + $0x2b0] sm:$0xff] %vm380_vm0, %v10664_v49  ;;  %6159 = vst.msk [vmem:[#allocation3 + $0x2c8] sm:$0xff] %vm380_vm0, %v10666_v7  ;;  %v5378_v15 = vsel %vm1031_vm2, %v5346_v33, %v5139_v58  ;;  %v10720_v58 = vld [vmem:[#allocation2 + $0x1f0] sm:$0xff] }
 0x531   : > { %5798 = vrot.lane.b32.xlu0 %v10670_v4, %s7188_s29  ;;  %v10766_v2 = vld [vmem:[#allocation2 + $0x210] sm:$0xff] }
 0x532   : > { %v5013_v19 = vpop.permute.xlu1 %5012 }
 0x533   : > { %v5907_v31 = vpop.permute.xlu0 %5906  ;;  %v5347_v36 = vsel %vm380_vm0, %v4835_v12, %v5013_v19 }
 0x534   : > { %v6050_v56 = vsel %vm1064_vm1, %v6018_v18, %v5907_v31  ;;  %5672 = vrot.lane.b32.xlu1 %v10532_v55, %s7186_s20  ;;  %v10728_v18 = vld [vmem:[#allocation2 + $0x207] sm:$0xff] }
 0x535   : > { %5158 = vrot.lane.b32.xlu0 %v10464_v3, %s7188_s29 }
 0x536   : > { %v5781_v0 = vpop.permute.xlu1 %5780 }
 0x537   : > { %v5267_v34 = vpop.permute.xlu0 %5266  ;;  %v6250_v44 = vld [vmem:[#allocation3 + $0x2b0] sm:$0xff]  ;;  %v6253_v11 = vld [vmem:[#allocation3 + $0x2c8] sm:$0xff]  ;;  %v6019_v8 = vsel %vm1031_vm2, %v5987_v26, %v5781_v0 }
 0x538   : > { %v5410_v62 = vsel %vm1064_vm1, %v5378_v15, %v5267_v34  ;;  %5032 = vrot.lane.b32.xlu1 %v10588_v14, %s7186_s20  ;;  %v7139_v3 = vpack.c.bf16 %v6253_v11, %v6250_v44  ;;  %v10745_v15 = vld [vmem:[#allocation2 + $0x208] sm:$0xff] }
 0x539   : > { %5926 = vrot.lane.b32.xlu0 %v10691_v17, %s7189_s16  ;;  %v10749_v11 = vld [vmem:[#allocation2 + $0x20f] sm:$0xff] }
 0x53a   : > { %7141 = vmatprep.subr.msk.bf16.mxu0 %vm10289_vm4, %v7139_v3  ;;  %v5141_v23 = vpop.permute.xlu1 %5140 }
 0x53b   : > { %7144 = vmatpush3.bf16.xpose.msk.msra.mxu0 %vm10289_vm4, %v7142_v22  ;;  %v5655_v10 = vpop.permute.xlu0 %5654  ;;  %v5379_v53 = vsel %vm1031_vm2, %v5347_v36, %v5141_v23  ;;  %v4837_v23 = vld [vmem:[#allocation2 + $0x12f] sm:$0xff] }
 0x53c   : > { %5800 = vrot.lane.b32.xlu1 %v10699_v25, %s7188_s29  ;;  %7147 = vmatprep.subr.msk.bf16.mxu0 %vm10289_vm4, %v7145_v51  ;;  %v5988_v50 = vsel %vm380_vm0, %v10360_v24, %v5655_v10 }
 0x53d   : > { %5286 = vrot.lane.b32.xlu0 %v10602_v9, %s7189_s16 }
 0x53e   : > { %v5909_v43 = vpop.permute.xlu1 %5908 }
 0x53f   : > { %v6051_v52 = vsel %vm1064_vm1, %v6019_v8, %v5909_v43  ;;  %v5015_v27 = vpop.permute.xlu0 %5014 }
 0x540   : > { %5160 = vrot.lane.b32.xlu1 %v10466_v54, %s7188_s29  ;;  %v7071_v48 = vpack.c.bf16 %v6051_v52, %v6050_v56  ;;  %v5348_v33 = vsel %vm380_vm0, %v4836_v21, %v5015_v27  ;;  %v5552_v27 = vld [vmem:[#allocation2 + $0x227] sm:$0xff] }
 0x541   : > { %5674 = vrot.lane.b32.xlu0 %v10596_v46, %s7186_s20  ;;  %v6163_v21 = vld [vmem:[%s10915_s8 + $0x8] sm:$0xf] }
 0x542   : > { %v5269_v5 = vpop.permute.xlu1 %5268  ;;  %7072 = vmatprep.subr.bf16.mxu1 %v7071_v48  ;;  %6813 = vmatprep.mubr.msk.f32.mxu0 %vm380_vm0, %v6163_v21 }
 0x543   : > { %v5411_v30 = vsel %vm1064_vm1, %v5379_v53, %v5269_v5  ;;  %7150 = vmatpush3.bf16.xpose.msk.msra.mxu0 %vm10289_vm4, %v7148_v35  ;;  %v5783_v61 = vpop.permute.xlu0 %5782  ;;  %v4838_v5 = vld [vmem:[#allocation2 + $0x147] sm:$0xff] }
 0x544   : > { %5928 = vrot.lane.b32.xlu1 %v10720_v58, %s7189_s16  ;;  %v7073_v54 = vpack.c.bf16 %v5411_v30, %v5410_v62  ;;  %v6020_v56 = vsel %vm1031_vm2, %v5988_v50, %v5783_v61  ;;  %v5553_v50 = vld [vmem:[#allocation2 + $0x22f] sm:$0xff] }
 0x545   : > { %5034 = vrot.lane.b32.xlu0 %v10625_v1, %s7186_s20 }
 0x546   : > { %v5657_v59 = vpop.permute.xlu1 %5656  ;;  %7074 = vmatpush1.bf16.xpose.msra.mxu1 %v7073_v54  ;;  %v5584_v54 = vld [vmem:[#allocation2 + $0x228] sm:$0xff] }
 0x547   : > { %v5143_v19 = vpop.permute.xlu0 %5142 }
 0x548   : > { %5288 = vrot.lane.b32.xlu1 %v10637_v63, %s7189_s16  ;;  %v5380_v29 = vsel %vm1031_vm2, %v5348_v33, %v5143_v19 }
 0x549   : > { %5802 = vrot.lane.b32.xlu0 %v10728_v18, %s7188_s29 }
 0x54a   : > { %v5017_v31 = vpop.permute.xlu1 %5016  ;;  %6814 = vmatmul.mubr.msk.f32.vlgmr.msra.gmra.mrb[96].mxu0 %vm380_vm0, %v6163_v21 }
 0x54b   : > { %v5911_v39 = vpop.permute.xlu0 %5910  ;;  %v5349_v26 = vsel %vm380_vm0, %v4837_v23, %v5017_v31 }
 0x54c   : > { %v6052_v13 = vsel %vm1064_vm1, %v6020_v56, %v5911_v39  ;;  %5676 = vrot.lane.b32.xlu1 %v10598_v47, %s7186_s20 }
 0x54d   : > { %5162 = vrot.lane.b32.xlu0 %v10530_v41, %s7188_s29  ;;  %v5989_v41 = vsel %vm380_vm0, %v10390_v38, %v5657_v59 }
 0x54e   : > { %v5785_v0 = vpop.permute.xlu1 %5784 }
 0x54f   : > { %v5271_v32 = vpop.permute.xlu0 %5270  ;;  %v6021_v62 = vsel %vm1031_vm2, %v5989_v41, %v5785_v0 }
 0x550   : > { %v5412_v24 = vsel %vm1064_vm1, %v5380_v29, %v5271_v32  ;;  %5036 = vrot.lane.b32.xlu1 %v10658_v60, %s7186_s20 }
 0x551   : > { %5930 = vrot.lane.b32.xlu0 %v10745_v15, %s7189_s16 }
 0x552   : > { %v5145_v34 = vpop.permute.xlu1 %5144 }
 0x553   : > { %v5659_v44 = vpop.permute.xlu0 %5658  ;;  %v5381_v38 = vsel %vm1031_vm2, %v5349_v26, %v5145_v34 }
 0x554   : > { %5804 = vrot.lane.b32.xlu1 %v10749_v11, %s7188_s29  ;;  %v5990_v12 = vsel %vm380_vm0, %v10427_v20, %v5659_v44 }
 0x555   : > { %5290 = vrot.lane.b32.xlu0 %v10670_v4, %s7189_s16 }
 0x556   : > { %v5913_v3 = vpop.permute.xlu1 %5912 }
 0x557   : > { %v6053_v51 = vsel %vm1064_vm1, %v6021_v62, %v5913_v3  ;;  %v5019_v22 = vpop.permute.xlu0 %5018 }
 0x558   : > { %5164 = vrot.lane.b32.xlu1 %v10532_v55, %s7188_s29  ;;  %v7075_v10 = vpack.c.bf16 %v6053_v51, %v6052_v13  ;;  %v5350_v30 = vsel %vm380_vm0, %v4838_v5, %v5019_v22  ;;  %v10798_v13 = vld [vmem:[%s10915_s8] sm:$0xff]  ;;  %v7190_v22 = vmov 0  }
 0x559   : > { %5678 = vrot.lane.b32.xlu0 %v10664_v49, %s7186_s20 }
 0x55a   : > { %v5273_v8 = vpop.permute.xlu1 %5272  ;;  %7076 = vmatprep.subr.bf16.mxu1 %v7075_v10  ;;  %7168 = vset.pattern.permute.xlu0 %v7190_v22 }
 0x55b   : > { %v5413_v43 = vsel %vm1064_vm1, %v5381_v38, %v5273_v8  ;;  %v5787_v16 = vpop.permute.xlu0 %5786 }
 0x55c   : > { %5932 = vrot.lane.b32.xlu1 %v10766_v2, %s7189_s16  ;;  %v7077_v52 = vpack.c.bf16 %v5413_v43, %v5412_v24  ;;  %v6022_v36 = vsel %vm1031_vm2, %v5990_v12, %v5787_v16  ;;  %v5585_v24 = vld [vmem:[#allocation2 + $0x230] sm:$0xff]  ;;  %v4840_v16 = vld [vmem:[#allocation2 + $0x167] sm:$0xff] }
 0x55d   : > { %5038 = vrot.lane.b32.xlu0 %v10691_v17, %s7186_s20 }
 0x55e   : > { %v5661_v55 = vpop.permute.xlu1 %5660  ;;  %7078 = vmatpush1.bf16.xpose.msra.mxu1 %v7077_v52 }
 0x55f   : > { %v5147_v49 = vpop.permute.xlu0 %5146 }
 0x560   : > { %5292 = vrot.lane.b32.xlu1 %v10699_v25, %s7189_s16  ;;  %v5382_v59 = vsel %vm1031_vm2, %v5350_v30, %v5147_v49  ;;  %v4841_v30 = vld [vmem:[#allocation2 + $0x16f] sm:$0xff] }
 0x561   : > { %5806 = vrot.lane.b32.xlu0 %v5552_v27, %s7188_s29 }
 0x562   : > { %v5021_v48 = vpop.permute.xlu1 %5020 }
 0x563   : > { %v5915_v35 = vpop.permute.xlu0 %5914 }
 0x564   : > { %v6054_v53 = vsel %vm1064_vm1, %v6022_v36, %v5915_v35  ;;  %5680 = vrot.lane.b32.xlu1 %v10666_v7, %s7186_s20 }
 0x565   : > { %5166 = vrot.lane.b32.xlu0 %v10596_v46, %s7188_s29  ;;  %v5991_v46 = vsel %vm380_vm0, %v10456_v42, %v5661_v55  ;;  %v6262_v42 = vcombine.high %v10798_v13, %v10798_v13 }
 0x566   : > { %v5789_v61 = vpop.permute.xlu1 %5788 }
 0x567   : > { %v5275_v20 = vpop.permute.xlu0 %5274  ;;  %v6023_v56 = vsel %vm1031_vm2, %v5991_v46, %v5789_v61  ;;  %6426 = vmatprep.mubr.f32.mxu1 %v6262_v42 }
 0x568   : > { %v5414_v19 = vsel %vm1064_vm1, %v5382_v59, %v5275_v20  ;;  %5040 = vrot.lane.b32.xlu1 %v10720_v58, %s7186_s20 }
 0x569   : > { %5934 = vrot.lane.b32.xlu0 %v5584_v54, %s7189_s16 }
 0x56a   : > { %v5149_v7 = vpop.permute.xlu1 %5148 }
 0x56b   : > { %v5663_v31 = vpop.permute.xlu0 %5662 }
 0x56c   : > { %5808 = vrot.lane.b32.xlu1 %v5553_v50, %s7188_s29  ;;  %v5992_v10 = vsel %vm380_vm0, %v10493_v37, %v5663_v31 }
 0x56d   : > { %5294 = vrot.lane.b32.xlu0 %v10728_v18, %s7189_s16  ;;  %v4839_v18 = vld [vmem:[#allocation2 + $0x14f] sm:$0xff] }
 0x56e   : > { %v5917_v39 = vpop.permute.xlu1 %5916  ;;  %v5351_v32 = vsel %vm380_vm0, %v4839_v18, %v5021_v48 }
 0x56f   : > { %v6055_v33 = vsel %vm1064_vm1, %v6023_v56, %v5917_v39  ;;  %v5023_v0 = vpop.permute.xlu0 %5022  ;;  %v5383_v34 = vsel %vm1031_vm2, %v5351_v32, %v5149_v7 }
 0x570   : > { %5168 = vrot.lane.b32.xlu1 %v10598_v47, %s7188_s29  ;;  %v7079_v29 = vpack.c.bf16 %v6055_v33, %v6054_v53  ;;  %v6510_v47 = vld [vmem:[%s10916_s9] sm:$0xf]  ;;  %v5352_v52 = vsel %vm380_vm0, %v4840_v16, %v5023_v0  ;;  %v4842_v0 = vld [vmem:[#allocation2 + $0x187] sm:$0xff]  ;;  %s6707_s29 = sshll.u32 %s11035_s14, 3 }
 0x571   : > { %6513 = vperm.xlu0 %7168, %v6510_v47   ;;  %s374_s26 = scalar_lea.vmem %s10908_s1, %s6707_s29  ;;  %s379_s30 = scalar_lea.vmem %s10917_s10, %s6707_s29 }
 0x572   : > { %v5277_v44 = vpop.permute.xlu1 %5276  ;;  %7080 = vmatprep.subr.bf16.mxu1 %v7079_v29 }
 0x573   : > { %v5415_v41 = vsel %vm1064_vm1, %v5383_v34, %v5277_v44  ;;  %v5791_v62 = vpop.permute.xlu0 %5790 }
 0x574   : > { %5936 = vrot.lane.b32.xlu1 %v5585_v24, %s7189_s16  ;;  %v7081_v3 = vpack.c.bf16 %v5415_v41, %v5414_v19  ;;  %v6024_v38 = vsel %vm1031_vm2, %v5992_v10, %v5791_v62 }
 0x576   : > { %v5665_v51 = vpop.permute.xlu1 %5664  ;;  %7082 = vmatpush1.bf16.xpose.msra.mxu1 %v7081_v3 }
 0x577   : > { %v5151_v23 = vpop.permute.xlu0 %5150  ;;  %v5993_v37 = vsel %vm380_vm0, %v10522_v28, %v5665_v51 }
 0x578   : > { %5296 = vrot.lane.b32.xlu1 %v10749_v11, %s7189_s16  ;;  %v5384_v27 = vsel %vm1031_vm2, %v5352_v52, %v5151_v23 }
 0x57a   : > { %v5025_v26 = vpop.permute.xlu1 %5024 }
 0x57b   : > { %v5919_v8 = vpop.permute.xlu0 %5918  ;;  %v5353_v54 = vsel %vm380_vm0, %v4841_v30, %v5025_v26 }
 0x57c   : > { %v6056_v43 = vsel %vm1064_vm1, %v6024_v38, %v5919_v8 }
 0x57e   : > { %v5793_v55 = vpop.permute.xlu1 %5792 }
 0x57f   : > { %v5279_v49 = vpop.permute.xlu0 %5278  ;;  %v6025_v36 = vsel %vm1031_vm2, %v5993_v37, %v5793_v55 }
 0x580   : > { %v5416_v12 = vsel %vm1064_vm1, %v5384_v27, %v5279_v49 }
 0x582   : > { %v5153_v48 = vpop.permute.xlu1 %5152 }
 0x583   : > { %v5667_v11 = vpop.permute.xlu0 %5666  ;;  %v5385_v59 = vsel %vm1031_vm2, %v5353_v54, %v5153_v48 }
 0x584   : > { %v5994_v46 = vsel %vm380_vm0, %v10559_v45, %v5667_v11 }
 0x586   : > { %v5921_v35 = vpop.permute.xlu1 %5920 }
 0x587   : > { %v6057_v53 = vsel %vm1064_vm1, %v6025_v36, %v5921_v35  ;;  %v5027_v5 = vpop.permute.xlu0 %5026 }
 0x588   : > { %v7083_v61 = vpack.c.bf16 %v6057_v53, %v6056_v43  ;;  %v5354_v42 = vsel %vm380_vm0, %v4842_v0, %v5027_v5 }
 0x58a   : > { %v5281_v20 = vpop.permute.xlu1 %5280  ;;  %7084 = vmatprep.subr.bf16.mxu1 %v7083_v61 }
 0x58b   : > { %v5417_v19 = vsel %vm1064_vm1, %v5385_v59, %v5281_v20  ;;  %v5795_v50 = vpop.permute.xlu0 %5794 }
 0x58c   : > { %v7085_v7 = vpack.c.bf16 %v5417_v19, %v5416_v12  ;;  %v6026_v39 = vsel %vm1031_vm2, %v5994_v46, %v5795_v50 }
 0x58e   : > { %v5669_v31 = vpop.permute.xlu1 %5668  ;;  %7086 = vmatpush1.bf16.xpose.msra.mxu1 %v7085_v7 }
 0x58f   : > { %v5155_v28 = vpop.permute.xlu0 %5154  ;;  %v5995_v45 = vsel %vm380_vm0, %v10588_v14, %v5669_v31 }
 0x590   : > { %v5386_v29 = vsel %vm1031_vm2, %v5354_v42, %v5155_v28 }
 0x592   : > { %v5029_v56 = vpop.permute.xlu1 %5028 }
 0x593   : > { %v5923_v21 = vpop.permute.xlu0 %5922  ;;  %v5355_v22 = vsel %vm380_vm0, %v10503_v57, %v5029_v56 }
 0x594   : > { %v6058_v33 = vsel %vm1064_vm1, %v6026_v39, %v5923_v21 }
 0x596   : > { %v5797_v18 = vpop.permute.xlu1 %5796 }
 0x597   : > { %v5283_v32 = vpop.permute.xlu0 %5282  ;;  %v6027_v41 = vsel %vm1031_vm2, %v5995_v45, %v5797_v18 }
 0x598   : > { %v5418_v24 = vsel %vm1064_vm1, %v5386_v29, %v5283_v32 }
 0x59a   : > { %v5157_v34 = vpop.permute.xlu1 %5156 }
 0x59b   : > { %v5671_v44 = vpop.permute.xlu0 %5670  ;;  %v5387_v23 = vsel %vm1031_vm2, %v5355_v22, %v5157_v34 }
 0x59c   : > { %v5996_v16 = vsel %vm380_vm0, %v10625_v1, %v5671_v44 }
 0x59e   : > { %v5925_v62 = vpop.permute.xlu1 %5924 }
 0x59f   : > { %v6059_v3 = vsel %vm1064_vm1, %v6027_v41, %v5925_v62  ;;  %v5031_v47 = vpop.permute.xlu0 %5030 }
 0x5a0   : > { %v7087_v51 = vpack.c.bf16 %v6059_v3, %v6058_v33  ;;  %v5356_v49 = vsel %vm380_vm0, %v10536_v40, %v5031_v47 }
 0x5a2   : > { %v5285_v10 = vpop.permute.xlu1 %5284  ;;  %7088 = vmatprep.subr.bf16.mxu1 %v7087_v51 }
 0x5a3   : > { %v5419_v26 = vsel %vm1064_vm1, %v5387_v23, %v5285_v10  ;;  %v5799_v38 = vpop.permute.xlu0 %5798 }
 0x5a4   : > { %v7089_v8 = vpack.c.bf16 %v5419_v26, %v5418_v24  ;;  %v6028_v55 = vsel %vm1031_vm2, %v5996_v16, %v5799_v38 }
 0x5a6   : > { %v5673_v43 = vpop.permute.xlu1 %5672  ;;  %7090 = vmatpush1.bf16.xpose.msra.mxu1 %v7089_v8 }
 0x5a7   : > { %v5159_v14 = vpop.permute.xlu0 %5158  ;;  %v5997_v1 = vsel %vm380_vm0, %v10658_v60, %v5673_v43 }
 0x5a8   : > { %v5388_v48 = vsel %vm1031_vm2, %v5356_v49, %v5159_v14 }
 0x5aa   : > { %v5033_v52 = vpop.permute.xlu1 %5032 }
 0x5ab   : > { %v5927_v27 = vpop.permute.xlu0 %5926  ;;  %v5357_v40 = vsel %vm380_vm0, %v10569_v6, %v5033_v52 }
 0x5ac   : > { %v6060_v57 = vsel %vm1064_vm1, %v6028_v55, %v5927_v27 }
 0x5ae   : > { %v5801_v12 = vpop.permute.xlu1 %5800 }
 0x5af   : > { %v5287_v11 = vpop.permute.xlu0 %5286  ;;  %v6029_v53 = vsel %vm1031_vm2, %v5997_v1, %v5801_v12 }
 0x5b0   : > { %v5420_v37 = vsel %vm1064_vm1, %v5388_v48, %v5287_v11 }
 0x5b2   : > { %v5161_v36 = vpop.permute.xlu1 %5160 }
 0x5b3   : > { %v5675_v35 = vpop.permute.xlu0 %5674  ;;  %v5389_v59 = vsel %vm1031_vm2, %v5357_v40, %v5161_v36 }
 0x5b4   : > { %v5998_v28 = vsel %vm380_vm0, %v10691_v17, %v5675_v35 }
 0x5b6   : > { %v5929_v5 = vpop.permute.xlu1 %5928 }
 0x5b7   : > { %v6061_v30 = vsel %vm1064_vm1, %v6029_v53, %v5929_v5  ;;  %v5035_v61 = vpop.permute.xlu0 %5034  ;;  %v7191_v53 = vmov 839922192  }
 0x5b8   : > { %v7091_v54 = vpack.c.bf16 %v6061_v30, %v6060_v57  ;;  %v5358_v21 = vsel %vm380_vm0, %v10602_v9, %v5035_v61  ;;  %v6516_v5 = vunpack.c.l.s4 %v7191_v53  ;;  %v6518_v30 = vlaneseq }
 0x5ba   : > { %v5289_v20 = vpop.permute.xlu1 %5288  ;;  %7092 = vmatprep.subr.bf16.mxu1 %v7091_v54  ;;  %v6517_v61 = vunpack.c.0.s8 %v6516_v5  ;;  %v6519_v54 = vshrl.u32 %v6518_v30, 7 }
 0x5bb   : > { %v5421_v19 = vsel %vm1064_vm1, %v5389_v59, %v5289_v20  ;;  %v5803_v50 = vpop.permute.xlu0 %5802 }
 0x5bc   : > { %v7093_v7 = vpack.c.bf16 %v5421_v19, %v5420_v37  ;;  %v6030_v56 = vsel %vm1031_vm2, %v5998_v28, %v5803_v50 }
 0x5be   : > { %v5677_v31 = vpop.permute.xlu1 %5676  ;;  %7094 = vmatpush1.bf16.xpose.msra.mxu1 %v7093_v7  ;;  %v6504_v7 = vld [vmem:[%s374_s26] sm:$0xff] }
 0x5bf   : > { %v5163_v60 = vpop.permute.xlu0 %5162  ;;  %v5999_v17 = vsel %vm380_vm0, %v10720_v58, %v5677_v31 }
 0x5c0   : > { %v5390_v0 = vsel %vm1031_vm2, %v5358_v21, %v5163_v60 }
 0x5c2   : > { %v5037_v46 = vpop.permute.xlu1 %5036 }
 0x5c3   : > { %v5931_v39 = vpop.permute.xlu0 %5930  ;;  %v5359_v9 = vsel %vm380_vm0, %v10637_v63, %v5037_v46 }
 0x5c4   : > { %v6062_v6 = vsel %vm1064_vm1, %v6030_v56, %v5931_v39 }
 0x5c6   : > { %v5805_v33 = vpop.permute.xlu1 %5804 }
 0x5c7   : > { %v5291_v42 = vpop.permute.xlu0 %5290  ;;  %v6031_v24 = vsel %vm1031_vm2, %v5999_v17, %v5805_v33 }
 0x5c8   : > { %v5422_v18 = vsel %vm1064_vm1, %v5390_v0, %v5291_v42 }
 0x5ca   : > { %v5165_v29 = vpop.permute.xlu1 %5164 }
 0x5cb   : > { %v5679_v32 = vpop.permute.xlu0 %5678  ;;  %v5391_v62 = vsel %vm1031_vm2, %v5359_v9, %v5165_v29 }
 0x5cc   : > { %v6000_v10 = vsel %vm380_vm0, %v10745_v15, %v5679_v32 }
 0x5ce   : > { %v5933_v34 = vpop.permute.xlu1 %5932 }
 0x5cf   : > { %v6063_v44 = vsel %vm1064_vm1, %v6031_v24, %v5933_v34  ;;  %v5039_v45 = vpop.permute.xlu0 %5038 }
 0x5d0   : > { %v7095_v41 = vpack.c.bf16 %v6063_v44, %v6062_v6  ;;  %v5360_v43 = vsel %vm380_vm0, %v10670_v4, %v5039_v45 }
 0x5d2   : > { %v5293_v3 = vpop.permute.xlu1 %5292  ;;  %7096 = vmatprep.subr.bf16.mxu1 %v7095_v41 }
 0x5d3   : > { %v5423_v47 = vsel %vm1064_vm1, %v5391_v62, %v5293_v3  ;;  %v5807_v51 = vpop.permute.xlu0 %5806 }
 0x5d4   : > { %v7097_v22 = vpack.c.bf16 %v5423_v47, %v5422_v18  ;;  %v6032_v38 = vsel %vm1031_vm2, %v6000_v10, %v5807_v51 }
 0x5d6   : > { %v5681_v23 = vpop.permute.xlu1 %5680  ;;  %7098 = vmatpush1.bf16.xpose.msra.mxu1 %v7097_v22 }
 0x5d7   : > { %v5167_v58 = vpop.permute.xlu0 %5166  ;;  %v6001_v57 = vsel %vm380_vm0, %v10766_v2, %v5681_v23 }
 0x5d8   : > { %v5392_v16 = vsel %vm1031_vm2, %v5360_v43, %v5167_v58 }
 0x5da   : > { %v5041_v26 = vpop.permute.xlu1 %5040 }
 0x5db   : > { %v5935_v8 = vpop.permute.xlu0 %5934  ;;  %v5361_v4 = vsel %vm380_vm0, %v10699_v25, %v5041_v26  ;;  %v6520_v25 = vsub.s32 %v6517_v61, %v6519_v54 }
 0x5dc   : > { %v6064_v63 = vsel %vm1064_vm1, %v6032_v38, %v5935_v8 }
 0x5de   : > { %v5809_v14 = vpop.permute.xlu1 %5808 }
 0x5df   : > { %v5295_v52 = vpop.permute.xlu0 %5294  ;;  %v6033_v15 = vsel %vm1031_vm2, %v6001_v57, %v5809_v14 }
 0x5e0   : > { %v5424_v55 = vsel %vm1064_vm1, %v5392_v16, %v5295_v52 }
 0x5e2   : > { %v5169_v27 = vpop.permute.xlu1 %5168 }
 0x5e3   : > { %v5393_v11 = vsel %vm1031_vm2, %v5361_v4, %v5169_v27 }
 0x5e6   : > { %v5937_v49 = vpop.permute.xlu1 %5936 }
 0x5e7   : > { %v6065_v12 = vsel %vm1064_vm1, %v6033_v15, %v5937_v49 }
 0x5e8   : > { %v7099_v48 = vpack.c.bf16 %v6065_v12, %v6064_v63 }
 0x5ea   : > { %v5297_v37 = vpop.permute.xlu1 %5296  ;;  %7100 = vmatprep.subr.bf16.mxu1 %v7099_v48 }
 0x5eb   : > { %v5425_v36 = vsel %vm1064_vm1, %v5393_v11, %v5297_v37 }
 0x5ec   : > { %v7101_v35 = vpack.c.bf16 %v5425_v36, %v5424_v55 }
 0x5ee   : > { %7102 = vmatpush1.bf16.xpose.msra.mxu1 %v7101_v35 }
 0x5f0   : > { %v6514_v19 = vpop.permute.xlu0 %6513 }
 0x5f1   : > { %v6521_v31 = vrot.slane %v6514_v19, %v6520_v25 }
 0x5f5   : > { %6427 = vmatmul.mubr.f32.vlgmr.msra.gmra.mrb[96].mxu1 %v10798_v13 }
 0x61d   : > { %v6499_v2 = vpop.f32.mrb[96].mxu0 }
 0x61e   : > { %v6501_v1 = vpop.f32.mrb[97].mxu0 }
 0x6c8   : > { %v6428_v40 = vpop.f32.mrb[96].mxu1 }
 0x6c9   : > { %v6500_v59 = vadd.f32 %v6499_v2, %v6428_v40  ;;  %v6430_v20 = vpop.f32.mrb[97].mxu1 }
 0x6ca   : > { %v6502_v50 = vadd.f32 %v6501_v1, %v6430_v20 }
 0x6cc   : > { %v6507_v13 = vcombine.low %v6500_v59, %v6502_v50 }
 0x6ce   : > { %v6509_v60 = vadd.f32 %v6507_v13, %v6504_v7 }
 0x6d0   : > { %v6523_v28 = vadd.f32 %v6521_v31, %v6509_v60 }
 0x6d2   : > { %6524 = vst [vmem:[%s379_s30] sm:$0xff] %v6523_v28 }
 0x6d3 PF: > { %s20_s13 = sadd.s32 1, %s7183_s13  }
 0x6d4   : > { %p17_p4 = scmp.ge.s32.totalorder %s20_s13, 4  }
 0x6d6   :  { %19 = sbr.rel (!%p17_p4) target bundleno = 1 (0x1), region = 96 }

</bundles_post_ra>
